<compile_context>
chip_gen: v7x
topology: tpu7x:2x2x1
jax: 0.10.0
libtpu: 0.0.40
codegen_flags: <defaults>
</compile_context>

<pallas_src>
import functools
import math

import jax
import jax.numpy as jnp
from jax import lax
from jax.experimental import pallas as pl
from jax.experimental.pallas import tpu as pltpu


# ----------------------------------------------------------------------------
# Hardware-aware sizing helpers
# ----------------------------------------------------------------------------

_VMEM_LIMIT = None


def _vmem_limit_bytes():
    """Generation-aware VMEM limit: ~52 MiB on v7x (64 MiB/TC), ~105 MiB on v5e/v6e (128 MiB)."""
    global _VMEM_LIMIT
    if _VMEM_LIMIT is None:
        cap = 64 << 20  # conservative default: v7x's 64 MiB per TensorCore
        try:
            info = pltpu.get_tpu_info()
            cap = int(getattr(info, "vmem_capacity_bytes", cap)) or cap
        except Exception:
            pass
        cap = max(32 << 20, min(cap, 192 << 20))
        _VMEM_LIMIT = min(int(cap * 0.82), 112 << 20)
    return _VMEM_LIMIT


def _pad_to(n, m=128):
    return ((n + m - 1) // m) * m


def _pick_tk(kp, cap=2048):
    """Largest multiple-of-128 divisor of kp that is <= cap (so K tiles exactly cover K)."""
    m = kp // 128
    best = 1
    for d in range(1, m + 1):
        if m % d == 0 and 128 * d <= cap:
            best = d
    return 128 * best


def _row_tile(rows, per_row_bytes, vmem_limit, fixed_bytes=0):
    """Row tile sized from the FULL VMEM footprint (all residents + headroom), multiple of 16."""
    r16 = ((rows + 15) // 16) * 16
    budget = max(vmem_limit - fixed_bytes - (2 << 20), 16 * per_row_bytes)
    tr = max(16, (budget // per_row_bytes) // 16 * 16)
    tr = min(tr, r16)
    # Keep >= 2-4 row steps when possible so v7x's two TensorCores both get pipeline stages.
    steps = min(4, max(1, r16 // 16))
    tr = min(tr, max(16, (((rows + steps - 1) // steps) + 15) // 16 * 16))
    return tr


# ----------------------------------------------------------------------------
# Pallas kernels
# ----------------------------------------------------------------------------

def _mm_kernel(x_ref, w_ref, scale_ref, shift_ref, o_ref, acc_ref, *, relu):
    k = pl.program_id(1)

    @pl.when(k == 0)
    def _():
        acc_ref[...] = jnp.zeros_like(acc_ref)

    acc_ref[...] += jnp.dot(x_ref[...].astype(w_ref.dtype), w_ref[...],
                            preferred_element_type=jnp.float32)

    @pl.when(k == pl.num_programs(1) - 1)
    def _():
        y = acc_ref[...] * scale_ref[...] + shift_ref[...]
        if relu:
            y = jnp.maximum(y, 0.0)
        o_ref[...] = y.astype(o_ref.dtype)


def _mm_res_kernel(x_ref, w_ref, scale_ref, shift_ref, res_ref, o_ref, acc_ref, *, relu):
    k = pl.program_id(1)

    @pl.when(k == 0)
    def _():
        acc_ref[...] = jnp.zeros_like(acc_ref)

    acc_ref[...] += jnp.dot(x_ref[...].astype(w_ref.dtype), w_ref[...],
                            preferred_element_type=jnp.float32)

    @pl.when(k == pl.num_programs(1) - 1)
    def _():
        y = acc_ref[...] * scale_ref[...] + shift_ref[...] + res_ref[...].astype(jnp.float32)
        if relu:
            y = jnp.maximum(y, 0.0)
        o_ref[...] = y.astype(o_ref.dtype)


def _maxpool_kernel(x_ref, o_ref):
    # x_ref: (9, TR, C) stacked taps; elementwise math in f32 (no bf16 VPU on v5e).
    o_ref[...] = jnp.max(x_ref[...].astype(jnp.float32), axis=0).astype(o_ref.dtype)


# ----------------------------------------------------------------------------
# Pallas-backed ops
# ----------------------------------------------------------------------------

def fused_matmul(x2d, w2d, scale, shift, *, relu, residual=None, out_dtype=None):
    """out = act( x2d @ w2d * scale + shift [+ residual] ), lane-dense padded output."""
    R, Kx = x2d.shape
    Kp, Coutp = w2d.shape
    assert Kx == Kp and Kp % 128 == 0 and Coutp % 128 == 0
    out_dtype = out_dtype or x2d.dtype

    TK = _pick_tk(Kp)
    vmem_limit = _vmem_limit_bytes()
    x_b = x2d.dtype.itemsize
    w_b = w2d.dtype.itemsize
    o_b = jnp.dtype(out_dtype).itemsize
    per_row = 2 * TK * x_b + 2 * Coutp * o_b + Coutp * 4          # x dbuf + out dbuf + f32 acc
    if residual is not None:
        per_row += 2 * Coutp * residual.dtype.itemsize            # residual dbuf
    fixed = 2 * TK * Coutp * w_b + 4 * Coutp * 4                  # weight dbuf + scale/shift
    TR = _row_tile(R, per_row, vmem_limit, fixed)

    grid = (pl.cdiv(R, TR), Kp // TK)

    in_specs = [
        pl.BlockSpec((TR, TK), lambda i, k: (i, k)),
        pl.BlockSpec((TK, Coutp), lambda i, k: (k, 0)),
        pl.BlockSpec((1, Coutp), lambda i, k: (0, 0)),
        pl.BlockSpec((1, Coutp), lambda i, k: (0, 0)),
    ]
    args = [x2d, w2d, scale.reshape(1, Coutp), shift.reshape(1, Coutp)]
    if residual is not None:
        in_specs.append(pl.BlockSpec((TR, Coutp), lambda i, k: (i, 0)))
        args.append(residual)
        kernel = functools.partial(_mm_res_kernel, relu=relu)
    else:
        kernel = functools.partial(_mm_kernel, relu=relu)

    bytes_accessed = (x2d.size * x_b + w2d.size * w_b + R * Coutp * o_b
                      + (residual.size * residual.dtype.itemsize if residual is not None else 0))
    cost = pl.CostEstimate(flops=2 * R * Kp * Coutp, transcendentals=0,
                           bytes_accessed=int(bytes_accessed))

    return pl.pallas_call(
        kernel,
        out_shape=jax.ShapeDtypeStruct((R, Coutp), out_dtype),
        grid=grid,
        in_specs=in_specs,
        out_specs=pl.BlockSpec((TR, Coutp), lambda i, k: (i, 0)),
        scratch_shapes=[pltpu.VMEM((TR, Coutp), jnp.float32)],
        compiler_params=pltpu.CompilerParams(
            dimension_semantics=("parallel", "arbitrary"),
            vmem_limit_bytes=vmem_limit),
        cost_estimate=cost,
    )(*args)


def _im2col(x_nhwc, kh, kw, stride, pad):
    N, H, W, C = x_nhwc.shape
    Ho = (H + 2 * pad - kh) // stride + 1
    Wo = (W + 2 * pad - kw) // stride + 1
    xp = jnp.pad(x_nhwc, ((0, 0), (pad, pad), (pad, pad), (0, 0)))
    taps = [xp[:, i:i + stride * (Ho - 1) + 1:stride, j:j + stride * (Wo - 1) + 1:stride, :]
            for i in range(kh) for j in range(kw)]
    patches = jnp.concatenate(taps, axis=-1) if len(taps) > 1 else taps[0]
    return patches.reshape(N * Ho * Wo, kh * kw * C), (N, Ho, Wo)


def conv_bn_act(x_nhwc, w2d, scale, shift, *, ksize, stride, pad, relu, residual_nhwc=None):
    patches, (N, Ho, Wo) = _im2col(x_nhwc, ksize, ksize, stride, pad)
    Kp, Coutp = w2d.shape
    if Kp > patches.shape[1]:
        patches = jnp.pad(patches, ((0, 0), (0, Kp - patches.shape[1])))
    res2d = None
    if residual_nhwc is not None:
        res2d = residual_nhwc.reshape(N * Ho * Wo, Coutp)
    out2d = fused_matmul(patches, w2d, scale, shift, relu=relu, residual=res2d,
                         out_dtype=x_nhwc.dtype)
    return out2d.reshape(N, Ho, Wo, Coutp)


def maxpool_3x3_s2_p1(x_nhwc):
    N, H, W, C = x_nhwc.shape
    Ho = (H + 2 - 3) // 2 + 1
    Wo = (W + 2 - 3) // 2 + 1
    # Zero spatial padding is exact here: the input is post-ReLU (>= 0) and every 3x3 window
    # contains at least one real pixel, so 0-padding == -inf padding for the max.
    xp = jnp.pad(x_nhwc, ((0, 0), (1, 1), (1, 1), (0, 0)))
    taps = [xp[:, i:i + 2 * (Ho - 1) + 1:2, j:j + 2 * (Wo - 1) + 1:2, :]
            for i in range(3) for j in range(3)]
    R = N * Ho * Wo
    stacked = jnp.stack(taps, axis=0).reshape(9, R, C)

    vmem_limit = _vmem_limit_bytes()
    per_row = C * x_nhwc.dtype.itemsize * (2 * 9 + 2)   # stacked input dbuf + out dbuf
    tr = _row_tile(R, per_row, vmem_limit)

    out = pl.pallas_call(
        _maxpool_kernel,
        out_shape=jax.ShapeDtypeStruct((R, C), x_nhwc.dtype),
        grid=(pl.cdiv(R, tr),),
        in_specs=[pl.BlockSpec((9, tr, C), lambda i: (0, i, 0))],
        out_specs=pl.BlockSpec((tr, C), lambda i: (i, 0)),
        compiler_params=pltpu.CompilerParams(
            dimension_semantics=("parallel",),
            vmem_limit_bytes=vmem_limit),
    )(stacked)
    return out.reshape(N, Ho, Wo, C)


# ----------------------------------------------------------------------------
# Parameter preparation (BN folding, channel padding, K-major weights)
# ----------------------------------------------------------------------------

def _fold_bn(gamma, beta, mean, var, eps=1e-5):
    inv = lax.rsqrt(var.astype(jnp.float32) + eps)
    scale = gamma.astype(jnp.float32) * inv
    shift = beta.astype(jnp.float32) - mean.astype(jnp.float32) * scale
    return scale, shift


def _pad_vec(v, n):
    v = v.astype(jnp.float32)
    return jnp.pad(v, (0, n - v.shape[0]))


def _prep_conv_weight(w_oihw, cin_pad, cout_pad, kp, dtype):
    Cout, Cin, KH, KW = w_oihw.shape
    w = jnp.transpose(w_oihw, (2, 3, 1, 0)).astype(jnp.float32)      # (KH, KW, Cin, Cout)
    w = jnp.pad(w, ((0, 0), (0, 0), (0, cin_pad - Cin), (0, cout_pad - Cout)))
    w2d = w.reshape(KH * KW * cin_pad, cout_pad)
    if kp > w2d.shape[0]:
        w2d = jnp.pad(w2d, ((0, kp - w2d.shape[0]), (0, 0)))
    return w2d.astype(dtype)


def _conv_out(n, k, s, p):
    return (n + 2 * p - k) // s + 1


def prepare_params(raw, layers, input_hw, mxu_dtype, eps=1e-5):
    H, W = input_hw

    def fold(bnp):
        return _fold_bn(bnp['gamma'], bnp['beta'], bnp['mean'], bnp['var'], eps)

    prep = {}
    cout_p = _pad_to(64)
    s, sh = fold(raw['stem']['bn'])
    prep['stem'] = dict(
        w=_prep_conv_weight(raw['stem']['conv'], 3, cout_p, _pad_to(7 * 7 * 3), mxu_dtype),
        scale=_pad_vec(s, cout_p), shift=_pad_vec(sh, cout_p))
    h, w_sp = _conv_out(H, 7, 2, 3), _conv_out(W, 7, 2, 3)
    h, w_sp = _conv_out(h, 3, 2, 1), _conv_out(w_sp, 3, 2, 1)

    prep['groups'] = []
    for gi, group in enumerate(raw['groups']):
        blks = []
        for bi, blk in enumerate(group):
            stride = (1 if gi == 0 else 2) if bi == 0 else 1
            cout, c_in = blk['conv1'].shape[0], blk['conv1'].shape[1]
            cin_p, co_p = _pad_to(c_in), _pad_to(cout)
            s1, sh1 = fold(blk['bn1'])
            s2, sh2 = fold(blk['bn2'])
            e = dict(
                conv1=dict(w=_prep_conv_weight(blk['conv1'], cin_p, co_p, 9 * cin_p, mxu_dtype),
                           scale=_pad_vec(s1, co_p), shift=_pad_vec(sh1, co_p)),
                conv2=dict(w=_prep_conv_weight(blk['conv2'], co_p, co_p, 9 * co_p, mxu_dtype),
                           scale=_pad_vec(s2, co_p), shift=_pad_vec(sh2, co_p)))
            if blk['shortcut'] is not None:
                ss, ssh = fold(blk['shortcut']['bn'])
                e['shortcut'] = dict(
                    w=_prep_conv_weight(blk['shortcut']['conv'], cin_p, co_p, cin_p, mxu_dtype),
                    scale=_pad_vec(ss, co_p), shift=_pad_vec(ssh, co_p))
            else:
                e['shortcut'] = None
            blks.append(e)
            h, w_sp = _conv_out(h, 3, stride, 1), _conv_out(w_sp, 3, stride, 1)
        prep['groups'].append(blks)

    feat = 64 * 2 ** len(layers)
    cp = _pad_to(feat)
    num_classes = raw['fc']['w'].shape[0]
    ncp = _pad_to(num_classes)
    hw = h * w_sp
    wt = jnp.pad(jnp.transpose(raw['fc']['w']).astype(jnp.float32),
                 ((0, cp - feat), (0, ncp - num_classes)))
    # Adaptive-avg-pool(1,1) folded into the FC weight: tile W/HW over the HW positions.
    prep['fc'] = dict(w=jnp.tile(wt / hw, (hw, 1)).astype(mxu_dtype),
                      scale=jnp.ones((ncp,), jnp.float32),
                      shift=jnp.pad(raw['fc']['b'].astype(jnp.float32), (0, ncp - num_classes)))
    return prep


# ----------------------------------------------------------------------------
# Forward pass (Pallas) and pure-JAX reference
# ----------------------------------------------------------------------------

def custom_resnet_forward(x_nchw, prep, *, layers, num_classes, act_dtype):
    x = jnp.transpose(x_nchw, (0, 2, 3, 1)).astype(act_dtype)        # NCHW -> NHWC once

    st = prep['stem']
    x = conv_bn_act(x, st['w'], st['scale'], st['shift'], ksize=7, stride=2, pad=3, relu=True)
    x = maxpool_3x3_s2_p1(x)

    for gi, nb in enumerate(layers):
        for bi in range(nb):
            blk = prep['groups'][gi][bi]
            stride = (1 if gi == 0 else 2) if bi == 0 else 1
            if blk['shortcut'] is not None:
                sc = conv_bn_act(x, blk['shortcut']['w'], blk['shortcut']['scale'],
                                 blk['shortcut']['shift'], ksize=1, stride=stride, pad=0,
                                 relu=False)
            else:
                sc = x
            y = conv_bn_act(x, blk['conv1']['w'], blk['conv1']['scale'], blk['conv1']['shift'],
                            ksize=3, stride=stride, pad=1, relu=True)
            x = conv_bn_act(y, blk['conv2']['w'], blk['conv2']['scale'], blk['conv2']['shift'],
                            ksize=3, stride=1, pad=1, relu=True, residual_nhwc=sc)

    N, Ho, Wo, Cp = x.shape
    feat = x.reshape(N, Ho * Wo * Cp)                                # row-major, free
    rp = max(16, ((N + 15) // 16) * 16)
    feat = jnp.pad(feat, ((0, rp - N), (0, 0)))
    logits = fused_matmul(feat, prep['fc']['w'], prep['fc']['scale'], prep['fc']['shift'],
                          relu=False, out_dtype=jnp.float32)
    return logits[:N, :num_classes]


def custom_resnet_ref(x, params, eps=1e-5):
    def conv(x, w, stride, pad):
        return lax.conv_general_dilated(x, w, (stride, stride), ((pad, pad), (pad, pad)),
                                        dimension_numbers=('NCHW', 'OIHW', 'NCHW'))

    def bn(x, p):
        inv = 1.0 / jnp.sqrt(p['var'] + eps)
        return ((x - p['mean'][None, :, None, None]) * inv[None, :, None, None]
                * p['gamma'][None, :, None, None] + p['beta'][None, :, None, None])

    x = jnp.maximum(bn(conv(x, params['stem']['conv'], 2, 3), params['stem']['bn']), 0.0)
    x = lax.reduce_window(x, -jnp.inf, lax.max, (1, 1, 3, 3), (1, 1, 2, 2),
                          ((0, 0), (0, 0), (1, 1), (1, 1)))
    for gi, group in enumerate(params['groups']):
        for bi, blk in enumerate(group):
            stride = (1 if gi == 0 else 2) if bi == 0 else 1
            if blk['shortcut'] is not None:
                sc = bn(conv(x, blk['shortcut']['conv'], stride, 0), blk['shortcut']['bn'])
            else:
                sc = x
            y = jnp.maximum(bn(conv(x, blk['conv1'], stride, 1), blk['bn1']), 0.0)
            y = bn(conv(y, blk['conv2'], 1, 1), blk['bn2'])
            x = jnp.maximum(y + sc, 0.0)
    feat = jnp.mean(x, axis=(2, 3))
    return feat @ params['fc']['w'].T + params['fc']['b']


def init_params(key, layers, num_classes):
    keys = iter(jax.random.split(key, 64))

    def conv(cout, cin, k):
        fan_in = cin * k * k
        return jax.random.normal(next(keys), (cout, cin, k, k), jnp.float32) * math.sqrt(2.0 / fan_in)

    def bn(c):
        return dict(
            gamma=1.0 + 0.1 * jax.random.normal(next(keys), (c,), jnp.float32),
            beta=0.1 * jax.random.normal(next(keys), (c,), jnp.float32),
            mean=0.1 * jax.random.normal(next(keys), (c,), jnp.float32),
            var=jax.random.uniform(next(keys), (c,), jnp.float32, minval=0.5, maxval=1.5))

    params = dict(stem=dict(conv=conv(64, 3, 7), bn=bn(64)), groups=[])
    for i, nb in enumerate(layers):
        cin, cout = 64 * 2 ** i, 64 * 2 ** (i + 1)
        group = []
        for b in range(nb):
            c_in = cin if b == 0 else cout
            blk = dict(conv1=conv(cout, c_in, 3), bn1=bn(cout),
                       conv2=conv(cout, cout, 3), bn2=bn(cout),
                       shortcut=(dict(conv=conv(cout, c_in, 1), bn=bn(cout)) if b == 0 else None))
            group.append(blk)
        params['groups'].append(group)
    feat = 64 * 2 ** len(layers)
    params['fc'] = dict(
        w=jax.random.normal(next(keys), (num_classes, feat), jnp.float32) / math.sqrt(feat),
        b=0.1 * jax.random.normal(next(keys), (num_classes,), jnp.float32))
    return params


# ----------------------------------------------------------------------------
# Self-test
# ----------------------------------------------------------------------------

if __name__ == "__main__":
    key = jax.random.PRNGKey(0)
    kx, kp = jax.random.split(key)

    layers = [1, 1]
    num_classes = 10
    N, H, W = 2, 32, 32

    x = jax.random.normal(kx, (N, 3, H, W), jnp.float32)
    raw = init_params(kp, layers, num_classes)

    ref = custom_resnet_ref(x, raw)
    ref_scale = float(jnp.max(jnp.abs(ref))) + 1e-3

    # f32 path (tolerance is loose-ish because Mosaic's default f32 matmul precision may use
    # bf16 MXU passes; the check still catches any structural/layout/fold bug).
    prep_f32 = prepare_params(raw, layers, (H, W), jnp.float32)
    fwd_f32 = jax.jit(functools.partial(custom_resnet_forward, layers=layers,
                                        num_classes=num_classes, act_dtype=jnp.float32))
    out_f32 = jax.block_until_ready(fwd_f32(x, prep_f32))
    assert out_f32.shape == (N, num_classes), out_f32.shape
    err_f32 = float(jnp.max(jnp.abs(out_f32 - ref)))
    assert err_f32 <= 0.08 * ref_scale + 0.02, (err_f32, ref_scale)

    # bf16 production path: bf16 activations + bf16 MXU operands, f32 accumulation/epilogue.
    prep_bf16 = prepare_params(raw, layers, (H, W), jnp.bfloat16)
    fwd_bf16 = jax.jit(functools.partial(custom_resnet_forward, layers=layers,
                                         num_classes=num_classes, act_dtype=jnp.bfloat16))
    out_bf16 = jax.block_until_ready(fwd_bf16(x, prep_bf16))
    assert out_bf16.shape == (N, num_classes), out_bf16.shape
    err_bf16 = float(jnp.max(jnp.abs(out_bf16 - ref)))
    assert err_bf16 <= 0.15 * ref_scale + 0.02, (err_bf16, ref_scale)

    print("KERNEL_OK")
</pallas_src>

<mosaic_0001>
module attributes {stable_mosaic.version = 11 : i64} {
  func.func @_mm_kernel(%arg0: i32, %arg1: i32, %arg2: memref<128x256xf32, #tpu.memory_space<vmem>>, %arg3: memref<256x128xf32, #tpu.memory_space<vmem>>, %arg4: memref<1x128xf32, #tpu.memory_space<vmem>>, %arg5: memref<1x128xf32, #tpu.memory_space<vmem>>, %arg6: memref<128x128xf32, #tpu.memory_space<vmem>>, %arg7: memref<128x128xf32, #tpu.memory_space<vmem>>) attributes {dimension_semantics = [#tpu.dimension_semantics<parallel>, #tpu.dimension_semantics<arbitrary>], iteration_bounds = array<i64: 4, 1>, scalar_prefetch = 0 : i64, scratch_operands = 1 : i64, tpu.core_type = #tpu.core_type<tc>, window_params = [{transform_indices = @transform_0, window_bounds = array<i64: 128, 256>}, {transform_indices = @transform_1, window_bounds = array<i64: 256, 128>}, {pipeline_mode = #tpu.pipeline_mode<synchronous>, transform_indices = @transform_2, window_bounds = array<i64: 1, 128>}, {pipeline_mode = #tpu.pipeline_mode<synchronous>, transform_indices = @transform_3, window_bounds = array<i64: 1, 128>}, {transform_indices = @transform_4, window_bounds = array<i64: 128, 128>}]} {
    %c0_i32 = arith.constant 0 : i32
    %0 = arith.cmpi eq, %arg1, %c0_i32 : i32
    %1 = arith.extui %0 : i1 to i32
    %c0_i32_0 = arith.constant 0 : i32
    %2 = arith.cmpi ne, %1, %c0_i32_0 : i32
    scf.if %2 {
      %cst_10 = arith.constant 0.000000e+00 : f32
      %12 = vector.broadcast %cst_10 : f32 to vector<128x128xf32>
      %c0_11 = arith.constant 0 : index
      %c0_12 = arith.constant 0 : index
      %13 = vector.load %arg7[%c0_11, %c0_12] : memref<128x128xf32, #tpu.memory_space<vmem>>, vector<128x128xf32>
      tpu.vector_store %arg7[%c0_11, %c0_12], %12 {strides = array<i32>} : memref<128x128xf32, #tpu.memory_space<vmem>>, vector<128x128xf32>,
    } else {
    }
    %c0 = arith.constant 0 : index
    %c0_1 = arith.constant 0 : index
    %3 = vector.load %arg7[%c0, %c0_1] : memref<128x128xf32, #tpu.memory_space<vmem>>, vector<128x128xf32>
    %c0_2 = arith.constant 0 : index
    %c0_3 = arith.constant 0 : index
    %4 = vector.load %arg2[%c0_2, %c0_3] : memref<128x256xf32, #tpu.memory_space<vmem>>, vector<128x256xf32>
    %c0_4 = arith.constant 0 : index
    %c0_5 = arith.constant 0 : index
    %5 = vector.load %arg3[%c0_4, %c0_5] : memref<256x128xf32, #tpu.memory_space<vmem>>, vector<256x128xf32>
    %cst = arith.constant dense<0.000000e+00> : vector<128x128xf32>
    %6 = tpu.matmul %4, %5, %cst {dimension_numbers = #tpu.dot_dimension_numbers<[1], [0], [0], [1], [0, 0, 1, 1], [], []>} : vector<128x256xf32>, vector<256x128xf32>, vector<128x128xf32> -> vector<128x128xf32>
    %7 = arith.addf %3, %6 : vector<128x128xf32>
    %c0_6 = arith.constant 0 : index
    %c0_7 = arith.constant 0 : index
    %8 = vector.load %arg7[%c0_6, %c0_7] : memref<128x128xf32, #tpu.memory_space<vmem>>, vector<128x128xf32>
    tpu.vector_store %arg7[%c0_6, %c0_7], %7 {strides = array<i32>} : memref<128x128xf32, #tpu.memory_space<vmem>>, vector<128x128xf32>,
    %c0_i32_8 = arith.constant 0 : i32
    %9 = arith.cmpi eq, %arg1, %c0_i32_8 : i32
    %10 = arith.extui %9 : i1 to i32
    %c0_i32_9 = arith.constant 0 : i32
    %11 = arith.cmpi ne, %10, %c0_i32_9 : i32
    scf.if %11 {
      %c0_10 = arith.constant 0 : index
      %c0_11 = arith.constant 0 : index
      %12 = vector.load %arg7[%c0_10, %c0_11] : memref<128x128xf32, #tpu.memory_space<vmem>>, vector<128x128xf32>
      %c0_12 = arith.constant 0 : index
      %c0_13 = arith.constant 0 : index
      %13 = vector.load %arg4[%c0_12, %c0_13] : memref<1x128xf32, #tpu.memory_space<vmem>>, vector<1x128xf32>
      %14 = vector.broadcast %13 : vector<1x128xf32> to vector<128x128xf32>
      %15 = arith.mulf %12, %14 : vector<128x128xf32>
      %c0_14 = arith.constant 0 : index
      %c0_15 = arith.constant 0 : index
      %16 = vector.load %arg5[%c0_14, %c0_15] : memref<1x128xf32, #tpu.memory_space<vmem>>, vector<1x128xf32>
      %17 = vector.broadcast %16 : vector<1x128xf32> to vector<128x128xf32>
      %18 = arith.addf %15, %17 : vector<128x128xf32>
      %cst_16 = arith.constant 0.000000e+00 : f32
      %19 = vector.broadcast %cst_16 : f32 to vector<128x128xf32>
      %20 = arith.maximumf %18, %19 : vector<128x128xf32>
      %c0_17 = arith.constant 0 : index
      %c0_18 = arith.constant 0 : index
      %21 = vector.load %arg6[%c0_17, %c0_18] : memref<128x128xf32, #tpu.memory_space<vmem>>, vector<128x128xf32>
      tpu.vector_store %arg6[%c0_17, %c0_18], %20 {strides = array<i32>} : memref<128x128xf32, #tpu.memory_space<vmem>>, vector<128x128xf32>,
    } else {
    }
    return
  }
  func.func @transform_0(%arg0: i32, %arg1: i32) -> (i32, i32) {
    %c0_i32 = arith.constant 0 : i32
    return %arg0, %arg1 : i32, i32
  }
  func.func @transform_1(%arg0: i32, %arg1: i32) -> (i32, i32) {
    %c0_i32 = arith.constant 0 : i32
    %c0_i32_0 = arith.constant 0 : i32
    return %arg1, %c0_i32 : i32, i32
  }
  func.func @transform_2(%arg0: i32, %arg1: i32) -> (i32, i32) {
    %c0_i32 = arith.constant 0 : i32
    %c0_i32_0 = arith.constant 0 : i32
    %c0_i32_1 = arith.constant 0 : i32
    return %c0_i32, %c0_i32_0 : i32, i32
  }
  func.func @transform_3(%arg0: i32, %arg1: i32) -> (i32, i32) {
    %c0_i32 = arith.constant 0 : i32
    %c0_i32_0 = arith.constant 0 : i32
    %c0_i32_1 = arith.constant 0 : i32
    return %c0_i32, %c0_i32_0 : i32, i32
  }
  func.func @transform_4(%arg0: i32, %arg1: i32) -> (i32, i32) {
    %c0_i32 = arith.constant 0 : i32
    %c0_i32_0 = arith.constant 0 : i32
    return %arg0, %c0_i32 : i32, i32
  }
}

module attributes {stable_mosaic.version = 11 : i64} {
  func.func @_mm_kernel(%arg0: i32, %arg1: i32, %arg2: memref<32x128xf32, #tpu.memory_space<vmem>>, %arg3: memref<128x128xf32, #tpu.memory_space<vmem>>, %arg4: memref<1x128xf32, #tpu.memory_space<vmem>>, %arg5: memref<1x128xf32, #tpu.memory_space<vmem>>, %arg6: memref<32x128xf32, #tpu.memory_space<vmem>>, %arg7: memref<32x128xf32, #tpu.memory_space<vmem>>) attributes {dimension_semantics = [#tpu.dimension_semantics<parallel>, #tpu.dimension_semantics<arbitrary>], iteration_bounds = array<i64: 4, 1>, scalar_prefetch = 0 : i64, scratch_operands = 1 : i64, tpu.core_type = #tpu.core_type<tc>, window_params = [{transform_indices = @transform_0, window_bounds = array<i64: 32, 128>}, {transform_indices = @transform_1, window_bounds = array<i64: 128, 128>}, {pipeline_mode = #tpu.pipeline_mode<synchronous>, transform_indices = @transform_2, window_bounds = array<i64: 1, 128>}, {pipeline_mode = #tpu.pipeline_mode<synchronous>, transform_indices = @transform_3, window_bounds = array<i64: 1, 128>}, {transform_indices = @transform_4, window_bounds = array<i64: 32, 128>}]} {
    %c0_i32 = arith.constant 0 : i32
    %0 = arith.cmpi eq, %arg1, %c0_i32 : i32
    %1 = arith.extui %0 : i1 to i32
    %c0_i32_0 = arith.constant 0 : i32
    %2 = arith.cmpi ne, %1, %c0_i32_0 : i32
    scf.if %2 {
      %cst_10 = arith.constant 0.000000e+00 : f32
      %12 = vector.broadcast %cst_10 : f32 to vector<32x128xf32>
      %c0_11 = arith.constant 0 : index
      %c0_12 = arith.constant 0 : index
      %13 = vector.load %arg7[%c0_11, %c0_12] : memref<32x128xf32, #tpu.memory_space<vmem>>, vector<32x128xf32>
      tpu.vector_store %arg7[%c0_11, %c0_12], %12 {strides = array<i32>} : memref<32x128xf32, #tpu.memory_space<vmem>>, vector<32x128xf32>,
    } else {
    }
    %c0 = arith.constant 0 : index
    %c0_1 = arith.constant 0 : index
    %3 = vector.load %arg7[%c0, %c0_1] : memref<32x128xf32, #tpu.memory_space<vmem>>, vector<32x128xf32>
    %c0_2 = arith.constant 0 : index
    %c0_3 = arith.constant 0 : index
    %4 = vector.load %arg2[%c0_2, %c0_3] : memref<32x128xf32, #tpu.memory_space<vmem>>, vector<32x128xf32>
    %c0_4 = arith.constant 0 : index
    %c0_5 = arith.constant 0 : index
    %5 = vector.load %arg3[%c0_4, %c0_5] : memref<128x128xf32, #tpu.memory_space<vmem>>, vector<128x128xf32>
    %cst = arith.constant dense<0.000000e+00> : vector<32x128xf32>
    %6 = tpu.matmul %4, %5, %cst {dimension_numbers = #tpu.dot_dimension_numbers<[1], [0], [0], [1], [0, 0, 1, 1], [], []>} : vector<32x128xf32>, vector<128x128xf32>, vector<32x128xf32> -> vector<32x128xf32>
    %7 = arith.addf %3, %6 : vector<32x128xf32>
    %c0_6 = arith.constant 0 : index
    %c0_7 = arith.constant 0 : index
    %8 = vector.load %arg7[%c0_6, %c0_7] : memref<32x128xf32, #tpu.memory_space<vmem>>, vector<32x128xf32>
    tpu.vector_store %arg7[%c0_6, %c0_7], %7 {strides = array<i32>} : memref<32x128xf32, #tpu.memory_space<vmem>>, vector<32x128xf32>,
    %c0_i32_8 = arith.constant 0 : i32
    %9 = arith.cmpi eq, %arg1, %c0_i32_8 : i32
    %10 = arith.extui %9 : i1 to i32
    %c0_i32_9 = arith.constant 0 : i32
    %11 = arith.cmpi ne, %10, %c0_i32_9 : i32
    scf.if %11 {
      %c0_10 = arith.constant 0 : index
      %c0_11 = arith.constant 0 : index
      %12 = vector.load %arg7[%c0_10, %c0_11] : memref<32x128xf32, #tpu.memory_space<vmem>>, vector<32x128xf32>
      %c0_12 = arith.constant 0 : index
      %c0_13 = arith.constant 0 : index
      %13 = vector.load %arg4[%c0_12, %c0_13] : memref<1x128xf32, #tpu.memory_space<vmem>>, vector<1x128xf32>
      %14 = vector.broadcast %13 : vector<1x128xf32> to vector<32x128xf32>
      %15 = arith.mulf %12, %14 : vector<32x128xf32>
      %c0_14 = arith.constant 0 : index
      %c0_15 = arith.constant 0 : index
      %16 = vector.load %arg5[%c0_14, %c0_15] : memref<1x128xf32, #tpu.memory_space<vmem>>, vector<1x128xf32>
      %17 = vector.broadcast %16 : vector<1x128xf32> to vector<32x128xf32>
      %18 = arith.addf %15, %17 : vector<32x128xf32>
      %c0_16 = arith.constant 0 : index
      %c0_17 = arith.constant 0 : index
      %19 = vector.load %arg6[%c0_16, %c0_17] : memref<32x128xf32, #tpu.memory_space<vmem>>, vector<32x128xf32>
      tpu.vector_store %arg6[%c0_16, %c0_17], %18 {strides = array<i32>} : memref<32x128xf32, #tpu.memory_space<vmem>>, vector<32x128xf32>,
    } else {
    }
    return
  }
  func.func @transform_0(%arg0: i32, %arg1: i32) -> (i32, i32) {
    %c0_i32 = arith.constant 0 : i32
    return %arg0, %arg1 : i32, i32
  }
  func.func @transform_1(%arg0: i32, %arg1: i32) -> (i32, i32) {
    %c0_i32 = arith.constant 0 : i32
    %c0_i32_0 = arith.constant 0 : i32
    return %arg1, %c0_i32 : i32, i32
  }
  func.func @transform_2(%arg0: i32, %arg1: i32) -> (i32, i32) {
    %c0_i32 = arith.constant 0 : i32
    %c0_i32_0 = arith.constant 0 : i32
    %c0_i32_1 = arith.constant 0 : i32
    return %c0_i32, %c0_i32_0 : i32, i32
  }
  func.func @transform_3(%arg0: i32, %arg1: i32) -> (i32, i32) {
    %c0_i32 = arith.constant 0 : i32
    %c0_i32_0 = arith.constant 0 : i32
    %c0_i32_1 = arith.constant 0 : i32
    return %c0_i32, %c0_i32_0 : i32, i32
  }
  func.func @transform_4(%arg0: i32, %arg1: i32) -> (i32, i32) {
    %c0_i32 = arith.constant 0 : i32
    %c0_i32_0 = arith.constant 0 : i32
    return %arg0, %c0_i32 : i32, i32
  }
}

module attributes {stable_mosaic.version = 11 : i64} {
  func.func @_maxpool_kernel(%arg0: i32, %arg1: memref<9x32x128xf32, #tpu.memory_space<vmem>>, %arg2: memref<32x128xf32, #tpu.memory_space<vmem>>) attributes {dimension_semantics = [#tpu.dimension_semantics<parallel>], iteration_bounds = array<i64: 4>, scalar_prefetch = 0 : i64, scratch_operands = 0 : i64, tpu.core_type = #tpu.core_type<tc>, window_params = [{transform_indices = @transform_0, window_bounds = array<i64: 9, 32, 128>}, {transform_indices = @transform_1, window_bounds = array<i64: 32, 128>}]} {
    %c0 = arith.constant 0 : index
    %c0_0 = arith.constant 0 : index
    %c0_1 = arith.constant 0 : index
    %0 = vector.load %arg1[%c0, %c0_0, %c0_1] : memref<9x32x128xf32, #tpu.memory_space<vmem>>, vector<9x32x128xf32>
    %cst = arith.constant dense<0xFF800000> : vector<32x128xf32>
    %1 = vector.multi_reduction <maximumf>, %0, %cst [0] : vector<9x32x128xf32> to vector<32x128xf32>
    %c0_2 = arith.constant 0 : index
    %c0_3 = arith.constant 0 : index
    %2 = vector.load %arg2[%c0_2, %c0_3] : memref<32x128xf32, #tpu.memory_space<vmem>>, vector<32x128xf32>
    tpu.vector_store %arg2[%c0_2, %c0_3], %1 {strides = array<i32>} : memref<32x128xf32, #tpu.memory_space<vmem>>, vector<32x128xf32>,
    return
  }
  func.func @transform_0(%arg0: i32) -> (i32, i32, i32) {
    %c0_i32 = arith.constant 0 : i32
    %c0_i32_0 = arith.constant 0 : i32
    %c0_i32_1 = arith.constant 0 : i32
    return %c0_i32, %arg0, %c0_i32_0 : i32, i32, i32
  }
  func.func @transform_1(%arg0: i32) -> (i32, i32) {
    %c0_i32 = arith.constant 0 : i32
    %c0_i32_0 = arith.constant 0 : i32
    return %arg0, %c0_i32 : i32, i32
  }
}

module attributes {stable_mosaic.version = 11 : i64} {
  func.func @_mm_kernel(%arg0: i32, %arg1: i32, %arg2: memref<32x1152xf32, #tpu.memory_space<vmem>>, %arg3: memref<1152x128xf32, #tpu.memory_space<vmem>>, %arg4: memref<1x128xf32, #tpu.memory_space<vmem>>, %arg5: memref<1x128xf32, #tpu.memory_space<vmem>>, %arg6: memref<32x128xf32, #tpu.memory_space<vmem>>, %arg7: memref<32x128xf32, #tpu.memory_space<vmem>>) attributes {dimension_semantics = [#tpu.dimension_semantics<parallel>, #tpu.dimension_semantics<arbitrary>], iteration_bounds = array<i64: 4, 1>, scalar_prefetch = 0 : i64, scratch_operands = 1 : i64, tpu.core_type = #tpu.core_type<tc>, window_params = [{transform_indices = @transform_0, window_bounds = array<i64: 32, 1152>}, {transform_indices = @transform_1, window_bounds = array<i64: 1152, 128>}, {pipeline_mode = #tpu.pipeline_mode<synchronous>, transform_indices = @transform_2, window_bounds = array<i64: 1, 128>}, {pipeline_mode = #tpu.pipeline_mode<synchronous>, transform_indices = @transform_3, window_bounds = array<i64: 1, 128>}, {transform_indices = @transform_4, window_bounds = array<i64: 32, 128>}]} {
    %c0_i32 = arith.constant 0 : i32
    %0 = arith.cmpi eq, %arg1, %c0_i32 : i32
    %1 = arith.extui %0 : i1 to i32
    %c0_i32_0 = arith.constant 0 : i32
    %2 = arith.cmpi ne, %1, %c0_i32_0 : i32
    scf.if %2 {
      %cst_10 = arith.constant 0.000000e+00 : f32
      %12 = vector.broadcast %cst_10 : f32 to vector<32x128xf32>
      %c0_11 = arith.constant 0 : index
      %c0_12 = arith.constant 0 : index
      %13 = vector.load %arg7[%c0_11, %c0_12] : memref<32x128xf32, #tpu.memory_space<vmem>>, vector<32x128xf32>
      tpu.vector_store %arg7[%c0_11, %c0_12], %12 {strides = array<i32>} : memref<32x128xf32, #tpu.memory_space<vmem>>, vector<32x128xf32>,
    } else {
    }
    %c0 = arith.constant 0 : index
    %c0_1 = arith.constant 0 : index
    %3 = vector.load %arg7[%c0, %c0_1] : memref<32x128xf32, #tpu.memory_space<vmem>>, vector<32x128xf32>
    %c0_2 = arith.constant 0 : index
    %c0_3 = arith.constant 0 : index
    %4 = vector.load %arg2[%c0_2, %c0_3] : memref<32x1152xf32, #tpu.memory_space<vmem>>, vector<32x1152xf32>
    %c0_4 = arith.constant 0 : index
    %c0_5 = arith.constant 0 : index
    %5 = vector.load %arg3[%c0_4, %c0_5] : memref<1152x128xf32, #tpu.memory_space<vmem>>, vector<1152x128xf32>
    %cst = arith.constant dense<0.000000e+00> : vector<32x128xf32>
    %6 = tpu.matmul %4, %5, %cst {dimension_numbers = #tpu.dot_dimension_numbers<[1], [0], [0], [1], [0, 0, 1, 1], [], []>} : vector<32x1152xf32>, vector<1152x128xf32>, vector<32x128xf32> -> vector<32x128xf32>
    %7 = arith.addf %3, %6 : vector<32x128xf32>
    %c0_6 = arith.constant 0 : index
    %c0_7 = arith.constant 0 : index
    %8 = vector.load %arg7[%c0_6, %c0_7] : memref<32x128xf32, #tpu.memory_space<vmem>>, vector<32x128xf32>
    tpu.vector_store %arg7[%c0_6, %c0_7], %7 {strides = array<i32>} : memref<32x128xf32, #tpu.memory_space<vmem>>, vector<32x128xf32>,
    %c0_i32_8 = arith.constant 0 : i32
    %9 = arith.cmpi eq, %arg1, %c0_i32_8 : i32
    %10 = arith.extui %9 : i1 to i32
    %c0_i32_9 = arith.constant 0 : i32
    %11 = arith.cmpi ne, %10, %c0_i32_9 : i32
    scf.if %11 {
      %c0_10 = arith.constant 0 : index
      %c0_11 = arith.constant 0 : index
      %12 = vector.load %arg7[%c0_10, %c0_11] : memref<32x128xf32, #tpu.memory_space<vmem>>, vector<32x128xf32>
      %c0_12 = arith.constant 0 : index
      %c0_13 = arith.constant 0 : index
      %13 = vector.load %arg4[%c0_12, %c0_13] : memref<1x128xf32, #tpu.memory_space<vmem>>, vector<1x128xf32>
      %14 = vector.broadcast %13 : vector<1x128xf32> to vector<32x128xf32>
      %15 = arith.mulf %12, %14 : vector<32x128xf32>
      %c0_14 = arith.constant 0 : index
      %c0_15 = arith.constant 0 : index
      %16 = vector.load %arg5[%c0_14, %c0_15] : memref<1x128xf32, #tpu.memory_space<vmem>>, vector<1x128xf32>
      %17 = vector.broadcast %16 : vector<1x128xf32> to vector<32x128xf32>
      %18 = arith.addf %15, %17 : vector<32x128xf32>
      %cst_16 = arith.constant 0.000000e+00 : f32
      %19 = vector.broadcast %cst_16 : f32 to vector<32x128xf32>
      %20 = arith.maximumf %18, %19 : vector<32x128xf32>
      %c0_17 = arith.constant 0 : index
      %c0_18 = arith.constant 0 : index
      %21 = vector.load %arg6[%c0_17, %c0_18] : memref<32x128xf32, #tpu.memory_space<vmem>>, vector<32x128xf32>
      tpu.vector_store %arg6[%c0_17, %c0_18], %20 {strides = array<i32>} : memref<32x128xf32, #tpu.memory_space<vmem>>, vector<32x128xf32>,
    } else {
    }
    return
  }
  func.func @transform_0(%arg0: i32, %arg1: i32) -> (i32, i32) {
    %c0_i32 = arith.constant 0 : i32
    return %arg0, %arg1 : i32, i32
  }
  func.func @transform_1(%arg0: i32, %arg1: i32) -> (i32, i32) {
    %c0_i32 = arith.constant 0 : i32
    %c0_i32_0 = arith.constant 0 : i32
    return %arg1, %c0_i32 : i32, i32
  }
  func.func @transform_2(%arg0: i32, %arg1: i32) -> (i32, i32) {
    %c0_i32 = arith.constant 0 : i32
    %c0_i32_0 = arith.constant 0 : i32
    %c0_i32_1 = arith.constant 0 : i32
    return %c0_i32, %c0_i32_0 : i32, i32
  }
  func.func @transform_3(%arg0: i32, %arg1: i32) -> (i32, i32) {
    %c0_i32 = arith.constant 0 : i32
    %c0_i32_0 = arith.constant 0 : i32
    %c0_i32_1 = arith.constant 0 : i32
    return %c0_i32, %c0_i32_0 : i32, i32
  }
  func.func @transform_4(%arg0: i32, %arg1: i32) -> (i32, i32) {
    %c0_i32 = arith.constant 0 : i32
    %c0_i32_0 = arith.constant 0 : i32
    return %arg0, %c0_i32 : i32, i32
  }
}

module attributes {stable_mosaic.version = 11 : i64} {
  func.func @_mm_kernel(%arg0: i32, %arg1: i32, %arg2: memref<16x128xf32, #tpu.memory_space<vmem>>, %arg3: memref<128x256xf32, #tpu.memory_space<vmem>>, %arg4: memref<1x256xf32, #tpu.memory_space<vmem>>, %arg5: memref<1x256xf32, #tpu.memory_space<vmem>>, %arg6: memref<16x256xf32, #tpu.memory_space<vmem>>, %arg7: memref<16x256xf32, #tpu.memory_space<vmem>>) attributes {dimension_semantics = [#tpu.dimension_semantics<parallel>, #tpu.dimension_semantics<arbitrary>], iteration_bounds = array<i64: 2, 1>, scalar_prefetch = 0 : i64, scratch_operands = 1 : i64, tpu.core_type = #tpu.core_type<tc>, window_params = [{transform_indices = @transform_0, window_bounds = array<i64: 16, 128>}, {transform_indices = @transform_1, window_bounds = array<i64: 128, 256>}, {pipeline_mode = #tpu.pipeline_mode<synchronous>, transform_indices = @transform_2, window_bounds = array<i64: 1, 256>}, {pipeline_mode = #tpu.pipeline_mode<synchronous>, transform_indices = @transform_3, window_bounds = array<i64: 1, 256>}, {transform_indices = @transform_4, window_bounds = array<i64: 16, 256>}]} {
    %c0_i32 = arith.constant 0 : i32
    %0 = arith.cmpi eq, %arg1, %c0_i32 : i32
    %1 = arith.extui %0 : i1 to i32
    %c0_i32_0 = arith.constant 0 : i32
    %2 = arith.cmpi ne, %1, %c0_i32_0 : i32
    scf.if %2 {
      %cst_10 = arith.constant 0.000000e+00 : f32
      %12 = vector.broadcast %cst_10 : f32 to vector<16x256xf32>
      %c0_11 = arith.constant 0 : index
      %c0_12 = arith.constant 0 : index
      %13 = vector.load %arg7[%c0_11, %c0_12] : memref<16x256xf32, #tpu.memory_space<vmem>>, vector<16x256xf32>
      tpu.vector_store %arg7[%c0_11, %c0_12], %12 {strides = array<i32>} : memref<16x256xf32, #tpu.memory_space<vmem>>, vector<16x256xf32>,
    } else {
    }
    %c0 = arith.constant 0 : index
    %c0_1 = arith.constant 0 : index
    %3 = vector.load %arg7[%c0, %c0_1] : memref<16x256xf32, #tpu.memory_space<vmem>>, vector<16x256xf32>
    %c0_2 = arith.constant 0 : index
    %c0_3 = arith.constant 0 : index
    %4 = vector.load %arg2[%c0_2, %c0_3] : memref<16x128xf32, #tpu.memory_space<vmem>>, vector<16x128xf32>
    %c0_4 = arith.constant 0 : index
    %c0_5 = arith.constant 0 : index
    %5 = vector.load %arg3[%c0_4, %c0_5] : memref<128x256xf32, #tpu.memory_space<vmem>>, vector<128x256xf32>
    %cst = arith.constant dense<0.000000e+00> : vector<16x256xf32>
    %6 = tpu.matmul %4, %5, %cst {dimension_numbers = #tpu.dot_dimension_numbers<[1], [0], [0], [1], [0, 0, 1, 1], [], []>} : vector<16x128xf32>, vector<128x256xf32>, vector<16x256xf32> -> vector<16x256xf32>
    %7 = arith.addf %3, %6 : vector<16x256xf32>
    %c0_6 = arith.constant 0 : index
    %c0_7 = arith.constant 0 : index
    %8 = vector.load %arg7[%c0_6, %c0_7] : memref<16x256xf32, #tpu.memory_space<vmem>>, vector<16x256xf32>
    tpu.vector_store %arg7[%c0_6, %c0_7], %7 {strides = array<i32>} : memref<16x256xf32, #tpu.memory_space<vmem>>, vector<16x256xf32>,
    %c0_i32_8 = arith.constant 0 : i32
    %9 = arith.cmpi eq, %arg1, %c0_i32_8 : i32
    %10 = arith.extui %9 : i1 to i32
    %c0_i32_9 = arith.constant 0 : i32
    %11 = arith.cmpi ne, %10, %c0_i32_9 : i32
    scf.if %11 {
      %c0_10 = arith.constant 0 : index
      %c0_11 = arith.constant 0 : index
      %12 = vector.load %arg7[%c0_10, %c0_11] : memref<16x256xf32, #tpu.memory_space<vmem>>, vector<16x256xf32>
      %c0_12 = arith.constant 0 : index
      %c0_13 = arith.constant 0 : index
      %13 = vector.load %arg4[%c0_12, %c0_13] : memref<1x256xf32, #tpu.memory_space<vmem>>, vector<1x256xf32>
      %14 = vector.broadcast %13 : vector<1x256xf32> to vector<16x256xf32>
      %15 = arith.mulf %12, %14 : vector<16x256xf32>
      %c0_14 = arith.constant 0 : index
      %c0_15 = arith.constant 0 : index
      %16 = vector.load %arg5[%c0_14, %c0_15] : memref<1x256xf32, #tpu.memory_space<vmem>>, vector<1x256xf32>
      %17 = vector.broadcast %16 : vector<1x256xf32> to vector<16x256xf32>
      %18 = arith.addf %15, %17 : vector<16x256xf32>
      %c0_16 = arith.constant 0 : index
      %c0_17 = arith.constant 0 : index
      %19 = vector.load %arg6[%c0_16, %c0_17] : memref<16x256xf32, #tpu.memory_space<vmem>>, vector<16x256xf32>
      tpu.vector_store %arg6[%c0_16, %c0_17], %18 {strides = array<i32>} : memref<16x256xf32, #tpu.memory_space<vmem>>, vector<16x256xf32>,
    } else {
    }
    return
  }
  func.func @transform_0(%arg0: i32, %arg1: i32) -> (i32, i32) {
    %c0_i32 = arith.constant 0 : i32
    return %arg0, %arg1 : i32, i32
  }
  func.func @transform_1(%arg0: i32, %arg1: i32) -> (i32, i32) {
    %c0_i32 = arith.constant 0 : i32
    %c0_i32_0 = arith.constant 0 : i32
    return %arg1, %c0_i32 : i32, i32
  }
  func.func @transform_2(%arg0: i32, %arg1: i32) -> (i32, i32) {
    %c0_i32 = arith.constant 0 : i32
    %c0_i32_0 = arith.constant 0 : i32
    %c0_i32_1 = arith.constant 0 : i32
    return %c0_i32, %c0_i32_0 : i32, i32
  }
  func.func @transform_3(%arg0: i32, %arg1: i32) -> (i32, i32) {
    %c0_i32 = arith.constant 0 : i32
    %c0_i32_0 = arith.constant 0 : i32
    %c0_i32_1 = arith.constant 0 : i32
    return %c0_i32, %c0_i32_0 : i32, i32
  }
  func.func @transform_4(%arg0: i32, %arg1: i32) -> (i32, i32) {
    %c0_i32 = arith.constant 0 : i32
    %c0_i32_0 = arith.constant 0 : i32
    return %arg0, %c0_i32 : i32, i32
  }
}

module attributes {stable_mosaic.version = 11 : i64} {
  func.func @_mm_res_kernel(%arg0: i32, %arg1: i32, %arg2: memref<32x1152xf32, #tpu.memory_space<vmem>>, %arg3: memref<1152x128xf32, #tpu.memory_space<vmem>>, %arg4: memref<1x128xf32, #tpu.memory_space<vmem>>, %arg5: memref<1x128xf32, #tpu.memory_space<vmem>>, %arg6: memref<32x128xf32, #tpu.memory_space<vmem>>, %arg7: memref<32x128xf32, #tpu.memory_space<vmem>>, %arg8: memref<32x128xf32, #tpu.memory_space<vmem>>) attributes {dimension_semantics = [#tpu.dimension_semantics<parallel>, #tpu.dimension_semantics<arbitrary>], iteration_bounds = array<i64: 4, 1>, scalar_prefetch = 0 : i64, scratch_operands = 1 : i64, tpu.core_type = #tpu.core_type<tc>, window_params = [{transform_indices = @transform_0, window_bounds = array<i64: 32, 1152>}, {transform_indices = @transform_1, window_bounds = array<i64: 1152, 128>}, {pipeline_mode = #tpu.pipeline_mode<synchronous>, transform_indices = @transform_2, window_bounds = array<i64: 1, 128>}, {pipeline_mode = #tpu.pipeline_mode<synchronous>, transform_indices = @transform_3, window_bounds = array<i64: 1, 128>}, {transform_indices = @transform_4, window_bounds = array<i64: 32, 128>}, {transform_indices = @transform_5, window_bounds = array<i64: 32, 128>}]} {
    %c0_i32 = arith.constant 0 : i32
    %0 = arith.cmpi eq, %arg1, %c0_i32 : i32
    %1 = arith.extui %0 : i1 to i32
    %c0_i32_0 = arith.constant 0 : i32
    %2 = arith.cmpi ne, %1, %c0_i32_0 : i32
    scf.if %2 {
      %cst_10 = arith.constant 0.000000e+00 : f32
      %12 = vector.broadcast %cst_10 : f32 to vector<32x128xf32>
      %c0_11 = arith.constant 0 : index
      %c0_12 = arith.constant 0 : index
      %13 = vector.load %arg8[%c0_11, %c0_12] : memref<32x128xf32, #tpu.memory_space<vmem>>, vector<32x128xf32>
      tpu.vector_store %arg8[%c0_11, %c0_12], %12 {strides = array<i32>} : memref<32x128xf32, #tpu.memory_space<vmem>>, vector<32x128xf32>,
    } else {
    }
    %c0 = arith.constant 0 : index
    %c0_1 = arith.constant 0 : index
    %3 = vector.load %arg8[%c0, %c0_1] : memref<32x128xf32, #tpu.memory_space<vmem>>, vector<32x128xf32>
    %c0_2 = arith.constant 0 : index
    %c0_3 = arith.constant 0 : index
    %4 = vector.load %arg2[%c0_2, %c0_3] : memref<32x1152xf32, #tpu.memory_space<vmem>>, vector<32x1152xf32>
    %c0_4 = arith.constant 0 : index
    %c0_5 = arith.constant 0 : index
    %5 = vector.load %arg3[%c0_4, %c0_5] : memref<1152x128xf32, #tpu.memory_space<vmem>>, vector<1152x128xf32>
    %cst = arith.constant dense<0.000000e+00> : vector<32x128xf32>
    %6 = tpu.matmul %4, %5, %cst {dimension_numbers = #tpu.dot_dimension_numbers<[1], [0], [0], [1], [0, 0, 1, 1], [], []>} : vector<32x1152xf32>, vector<1152x128xf32>, vector<32x128xf32> -> vector<32x128xf32>
    %7 = arith.addf %3, %6 : vector<32x128xf32>
    %c0_6 = arith.constant 0 : index
    %c0_7 = arith.constant 0 : index
    %8 = vector.load %arg8[%c0_6, %c0_7] : memref<32x128xf32, #tpu.memory_space<vmem>>, vector<32x128xf32>
    tpu.vector_store %arg8[%c0_6, %c0_7], %7 {strides = array<i32>} : memref<32x128xf32, #tpu.memory_space<vmem>>, vector<32x128xf32>,
    %c0_i32_8 = arith.constant 0 : i32
    %9 = arith.cmpi eq, %arg1, %c0_i32_8 : i32
    %10 = arith.extui %9 : i1 to i32
    %c0_i32_9 = arith.constant 0 : i32
    %11 = arith.cmpi ne, %10, %c0_i32_9 : i32
    scf.if %11 {
      %c0_10 = arith.constant 0 : index
      %c0_11 = arith.constant 0 : index
      %12 = vector.load %arg8[%c0_10, %c0_11] : memref<32x128xf32, #tpu.memory_space<vmem>>, vector<32x128xf32>
      %c0_12 = arith.constant 0 : index
      %c0_13 = arith.constant 0 : index
      %13 = vector.load %arg4[%c0_12, %c0_13] : memref<1x128xf32, #tpu.memory_space<vmem>>, vector<1x128xf32>
      %14 = vector.broadcast %13 : vector<1x128xf32> to vector<32x128xf32>
      %15 = arith.mulf %12, %14 : vector<32x128xf32>
      %c0_14 = arith.constant 0 : index
      %c0_15 = arith.constant 0 : index
      %16 = vector.load %arg5[%c0_14, %c0_15] : memref<1x128xf32, #tpu.memory_space<vmem>>, vector<1x128xf32>
      %17 = vector.broadcast %16 : vector<1x128xf32> to vector<32x128xf32>
      %18 = arith.addf %15, %17 : vector<32x128xf32>
      %c0_16 = arith.constant 0 : index
      %c0_17 = arith.constant 0 : index
      %19 = vector.load %arg6[%c0_16, %c0_17] : memref<32x128xf32, #tpu.memory_space<vmem>>, vector<32x128xf32>
      %20 = arith.addf %18, %19 : vector<32x128xf32>
      %cst_18 = arith.constant 0.000000e+00 : f32
      %21 = vector.broadcast %cst_18 : f32 to vector<32x128xf32>
      %22 = arith.maximumf %20, %21 : vector<32x128xf32>
      %c0_19 = arith.constant 0 : index
      %c0_20 = arith.constant 0 : index
      %23 = vector.load %arg7[%c0_19, %c0_20] : memref<32x128xf32, #tpu.memory_space<vmem>>, vector<32x128xf32>
      tpu.vector_store %arg7[%c0_19, %c0_20], %22 {strides = array<i32>} : memref<32x128xf32, #tpu.memory_space<vmem>>, vector<32x128xf32>,
    } else {
    }
    return
  }
  func.func @transform_0(%arg0: i32, %arg1: i32) -> (i32, i32) {
    %c0_i32 = arith.constant 0 : i32
    return %arg0, %arg1 : i32, i32
  }
  func.func @transform_1(%arg0: i32, %arg1: i32) -> (i32, i32) {
    %c0_i32 = arith.constant 0 : i32
    %c0_i32_0 = arith.constant 0 : i32
    return %arg1, %c0_i32 : i32, i32
  }
  func.func @transform_2(%arg0: i32, %arg1: i32) -> (i32, i32) {
    %c0_i32 = arith.constant 0 : i32
    %c0_i32_0 = arith.constant 0 : i32
    %c0_i32_1 = arith.constant 0 : i32
    return %c0_i32, %c0_i32_0 : i32, i32
  }
  func.func @transform_3(%arg0: i32, %arg1: i32) -> (i32, i32) {
    %c0_i32 = arith.constant 0 : i32
    %c0_i32_0 = arith.constant 0 : i32
    %c0_i32_1 = arith.constant 0 : i32
    return %c0_i32, %c0_i32_0 : i32, i32
  }
  func.func @transform_4(%arg0: i32, %arg1: i32) -> (i32, i32) {
    %c0_i32 = arith.constant 0 : i32
    %c0_i32_0 = arith.constant 0 : i32
    return %arg0, %c0_i32 : i32, i32
  }
  func.func @transform_5(%arg0: i32, %arg1: i32) -> (i32, i32) {
    %c0_i32 = arith.constant 0 : i32
    %c0_i32_0 = arith.constant 0 : i32
    return %arg0, %c0_i32 : i32, i32
  }
}

module attributes {stable_mosaic.version = 11 : i64} {
  func.func @_mm_kernel(%arg0: i32, %arg1: i32, %arg2: memref<16x1152xf32, #tpu.memory_space<vmem>>, %arg3: memref<1152x256xf32, #tpu.memory_space<vmem>>, %arg4: memref<1x256xf32, #tpu.memory_space<vmem>>, %arg5: memref<1x256xf32, #tpu.memory_space<vmem>>, %arg6: memref<16x256xf32, #tpu.memory_space<vmem>>, %arg7: memref<16x256xf32, #tpu.memory_space<vmem>>) attributes {dimension_semantics = [#tpu.dimension_semantics<parallel>, #tpu.dimension_semantics<arbitrary>], iteration_bounds = array<i64: 2, 1>, scalar_prefetch = 0 : i64, scratch_operands = 1 : i64, tpu.core_type = #tpu.core_type<tc>, window_params = [{transform_indices = @transform_0, window_bounds = array<i64: 16, 1152>}, {transform_indices = @transform_1, window_bounds = array<i64: 1152, 256>}, {pipeline_mode = #tpu.pipeline_mode<synchronous>, transform_indices = @transform_2, window_bounds = array<i64: 1, 256>}, {pipeline_mode = #tpu.pipeline_mode<synchronous>, transform_indices = @transform_3, window_bounds = array<i64: 1, 256>}, {transform_indices = @transform_4, window_bounds = array<i64: 16, 256>}]} {
    %c0_i32 = arith.constant 0 : i32
    %0 = arith.cmpi eq, %arg1, %c0_i32 : i32
    %1 = arith.extui %0 : i1 to i32
    %c0_i32_0 = arith.constant 0 : i32
    %2 = arith.cmpi ne, %1, %c0_i32_0 : i32
    scf.if %2 {
      %cst_10 = arith.constant 0.000000e+00 : f32
      %12 = vector.broadcast %cst_10 : f32 to vector<16x256xf32>
      %c0_11 = arith.constant 0 : index
      %c0_12 = arith.constant 0 : index
      %13 = vector.load %arg7[%c0_11, %c0_12] : memref<16x256xf32, #tpu.memory_space<vmem>>, vector<16x256xf32>
      tpu.vector_store %arg7[%c0_11, %c0_12], %12 {strides = array<i32>} : memref<16x256xf32, #tpu.memory_space<vmem>>, vector<16x256xf32>,
    } else {
    }
    %c0 = arith.constant 0 : index
    %c0_1 = arith.constant 0 : index
    %3 = vector.load %arg7[%c0, %c0_1] : memref<16x256xf32, #tpu.memory_space<vmem>>, vector<16x256xf32>
    %c0_2 = arith.constant 0 : index
    %c0_3 = arith.constant 0 : index
    %4 = vector.load %arg2[%c0_2, %c0_3] : memref<16x1152xf32, #tpu.memory_space<vmem>>, vector<16x1152xf32>
    %c0_4 = arith.constant 0 : index
    %c0_5 = arith.constant 0 : index
    %5 = vector.load %arg3[%c0_4, %c0_5] : memref<1152x256xf32, #tpu.memory_space<vmem>>, vector<1152x256xf32>
    %cst = arith.constant dense<0.000000e+00> : vector<16x256xf32>
    %6 = tpu.matmul %4, %5, %cst {dimension_numbers = #tpu.dot_dimension_numbers<[1], [0], [0], [1], [0, 0, 1, 1], [], []>} : vector<16x1152xf32>, vector<1152x256xf32>, vector<16x256xf32> -> vector<16x256xf32>
    %7 = arith.addf %3, %6 : vector<16x256xf32>
    %c0_6 = arith.constant 0 : index
    %c0_7 = arith.constant 0 : index
    %8 = vector.load %arg7[%c0_6, %c0_7] : memref<16x256xf32, #tpu.memory_space<vmem>>, vector<16x256xf32>
    tpu.vector_store %arg7[%c0_6, %c0_7], %7 {strides = array<i32>} : memref<16x256xf32, #tpu.memory_space<vmem>>, vector<16x256xf32>,
    %c0_i32_8 = arith.constant 0 : i32
    %9 = arith.cmpi eq, %arg1, %c0_i32_8 : i32
    %10 = arith.extui %9 : i1 to i32
    %c0_i32_9 = arith.constant 0 : i32
    %11 = arith.cmpi ne, %10, %c0_i32_9 : i32
    scf.if %11 {
      %c0_10 = arith.constant 0 : index
      %c0_11 = arith.constant 0 : index
      %12 = vector.load %arg7[%c0_10, %c0_11] : memref<16x256xf32, #tpu.memory_space<vmem>>, vector<16x256xf32>
      %c0_12 = arith.constant 0 : index
      %c0_13 = arith.constant 0 : index
      %13 = vector.load %arg4[%c0_12, %c0_13] : memref<1x256xf32, #tpu.memory_space<vmem>>, vector<1x256xf32>
      %14 = vector.broadcast %13 : vector<1x256xf32> to vector<16x256xf32>
      %15 = arith.mulf %12, %14 : vector<16x256xf32>
      %c0_14 = arith.constant 0 : index
      %c0_15 = arith.constant 0 : index
      %16 = vector.load %arg5[%c0_14, %c0_15] : memref<1x256xf32, #tpu.memory_space<vmem>>, vector<1x256xf32>
      %17 = vector.broadcast %16 : vector<1x256xf32> to vector<16x256xf32>
      %18 = arith.addf %15, %17 : vector<16x256xf32>
      %cst_16 = arith.constant 0.000000e+00 : f32
      %19 = vector.broadcast %cst_16 : f32 to vector<16x256xf32>
      %20 = arith.maximumf %18, %19 : vector<16x256xf32>
      %c0_17 = arith.constant 0 : index
      %c0_18 = arith.constant 0 : index
      %21 = vector.load %arg6[%c0_17, %c0_18] : memref<16x256xf32, #tpu.memory_space<vmem>>, vector<16x256xf32>
      tpu.vector_store %arg6[%c0_17, %c0_18], %20 {strides = array<i32>} : memref<16x256xf32, #tpu.memory_space<vmem>>, vector<16x256xf32>,
    } else {
    }
    return
  }
  func.func @transform_0(%arg0: i32, %arg1: i32) -> (i32, i32) {
    %c0_i32 = arith.constant 0 : i32
    return %arg0, %arg1 : i32, i32
  }
  func.func @transform_1(%arg0: i32, %arg1: i32) -> (i32, i32) {
    %c0_i32 = arith.constant 0 : i32
    %c0_i32_0 = arith.constant 0 : i32
    return %arg1, %c0_i32 : i32, i32
  }
  func.func @transform_2(%arg0: i32, %arg1: i32) -> (i32, i32) {
    %c0_i32 = arith.constant 0 : i32
    %c0_i32_0 = arith.constant 0 : i32
    %c0_i32_1 = arith.constant 0 : i32
    return %c0_i32, %c0_i32_0 : i32, i32
  }
  func.func @transform_3(%arg0: i32, %arg1: i32) -> (i32, i32) {
    %c0_i32 = arith.constant 0 : i32
    %c0_i32_0 = arith.constant 0 : i32
    %c0_i32_1 = arith.constant 0 : i32
    return %c0_i32, %c0_i32_0 : i32, i32
  }
  func.func @transform_4(%arg0: i32, %arg1: i32) -> (i32, i32) {
    %c0_i32 = arith.constant 0 : i32
    %c0_i32_0 = arith.constant 0 : i32
    return %arg0, %c0_i32 : i32, i32
  }
}

module attributes {stable_mosaic.version = 11 : i64} {
  func.func @_mm_res_kernel(%arg0: i32, %arg1: i32, %arg2: memref<16x1152xf32, #tpu.memory_space<vmem>>, %arg3: memref<1152x256xf32, #tpu.memory_space<vmem>>, %arg4: memref<1x256xf32, #tpu.memory_space<vmem>>, %arg5: memref<1x256xf32, #tpu.memory_space<vmem>>, %arg6: memref<16x256xf32, #tpu.memory_space<vmem>>, %arg7: memref<16x256xf32, #tpu.memory_space<vmem>>, %arg8: memref<16x256xf32, #tpu.memory_space<vmem>>) attributes {dimension_semantics = [#tpu.dimension_semantics<parallel>, #tpu.dimension_semantics<arbitrary>], iteration_bounds = array<i64: 2, 2>, scalar_prefetch = 0 : i64, scratch_operands = 1 : i64, tpu.core_type = #tpu.core_type<tc>, window_params = [{transform_indices = @transform_0, window_bounds = array<i64: 16, 1152>}, {transform_indices = @transform_1, window_bounds = array<i64: 1152, 256>}, {pipeline_mode = #tpu.pipeline_mode<synchronous>, transform_indices = @transform_2, window_bounds = array<i64: 1, 256>}, {pipeline_mode = #tpu.pipeline_mode<synchronous>, transform_indices = @transform_3, window_bounds = array<i64: 1, 256>}, {transform_indices = @transform_4, window_bounds = array<i64: 16, 256>}, {transform_indices = @transform_5, window_bounds = array<i64: 16, 256>}]} {
    %c0_i32 = arith.constant 0 : i32
    %0 = arith.cmpi eq, %arg1, %c0_i32 : i32
    %1 = arith.extui %0 : i1 to i32
    %c0_i32_0 = arith.constant 0 : i32
    %2 = arith.cmpi ne, %1, %c0_i32_0 : i32
    scf.if %2 {
      %cst_9 = arith.constant 0.000000e+00 : f32
      %12 = vector.broadcast %cst_9 : f32 to vector<16x256xf32>
      %c0_10 = arith.constant 0 : index
      %c0_11 = arith.constant 0 : index
      %13 = vector.load %arg8[%c0_10, %c0_11] : memref<16x256xf32, #tpu.memory_space<vmem>>, vector<16x256xf32>
      tpu.vector_store %arg8[%c0_10, %c0_11], %12 {strides = array<i32>} : memref<16x256xf32, #tpu.memory_space<vmem>>, vector<16x256xf32>,
    } else {
    }
    %c0 = arith.constant 0 : index
    %c0_1 = arith.constant 0 : index
    %3 = vector.load %arg8[%c0, %c0_1] : memref<16x256xf32, #tpu.memory_space<vmem>>, vector<16x256xf32>
    %c0_2 = arith.constant 0 : index
    %c0_3 = arith.constant 0 : index
    %4 = vector.load %arg2[%c0_2, %c0_3] : memref<16x1152xf32, #tpu.memory_space<vmem>>, vector<16x1152xf32>
    %c0_4 = arith.constant 0 : index
    %c0_5 = arith.constant 0 : index
    %5 = vector.load %arg3[%c0_4, %c0_5] : memref<1152x256xf32, #tpu.memory_space<vmem>>, vector<1152x256xf32>
    %cst = arith.constant dense<0.000000e+00> : vector<16x256xf32>
    %6 = tpu.matmul %4, %5, %cst {dimension_numbers = #tpu.dot_dimension_numbers<[1], [0], [0], [1], [0, 0, 1, 1], [], []>} : vector<16x1152xf32>, vector<1152x256xf32>, vector<16x256xf32> -> vector<16x256xf32>
    %7 = arith.addf %3, %6 : vector<16x256xf32>
    %c0_6 = arith.constant 0 : index
    %c0_7 = arith.constant 0 : index
    %8 = vector.load %arg8[%c0_6, %c0_7] : memref<16x256xf32, #tpu.memory_space<vmem>>, vector<16x256xf32>
    tpu.vector_store %arg8[%c0_6, %c0_7], %7 {strides = array<i32>} : memref<16x256xf32, #tpu.memory_space<vmem>>, vector<16x256xf32>,
    %c1_i32 = arith.constant 1 : i32
    %9 = arith.cmpi eq, %arg1, %c1_i32 : i32
    %10 = arith.extui %9 : i1 to i32
    %c0_i32_8 = arith.constant 0 : i32
    %11 = arith.cmpi ne, %10, %c0_i32_8 : i32
    scf.if %11 {
      %c0_9 = arith.constant 0 : index
      %c0_10 = arith.constant 0 : index
      %12 = vector.load %arg8[%c0_9, %c0_10] : memref<16x256xf32, #tpu.memory_space<vmem>>, vector<16x256xf32>
      %c0_11 = arith.constant 0 : index
      %c0_12 = arith.constant 0 : index
      %13 = vector.load %arg4[%c0_11, %c0_12] : memref<1x256xf32, #tpu.memory_space<vmem>>, vector<1x256xf32>
      %14 = vector.broadcast %13 : vector<1x256xf32> to vector<16x256xf32>
      %15 = arith.mulf %12, %14 : vector<16x256xf32>
      %c0_13 = arith.constant 0 : index
      %c0_14 = arith.constant 0 : index
      %16 = vector.load %arg5[%c0_13, %c0_14] : memref<1x256xf32, #tpu.memory_space<vmem>>, vector<1x256xf32>
      %17 = vector.broadcast %16 : vector<1x256xf32> to vector<16x256xf32>
      %18 = arith.addf %15, %17 : vector<16x256xf32>
      %c0_15 = arith.constant 0 : index
      %c0_16 = arith.constant 0 : index
      %19 = vector.load %arg6[%c0_15, %c0_16] : memref<16x256xf32, #tpu.memory_space<vmem>>, vector<16x256xf32>
      %20 = arith.addf %18, %19 : vector<16x256xf32>
      %cst_17 = arith.constant 0.000000e+00 : f32
      %21 = vector.broadcast %cst_17 : f32 to vector<16x256xf32>
      %22 = arith.maximumf %20, %21 : vector<16x256xf32>
      %c0_18 = arith.constant 0 : index
      %c0_19 = arith.constant 0 : index
      %23 = vector.load %arg7[%c0_18, %c0_19] : memref<16x256xf32, #tpu.memory_space<vmem>>, vector<16x256xf32>
      tpu.vector_store %arg7[%c0_18, %c0_19], %22 {strides = array<i32>} : memref<16x256xf32, #tpu.memory_space<vmem>>, vector<16x256xf32>,
    } else {
    }
    return
  }
  func.func @transform_0(%arg0: i32, %arg1: i32) -> (i32, i32) {
    %c0_i32 = arith.constant 0 : i32
    return %arg0, %arg1 : i32, i32
  }
  func.func @transform_1(%arg0: i32, %arg1: i32) -> (i32, i32) {
    %c0_i32 = arith.constant 0 : i32
    %c0_i32_0 = arith.constant 0 : i32
    return %arg1, %c0_i32 : i32, i32
  }
  func.func @transform_2(%arg0: i32, %arg1: i32) -> (i32, i32) {
    %c0_i32 = arith.constant 0 : i32
    %c0_i32_0 = arith.constant 0 : i32
    %c0_i32_1 = arith.constant 0 : i32
    return %c0_i32, %c0_i32_0 : i32, i32
  }
  func.func @transform_3(%arg0: i32, %arg1: i32) -> (i32, i32) {
    %c0_i32 = arith.constant 0 : i32
    %c0_i32_0 = arith.constant 0 : i32
    %c0_i32_1 = arith.constant 0 : i32
    return %c0_i32, %c0_i32_0 : i32, i32
  }
  func.func @transform_4(%arg0: i32, %arg1: i32) -> (i32, i32) {
    %c0_i32 = arith.constant 0 : i32
    %c0_i32_0 = arith.constant 0 : i32
    return %arg0, %c0_i32 : i32, i32
  }
  func.func @transform_5(%arg0: i32, %arg1: i32) -> (i32, i32) {
    %c0_i32 = arith.constant 0 : i32
    %c0_i32_0 = arith.constant 0 : i32
    return %arg0, %c0_i32 : i32, i32
  }
}

module attributes {stable_mosaic.version = 11 : i64} {
  func.func @_mm_kernel(%arg0: i32, %arg1: i32, %arg2: memref<16x2048xf32, #tpu.memory_space<vmem>>, %arg3: memref<2048x128xf32, #tpu.memory_space<vmem>>, %arg4: memref<1x128xf32, #tpu.memory_space<vmem>>, %arg5: memref<1x128xf32, #tpu.memory_space<vmem>>, %arg6: memref<16x128xf32, #tpu.memory_space<vmem>>, %arg7: memref<16x128xf32, #tpu.memory_space<vmem>>) attributes {dimension_semantics = [#tpu.dimension_semantics<parallel>, #tpu.dimension_semantics<arbitrary>], iteration_bounds = array<i64: 1, 2>, scalar_prefetch = 0 : i64, scratch_operands = 1 : i64, tpu.core_type = #tpu.core_type<tc>, window_params = [{transform_indices = @transform_0, window_bounds = array<i64: 16, 2048>}, {transform_indices = @transform_1, window_bounds = array<i64: 2048, 128>}, {pipeline_mode = #tpu.pipeline_mode<synchronous>, transform_indices = @transform_2, window_bounds = array<i64: 1, 128>}, {pipeline_mode = #tpu.pipeline_mode<synchronous>, transform_indices = @transform_3, window_bounds = array<i64: 1, 128>}, {transform_indices = @transform_4, window_bounds = array<i64: 16, 128>}]} {
    %c0_i32 = arith.constant 0 : i32
    %0 = arith.cmpi eq, %arg1, %c0_i32 : i32
    %1 = arith.extui %0 : i1 to i32
    %c0_i32_0 = arith.constant 0 : i32
    %2 = arith.cmpi ne, %1, %c0_i32_0 : i32
    scf.if %2 {
      %cst_9 = arith.constant 0.000000e+00 : f32
      %12 = vector.broadcast %cst_9 : f32 to vector<16x128xf32>
      %c0_10 = arith.constant 0 : index
      %c0_11 = arith.constant 0 : index
      %13 = vector.load %arg7[%c0_10, %c0_11] : memref<16x128xf32, #tpu.memory_space<vmem>>, vector<16x128xf32>
      tpu.vector_store %arg7[%c0_10, %c0_11], %12 {strides = array<i32>} : memref<16x128xf32, #tpu.memory_space<vmem>>, vector<16x128xf32>,
    } else {
    }
    %c0 = arith.constant 0 : index
    %c0_1 = arith.constant 0 : index
    %3 = vector.load %arg7[%c0, %c0_1] : memref<16x128xf32, #tpu.memory_space<vmem>>, vector<16x128xf32>
    %c0_2 = arith.constant 0 : index
    %c0_3 = arith.constant 0 : index
    %4 = vector.load %arg2[%c0_2, %c0_3] : memref<16x2048xf32, #tpu.memory_space<vmem>>, vector<16x2048xf32>
    %c0_4 = arith.constant 0 : index
    %c0_5 = arith.constant 0 : index
    %5 = vector.load %arg3[%c0_4, %c0_5] : memref<2048x128xf32, #tpu.memory_space<vmem>>, vector<2048x128xf32>
    %cst = arith.constant dense<0.000000e+00> : vector<16x128xf32>
    %6 = tpu.matmul %4, %5, %cst {dimension_numbers = #tpu.dot_dimension_numbers<[1], [0], [0], [1], [0, 0, 1, 1], [], []>} : vector<16x2048xf32>, vector<2048x128xf32>, vector<16x128xf32> -> vector<16x128xf32>
    %7 = arith.addf %3, %6 : vector<16x128xf32>
    %c0_6 = arith.constant 0 : index
    %c0_7 = arith.constant 0 : index
    %8 = vector.load %arg7[%c0_6, %c0_7] : memref<16x128xf32, #tpu.memory_space<vmem>>, vector<16x128xf32>
    tpu.vector_store %arg7[%c0_6, %c0_7], %7 {strides = array<i32>} : memref<16x128xf32, #tpu.memory_space<vmem>>, vector<16x128xf32>,
    %c1_i32 = arith.constant 1 : i32
    %9 = arith.cmpi eq, %arg1, %c1_i32 : i32
    %10 = arith.extui %9 : i1 to i32
    %c0_i32_8 = arith.constant 0 : i32
    %11 = arith.cmpi ne, %10, %c0_i32_8 : i32
    scf.if %11 {
      %c0_9 = arith.constant 0 : index
      %c0_10 = arith.constant 0 : index
      %12 = vector.load %arg7[%c0_9, %c0_10] : memref<16x128xf32, #tpu.memory_space<vmem>>, vector<16x128xf32>
      %c0_11 = arith.constant 0 : index
      %c0_12 = arith.constant 0 : index
      %13 = vector.load %arg4[%c0_11, %c0_12] : memref<1x128xf32, #tpu.memory_space<vmem>>, vector<1x128xf32>
      %14 = vector.broadcast %13 : vector<1x128xf32> to vector<16x128xf32>
      %15 = arith.mulf %12, %14 : vector<16x128xf32>
      %c0_13 = arith.constant 0 : index
      %c0_14 = arith.constant 0 : index
      %16 = vector.load %arg5[%c0_13, %c0_14] : memref<1x128xf32, #tpu.memory_space<vmem>>, vector<1x128xf32>
      %17 = vector.broadcast %16 : vector<1x128xf32> to vector<16x128xf32>
      %18 = arith.addf %15, %17 : vector<16x128xf32>
      %c0_15 = arith.constant 0 : index
      %c0_16 = arith.constant 0 : index
      %19 = vector.load %arg6[%c0_15, %c0_16] : memref<16x128xf32, #tpu.memory_space<vmem>>, vector<16x128xf32>
      tpu.vector_store %arg6[%c0_15, %c0_16], %18 {strides = array<i32>} : memref<16x128xf32, #tpu.memory_space<vmem>>, vector<16x128xf32>,
    } else {
    }
    return
  }
  func.func @transform_0(%arg0: i32, %arg1: i32) -> (i32, i32) {
    %c0_i32 = arith.constant 0 : i32
    return %arg0, %arg1 : i32, i32
  }
  func.func @transform_1(%arg0: i32, %arg1: i32) -> (i32, i32) {
    %c0_i32 = arith.constant 0 : i32
    %c0_i32_0 = arith.constant 0 : i32
    return %arg1, %c0_i32 : i32, i32
  }
  func.func @transform_2(%arg0: i32, %arg1: i32) -> (i32, i32) {
    %c0_i32 = arith.constant 0 : i32
    %c0_i32_0 = arith.constant 0 : i32
    %c0_i32_1 = arith.constant 0 : i32
    return %c0_i32, %c0_i32_0 : i32, i32
  }
  func.func @transform_3(%arg0: i32, %arg1: i32) -> (i32, i32) {
    %c0_i32 = arith.constant 0 : i32
    %c0_i32_0 = arith.constant 0 : i32
    %c0_i32_1 = arith.constant 0 : i32
    return %c0_i32, %c0_i32_0 : i32, i32
  }
  func.func @transform_4(%arg0: i32, %arg1: i32) -> (i32, i32) {
    %c0_i32 = arith.constant 0 : i32
    %c0_i32_0 = arith.constant 0 : i32
    return %arg0, %c0_i32 : i32, i32
  }
}

</mosaic_0001>

<bundles_post_ra>
// kernel: custom_resnet_forward.11
= control target key start
LH: loop header
LB: loop body
LE: loop exit
PB: predicated region body
PF: predicated region fallthrough
CT: control target
= control target key end

     0   :  { %s680_s15 = smov 0   ;;  %s682_s16 = smov 0   ;;  %s780_s0 = inlined_call_operand.vmem [shape: f32[128,128], index: 0, kind: input, shape index: {}]   ;;  %s781_s1 = inlined_call_operand.vmem [shape: f32[128,128], index: 1, kind: input, shape index: {}]   ;;  %s782_s2 = inlined_call_operand.vmem [shape: f32[1,128], index: 2, kind: input, shape index: {}]   ;;  %s783_s3 = inlined_call_operand.vmem [shape: f32[1,128], index: 3, kind: input, shape index: {}]   ;;  %s784_s4 = inlined_call_operand.vmem [shape: f32[128,128], index: 4, kind: output, shape index: {}]  }
   0x1   :  { %s684_s17 = smov 0  }
   0x2 LB: > { %s26_s18 = sadd.s32 1, %s649_s16  ;;  %p492_p0 = scmp.ge.s32.totalorder %s653_s17, 1  ;;  %s653_s17 = sphi %s684_s17, %s14_s17   ;;  %s649_s16 = sphi %s682_s16, %s786_s16   ;;  %s645_s15 = sphi %s680_s15, %s785_s15  }
   0x3   : > { %p28_p1 = scmp.ge.s32.totalorder %s26_s18, 4  ;;  %p191_p2 = scmp.lt.s32.totalorder %s653_s17, 5 }
   0x5   : > { %s788_s18 = smov (%p28_p1, %s26_s18), 0  ;;  %p192_p3 = pnand %p492_p0, %p191_p2 }
   0x6   : > { %v262_v0 = vld [vmem:[%s781_s1] sm:$0xff] (!%p192_p3)  ;;  %v263_v1 = vld [vmem:[%s781_s1 + $0x8] sm:$0xff] (!%p192_p3)  ;;  %v264_v2 = vld [vmem:[%s781_s1 + $0x10] sm:$0xff] (!%p192_p3)  ;;  %s493_s25 = sshll.u32 (!%p192_p3), %s645_s15, 2 }
   0x7   : > { %195 = sbr.rel (%p192_p3) target bundleno = 260 (0x104), region = 36  ;;  %v559_v3 = vpack.c.bf16 (!%p192_p3), %v263_v1, %v262_v0  ;;  %v265_v4 = vld [vmem:[%s781_s1 + $0x18] sm:$0xff] (!%p192_p3)  ;;  %p226_p4 = scmp.lt.s32.totalorder (!%p192_p3), %s493_s25, 15  ;;  %v266_v6 = vld [vmem:[%s781_s1 + $0x20] sm:$0xff] (!%p192_p3)  ;;  %v267_v7 = vld [vmem:[%s781_s1 + $0x28] sm:$0xff] (!%p192_p3) }
   0x8   : > { %v563_v5 = vpack.c.bf16 (!%p192_p3), %v265_v4, %v264_v2  ;;  %v567_v8 = vpack.c.bf16 (!%p192_p3), %v267_v7, %v266_v6  ;;  %v268_v9 = vld [vmem:[%s781_s1 + $0x30] sm:$0xff] (!%p192_p3)  ;;  %v269_v10 = vld [vmem:[%s781_s1 + $0x38] sm:$0xff] (!%p192_p3)  ;;  %v270_v14 = vld [vmem:[%s781_s1 + $0x40] sm:$0xff] (!%p192_p3) }
   0x9   : > { %560 = vmatprep.subr.bf16.mxu0 (!%p192_p3), %v559_v3  ;;  %591 = vmatprep.subr.bf16.mxu1 (!%p192_p3), %v559_v3  ;;  %v571_v13 = vpack.c.bf16 (!%p192_p3), %v269_v10, %v268_v9  ;;  %v271_v15 = vld [vmem:[%s781_s1 + $0x48] sm:$0xff] (!%p192_p3)  ;;  %v272_v17 = vld [vmem:[%s781_s1 + $0x50] sm:$0xff] (!%p192_p3)  ;;  %v273_v18 = vld [vmem:[%s781_s1 + $0x58] sm:$0xff] (!%p192_p3) }
   0xa   : > { %562 = vmatpush3.bf16.msra.mxu0 (!%p192_p3), %v559_v3  ;;  %599 = vmatpush3.bf16.msra.mxu1 (!%p192_p3), %v559_v3  ;;  %v575_v16 = vpack.c.bf16 (!%p192_p3), %v271_v15, %v270_v14  ;;  %v579_v19 = vpack.c.bf16 (!%p192_p3), %v273_v18, %v272_v17  ;;  %v274_v20 = vld [vmem:[%s781_s1 + $0x60] sm:$0xff] (!%p192_p3)  ;;  %v275_v21 = vld [vmem:[%s781_s1 + $0x68] sm:$0xff] (!%p192_p3)  ;;  %v276_v23 = vld [vmem:[%s781_s1 + $0x70] sm:$0xff] (!%p192_p3) }
   0xb   : > { %564 = vmatprep.subr.bf16.mxu0 (!%p192_p3), %v563_v5  ;;  %592 = vmatprep.subr.bf16.mxu1 (!%p192_p3), %v563_v5  ;;  %v583_v22 = vpack.c.bf16 (!%p192_p3), %v275_v21, %v274_v20  ;;  %v277_v24 = vld [vmem:[%s781_s1 + $0x78] sm:$0xff] (!%p192_p3)  ;;  %v497_v28 = vld [vmem:[%s782_s2] ss:$0 sm:$0xff] (!%p192_p3) }
   0xc   : > { %v587_v25 = vpack.c.bf16 (!%p192_p3), %v277_v24, %v276_v23  ;;  %v498_v30 = vld [vmem:[%s783_s3] ss:$0 sm:$0xff] (!%p192_p3) }
   0xe   : > { %s790_s25 = smov (!%p226_p4, %s493_s25), 15  ;;  %566 = vmatpush3.bf16.msra.mxu0 %v563_v5  ;;  %600 = vmatpush3.bf16.msra.mxu1 %v563_v5 }
   0xf   : > { %s494_s6 = sshll.u32 %s790_s25, 3  ;;  %568 = vmatprep.subr.bf16.mxu0 %v567_v8  ;;  %593 = vmatprep.subr.bf16.mxu1 %v567_v8 }
  0x10   : > { %s730_s13 = scalar_lea.vmem %s780_s0, %s494_s6 }
  0x11   : > { %v258_v11 = vld [vmem:[%s730_s13] sm:$0xff]  ;;  %v260_v12 = vld [vmem:[%s730_s13 + $0x10] sm:$0xff]  ;;  %v259_v26 = vld [vmem:[%s730_s13 + $0x8] sm:$0xff] }
  0x12   : > { %553 = vmatprep.mubr.f32.mxu0 %v258_v11  ;;  %556 = vmatprep.mubr.f32.mxu1 %v260_v12  ;;  %v261_v27 = vld [vmem:[%s730_s13 + $0x18] sm:$0xff]  ;;  %s244_s13 = scalar_lea.vmem %s784_s4, %s494_s6 }
  0x13   : > { %570 = vmatpush3.bf16.msra.mxu0 %v567_v8  ;;  %601 = vmatpush3.bf16.msra.mxu1 %v567_v8 }
  0x14   : > { %572 = vmatprep.subr.bf16.mxu0 %v571_v13  ;;  %594 = vmatprep.subr.bf16.mxu1 %v571_v13 }
  0x17   : > { %574 = vmatpush3.bf16.msra.mxu0 %v571_v13  ;;  %602 = vmatpush3.bf16.msra.mxu1 %v571_v13 }
  0x18   : > { %576 = vmatprep.subr.bf16.mxu0 %v575_v16  ;;  %595 = vmatprep.subr.bf16.mxu1 %v575_v16 }
  0x1b   : > { %578 = vmatpush3.bf16.msra.mxu0 %v575_v16  ;;  %603 = vmatpush3.bf16.msra.mxu1 %v575_v16 }
  0x1c   : > { %580 = vmatprep.subr.bf16.mxu0 %v579_v19  ;;  %596 = vmatprep.subr.bf16.mxu1 %v579_v19 }
  0x1f   : > { %582 = vmatpush3.bf16.msra.mxu0 %v579_v19  ;;  %604 = vmatpush3.bf16.msra.mxu1 %v579_v19 }
  0x20   : > { %584 = vmatprep.subr.bf16.mxu0 %v583_v22  ;;  %597 = vmatprep.subr.bf16.mxu1 %v583_v22 }
  0x23   : > { %586 = vmatpush3.bf16.msra.mxu0 %v583_v22  ;;  %605 = vmatpush3.bf16.msra.mxu1 %v583_v22 }
  0x24   : > { %588 = vmatprep.subr.bf16.mxu0 %v587_v25  ;;  %598 = vmatprep.subr.bf16.mxu1 %v587_v25 }
  0x27   : > { %590 = vmatpush3.bf16.msra.mxu0 %v587_v25  ;;  %606 = vmatpush3.bf16.msra.mxu1 %v587_v25 }
  0x2a   : > { %554 = vmatmul.mubr.f32.vlgmr.msra.gmra.mrb[0].mxu0 %v259_v26  ;;  %557 = vmatmul.mubr.f32.vlgmr.msra.gmra.mrb[0].mxu1 %v261_v27 }
  0xfd   : > { %v555_v29 = vpop.f32.mrb[0].mxu0  ;;  %v558_v31 = vpop.f32.mrb[0].mxu1 }
  0xfe   : > { %v386_v32 = vmul.f32 %v555_v29, %v497_v28  ;;  %v388_v33 = vmul.f32 %v558_v31, %v497_v28  ;;  %v344_v34 = vpop.f32.mrb[1].mxu0  ;;  %v354_v35 = vpop.f32.mrb[1].mxu1 }
  0xff   : > { %v385_v36 = vmul.f32 %v497_v28, %v344_v34  ;;  %v387_v37 = vmul.f32 %v497_v28, %v354_v35 }
 0x100   : > { %v397_v38 = vadd.f32 %v498_v30, %v386_v32  ;;  %v399_v39 = vadd.f32 %v498_v30, %v388_v33 }
 0x101   : > { %v396_v40 = vadd.f32 %v498_v30, %v385_v36  ;;  %v398_v41 = vadd.f32 %v498_v30, %v387_v37 }
 0x102   : > { %401 = vst [vmem:[%s244_s13 + $0x8] sm:$0xff] %v397_v38  ;;  %403 = vst [vmem:[%s244_s13 + $0x18] sm:$0xff] %v399_v39 }
 0x103   : > { %400 = vst [vmem:[%s244_s13] sm:$0xff] %v396_v40  ;;  %402 = vst [vmem:[%s244_s13 + $0x10] sm:$0xff] %v398_v41 }
 0x104 PF: > { %s14_s17 = sadd.s32 1, %s653_s17   ;;  %s785_s15 = smov %s649_s16 }
 0x105   : > { %p11_p5 = scmp.ge.s32.totalorder %s14_s17, 6   ;;  %s786_s16 = smov %s788_s18 }
 0x107   :  { %13 = sbr.rel (!%p11_p5) target bundleno = 2 (0x2), region = 77 }

// kernel: custom_resnet_forward.9
= control target key start
LH: loop header
LB: loop body
LE: loop exit
PB: predicated region body
PF: predicated region fallthrough
CT: control target
= control target key end

     0   :  { %s931_s15 = smov 0   ;;  %s933_s16 = smov 0   ;;  %s1158_s0 = inlined_call_operand.vmem [shape: f32[512,256], index: 0, kind: input, shape index: {}]   ;;  %s1159_s1 = inlined_call_operand.vmem [shape: f32[256,128], index: 1, kind: input, shape index: {}]   ;;  %s1160_s2 = inlined_call_operand.vmem [shape: f32[1,128], index: 2, kind: input, shape index: {}]   ;;  %s1161_s3 = inlined_call_operand.vmem [shape: f32[1,128], index: 3, kind: input, shape index: {}]   ;;  %s1162_s4 = inlined_call_operand.vmem [shape: f32[512,128], index: 4, kind: output, shape index: {}]  }
   0x1   :  { %s935_s17 = smov 0  }
   0x2 LB: > { %s26_s18 = sadd.s32 1, %s900_s16  ;;  %p719_p0 = scmp.ge.s32.totalorder %s904_s17, 1  ;;  %s904_s17 = sphi %s935_s17, %s14_s17   ;;  %s900_s16 = sphi %s933_s16, %s1164_s16   ;;  %s896_s15 = sphi %s931_s15, %s1163_s15  }
   0x3   : > { %p28_p1 = scmp.ge.s32.totalorder %s26_s18, 4  ;;  %p194_p2 = scmp.lt.s32.totalorder %s904_s17, 5 }
   0x5   : > { %s1166_s18 = smov (%p28_p1, %s26_s18), 0  ;;  %p195_p3 = pnand %p719_p0, %p194_p2 }
   0x6   : > { %v338_v0 = vld [vmem:[%s1159_s1 + $0x80] sm:$0xff] (!%p195_p3)  ;;  %v339_v1 = vld [vmem:[%s1159_s1 + $0x88] sm:$0xff] (!%p195_p3)  ;;  %s720_s25 = sshll.u32 (!%p195_p3), %s896_s15, 4  ;;  %v340_v5 = vld [vmem:[%s1159_s1 + $0x90] sm:$0xff] (!%p195_p3) }
   0x7   : > { %198 = sbr.rel (%p195_p3) target bundleno = 292 (0x124), region = 36  ;;  %v322_v2 = vld [vmem:[%s1159_s1] sm:$0xff] (!%p195_p3)  ;;  %v810_v3 = vpack.c.bf16 (!%p195_p3), %v339_v1, %v338_v0  ;;  %v323_v4 = vld [vmem:[%s1159_s1 + $0x8] sm:$0xff] (!%p195_p3)  ;;  %v341_v6 = vld [vmem:[%s1159_s1 + $0x98] sm:$0xff] (!%p195_p3)  ;;  %p232_p4 = scmp.lt.s32.totalorder (!%p195_p3), %s720_s25, 63 }
   0x8   : > { %v812_v7 = vpack.c.bf16 (!%p195_p3), %v323_v4, %v322_v2  ;;  %v814_v8 = vpack.c.bf16 (!%p195_p3), %v341_v6, %v340_v5  ;;  %v324_v9 = vld [vmem:[%s1159_s1 + $0x10] sm:$0xff] (!%p195_p3)  ;;  %v325_v10 = vld [vmem:[%s1159_s1 + $0x18] sm:$0xff] (!%p195_p3)  ;;  %v342_v11 = vld [vmem:[%s1159_s1 + $0xa0] sm:$0xff] (!%p195_p3) }
   0x9   : > { %811 = vmatprep.subr.bf16.mxu0 (!%p195_p3), %v810_v3  ;;  %842 = vmatprep.subr.bf16.mxu1 (!%p195_p3), %v810_v3  ;;  %v343_v12 = vld [vmem:[%s1159_s1 + $0xa8] sm:$0xff] (!%p195_p3)  ;;  %v816_v13 = vpack.c.bf16 (!%p195_p3), %v325_v10, %v324_v9  ;;  %v326_v15 = vld [vmem:[%s1159_s1 + $0x20] sm:$0xff] (!%p195_p3)  ;;  %v344_v17 = vld [vmem:[%s1159_s1 + $0xb0] sm:$0xff] (!%p195_p3) }
   0xa   : > { %813 = vmatpush3.bf16.msra.mxu0 (!%p195_p3), %v812_v7  ;;  %850 = vmatpush3.bf16.msra.mxu1 (!%p195_p3), %v812_v7  ;;  %v818_v14 = vpack.c.bf16 (!%p195_p3), %v343_v12, %v342_v11  ;;  %v327_v16 = vld [vmem:[%s1159_s1 + $0x28] sm:$0xff] (!%p195_p3)  ;;  %v345_v18 = vld [vmem:[%s1159_s1 + $0xb8] sm:$0xff] (!%p195_p3)  ;;  %v328_v21 = vld [vmem:[%s1159_s1 + $0x30] sm:$0xff] (!%p195_p3) }
   0xb   : > { %815 = vmatprep.subr.bf16.mxu0 (!%p195_p3), %v814_v8  ;;  %843 = vmatprep.subr.bf16.mxu1 (!%p195_p3), %v814_v8  ;;  %v820_v19 = vpack.c.bf16 (!%p195_p3), %v327_v16, %v326_v15  ;;  %v822_v20 = vpack.c.bf16 (!%p195_p3), %v345_v18, %v344_v17  ;;  %v329_v22 = vld [vmem:[%s1159_s1 + $0x38] sm:$0xff] (!%p195_p3)  ;;  %v346_v23 = vld [vmem:[%s1159_s1 + $0xc0] sm:$0xff] (!%p195_p3)  ;;  %v347_v24 = vld [vmem:[%s1159_s1 + $0xc8] sm:$0xff] (!%p195_p3) }
   0xc   : > { %v824_v27 = vpack.c.bf16 (!%p195_p3), %v329_v22, %v328_v21  ;;  %v826_v28 = vpack.c.bf16 (!%p195_p3), %v347_v24, %v346_v23  ;;  %v330_v29 = vld [vmem:[%s1159_s1 + $0x40] sm:$0xff] (!%p195_p3)  ;;  %v331_v30 = vld [vmem:[%s1159_s1 + $0x48] sm:$0xff] (!%p195_p3)  ;;  %v348_v31 = vld [vmem:[%s1159_s1 + $0xd0] sm:$0xff] (!%p195_p3) }
   0xd   : > { %v349_v32 = vld [vmem:[%s1159_s1 + $0xd8] sm:$0xff] (!%p195_p3)  ;;  %v828_v33 = vpack.c.bf16 (!%p195_p3), %v331_v30, %v330_v29  ;;  %v332_v35 = vld [vmem:[%s1159_s1 + $0x50] sm:$0xff] (!%p195_p3)  ;;  %v350_v37 = vld [vmem:[%s1159_s1 + $0xe0] sm:$0xff] (!%p195_p3) }
   0xe   : > { %s1168_s25 = smov (!%p232_p4, %s720_s25), 63  ;;  %817 = vmatpush3.bf16.msra.mxu0 %v816_v13  ;;  %851 = vmatpush3.bf16.msra.mxu1 %v816_v13  ;;  %v830_v34 = vpack.c.bf16 %v349_v32, %v348_v31  ;;  %v333_v36 = vld [vmem:[%s1159_s1 + $0x58] sm:$0xff]  ;;  %v351_v38 = vld [vmem:[%s1159_s1 + $0xe8] sm:$0xff]  ;;  %v334_v41 = vld [vmem:[%s1159_s1 + $0x60] sm:$0xff] }
   0xf   : > { %s729_s21 = sshll.u32 %s1168_s25, 4  ;;  %819 = vmatprep.subr.bf16.mxu0 %v818_v14  ;;  %844 = vmatprep.subr.bf16.mxu1 %v818_v14  ;;  %v832_v39 = vpack.c.bf16 %v333_v36, %v332_v35  ;;  %v834_v40 = vpack.c.bf16 %v351_v38, %v350_v37  ;;  %v335_v42 = vld [vmem:[%s1159_s1 + $0x68] sm:$0xff]  ;;  %v352_v43 = vld [vmem:[%s1159_s1 + $0xf0] sm:$0xff]  ;;  %v353_v44 = vld [vmem:[%s1159_s1 + $0xf8] sm:$0xff]  ;;  %s724_s27 = sshll.u32 %s1168_s25, 3 }
  0x10   : > { %s997_s29 = scalar_lea.vmem %s1158_s0, %s729_s21  ;;  %v836_v45 = vpack.c.bf16 %v335_v42, %v334_v41  ;;  %v838_v46 = vpack.c.bf16 %v353_v44, %v352_v43  ;;  %v336_v47 = vld [vmem:[%s1159_s1 + $0x70] sm:$0xff]  ;;  %v337_v48 = vld [vmem:[%s1159_s1 + $0x78] sm:$0xff]  ;;  %v1093_v23 = vld [vmem:[%s1161_s3] ss:$0 sm:$0xff]  ;;  %s1103_s30 = scalar_lea.vmem %s1162_s4, %s724_s27 }
  0x11   : > { %v291_v25 = vld [vmem:[%s997_s29 + $0x8] sm:$0xff]  ;;  %v840_v49 = vpack.c.bf16 %v337_v48, %v336_v47  ;;  %v290_v50 = vld [vmem:[%s997_s29] sm:$0xff]  ;;  %v293_v52 = vld [vmem:[%s997_s29 + $0x18] sm:$0xff] }
  0x12   : > { %418 = vmatprep.mubr.f32.mxu0 %v291_v25  ;;  %v307_v26 = vld [vmem:[%s997_s29 + $0x88] sm:$0xff]  ;;  %821 = vmatpush3.bf16.msra.mxu0 %v820_v19  ;;  %v306_v51 = vld [vmem:[%s997_s29 + $0x80] sm:$0xff]  ;;  %v309_v53 = vld [vmem:[%s997_s29 + $0x98] sm:$0xff] }
  0x13   : > { %852 = vmatpush3.bf16.msra.mxu1 %v820_v19  ;;  %823 = vmatprep.subr.bf16.mxu0 %v822_v20  ;;  %v292_v54 = vld [vmem:[%s997_s29 + $0x10] sm:$0xff]  ;;  %v295_v56 = vld [vmem:[%s997_s29 + $0x28] sm:$0xff]  ;;  %v294_v58 = vld [vmem:[%s997_s29 + $0x20] sm:$0xff] }
  0x14   : > { %845 = vmatprep.subr.bf16.mxu1 %v822_v20  ;;  %458 = vmatprep.mubr.f32.mxu1 %v307_v26  ;;  %v308_v55 = vld [vmem:[%s997_s29 + $0x90] sm:$0xff]  ;;  %v311_v57 = vld [vmem:[%s997_s29 + $0xa8] sm:$0xff]  ;;  %v310_v59 = vld [vmem:[%s997_s29 + $0xa0] sm:$0xff] }
  0x15   : > { %v297_v60 = vld [vmem:[%s997_s29 + $0x38] sm:$0xff]  ;;  %v296_v62 = vld [vmem:[%s997_s29 + $0x30] sm:$0xff]  ;;  %v299_v0 = vld [vmem:[%s997_s29 + $0x48] sm:$0xff] }
  0x16   : > { %825 = vmatpush3.bf16.msra.mxu0 %v824_v27  ;;  %v313_v61 = vld [vmem:[%s997_s29 + $0xb8] sm:$0xff]  ;;  %v312_v63 = vld [vmem:[%s997_s29 + $0xb0] sm:$0xff]  ;;  %v315_v1 = vld [vmem:[%s997_s29 + $0xc8] sm:$0xff] }
  0x17   : > { %853 = vmatpush3.bf16.msra.mxu1 %v824_v27  ;;  %827 = vmatprep.subr.bf16.mxu0 %v826_v28  ;;  %v298_v2 = vld [vmem:[%s997_s29 + $0x40] sm:$0xff]  ;;  %v301_v4 = vld [vmem:[%s997_s29 + $0x58] sm:$0xff]  ;;  %v300_v6 = vld [vmem:[%s997_s29 + $0x50] sm:$0xff] }
  0x18   : > { %846 = vmatprep.subr.bf16.mxu1 %v826_v28  ;;  %v314_v3 = vld [vmem:[%s997_s29 + $0xc0] sm:$0xff]  ;;  %v317_v5 = vld [vmem:[%s997_s29 + $0xd8] sm:$0xff]  ;;  %v316_v7 = vld [vmem:[%s997_s29 + $0xd0] sm:$0xff] }
  0x19   : > { %v303_v8 = vld [vmem:[%s997_s29 + $0x68] sm:$0xff]  ;;  %v302_v10 = vld [vmem:[%s997_s29 + $0x60] sm:$0xff]  ;;  %v305_v12 = vld [vmem:[%s997_s29 + $0x78] sm:$0xff] }
  0x1a   : > { %829 = vmatpush3.bf16.msra.mxu0 %v828_v33  ;;  %v319_v9 = vld [vmem:[%s997_s29 + $0xe8] sm:$0xff]  ;;  %v318_v11 = vld [vmem:[%s997_s29 + $0xe0] sm:$0xff]  ;;  %v321_v13 = vld [vmem:[%s997_s29 + $0xf8] sm:$0xff] }
  0x1b   : > { %854 = vmatpush3.bf16.msra.mxu1 %v828_v33  ;;  %831 = vmatprep.subr.bf16.mxu0 %v830_v34  ;;  %v304_v14 = vld [vmem:[%s997_s29 + $0x70] sm:$0xff]  ;;  %v1088_v19 = vld [vmem:[%s1160_s2] ss:$0 sm:$0xff] }
  0x1c   : > { %847 = vmatprep.subr.bf16.mxu1 %v830_v34  ;;  %v320_v15 = vld [vmem:[%s997_s29 + $0xf0] sm:$0xff] }
  0x1e   : > { %833 = vmatpush3.bf16.msra.mxu0 %v832_v39 }
  0x1f   : > { %855 = vmatpush3.bf16.msra.mxu1 %v832_v39  ;;  %835 = vmatprep.subr.bf16.mxu0 %v834_v40 }
  0x20   : > { %848 = vmatprep.subr.bf16.mxu1 %v834_v40 }
  0x22   : > { %837 = vmatpush3.bf16.msra.mxu0 %v836_v45 }
  0x23   : > { %856 = vmatpush3.bf16.msra.mxu1 %v836_v45  ;;  %839 = vmatprep.subr.bf16.mxu0 %v838_v46 }
  0x24   : > { %849 = vmatprep.subr.bf16.mxu1 %v838_v46 }
  0x26   : > { %841 = vmatpush3.bf16.msra.mxu0 %v840_v49 }
  0x27   : > { %857 = vmatpush3.bf16.msra.mxu1 %v840_v49 }
  0x29   : > { %419 = vmatmul.mubr.f32.vlgmr.msra.gmra.mrb[0].mxu0 %v290_v50 }
  0x2a   : > { %459 = vmatmul.mubr.f32.vlgmr.msra.gmra.mrb[0].mxu1 %v306_v51  ;;  %423 = vmatprep.mubr.f32.mxu0 %v293_v52 }
  0x2b   : > { %463 = vmatprep.mubr.f32.mxu1 %v309_v53 }
  0x2d   : > { %424 = vmatmul.mubr.f32.gmra.mrb[2].mxu0 %v292_v54 }
  0x2e   : > { %464 = vmatmul.mubr.f32.gmra.mrb[2].mxu1 %v308_v55  ;;  %428 = vmatprep.mubr.f32.mxu0 %v295_v56 }
  0x2f   : > { %468 = vmatprep.mubr.f32.mxu1 %v311_v57 }
  0x31   : > { %429 = vmatmul.mubr.f32.gmra.mrb[4].mxu0 %v294_v58 }
  0x32   : > { %469 = vmatmul.mubr.f32.gmra.mrb[4].mxu1 %v310_v59  ;;  %433 = vmatprep.mubr.f32.mxu0 %v297_v60 }
  0x33   : > { %473 = vmatprep.mubr.f32.mxu1 %v313_v61 }
  0x35   : > { %434 = vmatmul.mubr.f32.gmra.mrb[6].mxu0 %v296_v62 }
  0x36   : > { %474 = vmatmul.mubr.f32.gmra.mrb[6].mxu1 %v312_v63  ;;  %438 = vmatprep.mubr.f32.mxu0 %v299_v0 }
  0x37   : > { %478 = vmatprep.mubr.f32.mxu1 %v315_v1 }
  0x39   : > { %439 = vmatmul.mubr.f32.gmra.mrb[8].mxu0 %v298_v2 }
  0x3a   : > { %479 = vmatmul.mubr.f32.gmra.mrb[8].mxu1 %v314_v3  ;;  %443 = vmatprep.mubr.f32.mxu0 %v301_v4 }
  0x3b   : > { %483 = vmatprep.mubr.f32.mxu1 %v317_v5 }
  0x3d   : > { %444 = vmatmul.mubr.f32.gmra.mrb[10].mxu0 %v300_v6 }
  0x3e   : > { %484 = vmatmul.mubr.f32.gmra.mrb[10].mxu1 %v316_v7  ;;  %448 = vmatprep.mubr.f32.mxu0 %v303_v8 }
  0x3f   : > { %488 = vmatprep.mubr.f32.mxu1 %v319_v9 }
  0x41   : > { %449 = vmatmul.mubr.f32.gmra.mrb[12].mxu0 %v302_v10 }
  0x42   : > { %489 = vmatmul.mubr.f32.gmra.mrb[12].mxu1 %v318_v11  ;;  %453 = vmatprep.mubr.f32.mxu0 %v305_v12 }
  0x43   : > { %493 = vmatprep.mubr.f32.mxu1 %v321_v13 }
  0x45   : > { %454 = vmatmul.mubr.f32.gmra.mrb[14].mxu0 %v304_v14 }
  0x46   : > { %494 = vmatmul.mubr.f32.gmra.mrb[14].mxu1 %v320_v15 }
  0xfc   : > { %v762_v16 = vpop.f32.mrb[0].mxu0 }
  0xfd   : > { %v786_v17 = vpop.f32.mrb[0].mxu1  ;;  %v763_v18 = vpop.f32.mrb[1].mxu0 }
  0xfe   : > { %v787_v20 = vpop.f32.mrb[1].mxu1  ;;  %v764_v21 = vadd.f32 %v763_v18, %v762_v16 }
  0xff   : > { %v788_v22 = vadd.f32 %v787_v20, %v786_v17 }
 0x100   : > { %v557_v24 = vmul.f32 %v764_v21, %v1088_v19  ;;  %v765_v26 = vpop.f32.mrb[2].mxu0 }
 0x101   : > { %v565_v25 = vmul.f32 %v788_v22, %v1088_v19  ;;  %v789_v27 = vpop.f32.mrb[2].mxu1  ;;  %v766_v28 = vpop.f32.mrb[3].mxu0 }
 0x102   : > { %v790_v29 = vpop.f32.mrb[3].mxu1  ;;  %v580_v30 = vadd.f32 %v1093_v23, %v557_v24  ;;  %v767_v32 = vadd.f32 %v766_v28, %v765_v26 }
 0x103   : > { %v588_v31 = vadd.f32 %v1093_v23, %v565_v25  ;;  %v791_v33 = vadd.f32 %v790_v29, %v789_v27 }
 0x104   : > { %v596_v34 = vmax.f32 %v580_v30, 0.0  ;;  %v558_v36 = vmul.f32 %v767_v32, %v1088_v19  ;;  %v768_v38 = vpop.f32.mrb[4].mxu0 }
 0x105   : > { %v604_v35 = vmax.f32 %v588_v31, 0.0  ;;  %v566_v37 = vmul.f32 %v791_v33, %v1088_v19  ;;  %v792_v39 = vpop.f32.mrb[4].mxu1  ;;  %v769_v40 = vpop.f32.mrb[5].mxu0 }
 0x106   : > { %v793_v41 = vpop.f32.mrb[5].mxu1  ;;  %612 = vst [vmem:[%s1103_s30] sm:$0xff] %v596_v34  ;;  %v581_v42 = vadd.f32 %v1093_v23, %v558_v36  ;;  %v770_v44 = vadd.f32 %v769_v40, %v768_v38 }
 0x107   : > { %620 = vst [vmem:[%s1103_s30 + $0x40] sm:$0xff] %v604_v35  ;;  %v589_v43 = vadd.f32 %v1093_v23, %v566_v37  ;;  %v794_v45 = vadd.f32 %v793_v41, %v792_v39 }
 0x108   : > { %v597_v46 = vmax.f32 %v581_v42, 0.0  ;;  %v559_v48 = vmul.f32 %v770_v44, %v1088_v19  ;;  %v771_v50 = vpop.f32.mrb[6].mxu0 }
 0x109   : > { %v605_v47 = vmax.f32 %v589_v43, 0.0  ;;  %v567_v49 = vmul.f32 %v794_v45, %v1088_v19  ;;  %v795_v51 = vpop.f32.mrb[6].mxu1  ;;  %v772_v52 = vpop.f32.mrb[7].mxu0 }
 0x10a   : > { %v796_v53 = vpop.f32.mrb[7].mxu1  ;;  %613 = vst [vmem:[%s1103_s30 + $0x8] sm:$0xff] %v597_v46  ;;  %v582_v54 = vadd.f32 %v1093_v23, %v559_v48  ;;  %v773_v56 = vadd.f32 %v772_v52, %v771_v50 }
 0x10b   : > { %621 = vst [vmem:[%s1103_s30 + $0x48] sm:$0xff] %v605_v47  ;;  %v590_v55 = vadd.f32 %v1093_v23, %v567_v49  ;;  %v797_v57 = vadd.f32 %v796_v53, %v795_v51 }
 0x10c   : > { %v598_v58 = vmax.f32 %v582_v54, 0.0  ;;  %v560_v60 = vmul.f32 %v773_v56, %v1088_v19  ;;  %v774_v62 = vpop.f32.mrb[8].mxu0 }
 0x10d   : > { %v606_v59 = vmax.f32 %v590_v55, 0.0  ;;  %v568_v61 = vmul.f32 %v797_v57, %v1088_v19  ;;  %v798_v63 = vpop.f32.mrb[8].mxu1  ;;  %v775_v0 = vpop.f32.mrb[9].mxu0 }
 0x10e   : > { %v799_v1 = vpop.f32.mrb[9].mxu1  ;;  %614 = vst [vmem:[%s1103_s30 + $0x10] sm:$0xff] %v598_v58  ;;  %v583_v2 = vadd.f32 %v1093_v23, %v560_v60  ;;  %v776_v4 = vadd.f32 %v775_v0, %v774_v62 }
 0x10f   : > { %622 = vst [vmem:[%s1103_s30 + $0x50] sm:$0xff] %v606_v59  ;;  %v591_v3 = vadd.f32 %v1093_v23, %v568_v61  ;;  %v800_v5 = vadd.f32 %v799_v1, %v798_v63 }
 0x110   : > { %v599_v6 = vmax.f32 %v583_v2, 0.0  ;;  %v561_v8 = vmul.f32 %v776_v4, %v1088_v19  ;;  %v777_v10 = vpop.f32.mrb[10].mxu0 }
 0x111   : > { %v607_v7 = vmax.f32 %v591_v3, 0.0  ;;  %v569_v9 = vmul.f32 %v800_v5, %v1088_v19  ;;  %v801_v11 = vpop.f32.mrb[10].mxu1  ;;  %v778_v12 = vpop.f32.mrb[11].mxu0 }
 0x112   : > { %v802_v13 = vpop.f32.mrb[11].mxu1  ;;  %615 = vst [vmem:[%s1103_s30 + $0x18] sm:$0xff] %v599_v6  ;;  %v584_v14 = vadd.f32 %v1093_v23, %v561_v8  ;;  %v779_v16 = vadd.f32 %v778_v12, %v777_v10 }
 0x113   : > { %623 = vst [vmem:[%s1103_s30 + $0x58] sm:$0xff] %v607_v7  ;;  %v592_v15 = vadd.f32 %v1093_v23, %v569_v9  ;;  %v803_v17 = vadd.f32 %v802_v13, %v801_v11 }
 0x114   : > { %v600_v18 = vmax.f32 %v584_v14, 0.0  ;;  %v562_v21 = vmul.f32 %v779_v16, %v1088_v19  ;;  %v780_v24 = vpop.f32.mrb[12].mxu0 }
 0x115   : > { %v608_v20 = vmax.f32 %v592_v15, 0.0  ;;  %v570_v22 = vmul.f32 %v803_v17, %v1088_v19  ;;  %v804_v25 = vpop.f32.mrb[12].mxu1  ;;  %v781_v26 = vpop.f32.mrb[13].mxu0 }
 0x116   : > { %v805_v27 = vpop.f32.mrb[13].mxu1  ;;  %616 = vst [vmem:[%s1103_s30 + $0x20] sm:$0xff] %v600_v18  ;;  %v585_v28 = vadd.f32 %v1093_v23, %v562_v21  ;;  %v782_v30 = vadd.f32 %v781_v26, %v780_v24 }
 0x117   : > { %624 = vst [vmem:[%s1103_s30 + $0x60] sm:$0xff] %v608_v20  ;;  %v593_v29 = vadd.f32 %v1093_v23, %v570_v22  ;;  %v806_v31 = vadd.f32 %v805_v27, %v804_v25 }
 0x118   : > { %v601_v32 = vmax.f32 %v585_v28, 0.0  ;;  %v563_v34 = vmul.f32 %v782_v30, %v1088_v19  ;;  %v783_v36 = vpop.f32.mrb[14].mxu0 }
 0x119   : > { %v609_v33 = vmax.f32 %v593_v29, 0.0  ;;  %v571_v35 = vmul.f32 %v806_v31, %v1088_v19  ;;  %v807_v37 = vpop.f32.mrb[14].mxu1  ;;  %v784_v38 = vpop.f32.mrb[15].mxu0 }
 0x11a   : > { %v808_v39 = vpop.f32.mrb[15].mxu1  ;;  %617 = vst [vmem:[%s1103_s30 + $0x28] sm:$0xff] %v601_v32  ;;  %v586_v40 = vadd.f32 %v1093_v23, %v563_v34  ;;  %v785_v42 = vadd.f32 %v784_v38, %v783_v36 }
 0x11b   : > { %625 = vst [vmem:[%s1103_s30 + $0x68] sm:$0xff] %v609_v33  ;;  %v594_v41 = vadd.f32 %v1093_v23, %v571_v35  ;;  %v809_v43 = vadd.f32 %v808_v39, %v807_v37 }
 0x11c   : > { %v602_v44 = vmax.f32 %v586_v40, 0.0  ;;  %v564_v46 = vmul.f32 %v785_v42, %v1088_v19 }
 0x11d   : > { %v610_v45 = vmax.f32 %v594_v41, 0.0  ;;  %v572_v47 = vmul.f32 %v809_v43, %v1088_v19 }
 0x11e   : > { %618 = vst [vmem:[%s1103_s30 + $0x30] sm:$0xff] %v602_v44  ;;  %v587_v48 = vadd.f32 %v1093_v23, %v564_v46 }
 0x11f   : > { %626 = vst [vmem:[%s1103_s30 + $0x70] sm:$0xff] %v610_v45  ;;  %v595_v49 = vadd.f32 %v1093_v23, %v572_v47 }
 0x120   : > { %v603_v50 = vmax.f32 %v587_v48, 0.0 }
 0x121   : > { %v611_v51 = vmax.f32 %v595_v49, 0.0 }
 0x122   : > { %619 = vst [vmem:[%s1103_s30 + $0x38] sm:$0xff] %v603_v50 }
 0x123   : > { %627 = vst [vmem:[%s1103_s30 + $0x78] sm:$0xff] %v611_v51 }
 0x124 PF: > { %s14_s17 = sadd.s32 1, %s904_s17   ;;  %s1163_s15 = smov %s900_s16 }
 0x125   : > { %p11_p5 = scmp.ge.s32.totalorder %s14_s17, 6   ;;  %s1164_s16 = smov %s1166_s18 }
 0x127   :  { %13 = sbr.rel (!%p11_p5) target bundleno = 2 (0x2), region = 77 }

// kernel: custom_resnet_forward.10
= control target key start
LH: loop header
LB: loop body
LE: loop exit
PB: predicated region body
PF: predicated region fallthrough
CT: control target
= control target key end

     0   :  { %s500_s6 = smov 0   ;;  %s502_s7 = smov 0   ;;  %s670_s0 = inlined_call_operand.vmem [shape: f32[9,128,128], index: 0, kind: input, shape index: {}]   ;;  %s671_s1 = inlined_call_operand.vmem [shape: f32[128,128], index: 1, kind: output, shape index: {}]  }
   0x1   :  { %s504_s8 = smov 0  }
   0x2 LB: > { %s428_s9 = sadd.s32 4294967295, %s488_s8   ;;  %s517_s10 = sadd.s32 1, %s488_s8   ;;  %s488_s8 = sphi %s504_s8, %s674_s8   ;;  %s484_s7 = sphi %s502_s7, %s673_s7   ;;  %s480_s6 = sphi %s500_s6, %s672_s6  }
   0x3   : > { %s15_s11 = ssub.s32 %s488_s8, %s517_s10  ;;  %s18_s12 = sadd.s32 1, %s484_s7 }
   0x4   : > { %p16_p0 = scmp.eq.s32.totalorder %s15_s11, 0  ;;  %p25_p1 = scmp.ne.s32.totalorder %s484_s7, %s480_s6 }
   0x5   : > { %p26_p2 = scmp.eq.s32.totalorder %s488_s8, 0  ;;  %p431_p4 = scmp.ge.s32.totalorder %s488_s8, 4 }
   0x6   : > { %s526_s13 = scalar_select %p16_p0, %s484_s7, %s18_s12  }
   0x7   : > { %p27_p3 = por %p26_p2, %p25_p1  ;;  %77 = sbr.rel (%p431_p4) target bundleno = 37 (0x25), region = 16 }
   0xe   : > { %80 = sbr.rel (!%p27_p3) target bundleno = 37 (0x25), region = 20  ;;  %s82_s14 = sand.u32 (%p27_p3), 1, %s484_s7  }
   0xf   : > { %s439_s15 = sshll.u32 (%p27_p3), %s488_s8, 5  ;;  %s440_s16 = smul.u32 (%p27_p3), 288, %s82_s14 }
  0x10   : > { %s534_s19 = scalar_lea.vmem (%p27_p3), %s670_s0, %s439_s15 }
  0x11   : > { %v185_v0 = vld [vmem:[%s534_s19] sm:$0xff] (%p27_p3)  ;;  %v187_v1 = vld [vmem:[%s534_s19 + $0x8] sm:$0xff] (%p27_p3)  ;;  %v189_v2 = vld [vmem:[%s534_s19 + $0x10] sm:$0xff] (%p27_p3)  ;;  %s542_s20 = scalar_lea.vmem (%p27_p3), [#allocation2], %s440_s16 }
  0x12   : > { %v191_v3 = vld [vmem:[%s534_s19 + $0x18] sm:$0xff] (%p27_p3)  ;;  %v193_v4 = vld [vmem:[%s534_s19 + $0x80] sm:$0xff] (%p27_p3)  ;;  %v195_v5 = vld [vmem:[%s534_s19 + $0x88] sm:$0xff] (%p27_p3)  ;;  %186 = vst [vmem:[%s542_s20] sm:$0xff] (%p27_p3), %v185_v0 }
  0x13   : > { %188 = vst [vmem:[%s542_s20 + $0x8] sm:$0xff] (%p27_p3), %v187_v1  ;;  %190 = vst [vmem:[%s542_s20 + $0x10] sm:$0xff] (%p27_p3), %v189_v2  ;;  %v197_v6 = vld [vmem:[%s534_s19 + $0x90] sm:$0xff] (%p27_p3)  ;;  %v199_v7 = vld [vmem:[%s534_s19 + $0x98] sm:$0xff] (%p27_p3) }
  0x14   : > { %192 = vst [vmem:[%s542_s20 + $0x18] sm:$0xff] (%p27_p3), %v191_v3  ;;  %194 = vst [vmem:[%s542_s20 + $0x20] sm:$0xff] (%p27_p3), %v193_v4  ;;  %v201_v8 = vld [vmem:[%s534_s19 + $0x100] sm:$0xff] (%p27_p3)  ;;  %v203_v9 = vld [vmem:[%s534_s19 + $0x108] sm:$0xff] (%p27_p3) }
  0x15   : > { %196 = vst [vmem:[%s542_s20 + $0x28] sm:$0xff] %v195_v5  ;;  %198 = vst [vmem:[%s542_s20 + $0x30] sm:$0xff] %v197_v6  ;;  %v205_v10 = vld [vmem:[%s534_s19 + $0x110] sm:$0xff]  ;;  %v207_v11 = vld [vmem:[%s534_s19 + $0x118] sm:$0xff] }
  0x16   : > { %200 = vst [vmem:[%s542_s20 + $0x38] sm:$0xff] %v199_v7  ;;  %202 = vst [vmem:[%s542_s20 + $0x40] sm:$0xff] %v201_v8  ;;  %v209_v12 = vld [vmem:[%s534_s19 + $0x180] sm:$0xff]  ;;  %v211_v13 = vld [vmem:[%s534_s19 + $0x188] sm:$0xff] }
  0x17   : > { %204 = vst [vmem:[%s542_s20 + $0x48] sm:$0xff] %v203_v9  ;;  %206 = vst [vmem:[%s542_s20 + $0x50] sm:$0xff] %v205_v10  ;;  %v213_v14 = vld [vmem:[%s534_s19 + $0x190] sm:$0xff]  ;;  %v215_v15 = vld [vmem:[%s534_s19 + $0x198] sm:$0xff] }
  0x18   : > { %208 = vst [vmem:[%s542_s20 + $0x58] sm:$0xff] %v207_v11  ;;  %210 = vst [vmem:[%s542_s20 + $0x60] sm:$0xff] %v209_v12  ;;  %v217_v16 = vld [vmem:[%s534_s19 + $0x200] sm:$0xff]  ;;  %v219_v17 = vld [vmem:[%s534_s19 + $0x208] sm:$0xff] }
  0x19   : > { %212 = vst [vmem:[%s542_s20 + $0x68] sm:$0xff] %v211_v13  ;;  %214 = vst [vmem:[%s542_s20 + $0x70] sm:$0xff] %v213_v14  ;;  %v221_v18 = vld [vmem:[%s534_s19 + $0x210] sm:$0xff]  ;;  %v223_v19 = vld [vmem:[%s534_s19 + $0x218] sm:$0xff] }
  0x1a   : > { %216 = vst [vmem:[%s542_s20 + $0x78] sm:$0xff] %v215_v15  ;;  %218 = vst [vmem:[%s542_s20 + $0x80] sm:$0xff] %v217_v16  ;;  %v225_v20 = vld [vmem:[%s534_s19 + $0x280] sm:$0xff]  ;;  %v227_v21 = vld [vmem:[%s534_s19 + $0x288] sm:$0xff] }
  0x1b   : > { %220 = vst [vmem:[%s542_s20 + $0x88] sm:$0xff] %v219_v17  ;;  %222 = vst [vmem:[%s542_s20 + $0x90] sm:$0xff] %v221_v18  ;;  %v229_v22 = vld [vmem:[%s534_s19 + $0x290] sm:$0xff]  ;;  %v231_v23 = vld [vmem:[%s534_s19 + $0x298] sm:$0xff] }
  0x1c   : > { %224 = vst [vmem:[%s542_s20 + $0x98] sm:$0xff] %v223_v19  ;;  %226 = vst [vmem:[%s542_s20 + $0xa0] sm:$0xff] %v225_v20  ;;  %v233_v24 = vld [vmem:[%s534_s19 + $0x300] sm:$0xff]  ;;  %v235_v25 = vld [vmem:[%s534_s19 + $0x308] sm:$0xff] }
  0x1d   : > { %228 = vst [vmem:[%s542_s20 + $0xa8] sm:$0xff] %v227_v21  ;;  %230 = vst [vmem:[%s542_s20 + $0xb0] sm:$0xff] %v229_v22  ;;  %v237_v26 = vld [vmem:[%s534_s19 + $0x310] sm:$0xff]  ;;  %v239_v27 = vld [vmem:[%s534_s19 + $0x318] sm:$0xff] }
  0x1e   : > { %232 = vst [vmem:[%s542_s20 + $0xb8] sm:$0xff] %v231_v23  ;;  %234 = vst [vmem:[%s542_s20 + $0xc0] sm:$0xff] %v233_v24  ;;  %v241_v28 = vld [vmem:[%s534_s19 + $0x380] sm:$0xff]  ;;  %v243_v29 = vld [vmem:[%s534_s19 + $0x388] sm:$0xff] }
  0x1f   : > { %236 = vst [vmem:[%s542_s20 + $0xc8] sm:$0xff] %v235_v25  ;;  %238 = vst [vmem:[%s542_s20 + $0xd0] sm:$0xff] %v237_v26  ;;  %v245_v30 = vld [vmem:[%s534_s19 + $0x390] sm:$0xff]  ;;  %v247_v31 = vld [vmem:[%s534_s19 + $0x398] sm:$0xff] }
  0x20   : > { %240 = vst [vmem:[%s542_s20 + $0xd8] sm:$0xff] %v239_v27  ;;  %242 = vst [vmem:[%s542_s20 + $0xe0] sm:$0xff] %v241_v28  ;;  %v249_v32 = vld [vmem:[%s534_s19 + $0x400] sm:$0xff]  ;;  %v251_v33 = vld [vmem:[%s534_s19 + $0x408] sm:$0xff] }
  0x21   : > { %244 = vst [vmem:[%s542_s20 + $0xe8] sm:$0xff] %v243_v29  ;;  %246 = vst [vmem:[%s542_s20 + $0xf0] sm:$0xff] %v245_v30  ;;  %v253_v34 = vld [vmem:[%s534_s19 + $0x410] sm:$0xff]  ;;  %v255_v35 = vld [vmem:[%s534_s19 + $0x418] sm:$0xff] }
  0x22   : > { %248 = vst [vmem:[%s542_s20 + $0xf8] sm:$0xff] %v247_v31  ;;  %250 = vst [vmem:[%s542_s20 + $0x100] sm:$0xff] %v249_v32 }
  0x23   : > { %252 = vst [vmem:[%s542_s20 + $0x108] sm:$0xff] %v251_v33  ;;  %254 = vst [vmem:[%s542_s20 + $0x110] sm:$0xff] %v253_v34 }
  0x24   : > { %256 = vst [vmem:[%s542_s20 + $0x118] sm:$0xff] %v255_v35 }
  0x25 PF: > { %p434_p5 = scmp.ge.s32.totalorder %s488_s8, 1  ;;  %p261_p6 = scmp.lt.s32.totalorder %s488_s8, 5 }
  0x27   : > { %p262_p7 = pnand %p434_p5, %p261_p6 }
  0x28   : > { %s268_s21 = sand.u32 (!%p262_p7), 1, %s480_s6   ;;  %s435_s23 = sshll.u32 (!%p262_p7), %s428_s9, 2 }
  0x29   : > { %265 = sbr.rel (%p262_p7) target bundleno = 68 (0x44), region = 58  ;;  %p289_p8 = scmp.lt.s32.totalorder (!%p262_p7), %s435_s23, 15 }
  0x2a   : > { %s441_s22 = smul.u32 (!%p262_p7), 288, %s268_s21 }
  0x2c   : > { %s615_s24 = scalar_lea.vmem (!%p262_p7), [#allocation2], %s441_s22 }
  0x2d   : > { %v294_v36 = vld [vmem:[%s615_s24] sm:$0xff] (!%p262_p7)  ;;  %v295_v42 = vld [vmem:[%s615_s24 + $0x8] sm:$0xff] (!%p262_p7)  ;;  %v296_v51 = vld [vmem:[%s615_s24 + $0x10] sm:$0xff] (!%p262_p7) }
  0x2e   : > { %v298_v37 = vld [vmem:[%s615_s24 + $0x20] sm:$0xff] (!%p262_p7)  ;;  %v299_v43 = vld [vmem:[%s615_s24 + $0x28] sm:$0xff] (!%p262_p7)  ;;  %v300_v52 = vld [vmem:[%s615_s24 + $0x30] sm:$0xff] (!%p262_p7) }
  0x2f   : > { %v302_v38 = vld [vmem:[%s615_s24 + $0x40] sm:$0xff] (!%p262_p7)  ;;  %v330_v39 = vmax.f32 (!%p262_p7), %v294_v36, %v298_v37  ;;  %v303_v44 = vld [vmem:[%s615_s24 + $0x48] sm:$0xff] (!%p262_p7)  ;;  %v338_v46 = vmax.f32 (!%p262_p7), %v295_v42, %v299_v43  ;;  %v304_v53 = vld [vmem:[%s615_s24 + $0x50] sm:$0xff] (!%p262_p7)  ;;  %v346_v56 = vmax.f32 (!%p262_p7), %v296_v51, %v300_v52 }
  0x30   : > { %v306_v40 = vld [vmem:[%s615_s24 + $0x60] sm:$0xff]  ;;  %v307_v49 = vld [vmem:[%s615_s24 + $0x68] sm:$0xff]  ;;  %s676_s23 = smov (!%p289_p8, %s435_s23), 15  ;;  %v308_v60 = vld [vmem:[%s615_s24 + $0x70] sm:$0xff] }
  0x31   : > { %v331_v41 = vmax.f32 %v330_v39, %v302_v38  ;;  %v310_v45 = vld [vmem:[%s615_s24 + $0x80] sm:$0xff]  ;;  %v339_v50 = vmax.f32 %v338_v46, %v303_v44  ;;  %v311_v55 = vld [vmem:[%s615_s24 + $0x88] sm:$0xff]  ;;  %v347_v62 = vmax.f32 %v346_v56, %v304_v53  ;;  %v297_v63 = vld [vmem:[%s615_s24 + $0x18] sm:$0xff]  ;;  %s436_s25 = sshll.u32 %s676_s23, 3 }
  0x32   : > { %v314_v47 = vld [vmem:[%s615_s24 + $0xa0] sm:$0xff]  ;;  %v315_v58 = vld [vmem:[%s615_s24 + $0xa8] sm:$0xff]  ;;  %v301_v0 = vld [vmem:[%s615_s24 + $0x38] sm:$0xff]  ;;  %s292_s28 = scalar_lea.vmem %s671_s1, %s436_s25 }
  0x33   : > { %v332_v48 = vmax.f32 %v331_v41, %v306_v40  ;;  %v318_v57 = vld [vmem:[%s615_s24 + $0xc0] sm:$0xff]  ;;  %v340_v59 = vmax.f32 %v339_v50, %v307_v49  ;;  %v305_v1 = vld [vmem:[%s615_s24 + $0x58] sm:$0xff]  ;;  %v312_v4 = vld [vmem:[%s615_s24 + $0x90] sm:$0xff]  ;;  %v354_v5 = vmax.f32 %v297_v63, %v301_v0  ;;  %v348_v8 = vmax.f32 %v347_v62, %v308_v60 }
  0x34   : > { %v322_v2 = vld [vmem:[%s615_s24 + $0xe0] sm:$0xff]  ;;  %v319_v7 = vld [vmem:[%s615_s24 + $0xc8] sm:$0xff]  ;;  %v309_v9 = vld [vmem:[%s615_s24 + $0x78] sm:$0xff] }
  0x35   : > { %v333_v54 = vmax.f32 %v332_v48, %v310_v45  ;;  %v341_v3 = vmax.f32 %v340_v59, %v311_v55  ;;  %v326_v10 = vld [vmem:[%s615_s24 + $0x100] sm:$0xff]  ;;  %v316_v12 = vld [vmem:[%s615_s24 + $0xb0] sm:$0xff]  ;;  %v355_v13 = vmax.f32 %v354_v5, %v305_v1  ;;  %v323_v15 = vld [vmem:[%s615_s24 + $0xe8] sm:$0xff]  ;;  %v349_v16 = vmax.f32 %v348_v8, %v312_v4 }
  0x36   : > { %v313_v17 = vld [vmem:[%s615_s24 + $0x98] sm:$0xff]  ;;  %v320_v19 = vld [vmem:[%s615_s24 + $0xd0] sm:$0xff]  ;;  %v327_v22 = vld [vmem:[%s615_s24 + $0x108] sm:$0xff] }
  0x37   : > { %v334_v61 = vmax.f32 %v333_v54, %v314_v47  ;;  %v342_v11 = vmax.f32 %v341_v3, %v315_v58  ;;  %v356_v20 = vmax.f32 %v355_v13, %v309_v9  ;;  %v350_v23 = vmax.f32 %v349_v16, %v316_v12  ;;  %v317_v24 = vld [vmem:[%s615_s24 + $0xb8] sm:$0xff]  ;;  %v324_v26 = vld [vmem:[%s615_s24 + $0xf0] sm:$0xff] }
  0x38   : > { %v321_v29 = vld [vmem:[%s615_s24 + $0xd8] sm:$0xff]  ;;  %v328_v31 = vld [vmem:[%s615_s24 + $0x110] sm:$0xff] }
  0x39   : > { %v335_v6 = vmax.f32 %v334_v61, %v318_v57  ;;  %v343_v18 = vmax.f32 %v342_v11, %v319_v7  ;;  %v357_v27 = vmax.f32 %v356_v20, %v313_v17  ;;  %v351_v28 = vmax.f32 %v350_v23, %v320_v19  ;;  %v325_v34 = vld [vmem:[%s615_s24 + $0xf8] sm:$0xff] }
  0x3a   : > { %v329_v37 = vld [vmem:[%s615_s24 + $0x118] sm:$0xff] }
  0x3b   : > { %v336_v14 = vmax.f32 %v335_v6, %v322_v2  ;;  %v344_v25 = vmax.f32 %v343_v18, %v323_v15  ;;  %v358_v32 = vmax.f32 %v357_v27, %v317_v24  ;;  %v352_v33 = vmax.f32 %v351_v28, %v324_v26 }
  0x3d   : > { %v337_v21 = vmax.f32 %v336_v14, %v326_v10  ;;  %v345_v30 = vmax.f32 %v344_v25, %v327_v22  ;;  %v359_v35 = vmax.f32 %v358_v32, %v321_v29  ;;  %v353_v36 = vmax.f32 %v352_v33, %v328_v31 }
  0x3f   : > { %362 = vst [vmem:[%s292_s28] sm:$0xff] %v337_v21  ;;  %363 = vst [vmem:[%s292_s28 + $0x8] sm:$0xff] %v345_v30  ;;  %v360_v38 = vmax.f32 %v359_v35, %v325_v34 }
  0x40   : > { %364 = vst [vmem:[%s292_s28 + $0x10] sm:$0xff] %v353_v36 }
  0x41   : > { %v361_v39 = vmax.f32 %v360_v38, %v329_v37 }
  0x43   : > { %365 = vst [vmem:[%s292_s28 + $0x18] sm:$0xff] %v361_v39 }
  0x44 PF: > { %p8_p9 = scmp.ge.s32.totalorder %s517_s10, 6   ;;  %s672_s6 = smov %s484_s7 }
  0x45   : > { %s673_s7 = smov %s526_s13  ;;  %s674_s8 = smov %s517_s10 }
  0x46   :  { %10 = sbr.rel (!%p8_p9) target bundleno = 2 (0x2), region = 97 }

// kernel: custom_resnet_forward.14
= control target key start
LH: loop header
LB: loop body
LE: loop exit
PB: predicated region body
PF: predicated region fallthrough
CT: control target
= control target key end

     0   :  { %s647_s15 = smov 0   ;;  %s649_s16 = smov 0   ;;  %s789_s0 = inlined_call_operand.vmem [shape: f32[32,128], index: 0, kind: input, shape index: {}]   ;;  %s790_s1 = inlined_call_operand.vmem [shape: f32[128,256], index: 1, kind: input, shape index: {}]   ;;  %s791_s2 = inlined_call_operand.vmem [shape: f32[1,256], index: 2, kind: input, shape index: {}]   ;;  %s792_s3 = inlined_call_operand.vmem [shape: f32[1,256], index: 3, kind: input, shape index: {}]   ;;  %s793_s4 = inlined_call_operand.vmem [shape: f32[32,256], index: 4, kind: output, shape index: {}]  }
   0x1   :  { %s651_s17 = smov 0  }
   0x2 LB: > { %s26_s18 = sadd.s32 1, %s615_s16  ;;  %p515_p0 = scmp.ge.s32.totalorder %s619_s17, 1  ;;  %s619_s17 = sphi %s651_s17, %s14_s17   ;;  %s615_s16 = sphi %s649_s16, %s795_s16   ;;  %s611_s15 = sphi %s647_s15, %s794_s15  }
   0x3   : > { %p28_p1 = scmp.ge.s32.totalorder %s26_s18, 2  ;;  %p192_p2 = scmp.lt.s32.totalorder %s619_s17, 3 }
   0x5   : > { %s797_s18 = smov (%p28_p1, %s26_s18), 0  ;;  %p193_p3 = pnand %p515_p0, %p192_p2 }
   0x6   : > { %v266_v0 = vld [vmem:[%s790_s1 + $0x8] sm:$0xff] (!%p193_p3)  ;;  %v268_v1 = vld [vmem:[%s790_s1 + $0x18] sm:$0xff] (!%p193_p3)  ;;  %v265_v2 = vld [vmem:[%s790_s1] sm:$0xff] (!%p193_p3)  ;;  %v621_v7 = vmov (!%p193_p3), 0.0   ;;  %s516_s19 = sshll.u32 (!%p193_p3), %s611_s15, 1  ;;  %v391_v51 = vlaneseq (!%p193_p3) }
   0x7   : > { %196 = sbr.rel (%p193_p3) target bundleno = 259 (0x103), region = 36  ;;  %v524_v3 = vpack.c.bf16 (!%p193_p3), %v268_v1, %v266_v0  ;;  %v267_v4 = vld [vmem:[%s790_s1 + $0x10] sm:$0xff] (!%p193_p3)  ;;  %v270_v5 = vld [vmem:[%s790_s1 + $0x28] sm:$0xff] (!%p193_p3)  ;;  %v272_v6 = vld [vmem:[%s790_s1 + $0x38] sm:$0xff] (!%p193_p3)  ;;  %361 = vmatprep.mubr.f32.mxu0 (!%p193_p3), %v621_v7  ;;  %367 = vmatprep.mubr.f32.mxu1 (!%p193_p3), %v621_v7  ;;  %p229_p4 = scmp.lt.s32.totalorder (!%p193_p3), %s516_s19, 3 }
   0x8   : > { %v526_v8 = vpack.c.bf16 (!%p193_p3), %v267_v4, %v265_v2  ;;  %v528_v9 = vpack.c.bf16 (!%p193_p3), %v272_v6, %v270_v5  ;;  %v269_v10 = vld [vmem:[%s790_s1 + $0x20] sm:$0xff] (!%p193_p3)  ;;  %v271_v11 = vld [vmem:[%s790_s1 + $0x30] sm:$0xff] (!%p193_p3)  ;;  %v274_v12 = vld [vmem:[%s790_s1 + $0x48] sm:$0xff] (!%p193_p3)  ;;  %v392_v52 = vshrl.u32 (!%p193_p3), %v391_v51, 7 }
   0x9   : > { %525 = vmatprep.subr.bf16.mxu0 (!%p193_p3), %v524_v3  ;;  %556 = vmatprep.subr.bf16.mxu1 (!%p193_p3), %v524_v3  ;;  %v276_v13 = vld [vmem:[%s790_s1 + $0x58] sm:$0xff] (!%p193_p3)  ;;  %v530_v14 = vpack.c.bf16 (!%p193_p3), %v271_v11, %v269_v10  ;;  %v273_v16 = vld [vmem:[%s790_s1 + $0x40] sm:$0xff] (!%p193_p3)  ;;  %v275_v17 = vld [vmem:[%s790_s1 + $0x50] sm:$0xff] (!%p193_p3) }
   0xa   : > { %527 = vmatpush1.bf16.msra.mxu0 (!%p193_p3), %v526_v8  ;;  %564 = vmatpush1.bf16.msra.mxu1 (!%p193_p3), %v526_v8  ;;  %v532_v15 = vpack.c.bf16 (!%p193_p3), %v276_v13, %v274_v12  ;;  %v278_v18 = vld [vmem:[%s790_s1 + $0x68] sm:$0xff] (!%p193_p3)  ;;  %v280_v19 = vld [vmem:[%s790_s1 + $0x78] sm:$0xff] (!%p193_p3)  ;;  %v534_v20 = vpack.c.bf16 (!%p193_p3), %v275_v17, %v273_v16  ;;  %v277_v22 = vld [vmem:[%s790_s1 + $0x60] sm:$0xff] (!%p193_p3)  ;;  %v393_v53 = vsub.s32 (!%p193_p3), 0, %v392_v52  ;;  %v397_v55 = vsub.s32 (!%p193_p3), 1, %v392_v52 }
   0xb   : > { %529 = vmatprep.subr.bf16.mxu0 (!%p193_p3), %v528_v9  ;;  %557 = vmatprep.subr.bf16.mxu1 (!%p193_p3), %v528_v9  ;;  %v536_v21 = vpack.c.bf16 (!%p193_p3), %v280_v19, %v278_v18  ;;  %v279_v23 = vld [vmem:[%s790_s1 + $0x70] sm:$0xff] (!%p193_p3)  ;;  %v282_v24 = vld [vmem:[%s790_s1 + $0x88] sm:$0xff] (!%p193_p3)  ;;  %v284_v25 = vld [vmem:[%s790_s1 + $0x98] sm:$0xff] (!%p193_p3) }
   0xc   : > { %v538_v26 = vpack.c.bf16 (!%p193_p3), %v279_v23, %v277_v22  ;;  %v540_v27 = vpack.c.bf16 (!%p193_p3), %v284_v25, %v282_v24  ;;  %v281_v28 = vld [vmem:[%s790_s1 + $0x80] sm:$0xff] (!%p193_p3)  ;;  %v283_v29 = vld [vmem:[%s790_s1 + $0x90] sm:$0xff] (!%p193_p3)  ;;  %v286_v30 = vld [vmem:[%s790_s1 + $0xa8] sm:$0xff] (!%p193_p3) }
   0xd   : > { %v288_v31 = vld [vmem:[%s790_s1 + $0xb8] sm:$0xff] (!%p193_p3)  ;;  %v542_v32 = vpack.c.bf16 (!%p193_p3), %v283_v29, %v281_v28  ;;  %v285_v34 = vld [vmem:[%s790_s1 + $0xa0] sm:$0xff] (!%p193_p3)  ;;  %v287_v35 = vld [vmem:[%s790_s1 + $0xb0] sm:$0xff] (!%p193_p3) }
   0xe   : > { %531 = vmatpush1.bf16.msra.mxu0 %v530_v14  ;;  %565 = vmatpush1.bf16.msra.mxu1 %v530_v14  ;;  %v544_v33 = vpack.c.bf16 %v288_v31, %v286_v30  ;;  %v290_v36 = vld [vmem:[%s790_s1 + $0xc8] sm:$0xff]  ;;  %v292_v37 = vld [vmem:[%s790_s1 + $0xd8] sm:$0xff]  ;;  %v546_v38 = vpack.c.bf16 %v287_v35, %v285_v34  ;;  %v289_v40 = vld [vmem:[%s790_s1 + $0xc0] sm:$0xff]  ;;  %s799_s19 = smov (!%p229_p4, %s516_s19), 3 }
   0xf   : > { %533 = vmatprep.subr.bf16.mxu0 %v532_v15  ;;  %558 = vmatprep.subr.bf16.mxu1 %v532_v15  ;;  %v548_v39 = vpack.c.bf16 %v292_v37, %v290_v36  ;;  %v291_v41 = vld [vmem:[%s790_s1 + $0xd0] sm:$0xff]  ;;  %v294_v42 = vld [vmem:[%s790_s1 + $0xe8] sm:$0xff]  ;;  %v296_v43 = vld [vmem:[%s790_s1 + $0xf8] sm:$0xff]  ;;  %s517_s13 = sshll.u32 %s799_s19, 3  ;;  %s523_s26 = sshll.u32 %s799_s19, 4 }
  0x10   : > { %v550_v44 = vpack.c.bf16 %v291_v41, %v289_v40  ;;  %v552_v45 = vpack.c.bf16 %v296_v43, %v294_v42  ;;  %v293_v46 = vld [vmem:[%s790_s1 + $0xe0] sm:$0xff]  ;;  %v295_v47 = vld [vmem:[%s790_s1 + $0xf0] sm:$0xff]  ;;  %s235_s21 = scalar_lea.vmem %s789_s0, %s517_s13  ;;  %s249_s28 = scalar_lea.vmem %s793_s4, %s523_s26 }
  0x11   : > { %v554_v48 = vpack.c.bf16 %v295_v47, %v293_v46  ;;  %v263_v49 = vld [vmem:[%s235_s21] sm:$0xff]  ;;  %v264_v50 = vld [vmem:[%s235_s21 + $0x8] sm:$0xff] }
  0x12   : > { %535 = vmatpush1.bf16.msra.mxu0 %v534_v20  ;;  %566 = vmatpush1.bf16.msra.mxu1 %v534_v20  ;;  %v389_v54 = vld [vmem:[%s791_s2] sm:$0x3] }
  0x13   : > { %537 = vmatprep.subr.bf16.mxu0 %v536_v21  ;;  %559 = vmatprep.subr.bf16.mxu1 %v536_v21  ;;  %v405_v56 = vld [vmem:[%s792_s3] sm:$0x3]  ;;  %v394_v57 = vrot.slane %v389_v54, %v393_v53  ;;  %v398_v58 = vrot.slane %v389_v54, %v397_v55 }
  0x14   : > { %v410_v59 = vrot.slane %v405_v56, %v393_v53  ;;  %v414_v62 = vrot.slane %v405_v56, %v397_v55 }
  0x16   : > { %539 = vmatpush1.bf16.msra.mxu0 %v538_v26  ;;  %567 = vmatpush1.bf16.msra.mxu1 %v538_v26 }
  0x17   : > { %541 = vmatprep.subr.bf16.mxu0 %v540_v27  ;;  %560 = vmatprep.subr.bf16.mxu1 %v540_v27 }
  0x1a   : > { %543 = vmatpush1.bf16.msra.mxu0 %v542_v32  ;;  %568 = vmatpush1.bf16.msra.mxu1 %v542_v32 }
  0x1b   : > { %545 = vmatprep.subr.bf16.mxu0 %v544_v33  ;;  %561 = vmatprep.subr.bf16.mxu1 %v544_v33 }
  0x1e   : > { %547 = vmatpush1.bf16.msra.mxu0 %v546_v38  ;;  %569 = vmatpush1.bf16.msra.mxu1 %v546_v38 }
  0x1f   : > { %549 = vmatprep.subr.bf16.mxu0 %v548_v39  ;;  %562 = vmatprep.subr.bf16.mxu1 %v548_v39 }
  0x22   : > { %551 = vmatpush1.bf16.msra.mxu0 %v550_v44  ;;  %570 = vmatpush1.bf16.msra.mxu1 %v550_v44 }
  0x23   : > { %553 = vmatprep.subr.bf16.mxu0 %v552_v45  ;;  %563 = vmatprep.subr.bf16.mxu1 %v552_v45 }
  0x26   : > { %555 = vmatpush1.bf16.msra.mxu0 %v554_v48  ;;  %571 = vmatpush1.bf16.msra.mxu1 %v554_v48 }
  0x29   : > { %362 = vmatmul.mubr.f32.vlgmr.msra.gmra.mrb[0].mxu0 %v263_v49  ;;  %368 = vmatmul.mubr.f32.vlgmr.msra.gmra.mrb[0].mxu1 %v264_v50 }
  0xfc   : > { %v363_v60 = vpop.f32.mrb[0].mxu0  ;;  %v369_v61 = vpop.f32.mrb[0].mxu1 }
  0xfd   : > { %v401_v63 = vmul.f32 %v394_v57, %v363_v60  ;;  %v403_v0 = vmul.f32 %v394_v57, %v369_v61  ;;  %v365_v1 = vpop.f32.mrb[1].mxu0  ;;  %v371_v2 = vpop.f32.mrb[1].mxu1 }
  0xfe   : > { %v402_v3 = vmul.f32 %v398_v58, %v365_v1  ;;  %v404_v4 = vmul.f32 %v398_v58, %v371_v2 }
  0xff   : > { %v417_v5 = vadd.f32 %v410_v59, %v401_v63  ;;  %v419_v6 = vadd.f32 %v410_v59, %v403_v0 }
 0x100   : > { %v418_v7 = vadd.f32 %v414_v62, %v402_v3  ;;  %v420_v8 = vadd.f32 %v414_v62, %v404_v4 }
 0x101   : > { %421 = vst [vmem:[%s249_s28] sm:$0xff] %v417_v5  ;;  %423 = vst [vmem:[%s249_s28 + $0x10] sm:$0xff] %v419_v6 }
 0x102   : > { %422 = vst [vmem:[%s249_s28 + $0x8] sm:$0xff] %v418_v7  ;;  %424 = vst [vmem:[%s249_s28 + $0x18] sm:$0xff] %v420_v8 }
 0x103 PF: > { %s14_s17 = sadd.s32 1, %s619_s17   ;;  %s794_s15 = smov %s615_s16 }
 0x104   : > { %p11_p5 = scmp.ge.s32.totalorder %s14_s17, 4   ;;  %s795_s16 = smov %s797_s18 }
 0x106   :  { %13 = sbr.rel (!%p11_p5) target bundleno = 2 (0x2), region = 77 }

// kernel: custom_resnet_forward.12
= control target key start
LH: loop header
LB: loop body
LE: loop exit
PB: predicated region body
PF: predicated region fallthrough
CT: control target
= control target key end

     0   :  { %s1500_s15 = smov 0   ;;  %s1502_s16 = smov 0   ;;  %s2026_s0 = inlined_call_operand.vmem [shape: f32[128,1152], index: 0, kind: input, shape index: {}]   ;;  %s2027_s1 = inlined_call_operand.vmem [shape: f32[1152,128], index: 1, kind: input, shape index: {}]   ;;  %s2028_s2 = inlined_call_operand.vmem [shape: f32[1,128], index: 2, kind: input, shape index: {}]   ;;  %s2029_s3 = inlined_call_operand.vmem [shape: f32[1,128], index: 3, kind: input, shape index: {}]   ;;  %s2030_s4 = inlined_call_operand.vmem [shape: f32[128,128], index: 4, kind: output, shape index: {}]  }
   0x1   :  { %s1504_s17 = smov 0  }
   0x2 LB: > { %s26_s18 = sadd.s32 1, %s1469_s16  ;;  %p1007_p0 = scmp.ge.s32.totalorder %s1473_s17, 1  ;;  %s1473_s17 = sphi %s1504_s17, %s14_s17   ;;  %s1469_s16 = sphi %s1502_s16, %s2033_s16   ;;  %s1465_s15 = sphi %s1500_s15, %s2032_s15  }
   0x3   : > { %p28_p1 = scmp.ge.s32.totalorder %s26_s18, 4  ;;  %p194_p2 = scmp.lt.s32.totalorder %s1473_s17, 5 }
   0x5   : > { %s2035_s18 = smov (%p28_p1, %s26_s18), 0  ;;  %p195_p3 = pnand %p1007_p0, %p194_p2 }
   0x6   : > { %v318_v0 = vld [vmem:[%s2027_s1 + $0x80] sm:$0xff] (!%p195_p3)  ;;  %v319_v1 = vld [vmem:[%s2027_s1 + $0x88] sm:$0xff] (!%p195_p3)  ;;  %v320_v11 = vld [vmem:[%s2027_s1 + $0x90] sm:$0xff] (!%p195_p3)  ;;  %s1008_s21 = sshll.u32 (!%p195_p3), %s1465_s15, 2 }
   0x7   : > { %198 = sbr.rel (%p195_p3) target bundleno = 329 (0x149), region = 36  ;;  %v350_v2 = vld [vmem:[%s2027_s1 + $0x180] sm:$0xff] (!%p195_p3)  ;;  %v1250_v3 = vpack.c.bf16 (!%p195_p3), %v319_v1, %v318_v0  ;;  %v351_v4 = vld [vmem:[%s2027_s1 + $0x188] sm:$0xff] (!%p195_p3)  ;;  %v321_v13 = vld [vmem:[%s2027_s1 + $0x98] sm:$0xff] (!%p195_p3)  ;;  %p1586_p4 = scmp.lt.s32.totalorder (!%p195_p3), %s1008_s21, 15 }
   0x8   : > { %v302_v5 = vld [vmem:[%s2027_s1] sm:$0xff] (!%p195_p3)  ;;  %v303_v6 = vld [vmem:[%s2027_s1 + $0x8] sm:$0xff] (!%p195_p3)  ;;  %v1282_v7 = vpack.c.bf16 (!%p195_p3), %v351_v4, %v350_v2  ;;  %v352_v14 = vld [vmem:[%s2027_s1 + $0x190] sm:$0xff] (!%p195_p3)  ;;  %v1254_v16 = vpack.c.bf16 (!%p195_p3), %v321_v13, %v320_v11 }
   0x9   : > { %v1252_v8 = vpack.c.bf16 (!%p195_p3), %v303_v6, %v302_v5  ;;  %v334_v9 = vld [vmem:[%s2027_s1 + $0x100] sm:$0xff] (!%p195_p3)  ;;  %v335_v10 = vld [vmem:[%s2027_s1 + $0x108] sm:$0xff] (!%p195_p3)  ;;  %1251 = vmatprep.subr.bf16.mxu0 (!%p195_p3), %v1250_v3  ;;  %v353_v15 = vld [vmem:[%s2027_s1 + $0x198] sm:$0xff] (!%p195_p3) }
   0xa   : > { %v1284_v12 = vpack.c.bf16 (!%p195_p3), %v335_v10, %v334_v9  ;;  %1283 = vmatprep.subr.bf16.mxu1 (!%p195_p3), %v1282_v7  ;;  %v1286_v17 = vpack.c.bf16 (!%p195_p3), %v353_v15, %v352_v14  ;;  %v304_v18 = vld [vmem:[%s2027_s1 + $0x10] sm:$0xff] (!%p195_p3)  ;;  %v305_v19 = vld [vmem:[%s2027_s1 + $0x18] sm:$0xff] (!%p195_p3)  ;;  %v322_v23 = vld [vmem:[%s2027_s1 + $0xa0] sm:$0xff] (!%p195_p3) }
   0xb   : > { %1253 = vmatpush3.bf16.msra.mxu0 (!%p195_p3), %v1252_v8  ;;  %v336_v20 = vld [vmem:[%s2027_s1 + $0x110] sm:$0xff] (!%p195_p3)  ;;  %v1256_v21 = vpack.c.bf16 (!%p195_p3), %v305_v19, %v304_v18  ;;  %v337_v22 = vld [vmem:[%s2027_s1 + $0x118] sm:$0xff] (!%p195_p3)  ;;  %v323_v24 = vld [vmem:[%s2027_s1 + $0xa8] sm:$0xff] (!%p195_p3) }
   0xc   : > { %1285 = vmatpush3.bf16.msra.mxu1 (!%p195_p3), %v1284_v12  ;;  %1255 = vmatprep.subr.bf16.mxu0 (!%p195_p3), %v1254_v16  ;;  %v1288_v25 = vpack.c.bf16 (!%p195_p3), %v337_v22, %v336_v20  ;;  %v1258_v26 = vpack.c.bf16 (!%p195_p3), %v323_v24, %v322_v23  ;;  %v354_v27 = vld [vmem:[%s2027_s1 + $0x1a0] sm:$0xff] (!%p195_p3)  ;;  %v355_v28 = vld [vmem:[%s2027_s1 + $0x1a8] sm:$0xff] (!%p195_p3)  ;;  %v324_v35 = vld [vmem:[%s2027_s1 + $0xb0] sm:$0xff] (!%p195_p3) }
   0xd   : > { %1287 = vmatprep.subr.bf16.mxu1 (!%p195_p3), %v1286_v17  ;;  %v306_v29 = vld [vmem:[%s2027_s1 + $0x20] sm:$0xff] (!%p195_p3)  ;;  %v1290_v30 = vpack.c.bf16 (!%p195_p3), %v355_v28, %v354_v27  ;;  %v307_v31 = vld [vmem:[%s2027_s1 + $0x28] sm:$0xff] (!%p195_p3)  ;;  %v325_v36 = vld [vmem:[%s2027_s1 + $0xb8] sm:$0xff] (!%p195_p3) }
   0xe   : > { %v338_v32 = vld [vmem:[%s2027_s1 + $0x120] sm:$0xff]  ;;  %v339_v33 = vld [vmem:[%s2027_s1 + $0x128] sm:$0xff]  ;;  %v1260_v34 = vpack.c.bf16 %v307_v31, %v306_v29  ;;  %v356_v37 = vld [vmem:[%s2027_s1 + $0x1b0] sm:$0xff]  ;;  %v1262_v39 = vpack.c.bf16 %v325_v36, %v324_v35  ;;  %s2037_s21 = smov (!%p1586_p4, %s1008_s21), 15 }
   0xf   : > { %1257 = vmatpush3.bf16.msra.mxu0 %v1256_v21  ;;  %v1292_v38 = vpack.c.bf16 %v339_v33, %v338_v32  ;;  %v357_v40 = vld [vmem:[%s2027_s1 + $0x1b8] sm:$0xff]  ;;  %v308_v41 = vld [vmem:[%s2027_s1 + $0x30] sm:$0xff]  ;;  %v326_v46 = vld [vmem:[%s2027_s1 + $0xc0] sm:$0xff]  ;;  %s1426_s19 = smul.u32 72, %s2037_s21  ;;  %s1011_s20 = sshll.u32 %s2037_s21, 3 }
  0x10   : > { %1289 = vmatpush3.bf16.msra.mxu1 %v1288_v25  ;;  %1259 = vmatprep.subr.bf16.mxu0 %v1258_v26  ;;  %v309_v42 = vld [vmem:[%s2027_s1 + $0x38] sm:$0xff]  ;;  %v1294_v43 = vpack.c.bf16 %v357_v40, %v356_v37  ;;  %v340_v44 = vld [vmem:[%s2027_s1 + $0x130] sm:$0xff]  ;;  %v327_v47 = vld [vmem:[%s2027_s1 + $0xc8] sm:$0xff]  ;;  %s252_s24 = scalar_lea.vmem %s2030_s4, %s1011_s20 }
  0x11   : > { %1291 = vmatprep.subr.bf16.mxu1 %v1290_v30  ;;  %v341_v45 = vld [vmem:[%s2027_s1 + $0x138] sm:$0xff]  ;;  %v358_v48 = vld [vmem:[%s2027_s1 + $0x1c0] sm:$0xff]  ;;  %v359_v49 = vld [vmem:[%s2027_s1 + $0x1c8] sm:$0xff]  ;;  %v1264_v50 = vpack.c.bf16 %v309_v42, %v308_v41  ;;  %v1266_v52 = vpack.c.bf16 %v327_v47, %v326_v46  ;;  %s1687_s11 = scalar_lea.vmem %s2026_s0, %s1426_s19 }
  0x12   : > { %v1296_v51 = vpack.c.bf16 %v341_v45, %v340_v44  ;;  %v310_v53 = vld [vmem:[%s2027_s1 + $0x40] sm:$0xff]  ;;  %v311_v54 = vld [vmem:[%s2027_s1 + $0x48] sm:$0xff]  ;;  %v1298_v56 = vpack.c.bf16 %v359_v49, %v358_v48  ;;  %v328_v58 = vld [vmem:[%s2027_s1 + $0xd0] sm:$0xff] }
  0x13   : > { %1261 = vmatpush3.bf16.msra.mxu0 %v1260_v34  ;;  %v342_v55 = vld [vmem:[%s2027_s1 + $0x140] sm:$0xff]  ;;  %v343_v57 = vld [vmem:[%s2027_s1 + $0x148] sm:$0xff]  ;;  %v329_v59 = vld [vmem:[%s2027_s1 + $0xd8] sm:$0xff]  ;;  %v1268_v62 = vpack.c.bf16 %v311_v54, %v310_v53 }
  0x14   : > { %1293 = vmatpush3.bf16.msra.mxu1 %v1292_v38  ;;  %1263 = vmatprep.subr.bf16.mxu0 %v1262_v39  ;;  %v360_v60 = vld [vmem:[%s2027_s1 + $0x1d0] sm:$0xff]  ;;  %v361_v61 = vld [vmem:[%s2027_s1 + $0x1d8] sm:$0xff]  ;;  %v1300_v63 = vpack.c.bf16 %v343_v57, %v342_v55  ;;  %v1270_v0 = vpack.c.bf16 %v329_v59, %v328_v58  ;;  %v330_v6 = vld [vmem:[%s2027_s1 + $0xe0] sm:$0xff] }
  0x15   : > { %1295 = vmatprep.subr.bf16.mxu1 %v1294_v43  ;;  %v312_v1 = vld [vmem:[%s2027_s1 + $0x50] sm:$0xff]  ;;  %v313_v2 = vld [vmem:[%s2027_s1 + $0x58] sm:$0xff]  ;;  %v1302_v4 = vpack.c.bf16 %v361_v61, %v360_v60  ;;  %v331_v7 = vld [vmem:[%s2027_s1 + $0xe8] sm:$0xff] }
  0x16   : > { %v344_v3 = vld [vmem:[%s2027_s1 + $0x150] sm:$0xff]  ;;  %v345_v5 = vld [vmem:[%s2027_s1 + $0x158] sm:$0xff]  ;;  %v362_v8 = vld [vmem:[%s2027_s1 + $0x1e0] sm:$0xff]  ;;  %v1272_v10 = vpack.c.bf16 %v313_v2, %v312_v1  ;;  %v1274_v14 = vpack.c.bf16 %v331_v7, %v330_v6 }
  0x17   : > { %1265 = vmatpush3.bf16.msra.mxu0 %v1264_v50  ;;  %v363_v9 = vld [vmem:[%s2027_s1 + $0x1e8] sm:$0xff]  ;;  %v314_v11 = vld [vmem:[%s2027_s1 + $0x60] sm:$0xff]  ;;  %v1304_v13 = vpack.c.bf16 %v345_v5, %v344_v3  ;;  %v269_v17 = vld [vmem:[%s1687_s11 + $0x18] sm:$0xff] }
  0x18   : > { %1297 = vmatpush3.bf16.msra.mxu1 %v1296_v51  ;;  %1267 = vmatprep.subr.bf16.mxu0 %v1266_v52  ;;  %v315_v12 = vld [vmem:[%s2027_s1 + $0x68] sm:$0xff]  ;;  %v346_v15 = vld [vmem:[%s2027_s1 + $0x160] sm:$0xff]  ;;  %v1306_v18 = vpack.c.bf16 %v363_v9, %v362_v8  ;;  %v332_v20 = vld [vmem:[%s2027_s1 + $0xf0] sm:$0xff] }
  0x19   : > { %1299 = vmatprep.subr.bf16.mxu1 %v1298_v56  ;;  %v267_v16 = vld [vmem:[%s1687_s11 + $0x8] sm:$0xff]  ;;  %v333_v21 = vld [vmem:[%s2027_s1 + $0xf8] sm:$0xff]  ;;  %v364_v22 = vld [vmem:[%s2027_s1 + $0x1f0] sm:$0xff]  ;;  %595 = vmatprep.mubr.f32.mxu1 %v269_v17  ;;  %v1276_v24 = vpack.c.bf16 %v315_v12, %v314_v11 }
  0x1a   : > { %v347_v19 = vld [vmem:[%s2027_s1 + $0x168] sm:$0xff]  ;;  %510 = vmatprep.mubr.f32.mxu0 %v267_v16  ;;  %v365_v23 = vld [vmem:[%s2027_s1 + $0x1f8] sm:$0xff]  ;;  %v1278_v26 = vpack.c.bf16 %v333_v21, %v332_v20  ;;  %v316_v27 = vld [vmem:[%s2027_s1 + $0x70] sm:$0xff] }
  0x1b   : > { %1269 = vmatpush3.bf16.msra.mxu0 %v1268_v62  ;;  %v1308_v25 = vpack.c.bf16 %v347_v19, %v346_v15  ;;  %v317_v28 = vld [vmem:[%s2027_s1 + $0x78] sm:$0xff]  ;;  %v348_v29 = vld [vmem:[%s2027_s1 + $0x170] sm:$0xff]  ;;  %v1310_v30 = vpack.c.bf16 %v365_v23, %v364_v22  ;;  %v382_v32 = vld [vmem:[%s2027_s1 + $0x280] sm:$0xff] }
  0x1c   : > { %1301 = vmatpush3.bf16.msra.mxu1 %v1300_v63  ;;  %1271 = vmatprep.subr.bf16.mxu0 %v1270_v0  ;;  %v349_v31 = vld [vmem:[%s2027_s1 + $0x178] sm:$0xff]  ;;  %v383_v33 = vld [vmem:[%s2027_s1 + $0x288] sm:$0xff]  ;;  %v414_v34 = vld [vmem:[%s2027_s1 + $0x380] sm:$0xff]  ;;  %v1280_v36 = vpack.c.bf16 %v317_v28, %v316_v27 }
  0x1d   : > { %1303 = vmatprep.subr.bf16.mxu1 %v1302_v4  ;;  %v415_v35 = vld [vmem:[%s2027_s1 + $0x388] sm:$0xff]  ;;  %v1312_v37 = vpack.c.bf16 %v349_v31, %v348_v29  ;;  %v1314_v38 = vpack.c.bf16 %v383_v33, %v382_v32  ;;  %v366_v39 = vld [vmem:[%s2027_s1 + $0x200] sm:$0xff]  ;;  %v384_v44 = vld [vmem:[%s2027_s1 + $0x290] sm:$0xff] }
  0x1e   : > { %v367_v40 = vld [vmem:[%s2027_s1 + $0x208] sm:$0xff]  ;;  %v398_v41 = vld [vmem:[%s2027_s1 + $0x300] sm:$0xff]  ;;  %v1346_v42 = vpack.c.bf16 %v415_v35, %v414_v34  ;;  %v385_v45 = vld [vmem:[%s2027_s1 + $0x298] sm:$0xff] }
  0x1f   : > { %1273 = vmatpush3.bf16.msra.mxu0 %v1272_v10  ;;  %v399_v43 = vld [vmem:[%s2027_s1 + $0x308] sm:$0xff]  ;;  %v416_v46 = vld [vmem:[%s2027_s1 + $0x390] sm:$0xff]  ;;  %v417_v47 = vld [vmem:[%s2027_s1 + $0x398] sm:$0xff]  ;;  %v1316_v50 = vpack.c.bf16 %v367_v40, %v366_v39  ;;  %v1318_v52 = vpack.c.bf16 %v385_v45, %v384_v44 }
  0x20   : > { %1305 = vmatpush3.bf16.msra.mxu1 %v1304_v13  ;;  %1275 = vmatprep.subr.bf16.mxu0 %v1274_v14  ;;  %v266_v48 = vld [vmem:[%s1687_s11] sm:$0xff]  ;;  %v268_v49 = vld [vmem:[%s1687_s11 + $0x10] sm:$0xff]  ;;  %v1348_v51 = vpack.c.bf16 %v399_v43, %v398_v41  ;;  %v369_v54 = vld [vmem:[%s2027_s1 + $0x218] sm:$0xff]  ;;  %v1350_v56 = vpack.c.bf16 %v417_v47, %v416_v46 }
  0x21   : > { %1307 = vmatprep.subr.bf16.mxu1 %v1306_v18  ;;  %v368_v53 = vld [vmem:[%s2027_s1 + $0x210] sm:$0xff]  ;;  %v401_v57 = vld [vmem:[%s2027_s1 + $0x318] sm:$0xff]  ;;  %v386_v58 = vld [vmem:[%s2027_s1 + $0x2a0] sm:$0xff] }
  0x22   : > { %v400_v55 = vld [vmem:[%s2027_s1 + $0x310] sm:$0xff]  ;;  %v387_v59 = vld [vmem:[%s2027_s1 + $0x2a8] sm:$0xff]  ;;  %v418_v60 = vld [vmem:[%s2027_s1 + $0x3a0] sm:$0xff]  ;;  %v1320_v63 = vpack.c.bf16 %v369_v54, %v368_v53 }
  0x23   : > { %1277 = vmatpush3.bf16.msra.mxu0 %v1276_v24  ;;  %v419_v61 = vld [vmem:[%s2027_s1 + $0x3a8] sm:$0xff]  ;;  %v370_v62 = vld [vmem:[%s2027_s1 + $0x220] sm:$0xff]  ;;  %v276_v0 = vld [vmem:[%s1687_s11 + $0x50] sm:$0xff]  ;;  %v1352_v3 = vpack.c.bf16 %v401_v57, %v400_v55  ;;  %v1322_v4 = vpack.c.bf16 %v387_v59, %v386_v58 }
  0x24   : > { %1309 = vmatpush3.bf16.msra.mxu1 %v1308_v25  ;;  %1279 = vmatprep.subr.bf16.mxu0 %v1278_v26  ;;  %v278_v1 = vld [vmem:[%s1687_s11 + $0x60] sm:$0xff]  ;;  %v275_v2 = vld [vmem:[%s1687_s11 + $0x48] sm:$0xff]  ;;  %v277_v7 = vld [vmem:[%s1687_s11 + $0x58] sm:$0xff]  ;;  %v1354_v8 = vpack.c.bf16 %v419_v61, %v418_v60 }
  0x25   : > { %1311 = vmatprep.subr.bf16.mxu1 %v1310_v30  ;;  %v371_v5 = vld [vmem:[%s2027_s1 + $0x228] sm:$0xff]  ;;  %v402_v6 = vld [vmem:[%s2027_s1 + $0x320] sm:$0xff]  ;;  %v388_v10 = vld [vmem:[%s2027_s1 + $0x2b0] sm:$0xff] }
  0x26   : > { %v403_v9 = vld [vmem:[%s2027_s1 + $0x328] sm:$0xff]  ;;  %v389_v11 = vld [vmem:[%s2027_s1 + $0x2b8] sm:$0xff]  ;;  %v420_v12 = vld [vmem:[%s2027_s1 + $0x3b0] sm:$0xff]  ;;  %v1324_v15 = vpack.c.bf16 %v371_v5, %v370_v62 }
  0x27   : > { %1281 = vmatpush3.bf16.msra.mxu0 %v1280_v36  ;;  %v421_v13 = vld [vmem:[%s2027_s1 + $0x3b8] sm:$0xff]  ;;  %v372_v14 = vld [vmem:[%s2027_s1 + $0x230] sm:$0xff]  ;;  %v287_v17 = vld [vmem:[%s1687_s11 + $0xa8] sm:$0xff]  ;;  %v1356_v19 = vpack.c.bf16 %v403_v9, %v402_v6  ;;  %v1326_v20 = vpack.c.bf16 %v389_v11, %v388_v10 }
  0x28   : > { %1313 = vmatpush3.bf16.msra.mxu1 %v1312_v37  ;;  %1315 = vmatprep.subr.bf16.mxu0 %v1314_v38  ;;  %v285_v16 = vld [vmem:[%s1687_s11 + $0x98] sm:$0xff]  ;;  %v284_v18 = vld [vmem:[%s1687_s11 + $0x90] sm:$0xff]  ;;  %v286_v23 = vld [vmem:[%s1687_s11 + $0xa0] sm:$0xff]  ;;  %v1358_v24 = vpack.c.bf16 %v421_v13, %v420_v12 }
  0x29   : > { %1347 = vmatprep.subr.bf16.mxu1 %v1346_v42  ;;  %v373_v21 = vld [vmem:[%s2027_s1 + $0x238] sm:$0xff]  ;;  %v404_v22 = vld [vmem:[%s2027_s1 + $0x330] sm:$0xff]  ;;  %v390_v26 = vld [vmem:[%s2027_s1 + $0x2c0] sm:$0xff] }
  0x2a   : > { %511 = vmatmul.mubr.f32.vlgmr.msra.gmra.mrb[0].mxu0 %v266_v48  ;;  %v405_v25 = vld [vmem:[%s2027_s1 + $0x338] sm:$0xff]  ;;  %v391_v27 = vld [vmem:[%s2027_s1 + $0x2c8] sm:$0xff]  ;;  %v422_v28 = vld [vmem:[%s2027_s1 + $0x3c0] sm:$0xff]  ;;  %v1328_v31 = vpack.c.bf16 %v373_v21, %v372_v14 }
  0x2b   : > { %596 = vmatmul.mubr.f32.vlgmr.msra.gmra.mrb[0].mxu1 %v268_v49  ;;  %1317 = vmatpush3.bf16.msra.mxu0 %v1316_v50  ;;  %v423_v29 = vld [vmem:[%s2027_s1 + $0x3c8] sm:$0xff]  ;;  %v374_v30 = vld [vmem:[%s2027_s1 + $0x240] sm:$0xff]  ;;  %v296_v33 = vld [vmem:[%s1687_s11 + $0xf0] sm:$0xff]  ;;  %v1360_v35 = vpack.c.bf16 %v405_v25, %v404_v22  ;;  %v1330_v36 = vpack.c.bf16 %v391_v27, %v390_v26 }
  0x2c   : > { %1349 = vmatpush3.bf16.msra.mxu1 %v1348_v51  ;;  %1319 = vmatprep.subr.bf16.mxu0 %v1318_v52  ;;  %v294_v32 = vld [vmem:[%s1687_s11 + $0xe0] sm:$0xff]  ;;  %v293_v34 = vld [vmem:[%s1687_s11 + $0xd8] sm:$0xff]  ;;  %v375_v37 = vld [vmem:[%s2027_s1 + $0x248] sm:$0xff]  ;;  %v1362_v40 = vpack.c.bf16 %v423_v29, %v422_v28 }
  0x2d   : > { %1351 = vmatprep.subr.bf16.mxu1 %v1350_v56  ;;  %515 = vmatprep.mubr.f32.mxu0 %v276_v0  ;;  %v406_v38 = vld [vmem:[%s2027_s1 + $0x340] sm:$0xff]  ;;  %v295_v39 = vld [vmem:[%s1687_s11 + $0xe8] sm:$0xff]  ;;  %v392_v42 = vld [vmem:[%s2027_s1 + $0x2d0] sm:$0xff]  ;;  %v1332_v46 = vpack.c.bf16 %v375_v37, %v374_v30 }
  0x2e   : > { %600 = vmatprep.mubr.f32.mxu1 %v278_v1  ;;  %516 = vmatmul.mubr.f32.gmra.mrb[2].mxu0 %v275_v2  ;;  %v407_v41 = vld [vmem:[%s2027_s1 + $0x348] sm:$0xff]  ;;  %v393_v43 = vld [vmem:[%s2027_s1 + $0x2d8] sm:$0xff]  ;;  %v424_v44 = vld [vmem:[%s2027_s1 + $0x3d0] sm:$0xff] }
  0x2f   : > { %1321 = vmatpush3.bf16.msra.mxu0 %v1320_v63  ;;  %601 = vmatmul.mubr.f32.gmra.mrb[2].mxu1 %v277_v7  ;;  %v425_v45 = vld [vmem:[%s2027_s1 + $0x3d8] sm:$0xff]  ;;  %v271_v47 = vld [vmem:[%s1687_s11 + $0x28] sm:$0xff]  ;;  %v1364_v49 = vpack.c.bf16 %v407_v41, %v406_v38  ;;  %v1334_v50 = vpack.c.bf16 %v393_v43, %v392_v42  ;;  %v376_v51 = vld [vmem:[%s2027_s1 + $0x250] sm:$0xff] }
  0x30   : > { %1353 = vmatpush3.bf16.msra.mxu1 %v1352_v3  ;;  %1323 = vmatprep.subr.bf16.mxu0 %v1322_v4  ;;  %v273_v48 = vld [vmem:[%s1687_s11 + $0x38] sm:$0xff]  ;;  %v408_v53 = vld [vmem:[%s2027_s1 + $0x350] sm:$0xff]  ;;  %v1366_v54 = vpack.c.bf16 %v425_v45, %v424_v44  ;;  %v394_v56 = vld [vmem:[%s2027_s1 + $0x2e0] sm:$0xff] }
  0x31   : > { %1355 = vmatprep.subr.bf16.mxu1 %v1354_v8  ;;  %520 = vmatprep.mubr.f32.mxu0 %v285_v16  ;;  %v377_v52 = vld [vmem:[%s2027_s1 + $0x258] sm:$0xff]  ;;  %v395_v57 = vld [vmem:[%s2027_s1 + $0x2e8] sm:$0xff]  ;;  %v426_v58 = vld [vmem:[%s2027_s1 + $0x3e0] sm:$0xff] }
  0x32   : > { %605 = vmatprep.mubr.f32.mxu1 %v287_v17  ;;  %521 = vmatmul.mubr.f32.gmra.mrb[4].mxu0 %v284_v18  ;;  %v409_v55 = vld [vmem:[%s2027_s1 + $0x358] sm:$0xff]  ;;  %v427_v59 = vld [vmem:[%s2027_s1 + $0x3e8] sm:$0xff]  ;;  %v1336_v60 = vpack.c.bf16 %v377_v52, %v376_v51  ;;  %v1338_v62 = vpack.c.bf16 %v395_v57, %v394_v56  ;;  %v378_v63 = vld [vmem:[%s2027_s1 + $0x260] sm:$0xff] }
  0x33   : > { %1325 = vmatpush3.bf16.msra.mxu0 %v1324_v15  ;;  %606 = vmatmul.mubr.f32.gmra.mrb[4].mxu1 %v286_v23  ;;  %v1368_v61 = vpack.c.bf16 %v409_v55, %v408_v53  ;;  %v379_v0 = vld [vmem:[%s2027_s1 + $0x268] sm:$0xff]  ;;  %v410_v1 = vld [vmem:[%s2027_s1 + $0x360] sm:$0xff]  ;;  %v1370_v2 = vpack.c.bf16 %v427_v59, %v426_v58  ;;  %v396_v4 = vld [vmem:[%s2027_s1 + $0x2f0] sm:$0xff] }
  0x34   : > { %1357 = vmatpush3.bf16.msra.mxu1 %v1356_v19  ;;  %1327 = vmatprep.subr.bf16.mxu0 %v1326_v20  ;;  %v411_v3 = vld [vmem:[%s2027_s1 + $0x368] sm:$0xff]  ;;  %v397_v5 = vld [vmem:[%s2027_s1 + $0x2f8] sm:$0xff]  ;;  %v428_v6 = vld [vmem:[%s2027_s1 + $0x3f0] sm:$0xff]  ;;  %v1340_v8 = vpack.c.bf16 %v379_v0, %v378_v63 }
  0x35   : > { %1359 = vmatprep.subr.bf16.mxu1 %v1358_v24  ;;  %525 = vmatprep.mubr.f32.mxu0 %v294_v32  ;;  %v429_v7 = vld [vmem:[%s2027_s1 + $0x3f8] sm:$0xff]  ;;  %v1372_v9 = vpack.c.bf16 %v411_v3, %v410_v1  ;;  %v1342_v10 = vpack.c.bf16 %v397_v5, %v396_v4  ;;  %v380_v11 = vld [vmem:[%s2027_s1 + $0x270] sm:$0xff]  ;;  %v430_v16 = vld [vmem:[%s2027_s1 + $0x400] sm:$0xff] }
  0x36   : > { %610 = vmatprep.mubr.f32.mxu1 %v296_v33  ;;  %526 = vmatmul.mubr.f32.gmra.mrb[6].mxu0 %v293_v34  ;;  %v381_v12 = vld [vmem:[%s2027_s1 + $0x278] sm:$0xff]  ;;  %v412_v13 = vld [vmem:[%s2027_s1 + $0x370] sm:$0xff]  ;;  %v1374_v14 = vpack.c.bf16 %v429_v7, %v428_v6  ;;  %v431_v17 = vld [vmem:[%s2027_s1 + $0x408] sm:$0xff] }
  0x37   : > { %1329 = vmatpush3.bf16.msra.mxu0 %v1328_v31  ;;  %611 = vmatmul.mubr.f32.gmra.mrb[6].mxu1 %v295_v39  ;;  %v413_v15 = vld [vmem:[%s2027_s1 + $0x378] sm:$0xff]  ;;  %v1344_v18 = vpack.c.bf16 %v381_v12, %v380_v11  ;;  %v1378_v20 = vpack.c.bf16 %v431_v17, %v430_v16  ;;  %v432_v21 = vld [vmem:[%s2027_s1 + $0x410] sm:$0xff]  ;;  %v270_v23 = vld [vmem:[%s1687_s11 + $0x20] sm:$0xff] }
  0x38   : > { %1361 = vmatpush3.bf16.msra.mxu1 %v1360_v35  ;;  %1331 = vmatprep.subr.bf16.mxu0 %v1330_v36  ;;  %v1376_v19 = vpack.c.bf16 %v413_v15, %v412_v13  ;;  %v433_v22 = vld [vmem:[%s2027_s1 + $0x418] sm:$0xff]  ;;  %v272_v24 = vld [vmem:[%s1687_s11 + $0x30] sm:$0xff]  ;;  %v434_v27 = vld [vmem:[%s2027_s1 + $0x420] sm:$0xff] }
  0x39   : > { %1363 = vmatprep.subr.bf16.mxu1 %v1362_v40  ;;  %680 = vmatprep.mubr.f32.mxu0 %v271_v47  ;;  %v280_v25 = vld [vmem:[%s1687_s11 + $0x70] sm:$0xff]  ;;  %v1382_v26 = vpack.c.bf16 %v433_v22, %v432_v21  ;;  %v435_v28 = vld [vmem:[%s2027_s1 + $0x428] sm:$0xff]  ;;  %v282_v30 = vld [vmem:[%s1687_s11 + $0x80] sm:$0xff] }
  0x3a   : > { %765 = vmatprep.mubr.f32.mxu1 %v273_v48  ;;  %v279_v29 = vld [vmem:[%s1687_s11 + $0x68] sm:$0xff]  ;;  %v281_v31 = vld [vmem:[%s1687_s11 + $0x78] sm:$0xff]  ;;  %v1386_v33 = vpack.c.bf16 %v435_v28, %v434_v27  ;;  %v436_v34 = vld [vmem:[%s2027_s1 + $0x430] sm:$0xff] }
  0x3b   : > { %1333 = vmatpush3.bf16.msra.mxu0 %v1332_v46  ;;  %v289_v32 = vld [vmem:[%s1687_s11 + $0xb8] sm:$0xff]  ;;  %v288_v36 = vld [vmem:[%s1687_s11 + $0xb0] sm:$0xff]  ;;  %v291_v37 = vld [vmem:[%s1687_s11 + $0xc8] sm:$0xff] }
  0x3c   : > { %1365 = vmatpush3.bf16.msra.mxu1 %v1364_v49  ;;  %1335 = vmatprep.subr.bf16.mxu0 %v1334_v50  ;;  %v437_v35 = vld [vmem:[%s2027_s1 + $0x438] sm:$0xff]  ;;  %v290_v38 = vld [vmem:[%s1687_s11 + $0xc0] sm:$0xff]  ;;  %v439_v42 = vld [vmem:[%s2027_s1 + $0x448] sm:$0xff] }
  0x3d   : > { %1367 = vmatprep.subr.bf16.mxu1 %v1366_v54  ;;  %v298_v39 = vld [vmem:[%s1687_s11 + $0x100] sm:$0xff]  ;;  %v1390_v40 = vpack.c.bf16 %v437_v35, %v436_v34  ;;  %v297_v43 = vld [vmem:[%s1687_s11 + $0xf8] sm:$0xff]  ;;  %v300_v44 = vld [vmem:[%s1687_s11 + $0x110] sm:$0xff] }
  0x3e   : > { %v438_v41 = vld [vmem:[%s2027_s1 + $0x440] sm:$0xff]  ;;  %v299_v45 = vld [vmem:[%s1687_s11 + $0x108] sm:$0xff]  ;;  %v440_v47 = vld [vmem:[%s2027_s1 + $0x450] sm:$0xff] }
  0x3f   : > { %1337 = vmatpush3.bf16.msra.mxu0 %v1336_v60  ;;  %v1394_v46 = vpack.c.bf16 %v439_v42, %v438_v41  ;;  %v441_v48 = vld [vmem:[%s2027_s1 + $0x458] sm:$0xff]  ;;  %v274_v49 = vld [vmem:[%s1687_s11 + $0x40] sm:$0xff]  ;;  %v292_v50 = vld [vmem:[%s1687_s11 + $0xd0] sm:$0xff] }
  0x40   : > { %1369 = vmatpush3.bf16.msra.mxu1 %v1368_v61  ;;  %1339 = vmatprep.subr.bf16.mxu0 %v1338_v62  ;;  %v1398_v51 = vpack.c.bf16 %v441_v48, %v440_v47  ;;  %v442_v52 = vld [vmem:[%s2027_s1 + $0x460] sm:$0xff]  ;;  %v443_v53 = vld [vmem:[%s2027_s1 + $0x468] sm:$0xff]  ;;  %v444_v55 = vld [vmem:[%s2027_s1 + $0x470] sm:$0xff] }
  0x41   : > { %1371 = vmatprep.subr.bf16.mxu1 %v1370_v2  ;;  %v1402_v54 = vpack.c.bf16 %v443_v53, %v442_v52  ;;  %v445_v56 = vld [vmem:[%s2027_s1 + $0x478] sm:$0xff]  ;;  %v283_v58 = vld [vmem:[%s1687_s11 + $0x88] sm:$0xff] }
  0x42   : > { %v1406_v57 = vpack.c.bf16 %v445_v56, %v444_v55  ;;  %v301_v59 = vld [vmem:[%s1687_s11 + $0x118] sm:$0xff] }
  0x43   : > { %1341 = vmatpush3.bf16.msra.mxu0 %v1340_v8 }
  0x44   : > { %1373 = vmatpush3.bf16.msra.mxu1 %v1372_v9  ;;  %1343 = vmatprep.subr.bf16.mxu0 %v1342_v10 }
  0x45   : > { %1375 = vmatprep.subr.bf16.mxu1 %v1374_v14 }
  0x47   : > { %1345 = vmatpush3.bf16.msra.mxu0 %v1344_v18 }
  0x48   : > { %1377 = vmatpush3.bf16.msra.mxu1 %v1376_v19  ;;  %1379 = vmatprep.subr.bf16.mxu0 %v1378_v20 }
  0x49   : > { %1410 = vmatprep.subr.bf16.mxu1 %v1378_v20 }
  0x4a   : > { %681 = vmatmul.mubr.f32.vlgmr.msra.gmra.mrb[8].mxu0 %v270_v23 }
  0x4b   : > { %766 = vmatmul.mubr.f32.vlgmr.msra.gmra.mrb[8].mxu1 %v272_v24  ;;  %1381 = vmatpush3.bf16.msra.mxu0 %v1378_v20 }
  0x4c   : > { %1418 = vmatpush3.bf16.msra.mxu1 %v1378_v20  ;;  %685 = vmatprep.mubr.f32.mxu0 %v280_v25 }
  0x4d   : > { %1383 = vmatprep.subr.bf16.mxu0 %v1382_v26  ;;  %1411 = vmatprep.subr.bf16.mxu1 %v1382_v26 }
  0x4e   : > { %686 = vmatmul.mubr.f32.gmra.mrb[10].mxu0 %v279_v29  ;;  %770 = vmatprep.mubr.f32.mxu1 %v282_v30 }
  0x4f   : > { %1385 = vmatpush3.bf16.msra.mxu0 %v1382_v26  ;;  %771 = vmatmul.mubr.f32.gmra.mrb[10].mxu1 %v281_v31 }
  0x50   : > { %1419 = vmatpush3.bf16.msra.mxu1 %v1382_v26  ;;  %690 = vmatprep.mubr.f32.mxu0 %v289_v32 }
  0x51   : > { %1387 = vmatprep.subr.bf16.mxu0 %v1386_v33  ;;  %1412 = vmatprep.subr.bf16.mxu1 %v1386_v33 }
  0x52   : > { %691 = vmatmul.mubr.f32.gmra.mrb[12].mxu0 %v288_v36  ;;  %775 = vmatprep.mubr.f32.mxu1 %v291_v37 }
  0x53   : > { %1389 = vmatpush3.bf16.msra.mxu0 %v1386_v33  ;;  %776 = vmatmul.mubr.f32.gmra.mrb[12].mxu1 %v290_v38 }
  0x54   : > { %1420 = vmatpush3.bf16.msra.mxu1 %v1386_v33  ;;  %695 = vmatprep.mubr.f32.mxu0 %v298_v39 }
  0x55   : > { %1391 = vmatprep.subr.bf16.mxu0 %v1390_v40  ;;  %1413 = vmatprep.subr.bf16.mxu1 %v1390_v40 }
  0x56   : > { %696 = vmatmul.mubr.f32.gmra.mrb[14].mxu0 %v297_v43  ;;  %780 = vmatprep.mubr.f32.mxu1 %v300_v44 }
  0x57   : > { %1393 = vmatpush3.bf16.msra.mxu0 %v1390_v40  ;;  %781 = vmatmul.mubr.f32.gmra.mrb[14].mxu1 %v299_v45 }
  0x58   : > { %1421 = vmatpush3.bf16.msra.mxu1 %v1390_v40  ;;  %1395 = vmatprep.subr.bf16.mxu0 %v1394_v46 }
  0x59   : > { %1414 = vmatprep.subr.bf16.mxu1 %v1394_v46  ;;  %1244 = vmatprep.mubr.f32.mxu0 %v274_v49 }
  0x5a   : > { %1247 = vmatprep.mubr.f32.mxu1 %v292_v50 }
  0x5b   : > { %1397 = vmatpush3.bf16.msra.mxu0 %v1394_v46 }
  0x5c   : > { %1422 = vmatpush3.bf16.msra.mxu1 %v1394_v46  ;;  %1399 = vmatprep.subr.bf16.mxu0 %v1398_v51 }
  0x5d   : > { %1415 = vmatprep.subr.bf16.mxu1 %v1398_v51 }
  0x5f   : > { %1401 = vmatpush3.bf16.msra.mxu0 %v1398_v51 }
  0x60   : > { %1423 = vmatpush3.bf16.msra.mxu1 %v1398_v51  ;;  %1403 = vmatprep.subr.bf16.mxu0 %v1402_v54 }
  0x61   : > { %1416 = vmatprep.subr.bf16.mxu1 %v1402_v54 }
  0x63   : > { %1405 = vmatpush3.bf16.msra.mxu0 %v1402_v54 }
  0x64   : > { %1424 = vmatpush3.bf16.msra.mxu1 %v1402_v54  ;;  %1407 = vmatprep.subr.bf16.mxu0 %v1406_v57 }
  0x65   : > { %1417 = vmatprep.subr.bf16.mxu1 %v1406_v57 }
  0x67   : > { %1409 = vmatpush3.bf16.msra.mxu0 %v1406_v57 }
  0x68   : > { %1425 = vmatpush3.bf16.msra.mxu1 %v1406_v57  ;;  %v1012_v57 = vld [vmem:[%s2028_s2] ss:$0 sm:$0xff] }
  0x6a   : > { %1245 = vmatmul.mubr.f32.vlgmr.msra.gmra.mrb[16].mxu0 %v283_v58 }
  0x6b   : > { %1248 = vmatmul.mubr.f32.vlgmr.msra.gmra.mrb[16].mxu1 %v301_v59 }
  0xfd   : > { %v1048_v60 = vpop.f32.mrb[0].mxu0 }
  0xfe   : > { %v1092_v61 = vpop.f32.mrb[0].mxu1  ;;  %v1049_v62 = vpop.f32.mrb[1].mxu0 }
  0xff   : > { %v1050_v63 = vadd.f32 %v1049_v62, %v1048_v60  ;;  %v1093_v0 = vpop.f32.mrb[1].mxu1 }
 0x100   : > { %v1094_v1 = vadd.f32 %v1093_v0, %v1092_v61  ;;  %v1013_v61 = vld [vmem:[%s2029_s3] ss:$0 sm:$0xff] }
 0x101   : > { %v1051_v2 = vpop.f32.mrb[2].mxu0 }
 0x102   : > { %v598_v3 = vadd.f32 %v1094_v1, %v1050_v63  ;;  %v1095_v4 = vpop.f32.mrb[2].mxu1  ;;  %v1052_v5 = vpop.f32.mrb[3].mxu0 }
 0x103   : > { %v1053_v6 = vadd.f32 %v1052_v5, %v1051_v2  ;;  %v1096_v7 = vpop.f32.mrb[3].mxu1 }
 0x104   : > { %v1097_v8 = vadd.f32 %v1096_v7, %v1095_v4 }
 0x105   : > { %v1054_v9 = vpop.f32.mrb[4].mxu0 }
 0x106   : > { %v603_v10 = vadd.f32 %v1097_v8, %v1053_v6  ;;  %v1098_v11 = vpop.f32.mrb[4].mxu1  ;;  %v1055_v12 = vpop.f32.mrb[5].mxu0 }
 0x107   : > { %v1056_v13 = vadd.f32 %v1055_v12, %v1054_v9  ;;  %v1099_v14 = vpop.f32.mrb[5].mxu1 }
 0x108   : > { %v1100_v15 = vadd.f32 %v1099_v14, %v1098_v11 }
 0x109   : > { %v1057_v16 = vpop.f32.mrb[6].mxu0 }
 0x10a   : > { %v608_v17 = vadd.f32 %v1100_v15, %v1056_v13  ;;  %v1101_v18 = vpop.f32.mrb[6].mxu1  ;;  %v1058_v19 = vpop.f32.mrb[7].mxu0 }
 0x10b   : > { %v1059_v20 = vadd.f32 %v1058_v19, %v1057_v16  ;;  %v1102_v21 = vpop.f32.mrb[7].mxu1 }
 0x10c   : > { %v1103_v22 = vadd.f32 %v1102_v21, %v1101_v18 }
 0x10e   : > { %v613_v23 = vadd.f32 %v1103_v22, %v1059_v20 }
 0x11d   : > { %v1136_v24 = vpop.f32.mrb[8].mxu0 }
 0x11e   : > { %v1180_v25 = vpop.f32.mrb[8].mxu1  ;;  %v1137_v26 = vpop.f32.mrb[9].mxu0 }
 0x11f   : > { %v1138_v27 = vadd.f32 %v1137_v26, %v1136_v24  ;;  %v1181_v28 = vpop.f32.mrb[9].mxu1 }
 0x120   : > { %v1182_v29 = vadd.f32 %v1181_v28, %v1180_v25 }
 0x121   : > { %v683_v30 = vadd.f32 %v1138_v27, %v598_v3  ;;  %v1139_v31 = vpop.f32.mrb[10].mxu0 }
 0x122   : > { %v1140_v32 = vpop.f32.mrb[11].mxu0  ;;  %v1183_v33 = vpop.f32.mrb[10].mxu1 }
 0x123   : > { %v1141_v34 = vadd.f32 %v1140_v32, %v1139_v31  ;;  %v1184_v35 = vpop.f32.mrb[11].mxu1  ;;  %v768_v36 = vadd.f32 %v1182_v29, %v683_v30 }
 0x124   : > { %v1185_v37 = vadd.f32 %v1184_v35, %v1183_v33 }
 0x125   : > { %v688_v38 = vadd.f32 %v1141_v34, %v603_v10  ;;  %v1142_v39 = vpop.f32.mrb[12].mxu0 }
 0x126   : > { %v1143_v40 = vpop.f32.mrb[13].mxu0  ;;  %v1186_v41 = vpop.f32.mrb[12].mxu1 }
 0x127   : > { %v1144_v42 = vadd.f32 %v1143_v40, %v1142_v39  ;;  %v1187_v43 = vpop.f32.mrb[13].mxu1  ;;  %v773_v44 = vadd.f32 %v1185_v37, %v688_v38 }
 0x128   : > { %v1188_v45 = vadd.f32 %v1187_v43, %v1186_v41 }
 0x129   : > { %v693_v46 = vadd.f32 %v1144_v42, %v608_v17  ;;  %v1145_v47 = vpop.f32.mrb[14].mxu0 }
 0x12a   : > { %v1146_v48 = vpop.f32.mrb[15].mxu0  ;;  %v1189_v49 = vpop.f32.mrb[14].mxu1 }
 0x12b   : > { %v1147_v50 = vadd.f32 %v1146_v48, %v1145_v47  ;;  %v1190_v51 = vpop.f32.mrb[15].mxu1  ;;  %v778_v52 = vadd.f32 %v1188_v45, %v693_v46 }
 0x12c   : > { %v1191_v53 = vadd.f32 %v1190_v51, %v1189_v49 }
 0x12d   : > { %v698_v54 = vadd.f32 %v1147_v50, %v613_v23 }
 0x12f   : > { %v783_v55 = vadd.f32 %v1191_v53, %v698_v54 }
 0x13d   : > { %v1246_v56 = vpop.f32.mrb[16].mxu0 }
 0x13e   : > { %v858_v58 = vadd.f32 %v1246_v56, %v773_v44  ;;  %v1249_v59 = vpop.f32.mrb[16].mxu1  ;;  %v852_v60 = vpop.f32.mrb[17].mxu0 }
 0x13f   : > { %v868_v62 = vadd.f32 %v1249_v59, %v783_v55  ;;  %v853_v63 = vadd.f32 %v852_v60, %v768_v36  ;;  %v862_v0 = vpop.f32.mrb[17].mxu1 }
 0x140   : > { %v894_v1 = vmul.f32 %v1012_v57, %v858_v58  ;;  %v863_v2 = vadd.f32 %v862_v0, %v778_v52 }
 0x141   : > { %v896_v3 = vmul.f32 %v1012_v57, %v868_v62  ;;  %v893_v4 = vmul.f32 %v1012_v57, %v853_v63 }
 0x142   : > { %v905_v5 = vadd.f32 %v1013_v61, %v894_v1  ;;  %v895_v6 = vmul.f32 %v1012_v57, %v863_v2 }
 0x143   : > { %v907_v7 = vadd.f32 %v1013_v61, %v896_v3  ;;  %v904_v8 = vadd.f32 %v1013_v61, %v893_v4 }
 0x144   : > { %v909_v9 = vmax.f32 %v905_v5, 0.0  ;;  %v906_v10 = vadd.f32 %v1013_v61, %v895_v6 }
 0x145   : > { %v911_v11 = vmax.f32 %v907_v7, 0.0  ;;  %v908_v12 = vmax.f32 %v904_v8, 0.0 }
 0x146   : > { %913 = vst [vmem:[%s252_s24 + $0x8] sm:$0xff] %v909_v9  ;;  %v910_v13 = vmax.f32 %v906_v10, 0.0 }
 0x147   : > { %915 = vst [vmem:[%s252_s24 + $0x18] sm:$0xff] %v911_v11  ;;  %912 = vst [vmem:[%s252_s24] sm:$0xff] %v908_v12 }
 0x148   : > { %914 = vst [vmem:[%s252_s24 + $0x10] sm:$0xff] %v910_v13 }
 0x149 PF: > { %s14_s17 = sadd.s32 1, %s1473_s17   ;;  %s2032_s15 = smov %s1469_s16 }
 0x14a   : > { %p11_p5 = scmp.ge.s32.totalorder %s14_s17, 6   ;;  %s2033_s16 = smov %s2035_s18 }
 0x14c   :  { %13 = sbr.rel (!%p11_p5) target bundleno = 2 (0x2), region = 77 }

// kernel: custom_resnet_forward.13
= control target key start
LH: loop header
LB: loop body
LE: loop exit
PB: predicated region body
PF: predicated region fallthrough
CT: control target
= control target key end

     0   :  { %s1576_s18 = smov 0   ;;  %s1578_s19 = smov 0   ;;  %s2105_s0 = inlined_call_operand.vmem [shape: f32[128,1152], index: 0, kind: input, shape index: {}]   ;;  %s2106_s1 = inlined_call_operand.vmem [shape: f32[1152,128], index: 1, kind: input, shape index: {}]   ;;  %s2107_s2 = inlined_call_operand.vmem [shape: f32[1,128], index: 2, kind: input, shape index: {}]   ;;  %s2108_s3 = inlined_call_operand.vmem [shape: f32[1,128], index: 3, kind: input, shape index: {}]   ;;  %s2109_s4 = inlined_call_operand.vmem [shape: f32[128,128], index: 4, kind: input, shape index: {}]   ;;  %s2110_s5 = inlined_call_operand.vmem [shape: f32[128,128], index: 5, kind: output, shape index: {}]  }
   0x1   :  { %s1580_s20 = smov 0  }
   0x2 LB: > { %s27_s21 = sadd.s32 1, %s1540_s19  ;;  %p1076_p0 = scmp.ge.s32.totalorder %s1544_s20, 1  ;;  %s1544_s20 = sphi %s1580_s20, %s15_s20   ;;  %s1540_s19 = sphi %s1578_s19, %s2113_s19   ;;  %s1536_s18 = sphi %s1576_s18, %s2112_s18  }
   0x3   : > { %p29_p1 = scmp.ge.s32.totalorder %s27_s21, 4  ;;  %p230_p2 = scmp.lt.s32.totalorder %s1544_s20, 5 }
   0x5   : > { %s2115_s21 = smov (%p29_p1, %s27_s21), 0  ;;  %p231_p3 = pnand %p1076_p0, %p230_p2 }
   0x6   : > { %v367_v0 = vld [vmem:[%s2106_s1 + $0x80] sm:$0xff] (!%p231_p3)  ;;  %v368_v1 = vld [vmem:[%s2106_s1 + $0x88] sm:$0xff] (!%p231_p3)  ;;  %v369_v11 = vld [vmem:[%s2106_s1 + $0x90] sm:$0xff] (!%p231_p3)  ;;  %s1077_s25 = sshll.u32 (!%p231_p3), %s1536_s18, 2 }
   0x7   : > { %234 = sbr.rel (%p231_p3) target bundleno = 331 (0x14b), region = 40  ;;  %v399_v2 = vld [vmem:[%s2106_s1 + $0x180] sm:$0xff] (!%p231_p3)  ;;  %v1321_v3 = vpack.c.bf16 (!%p231_p3), %v368_v1, %v367_v0  ;;  %v400_v4 = vld [vmem:[%s2106_s1 + $0x188] sm:$0xff] (!%p231_p3)  ;;  %v370_v13 = vld [vmem:[%s2106_s1 + $0x98] sm:$0xff] (!%p231_p3)  ;;  %p1662_p4 = scmp.lt.s32.totalorder (!%p231_p3), %s1077_s25, 15 }
   0x8   : > { %v351_v5 = vld [vmem:[%s2106_s1] sm:$0xff] (!%p231_p3)  ;;  %v352_v6 = vld [vmem:[%s2106_s1 + $0x8] sm:$0xff] (!%p231_p3)  ;;  %v1353_v7 = vpack.c.bf16 (!%p231_p3), %v400_v4, %v399_v2  ;;  %v401_v14 = vld [vmem:[%s2106_s1 + $0x190] sm:$0xff] (!%p231_p3)  ;;  %v1325_v16 = vpack.c.bf16 (!%p231_p3), %v370_v13, %v369_v11 }
   0x9   : > { %v1323_v8 = vpack.c.bf16 (!%p231_p3), %v352_v6, %v351_v5  ;;  %v383_v9 = vld [vmem:[%s2106_s1 + $0x100] sm:$0xff] (!%p231_p3)  ;;  %v384_v10 = vld [vmem:[%s2106_s1 + $0x108] sm:$0xff] (!%p231_p3)  ;;  %1322 = vmatprep.subr.bf16.mxu0 (!%p231_p3), %v1321_v3  ;;  %v402_v15 = vld [vmem:[%s2106_s1 + $0x198] sm:$0xff] (!%p231_p3) }
   0xa   : > { %v1355_v12 = vpack.c.bf16 (!%p231_p3), %v384_v10, %v383_v9  ;;  %1354 = vmatprep.subr.bf16.mxu1 (!%p231_p3), %v1353_v7  ;;  %v1357_v17 = vpack.c.bf16 (!%p231_p3), %v402_v15, %v401_v14  ;;  %v353_v18 = vld [vmem:[%s2106_s1 + $0x10] sm:$0xff] (!%p231_p3)  ;;  %v354_v19 = vld [vmem:[%s2106_s1 + $0x18] sm:$0xff] (!%p231_p3)  ;;  %v371_v23 = vld [vmem:[%s2106_s1 + $0xa0] sm:$0xff] (!%p231_p3) }
   0xb   : > { %1324 = vmatpush3.bf16.msra.mxu0 (!%p231_p3), %v1323_v8  ;;  %v385_v20 = vld [vmem:[%s2106_s1 + $0x110] sm:$0xff] (!%p231_p3)  ;;  %v1327_v21 = vpack.c.bf16 (!%p231_p3), %v354_v19, %v353_v18  ;;  %v386_v22 = vld [vmem:[%s2106_s1 + $0x118] sm:$0xff] (!%p231_p3)  ;;  %v372_v24 = vld [vmem:[%s2106_s1 + $0xa8] sm:$0xff] (!%p231_p3) }
   0xc   : > { %1356 = vmatpush3.bf16.msra.mxu1 (!%p231_p3), %v1355_v12  ;;  %1326 = vmatprep.subr.bf16.mxu0 (!%p231_p3), %v1325_v16  ;;  %v1359_v25 = vpack.c.bf16 (!%p231_p3), %v386_v22, %v385_v20  ;;  %v1329_v26 = vpack.c.bf16 (!%p231_p3), %v372_v24, %v371_v23  ;;  %v403_v27 = vld [vmem:[%s2106_s1 + $0x1a0] sm:$0xff] (!%p231_p3)  ;;  %v404_v28 = vld [vmem:[%s2106_s1 + $0x1a8] sm:$0xff] (!%p231_p3)  ;;  %v373_v35 = vld [vmem:[%s2106_s1 + $0xb0] sm:$0xff] (!%p231_p3) }
   0xd   : > { %1358 = vmatprep.subr.bf16.mxu1 (!%p231_p3), %v1357_v17  ;;  %v355_v29 = vld [vmem:[%s2106_s1 + $0x20] sm:$0xff] (!%p231_p3)  ;;  %v1361_v30 = vpack.c.bf16 (!%p231_p3), %v404_v28, %v403_v27  ;;  %v356_v31 = vld [vmem:[%s2106_s1 + $0x28] sm:$0xff] (!%p231_p3)  ;;  %v374_v36 = vld [vmem:[%s2106_s1 + $0xb8] sm:$0xff] (!%p231_p3) }
   0xe   : > { %v387_v32 = vld [vmem:[%s2106_s1 + $0x120] sm:$0xff]  ;;  %v388_v33 = vld [vmem:[%s2106_s1 + $0x128] sm:$0xff]  ;;  %v1331_v34 = vpack.c.bf16 %v356_v31, %v355_v29  ;;  %v405_v37 = vld [vmem:[%s2106_s1 + $0x1b0] sm:$0xff]  ;;  %v1333_v39 = vpack.c.bf16 %v374_v36, %v373_v35  ;;  %s2117_s25 = smov (!%p1662_p4, %s1077_s25), 15 }
   0xf   : > { %1328 = vmatpush3.bf16.msra.mxu0 %v1327_v21  ;;  %v1363_v38 = vpack.c.bf16 %v388_v33, %v387_v32  ;;  %v406_v40 = vld [vmem:[%s2106_s1 + $0x1b8] sm:$0xff]  ;;  %v357_v41 = vld [vmem:[%s2106_s1 + $0x30] sm:$0xff]  ;;  %v375_v46 = vld [vmem:[%s2106_s1 + $0xc0] sm:$0xff]  ;;  %s1497_s27 = smul.u32 72, %s2117_s25 }
  0x10   : > { %1360 = vmatpush3.bf16.msra.mxu1 %v1359_v25  ;;  %1330 = vmatprep.subr.bf16.mxu0 %v1329_v26  ;;  %v358_v42 = vld [vmem:[%s2106_s1 + $0x38] sm:$0xff]  ;;  %v1365_v43 = vpack.c.bf16 %v406_v40, %v405_v37  ;;  %v389_v44 = vld [vmem:[%s2106_s1 + $0x130] sm:$0xff]  ;;  %v376_v47 = vld [vmem:[%s2106_s1 + $0xc8] sm:$0xff] }
  0x11   : > { %1362 = vmatprep.subr.bf16.mxu1 %v1361_v30  ;;  %v390_v45 = vld [vmem:[%s2106_s1 + $0x138] sm:$0xff]  ;;  %v407_v48 = vld [vmem:[%s2106_s1 + $0x1c0] sm:$0xff]  ;;  %v408_v49 = vld [vmem:[%s2106_s1 + $0x1c8] sm:$0xff]  ;;  %v1335_v50 = vpack.c.bf16 %v358_v42, %v357_v41  ;;  %v1337_v52 = vpack.c.bf16 %v376_v47, %v375_v46  ;;  %s1763_s24 = scalar_lea.vmem %s2105_s0, %s1497_s27 }
  0x12   : > { %v1367_v51 = vpack.c.bf16 %v390_v45, %v389_v44  ;;  %v359_v53 = vld [vmem:[%s2106_s1 + $0x40] sm:$0xff]  ;;  %v360_v54 = vld [vmem:[%s2106_s1 + $0x48] sm:$0xff]  ;;  %v1369_v56 = vpack.c.bf16 %v408_v49, %v407_v48  ;;  %v377_v58 = vld [vmem:[%s2106_s1 + $0xd0] sm:$0xff] }
  0x13   : > { %1332 = vmatpush3.bf16.msra.mxu0 %v1331_v34  ;;  %v391_v55 = vld [vmem:[%s2106_s1 + $0x140] sm:$0xff]  ;;  %v392_v57 = vld [vmem:[%s2106_s1 + $0x148] sm:$0xff]  ;;  %v378_v59 = vld [vmem:[%s2106_s1 + $0xd8] sm:$0xff]  ;;  %v1339_v62 = vpack.c.bf16 %v360_v54, %v359_v53 }
  0x14   : > { %1364 = vmatpush3.bf16.msra.mxu1 %v1363_v38  ;;  %1334 = vmatprep.subr.bf16.mxu0 %v1333_v39  ;;  %v409_v60 = vld [vmem:[%s2106_s1 + $0x1d0] sm:$0xff]  ;;  %v410_v61 = vld [vmem:[%s2106_s1 + $0x1d8] sm:$0xff]  ;;  %v1371_v63 = vpack.c.bf16 %v392_v57, %v391_v55  ;;  %v1341_v0 = vpack.c.bf16 %v378_v59, %v377_v58  ;;  %v379_v6 = vld [vmem:[%s2106_s1 + $0xe0] sm:$0xff] }
  0x15   : > { %1366 = vmatprep.subr.bf16.mxu1 %v1365_v43  ;;  %v361_v1 = vld [vmem:[%s2106_s1 + $0x50] sm:$0xff]  ;;  %v362_v2 = vld [vmem:[%s2106_s1 + $0x58] sm:$0xff]  ;;  %v1373_v4 = vpack.c.bf16 %v410_v61, %v409_v60  ;;  %v380_v7 = vld [vmem:[%s2106_s1 + $0xe8] sm:$0xff] }
  0x16   : > { %v393_v3 = vld [vmem:[%s2106_s1 + $0x150] sm:$0xff]  ;;  %v394_v5 = vld [vmem:[%s2106_s1 + $0x158] sm:$0xff]  ;;  %v411_v8 = vld [vmem:[%s2106_s1 + $0x1e0] sm:$0xff]  ;;  %v1343_v10 = vpack.c.bf16 %v362_v2, %v361_v1  ;;  %v1345_v14 = vpack.c.bf16 %v380_v7, %v379_v6 }
  0x17   : > { %1336 = vmatpush3.bf16.msra.mxu0 %v1335_v50  ;;  %v412_v9 = vld [vmem:[%s2106_s1 + $0x1e8] sm:$0xff]  ;;  %v363_v11 = vld [vmem:[%s2106_s1 + $0x60] sm:$0xff]  ;;  %v1375_v13 = vpack.c.bf16 %v394_v5, %v393_v3  ;;  %v318_v17 = vld [vmem:[%s1763_s24 + $0x18] sm:$0xff] }
  0x18   : > { %1368 = vmatpush3.bf16.msra.mxu1 %v1367_v51  ;;  %1338 = vmatprep.subr.bf16.mxu0 %v1337_v52  ;;  %v364_v12 = vld [vmem:[%s2106_s1 + $0x68] sm:$0xff]  ;;  %v395_v15 = vld [vmem:[%s2106_s1 + $0x160] sm:$0xff]  ;;  %v1377_v18 = vpack.c.bf16 %v412_v9, %v411_v8  ;;  %v381_v20 = vld [vmem:[%s2106_s1 + $0xf0] sm:$0xff] }
  0x19   : > { %1370 = vmatprep.subr.bf16.mxu1 %v1369_v56  ;;  %v316_v16 = vld [vmem:[%s1763_s24 + $0x8] sm:$0xff]  ;;  %v382_v21 = vld [vmem:[%s2106_s1 + $0xf8] sm:$0xff]  ;;  %v413_v22 = vld [vmem:[%s2106_s1 + $0x1f0] sm:$0xff]  ;;  %644 = vmatprep.mubr.f32.mxu1 %v318_v17  ;;  %v1347_v24 = vpack.c.bf16 %v364_v12, %v363_v11 }
  0x1a   : > { %v396_v19 = vld [vmem:[%s2106_s1 + $0x168] sm:$0xff]  ;;  %559 = vmatprep.mubr.f32.mxu0 %v316_v16  ;;  %v414_v23 = vld [vmem:[%s2106_s1 + $0x1f8] sm:$0xff]  ;;  %v1349_v26 = vpack.c.bf16 %v382_v21, %v381_v20  ;;  %v365_v27 = vld [vmem:[%s2106_s1 + $0x70] sm:$0xff] }
  0x1b   : > { %1340 = vmatpush3.bf16.msra.mxu0 %v1339_v62  ;;  %v1379_v25 = vpack.c.bf16 %v396_v19, %v395_v15  ;;  %v366_v28 = vld [vmem:[%s2106_s1 + $0x78] sm:$0xff]  ;;  %v397_v29 = vld [vmem:[%s2106_s1 + $0x170] sm:$0xff]  ;;  %v1381_v30 = vpack.c.bf16 %v414_v23, %v413_v22  ;;  %v431_v32 = vld [vmem:[%s2106_s1 + $0x280] sm:$0xff] }
  0x1c   : > { %1372 = vmatpush3.bf16.msra.mxu1 %v1371_v63  ;;  %1342 = vmatprep.subr.bf16.mxu0 %v1341_v0  ;;  %v398_v31 = vld [vmem:[%s2106_s1 + $0x178] sm:$0xff]  ;;  %v432_v33 = vld [vmem:[%s2106_s1 + $0x288] sm:$0xff]  ;;  %v463_v34 = vld [vmem:[%s2106_s1 + $0x380] sm:$0xff]  ;;  %v1351_v36 = vpack.c.bf16 %v366_v28, %v365_v27 }
  0x1d   : > { %1374 = vmatprep.subr.bf16.mxu1 %v1373_v4  ;;  %v464_v35 = vld [vmem:[%s2106_s1 + $0x388] sm:$0xff]  ;;  %v1383_v37 = vpack.c.bf16 %v398_v31, %v397_v29  ;;  %v1385_v38 = vpack.c.bf16 %v432_v33, %v431_v32  ;;  %v415_v39 = vld [vmem:[%s2106_s1 + $0x200] sm:$0xff]  ;;  %v433_v44 = vld [vmem:[%s2106_s1 + $0x290] sm:$0xff] }
  0x1e   : > { %v416_v40 = vld [vmem:[%s2106_s1 + $0x208] sm:$0xff]  ;;  %v447_v41 = vld [vmem:[%s2106_s1 + $0x300] sm:$0xff]  ;;  %v1417_v42 = vpack.c.bf16 %v464_v35, %v463_v34  ;;  %v434_v45 = vld [vmem:[%s2106_s1 + $0x298] sm:$0xff] }
  0x1f   : > { %1344 = vmatpush3.bf16.msra.mxu0 %v1343_v10  ;;  %v448_v43 = vld [vmem:[%s2106_s1 + $0x308] sm:$0xff]  ;;  %v465_v46 = vld [vmem:[%s2106_s1 + $0x390] sm:$0xff]  ;;  %v466_v47 = vld [vmem:[%s2106_s1 + $0x398] sm:$0xff]  ;;  %v1387_v50 = vpack.c.bf16 %v416_v40, %v415_v39  ;;  %v1389_v52 = vpack.c.bf16 %v434_v45, %v433_v44 }
  0x20   : > { %1376 = vmatpush3.bf16.msra.mxu1 %v1375_v13  ;;  %1346 = vmatprep.subr.bf16.mxu0 %v1345_v14  ;;  %v315_v48 = vld [vmem:[%s1763_s24] sm:$0xff]  ;;  %v317_v49 = vld [vmem:[%s1763_s24 + $0x10] sm:$0xff]  ;;  %v1419_v51 = vpack.c.bf16 %v448_v43, %v447_v41  ;;  %v418_v54 = vld [vmem:[%s2106_s1 + $0x218] sm:$0xff]  ;;  %v1421_v56 = vpack.c.bf16 %v466_v47, %v465_v46 }
  0x21   : > { %1378 = vmatprep.subr.bf16.mxu1 %v1377_v18  ;;  %v417_v53 = vld [vmem:[%s2106_s1 + $0x210] sm:$0xff]  ;;  %v450_v57 = vld [vmem:[%s2106_s1 + $0x318] sm:$0xff]  ;;  %v435_v58 = vld [vmem:[%s2106_s1 + $0x2a0] sm:$0xff] }
  0x22   : > { %v449_v55 = vld [vmem:[%s2106_s1 + $0x310] sm:$0xff]  ;;  %v436_v59 = vld [vmem:[%s2106_s1 + $0x2a8] sm:$0xff]  ;;  %v467_v60 = vld [vmem:[%s2106_s1 + $0x3a0] sm:$0xff]  ;;  %v1391_v63 = vpack.c.bf16 %v418_v54, %v417_v53 }
  0x23   : > { %1348 = vmatpush3.bf16.msra.mxu0 %v1347_v24  ;;  %v468_v61 = vld [vmem:[%s2106_s1 + $0x3a8] sm:$0xff]  ;;  %v419_v62 = vld [vmem:[%s2106_s1 + $0x220] sm:$0xff]  ;;  %v325_v0 = vld [vmem:[%s1763_s24 + $0x50] sm:$0xff]  ;;  %v1423_v3 = vpack.c.bf16 %v450_v57, %v449_v55  ;;  %v1393_v4 = vpack.c.bf16 %v436_v59, %v435_v58 }
  0x24   : > { %1380 = vmatpush3.bf16.msra.mxu1 %v1379_v25  ;;  %1350 = vmatprep.subr.bf16.mxu0 %v1349_v26  ;;  %v327_v1 = vld [vmem:[%s1763_s24 + $0x60] sm:$0xff]  ;;  %v324_v2 = vld [vmem:[%s1763_s24 + $0x48] sm:$0xff]  ;;  %v326_v7 = vld [vmem:[%s1763_s24 + $0x58] sm:$0xff]  ;;  %v1425_v8 = vpack.c.bf16 %v468_v61, %v467_v60 }
  0x25   : > { %1382 = vmatprep.subr.bf16.mxu1 %v1381_v30  ;;  %v420_v5 = vld [vmem:[%s2106_s1 + $0x228] sm:$0xff]  ;;  %v451_v6 = vld [vmem:[%s2106_s1 + $0x320] sm:$0xff]  ;;  %v437_v10 = vld [vmem:[%s2106_s1 + $0x2b0] sm:$0xff] }
  0x26   : > { %v452_v9 = vld [vmem:[%s2106_s1 + $0x328] sm:$0xff]  ;;  %v438_v11 = vld [vmem:[%s2106_s1 + $0x2b8] sm:$0xff]  ;;  %v469_v12 = vld [vmem:[%s2106_s1 + $0x3b0] sm:$0xff]  ;;  %v1395_v15 = vpack.c.bf16 %v420_v5, %v419_v62 }
  0x27   : > { %1352 = vmatpush3.bf16.msra.mxu0 %v1351_v36  ;;  %v470_v13 = vld [vmem:[%s2106_s1 + $0x3b8] sm:$0xff]  ;;  %v421_v14 = vld [vmem:[%s2106_s1 + $0x230] sm:$0xff]  ;;  %v336_v17 = vld [vmem:[%s1763_s24 + $0xa8] sm:$0xff]  ;;  %v1427_v19 = vpack.c.bf16 %v452_v9, %v451_v6  ;;  %v1397_v20 = vpack.c.bf16 %v438_v11, %v437_v10 }
  0x28   : > { %1384 = vmatpush3.bf16.msra.mxu1 %v1383_v37  ;;  %1386 = vmatprep.subr.bf16.mxu0 %v1385_v38  ;;  %v334_v16 = vld [vmem:[%s1763_s24 + $0x98] sm:$0xff]  ;;  %v333_v18 = vld [vmem:[%s1763_s24 + $0x90] sm:$0xff]  ;;  %v335_v23 = vld [vmem:[%s1763_s24 + $0xa0] sm:$0xff]  ;;  %v1429_v24 = vpack.c.bf16 %v470_v13, %v469_v12 }
  0x29   : > { %1418 = vmatprep.subr.bf16.mxu1 %v1417_v42  ;;  %v422_v21 = vld [vmem:[%s2106_s1 + $0x238] sm:$0xff]  ;;  %v453_v22 = vld [vmem:[%s2106_s1 + $0x330] sm:$0xff]  ;;  %v439_v26 = vld [vmem:[%s2106_s1 + $0x2c0] sm:$0xff] }
  0x2a   : > { %560 = vmatmul.mubr.f32.vlgmr.msra.gmra.mrb[0].mxu0 %v315_v48  ;;  %v454_v25 = vld [vmem:[%s2106_s1 + $0x338] sm:$0xff]  ;;  %v440_v27 = vld [vmem:[%s2106_s1 + $0x2c8] sm:$0xff]  ;;  %v471_v28 = vld [vmem:[%s2106_s1 + $0x3c0] sm:$0xff]  ;;  %v1399_v31 = vpack.c.bf16 %v422_v21, %v421_v14 }
  0x2b   : > { %645 = vmatmul.mubr.f32.vlgmr.msra.gmra.mrb[0].mxu1 %v317_v49  ;;  %1388 = vmatpush3.bf16.msra.mxu0 %v1387_v50  ;;  %v472_v29 = vld [vmem:[%s2106_s1 + $0x3c8] sm:$0xff]  ;;  %v423_v30 = vld [vmem:[%s2106_s1 + $0x240] sm:$0xff]  ;;  %v345_v33 = vld [vmem:[%s1763_s24 + $0xf0] sm:$0xff]  ;;  %v1431_v35 = vpack.c.bf16 %v454_v25, %v453_v22  ;;  %v1401_v36 = vpack.c.bf16 %v440_v27, %v439_v26 }
  0x2c   : > { %1420 = vmatpush3.bf16.msra.mxu1 %v1419_v51  ;;  %1390 = vmatprep.subr.bf16.mxu0 %v1389_v52  ;;  %v343_v32 = vld [vmem:[%s1763_s24 + $0xe0] sm:$0xff]  ;;  %v342_v34 = vld [vmem:[%s1763_s24 + $0xd8] sm:$0xff]  ;;  %v424_v37 = vld [vmem:[%s2106_s1 + $0x248] sm:$0xff]  ;;  %v1433_v40 = vpack.c.bf16 %v472_v29, %v471_v28 }
  0x2d   : > { %1422 = vmatprep.subr.bf16.mxu1 %v1421_v56  ;;  %564 = vmatprep.mubr.f32.mxu0 %v325_v0  ;;  %v455_v38 = vld [vmem:[%s2106_s1 + $0x340] sm:$0xff]  ;;  %v344_v39 = vld [vmem:[%s1763_s24 + $0xe8] sm:$0xff]  ;;  %v441_v42 = vld [vmem:[%s2106_s1 + $0x2d0] sm:$0xff]  ;;  %v1403_v46 = vpack.c.bf16 %v424_v37, %v423_v30 }
  0x2e   : > { %649 = vmatprep.mubr.f32.mxu1 %v327_v1  ;;  %565 = vmatmul.mubr.f32.gmra.mrb[2].mxu0 %v324_v2  ;;  %v456_v41 = vld [vmem:[%s2106_s1 + $0x348] sm:$0xff]  ;;  %v442_v43 = vld [vmem:[%s2106_s1 + $0x2d8] sm:$0xff]  ;;  %v473_v44 = vld [vmem:[%s2106_s1 + $0x3d0] sm:$0xff] }
  0x2f   : > { %1392 = vmatpush3.bf16.msra.mxu0 %v1391_v63  ;;  %650 = vmatmul.mubr.f32.gmra.mrb[2].mxu1 %v326_v7  ;;  %v474_v45 = vld [vmem:[%s2106_s1 + $0x3d8] sm:$0xff]  ;;  %v320_v47 = vld [vmem:[%s1763_s24 + $0x28] sm:$0xff]  ;;  %v1435_v49 = vpack.c.bf16 %v456_v41, %v455_v38  ;;  %v1405_v50 = vpack.c.bf16 %v442_v43, %v441_v42  ;;  %v425_v51 = vld [vmem:[%s2106_s1 + $0x250] sm:$0xff] }
  0x30   : > { %1424 = vmatpush3.bf16.msra.mxu1 %v1423_v3  ;;  %1394 = vmatprep.subr.bf16.mxu0 %v1393_v4  ;;  %v322_v48 = vld [vmem:[%s1763_s24 + $0x38] sm:$0xff]  ;;  %v457_v53 = vld [vmem:[%s2106_s1 + $0x350] sm:$0xff]  ;;  %v1437_v54 = vpack.c.bf16 %v474_v45, %v473_v44  ;;  %v443_v56 = vld [vmem:[%s2106_s1 + $0x2e0] sm:$0xff] }
  0x31   : > { %1426 = vmatprep.subr.bf16.mxu1 %v1425_v8  ;;  %569 = vmatprep.mubr.f32.mxu0 %v334_v16  ;;  %v426_v52 = vld [vmem:[%s2106_s1 + $0x258] sm:$0xff]  ;;  %v444_v57 = vld [vmem:[%s2106_s1 + $0x2e8] sm:$0xff]  ;;  %v475_v58 = vld [vmem:[%s2106_s1 + $0x3e0] sm:$0xff] }
  0x32   : > { %654 = vmatprep.mubr.f32.mxu1 %v336_v17  ;;  %570 = vmatmul.mubr.f32.gmra.mrb[4].mxu0 %v333_v18  ;;  %v458_v55 = vld [vmem:[%s2106_s1 + $0x358] sm:$0xff]  ;;  %v476_v59 = vld [vmem:[%s2106_s1 + $0x3e8] sm:$0xff]  ;;  %v1407_v60 = vpack.c.bf16 %v426_v52, %v425_v51  ;;  %v1409_v62 = vpack.c.bf16 %v444_v57, %v443_v56  ;;  %v427_v63 = vld [vmem:[%s2106_s1 + $0x260] sm:$0xff] }
  0x33   : > { %1396 = vmatpush3.bf16.msra.mxu0 %v1395_v15  ;;  %655 = vmatmul.mubr.f32.gmra.mrb[4].mxu1 %v335_v23  ;;  %v1439_v61 = vpack.c.bf16 %v458_v55, %v457_v53  ;;  %v428_v0 = vld [vmem:[%s2106_s1 + $0x268] sm:$0xff]  ;;  %v459_v1 = vld [vmem:[%s2106_s1 + $0x360] sm:$0xff]  ;;  %v1441_v2 = vpack.c.bf16 %v476_v59, %v475_v58  ;;  %v445_v4 = vld [vmem:[%s2106_s1 + $0x2f0] sm:$0xff] }
  0x34   : > { %1428 = vmatpush3.bf16.msra.mxu1 %v1427_v19  ;;  %1398 = vmatprep.subr.bf16.mxu0 %v1397_v20  ;;  %v460_v3 = vld [vmem:[%s2106_s1 + $0x368] sm:$0xff]  ;;  %v446_v5 = vld [vmem:[%s2106_s1 + $0x2f8] sm:$0xff]  ;;  %v477_v6 = vld [vmem:[%s2106_s1 + $0x3f0] sm:$0xff]  ;;  %v1411_v8 = vpack.c.bf16 %v428_v0, %v427_v63 }
  0x35   : > { %1430 = vmatprep.subr.bf16.mxu1 %v1429_v24  ;;  %574 = vmatprep.mubr.f32.mxu0 %v343_v32  ;;  %v478_v7 = vld [vmem:[%s2106_s1 + $0x3f8] sm:$0xff]  ;;  %v1443_v9 = vpack.c.bf16 %v460_v3, %v459_v1  ;;  %v1413_v10 = vpack.c.bf16 %v446_v5, %v445_v4  ;;  %v429_v11 = vld [vmem:[%s2106_s1 + $0x270] sm:$0xff]  ;;  %v479_v16 = vld [vmem:[%s2106_s1 + $0x400] sm:$0xff] }
  0x36   : > { %659 = vmatprep.mubr.f32.mxu1 %v345_v33  ;;  %575 = vmatmul.mubr.f32.gmra.mrb[6].mxu0 %v342_v34  ;;  %v430_v12 = vld [vmem:[%s2106_s1 + $0x278] sm:$0xff]  ;;  %v461_v13 = vld [vmem:[%s2106_s1 + $0x370] sm:$0xff]  ;;  %v1445_v14 = vpack.c.bf16 %v478_v7, %v477_v6  ;;  %v480_v17 = vld [vmem:[%s2106_s1 + $0x408] sm:$0xff] }
  0x37   : > { %1400 = vmatpush3.bf16.msra.mxu0 %v1399_v31  ;;  %660 = vmatmul.mubr.f32.gmra.mrb[6].mxu1 %v344_v39  ;;  %v462_v15 = vld [vmem:[%s2106_s1 + $0x378] sm:$0xff]  ;;  %v1415_v18 = vpack.c.bf16 %v430_v12, %v429_v11  ;;  %v1449_v20 = vpack.c.bf16 %v480_v17, %v479_v16  ;;  %v481_v21 = vld [vmem:[%s2106_s1 + $0x410] sm:$0xff]  ;;  %v319_v23 = vld [vmem:[%s1763_s24 + $0x20] sm:$0xff] }
  0x38   : > { %1432 = vmatpush3.bf16.msra.mxu1 %v1431_v35  ;;  %1402 = vmatprep.subr.bf16.mxu0 %v1401_v36  ;;  %v1447_v19 = vpack.c.bf16 %v462_v15, %v461_v13  ;;  %v482_v22 = vld [vmem:[%s2106_s1 + $0x418] sm:$0xff]  ;;  %v321_v24 = vld [vmem:[%s1763_s24 + $0x30] sm:$0xff]  ;;  %v483_v27 = vld [vmem:[%s2106_s1 + $0x420] sm:$0xff] }
  0x39   : > { %1434 = vmatprep.subr.bf16.mxu1 %v1433_v40  ;;  %729 = vmatprep.mubr.f32.mxu0 %v320_v47  ;;  %v329_v25 = vld [vmem:[%s1763_s24 + $0x70] sm:$0xff]  ;;  %v1453_v26 = vpack.c.bf16 %v482_v22, %v481_v21  ;;  %v484_v28 = vld [vmem:[%s2106_s1 + $0x428] sm:$0xff]  ;;  %v331_v30 = vld [vmem:[%s1763_s24 + $0x80] sm:$0xff] }
  0x3a   : > { %814 = vmatprep.mubr.f32.mxu1 %v322_v48  ;;  %v328_v29 = vld [vmem:[%s1763_s24 + $0x68] sm:$0xff]  ;;  %v330_v31 = vld [vmem:[%s1763_s24 + $0x78] sm:$0xff]  ;;  %v1457_v33 = vpack.c.bf16 %v484_v28, %v483_v27  ;;  %v485_v34 = vld [vmem:[%s2106_s1 + $0x430] sm:$0xff] }
  0x3b   : > { %1404 = vmatpush3.bf16.msra.mxu0 %v1403_v46  ;;  %v338_v32 = vld [vmem:[%s1763_s24 + $0xb8] sm:$0xff]  ;;  %v337_v36 = vld [vmem:[%s1763_s24 + $0xb0] sm:$0xff]  ;;  %v340_v37 = vld [vmem:[%s1763_s24 + $0xc8] sm:$0xff] }
  0x3c   : > { %1436 = vmatpush3.bf16.msra.mxu1 %v1435_v49  ;;  %1406 = vmatprep.subr.bf16.mxu0 %v1405_v50  ;;  %v486_v35 = vld [vmem:[%s2106_s1 + $0x438] sm:$0xff]  ;;  %v339_v38 = vld [vmem:[%s1763_s24 + $0xc0] sm:$0xff]  ;;  %v488_v42 = vld [vmem:[%s2106_s1 + $0x448] sm:$0xff] }
  0x3d   : > { %1438 = vmatprep.subr.bf16.mxu1 %v1437_v54  ;;  %v347_v39 = vld [vmem:[%s1763_s24 + $0x100] sm:$0xff]  ;;  %v1461_v40 = vpack.c.bf16 %v486_v35, %v485_v34  ;;  %v346_v43 = vld [vmem:[%s1763_s24 + $0xf8] sm:$0xff]  ;;  %v349_v44 = vld [vmem:[%s1763_s24 + $0x110] sm:$0xff] }
  0x3e   : > { %v487_v41 = vld [vmem:[%s2106_s1 + $0x440] sm:$0xff]  ;;  %v348_v45 = vld [vmem:[%s1763_s24 + $0x108] sm:$0xff]  ;;  %v489_v47 = vld [vmem:[%s2106_s1 + $0x450] sm:$0xff] }
  0x3f   : > { %1408 = vmatpush3.bf16.msra.mxu0 %v1407_v60  ;;  %v1465_v46 = vpack.c.bf16 %v488_v42, %v487_v41  ;;  %v490_v48 = vld [vmem:[%s2106_s1 + $0x458] sm:$0xff]  ;;  %v323_v49 = vld [vmem:[%s1763_s24 + $0x40] sm:$0xff]  ;;  %v341_v50 = vld [vmem:[%s1763_s24 + $0xd0] sm:$0xff] }
  0x40   : > { %1440 = vmatpush3.bf16.msra.mxu1 %v1439_v61  ;;  %1410 = vmatprep.subr.bf16.mxu0 %v1409_v62  ;;  %v1469_v51 = vpack.c.bf16 %v490_v48, %v489_v47  ;;  %v491_v52 = vld [vmem:[%s2106_s1 + $0x460] sm:$0xff]  ;;  %v492_v53 = vld [vmem:[%s2106_s1 + $0x468] sm:$0xff]  ;;  %v493_v55 = vld [vmem:[%s2106_s1 + $0x470] sm:$0xff] }
  0x41   : > { %1442 = vmatprep.subr.bf16.mxu1 %v1441_v2  ;;  %v1473_v54 = vpack.c.bf16 %v492_v53, %v491_v52  ;;  %v494_v56 = vld [vmem:[%s2106_s1 + $0x478] sm:$0xff]  ;;  %v332_v58 = vld [vmem:[%s1763_s24 + $0x88] sm:$0xff] }
  0x42   : > { %v1477_v57 = vpack.c.bf16 %v494_v56, %v493_v55  ;;  %v350_v59 = vld [vmem:[%s1763_s24 + $0x118] sm:$0xff]  ;;  %s1080_s24 = sshll.u32 %s2117_s25, 3 }
  0x43   : > { %1412 = vmatpush3.bf16.msra.mxu0 %v1411_v8  ;;  %s295_s11 = scalar_lea.vmem %s2109_s4, %s1080_s24  ;;  %s301_s15 = scalar_lea.vmem %s2110_s5, %s1080_s24 }
  0x44   : > { %1444 = vmatpush3.bf16.msra.mxu1 %v1443_v9  ;;  %1414 = vmatprep.subr.bf16.mxu0 %v1413_v10 }
  0x45   : > { %1446 = vmatprep.subr.bf16.mxu1 %v1445_v14 }
  0x47   : > { %1416 = vmatpush3.bf16.msra.mxu0 %v1415_v18 }
  0x48   : > { %1448 = vmatpush3.bf16.msra.mxu1 %v1447_v19  ;;  %1450 = vmatprep.subr.bf16.mxu0 %v1449_v20 }
  0x49   : > { %1481 = vmatprep.subr.bf16.mxu1 %v1449_v20 }
  0x4a   : > { %730 = vmatmul.mubr.f32.vlgmr.msra.gmra.mrb[8].mxu0 %v319_v23 }
  0x4b   : > { %815 = vmatmul.mubr.f32.vlgmr.msra.gmra.mrb[8].mxu1 %v321_v24  ;;  %1452 = vmatpush3.bf16.msra.mxu0 %v1449_v20 }
  0x4c   : > { %1489 = vmatpush3.bf16.msra.mxu1 %v1449_v20  ;;  %734 = vmatprep.mubr.f32.mxu0 %v329_v25 }
  0x4d   : > { %1454 = vmatprep.subr.bf16.mxu0 %v1453_v26  ;;  %1482 = vmatprep.subr.bf16.mxu1 %v1453_v26 }
  0x4e   : > { %735 = vmatmul.mubr.f32.gmra.mrb[10].mxu0 %v328_v29  ;;  %819 = vmatprep.mubr.f32.mxu1 %v331_v30 }
  0x4f   : > { %1456 = vmatpush3.bf16.msra.mxu0 %v1453_v26  ;;  %820 = vmatmul.mubr.f32.gmra.mrb[10].mxu1 %v330_v31 }
  0x50   : > { %1490 = vmatpush3.bf16.msra.mxu1 %v1453_v26  ;;  %739 = vmatprep.mubr.f32.mxu0 %v338_v32 }
  0x51   : > { %1458 = vmatprep.subr.bf16.mxu0 %v1457_v33  ;;  %1483 = vmatprep.subr.bf16.mxu1 %v1457_v33 }
  0x52   : > { %740 = vmatmul.mubr.f32.gmra.mrb[12].mxu0 %v337_v36  ;;  %824 = vmatprep.mubr.f32.mxu1 %v340_v37 }
  0x53   : > { %1460 = vmatpush3.bf16.msra.mxu0 %v1457_v33  ;;  %825 = vmatmul.mubr.f32.gmra.mrb[12].mxu1 %v339_v38 }
  0x54   : > { %1491 = vmatpush3.bf16.msra.mxu1 %v1457_v33  ;;  %744 = vmatprep.mubr.f32.mxu0 %v347_v39 }
  0x55   : > { %1462 = vmatprep.subr.bf16.mxu0 %v1461_v40  ;;  %1484 = vmatprep.subr.bf16.mxu1 %v1461_v40 }
  0x56   : > { %745 = vmatmul.mubr.f32.gmra.mrb[14].mxu0 %v346_v43  ;;  %829 = vmatprep.mubr.f32.mxu1 %v349_v44 }
  0x57   : > { %1464 = vmatpush3.bf16.msra.mxu0 %v1461_v40  ;;  %830 = vmatmul.mubr.f32.gmra.mrb[14].mxu1 %v348_v45 }
  0x58   : > { %1492 = vmatpush3.bf16.msra.mxu1 %v1461_v40  ;;  %1466 = vmatprep.subr.bf16.mxu0 %v1465_v46 }
  0x59   : > { %1485 = vmatprep.subr.bf16.mxu1 %v1465_v46  ;;  %1315 = vmatprep.mubr.f32.mxu0 %v323_v49 }
  0x5a   : > { %1318 = vmatprep.mubr.f32.mxu1 %v341_v50 }
  0x5b   : > { %1468 = vmatpush3.bf16.msra.mxu0 %v1465_v46 }
  0x5c   : > { %1493 = vmatpush3.bf16.msra.mxu1 %v1465_v46  ;;  %1470 = vmatprep.subr.bf16.mxu0 %v1469_v51 }
  0x5d   : > { %1486 = vmatprep.subr.bf16.mxu1 %v1469_v51 }
  0x5f   : > { %1472 = vmatpush3.bf16.msra.mxu0 %v1469_v51 }
  0x60   : > { %1494 = vmatpush3.bf16.msra.mxu1 %v1469_v51  ;;  %1474 = vmatprep.subr.bf16.mxu0 %v1473_v54 }
  0x61   : > { %1487 = vmatprep.subr.bf16.mxu1 %v1473_v54 }
  0x63   : > { %1476 = vmatpush3.bf16.msra.mxu0 %v1473_v54 }
  0x64   : > { %1495 = vmatpush3.bf16.msra.mxu1 %v1473_v54  ;;  %1478 = vmatprep.subr.bf16.mxu0 %v1477_v57 }
  0x65   : > { %1488 = vmatprep.subr.bf16.mxu1 %v1477_v57 }
  0x67   : > { %1480 = vmatpush3.bf16.msra.mxu0 %v1477_v57 }
  0x68   : > { %1496 = vmatpush3.bf16.msra.mxu1 %v1477_v57  ;;  %v1083_v57 = vld [vmem:[%s2107_s2] ss:$0 sm:$0xff] }
  0x6a   : > { %1316 = vmatmul.mubr.f32.vlgmr.msra.gmra.mrb[16].mxu0 %v332_v58 }
  0x6b   : > { %1319 = vmatmul.mubr.f32.vlgmr.msra.gmra.mrb[16].mxu1 %v350_v59 }
  0xfd   : > { %v1119_v60 = vpop.f32.mrb[0].mxu0 }
  0xfe   : > { %v1163_v61 = vpop.f32.mrb[0].mxu1  ;;  %v1120_v62 = vpop.f32.mrb[1].mxu0 }
  0xff   : > { %v1121_v63 = vadd.f32 %v1120_v62, %v1119_v60  ;;  %v1164_v0 = vpop.f32.mrb[1].mxu1 }
 0x100   : > { %v1165_v1 = vadd.f32 %v1164_v0, %v1163_v61  ;;  %v1084_v61 = vld [vmem:[%s2108_s3] ss:$0 sm:$0xff] }
 0x101   : > { %v1122_v2 = vpop.f32.mrb[2].mxu0 }
 0x102   : > { %v647_v3 = vadd.f32 %v1165_v1, %v1121_v63  ;;  %v1166_v4 = vpop.f32.mrb[2].mxu1  ;;  %v1123_v5 = vpop.f32.mrb[3].mxu0 }
 0x103   : > { %v1124_v6 = vadd.f32 %v1123_v5, %v1122_v2  ;;  %v1167_v7 = vpop.f32.mrb[3].mxu1 }
 0x104   : > { %v1168_v8 = vadd.f32 %v1167_v7, %v1166_v4  ;;  %v960_v7 = vld [vmem:[%s295_s11 + $0x18] sm:$0xff] }
 0x105   : > { %v1125_v9 = vpop.f32.mrb[4].mxu0 }
 0x106   : > { %v652_v10 = vadd.f32 %v1168_v8, %v1124_v6  ;;  %v1169_v11 = vpop.f32.mrb[4].mxu1  ;;  %v1126_v12 = vpop.f32.mrb[5].mxu0  ;;  %v957_v8 = vld [vmem:[%s295_s11] sm:$0xff] }
 0x107   : > { %v1127_v13 = vadd.f32 %v1126_v12, %v1125_v9  ;;  %v1170_v14 = vpop.f32.mrb[5].mxu1  ;;  %v959_v12 = vld [vmem:[%s295_s11 + $0x10] sm:$0xff] }
 0x108   : > { %v1171_v15 = vadd.f32 %v1170_v14, %v1169_v11 }
 0x109   : > { %v1128_v16 = vpop.f32.mrb[6].mxu0 }
 0x10a   : > { %v657_v17 = vadd.f32 %v1171_v15, %v1127_v13  ;;  %v1172_v18 = vpop.f32.mrb[6].mxu1  ;;  %v1129_v19 = vpop.f32.mrb[7].mxu0 }
 0x10b   : > { %v1130_v20 = vadd.f32 %v1129_v19, %v1128_v16  ;;  %v1173_v21 = vpop.f32.mrb[7].mxu1 }
 0x10c   : > { %v1174_v22 = vadd.f32 %v1173_v21, %v1172_v18 }
 0x10e   : > { %v662_v23 = vadd.f32 %v1174_v22, %v1130_v20 }
 0x11d   : > { %v1207_v24 = vpop.f32.mrb[8].mxu0 }
 0x11e   : > { %v1251_v25 = vpop.f32.mrb[8].mxu1  ;;  %v1208_v26 = vpop.f32.mrb[9].mxu0 }
 0x11f   : > { %v1209_v27 = vadd.f32 %v1208_v26, %v1207_v24  ;;  %v1252_v28 = vpop.f32.mrb[9].mxu1 }
 0x120   : > { %v1253_v29 = vadd.f32 %v1252_v28, %v1251_v25 }
 0x121   : > { %v732_v30 = vadd.f32 %v1209_v27, %v647_v3  ;;  %v1210_v31 = vpop.f32.mrb[10].mxu0  ;;  %v958_v3 = vld [vmem:[%s295_s11 + $0x8] sm:$0xff] }
 0x122   : > { %v1211_v32 = vpop.f32.mrb[11].mxu0  ;;  %v1254_v33 = vpop.f32.mrb[10].mxu1 }
 0x123   : > { %v1212_v34 = vadd.f32 %v1211_v32, %v1210_v31  ;;  %v1255_v35 = vpop.f32.mrb[11].mxu1  ;;  %v817_v36 = vadd.f32 %v1253_v29, %v732_v30 }
 0x124   : > { %v1256_v37 = vadd.f32 %v1255_v35, %v1254_v33 }
 0x125   : > { %v737_v38 = vadd.f32 %v1212_v34, %v652_v10  ;;  %v1213_v39 = vpop.f32.mrb[12].mxu0 }
 0x126   : > { %v1214_v40 = vpop.f32.mrb[13].mxu0  ;;  %v1257_v41 = vpop.f32.mrb[12].mxu1 }
 0x127   : > { %v1215_v42 = vadd.f32 %v1214_v40, %v1213_v39  ;;  %v1258_v43 = vpop.f32.mrb[13].mxu1  ;;  %v822_v44 = vadd.f32 %v1256_v37, %v737_v38 }
 0x128   : > { %v1259_v45 = vadd.f32 %v1258_v43, %v1257_v41 }
 0x129   : > { %v742_v46 = vadd.f32 %v1215_v42, %v657_v17  ;;  %v1216_v47 = vpop.f32.mrb[14].mxu0 }
 0x12a   : > { %v1217_v48 = vpop.f32.mrb[15].mxu0  ;;  %v1260_v49 = vpop.f32.mrb[14].mxu1 }
 0x12b   : > { %v1218_v50 = vadd.f32 %v1217_v48, %v1216_v47  ;;  %v1261_v51 = vpop.f32.mrb[15].mxu1  ;;  %v827_v52 = vadd.f32 %v1259_v45, %v742_v46 }
 0x12c   : > { %v1262_v53 = vadd.f32 %v1261_v51, %v1260_v49 }
 0x12d   : > { %v747_v54 = vadd.f32 %v1218_v50, %v662_v23 }
 0x12f   : > { %v832_v55 = vadd.f32 %v1262_v53, %v747_v54 }
 0x13d   : > { %v1317_v56 = vpop.f32.mrb[16].mxu0 }
 0x13e   : > { %v907_v58 = vadd.f32 %v1317_v56, %v822_v44  ;;  %v1320_v59 = vpop.f32.mrb[16].mxu1  ;;  %v901_v60 = vpop.f32.mrb[17].mxu0 }
 0x13f   : > { %v917_v62 = vadd.f32 %v1320_v59, %v832_v55  ;;  %v902_v63 = vadd.f32 %v901_v60, %v817_v36  ;;  %v911_v0 = vpop.f32.mrb[17].mxu1 }
 0x140   : > { %v943_v1 = vmul.f32 %v1083_v57, %v907_v58  ;;  %v912_v2 = vadd.f32 %v911_v0, %v827_v52 }
 0x141   : > { %v945_v4 = vmul.f32 %v1083_v57, %v917_v62  ;;  %v942_v5 = vmul.f32 %v1083_v57, %v902_v63 }
 0x142   : > { %v954_v6 = vadd.f32 %v1084_v61, %v943_v1  ;;  %v944_v9 = vmul.f32 %v1083_v57, %v912_v2 }
 0x143   : > { %v956_v10 = vadd.f32 %v1084_v61, %v945_v4  ;;  %v953_v11 = vadd.f32 %v1084_v61, %v942_v5 }
 0x144   : > { %v962_v13 = vadd.f32 %v958_v3, %v954_v6  ;;  %v955_v14 = vadd.f32 %v1084_v61, %v944_v9 }
 0x145   : > { %v964_v15 = vadd.f32 %v960_v7, %v956_v10  ;;  %v961_v16 = vadd.f32 %v957_v8, %v953_v11 }
 0x146   : > { %v966_v17 = vmax.f32 %v962_v13, 0.0  ;;  %v963_v18 = vadd.f32 %v959_v12, %v955_v14 }
 0x147   : > { %v968_v19 = vmax.f32 %v964_v15, 0.0  ;;  %v965_v20 = vmax.f32 %v961_v16, 0.0 }
 0x148   : > { %970 = vst [vmem:[%s301_s15 + $0x8] sm:$0xff] %v966_v17  ;;  %v967_v21 = vmax.f32 %v963_v18, 0.0 }
 0x149   : > { %972 = vst [vmem:[%s301_s15 + $0x18] sm:$0xff] %v968_v19  ;;  %969 = vst [vmem:[%s301_s15] sm:$0xff] %v965_v20 }
 0x14a   : > { %971 = vst [vmem:[%s301_s15 + $0x10] sm:$0xff] %v967_v21 }
 0x14b PF: > { %s15_s20 = sadd.s32 1, %s1544_s20   ;;  %s2112_s18 = smov %s1540_s19 }
 0x14c   : > { %p12_p5 = scmp.ge.s32.totalorder %s15_s20, 6   ;;  %s2113_s19 = smov %s2115_s21 }
 0x14e   :  { %14 = sbr.rel (!%p12_p5) target bundleno = 2 (0x2), region = 84 }

// kernel: custom_resnet_forward.15
= control target key start
LH: loop header
LB: loop body
LE: loop exit
PB: predicated region body
PF: predicated region fallthrough
CT: control target
= control target key end

     0   :  { %s1515_s15 = smov 0   ;;  %s1517_s16 = smov 0   ;;  %s2455_s0 = inlined_call_operand.vmem [shape: f32[32,1152], index: 0, kind: input, shape index: {}]   ;;  %s2456_s1 = inlined_call_operand.vmem [shape: f32[1152,256], index: 1, kind: input, shape index: {}]   ;;  %s2457_s2 = inlined_call_operand.vmem [shape: f32[1,256], index: 2, kind: input, shape index: {}]   ;;  %s2458_s3 = inlined_call_operand.vmem [shape: f32[1,256], index: 3, kind: input, shape index: {}]   ;;  %s2459_s4 = inlined_call_operand.vmem [shape: f32[32,256], index: 4, kind: output, shape index: {}]  }
   0x1   :  { %s1519_s17 = smov 0  }
   0x2 LB: > { %s26_s18 = sadd.s32 1, %s1483_s16  ;;  %p1110_p0 = scmp.ge.s32.totalorder %s1487_s17, 1  ;;  %s1487_s17 = sphi %s1519_s17, %s14_s17   ;;  %s1483_s16 = sphi %s1517_s16, %s2462_s16   ;;  %s1479_s15 = sphi %s1515_s15, %s2461_s15  }
   0x3   : > { %p28_p1 = scmp.ge.s32.totalorder %s26_s18, 2  ;;  %p195_p2 = scmp.lt.s32.totalorder %s1487_s17, 3 }
   0x5   : > { %s2464_s18 = smov (%p28_p1, %s26_s18), 0  ;;  %p196_p3 = pnand %p1110_p0, %p195_p2 }
   0x6   : > { %v290_v0 = vld [vmem:[%s2456_s1 + $0x8] sm:$0xff] (!%p196_p3)  ;;  %v292_v1 = vld [vmem:[%s2456_s1 + $0x18] sm:$0xff] (!%p196_p3)  ;;  %v289_v5 = vld [vmem:[%s2456_s1] sm:$0xff] (!%p196_p3)  ;;  %s1111_s29 = sshll.u32 (!%p196_p3), %s1479_s15, 1 }
   0x7   : > { %199 = sbr.rel (%p196_p3) target bundleno = 392 (0x188), region = 36  ;;  %v418_v2 = vld [vmem:[%s2456_s1 + $0x408] sm:$0xff] (!%p196_p3)  ;;  %v1119_v3 = vpack.c.bf16 (!%p196_p3), %v292_v1, %v290_v0  ;;  %v420_v4 = vld [vmem:[%s2456_s1 + $0x418] sm:$0xff] (!%p196_p3)  ;;  %v291_v6 = vld [vmem:[%s2456_s1 + $0x10] sm:$0xff] (!%p196_p3)  ;;  %p1742_p4 = scmp.lt.s32.totalorder (!%p196_p3), %s1111_s29, 3 }
   0x8   : > { %v1247_v7 = vpack.c.bf16 (!%p196_p3), %v420_v4, %v418_v2  ;;  %v1121_v8 = vpack.c.bf16 (!%p196_p3), %v291_v6, %v289_v5  ;;  %v417_v9 = vld [vmem:[%s2456_s1 + $0x400] sm:$0xff] (!%p196_p3)  ;;  %v419_v10 = vld [vmem:[%s2456_s1 + $0x410] sm:$0xff] (!%p196_p3)  ;;  %v294_v11 = vld [vmem:[%s2456_s1 + $0x28] sm:$0xff] (!%p196_p3) }
   0x9   : > { %1120 = vmatprep.subr.bf16.mxu1 (!%p196_p3), %v1119_v3  ;;  %v1249_v12 = vpack.c.bf16 (!%p196_p3), %v419_v10, %v417_v9  ;;  %v296_v13 = vld [vmem:[%s2456_s1 + $0x38] sm:$0xff] (!%p196_p3)  ;;  %v422_v14 = vld [vmem:[%s2456_s1 + $0x428] sm:$0xff] (!%p196_p3)  ;;  %v293_v18 = vld [vmem:[%s2456_s1 + $0x20] sm:$0xff] (!%p196_p3) }
   0xa   : > { %v424_v15 = vld [vmem:[%s2456_s1 + $0x438] sm:$0xff] (!%p196_p3)  ;;  %1248 = vmatprep.subr.bf16.mxu0 (!%p196_p3), %v1247_v7  ;;  %1122 = vmatpush1.bf16.msra.mxu1 (!%p196_p3), %v1121_v8  ;;  %v1123_v16 = vpack.c.bf16 (!%p196_p3), %v296_v13, %v294_v11  ;;  %v295_v19 = vld [vmem:[%s2456_s1 + $0x30] sm:$0xff] (!%p196_p3)  ;;  %v421_v20 = vld [vmem:[%s2456_s1 + $0x420] sm:$0xff] (!%p196_p3) }
   0xb   : > { %v1251_v17 = vpack.c.bf16 (!%p196_p3), %v424_v15, %v422_v14  ;;  %1250 = vmatpush1.bf16.msra.mxu0 (!%p196_p3), %v1249_v12  ;;  %v1125_v21 = vpack.c.bf16 (!%p196_p3), %v295_v19, %v293_v18  ;;  %v423_v22 = vld [vmem:[%s2456_s1 + $0x430] sm:$0xff] (!%p196_p3)  ;;  %v298_v23 = vld [vmem:[%s2456_s1 + $0x48] sm:$0xff] (!%p196_p3)  ;;  %v300_v24 = vld [vmem:[%s2456_s1 + $0x58] sm:$0xff] (!%p196_p3) }
   0xc   : > { %1124 = vmatprep.subr.bf16.mxu1 (!%p196_p3), %v1123_v16  ;;  %v1253_v25 = vpack.c.bf16 (!%p196_p3), %v423_v22, %v421_v20  ;;  %v1127_v26 = vpack.c.bf16 (!%p196_p3), %v300_v24, %v298_v23  ;;  %v426_v27 = vld [vmem:[%s2456_s1 + $0x448] sm:$0xff] (!%p196_p3)  ;;  %v428_v28 = vld [vmem:[%s2456_s1 + $0x458] sm:$0xff] (!%p196_p3)  ;;  %v297_v29 = vld [vmem:[%s2456_s1 + $0x40] sm:$0xff] (!%p196_p3) }
   0xd   : > { %1252 = vmatprep.subr.bf16.mxu0 (!%p196_p3), %v1251_v17  ;;  %v1255_v30 = vpack.c.bf16 (!%p196_p3), %v428_v28, %v426_v27  ;;  %v299_v31 = vld [vmem:[%s2456_s1 + $0x50] sm:$0xff] (!%p196_p3)  ;;  %v425_v32 = vld [vmem:[%s2456_s1 + $0x440] sm:$0xff] (!%p196_p3)  ;;  %v302_v35 = vld [vmem:[%s2456_s1 + $0x68] sm:$0xff] (!%p196_p3) }
   0xe   : > { %v427_v33 = vld [vmem:[%s2456_s1 + $0x450] sm:$0xff]  ;;  %1126 = vmatpush1.bf16.msra.mxu1 %v1125_v21  ;;  %v1129_v34 = vpack.c.bf16 %v299_v31, %v297_v29  ;;  %v304_v36 = vld [vmem:[%s2456_s1 + $0x78] sm:$0xff]  ;;  %v430_v37 = vld [vmem:[%s2456_s1 + $0x468] sm:$0xff]  ;;  %s2466_s29 = smov (!%p1742_p4, %s1111_s29), 3 }
   0xf   : > { %1254 = vmatpush1.bf16.msra.mxu0 %v1253_v25  ;;  %1128 = vmatprep.subr.bf16.mxu1 %v1127_v26  ;;  %v1257_v38 = vpack.c.bf16 %v427_v33, %v425_v32  ;;  %v1131_v39 = vpack.c.bf16 %v304_v36, %v302_v35  ;;  %v432_v40 = vld [vmem:[%s2456_s1 + $0x478] sm:$0xff]  ;;  %v301_v41 = vld [vmem:[%s2456_s1 + $0x60] sm:$0xff]  ;;  %v303_v42 = vld [vmem:[%s2456_s1 + $0x70] sm:$0xff]  ;;  %s1439_s10 = smul.u32 72, %s2466_s29  ;;  %s1118_s28 = sshll.u32 %s2466_s29, 4 }
  0x10   : > { %1256 = vmatprep.subr.bf16.mxu0 %v1255_v30  ;;  %v1259_v43 = vpack.c.bf16 %v432_v40, %v430_v37  ;;  %v429_v44 = vld [vmem:[%s2456_s1 + $0x460] sm:$0xff]  ;;  %v431_v45 = vld [vmem:[%s2456_s1 + $0x470] sm:$0xff]  ;;  %v306_v46 = vld [vmem:[%s2456_s1 + $0x88] sm:$0xff]  ;;  %v1133_v50 = vpack.c.bf16 %v303_v42, %v301_v41  ;;  %s257_s6 = scalar_lea.vmem %s2459_s4, %s1118_s28 }
  0x11   : > { %v308_v47 = vld [vmem:[%s2456_s1 + $0x98] sm:$0xff]  ;;  %v434_v48 = vld [vmem:[%s2456_s1 + $0x488] sm:$0xff]  ;;  %v1261_v51 = vpack.c.bf16 %v431_v45, %v429_v44  ;;  %v305_v53 = vld [vmem:[%s2456_s1 + $0x80] sm:$0xff]  ;;  %s1828_s7 = scalar_lea.vmem %s2455_s0, %s1439_s10 }
  0x12   : > { %v436_v49 = vld [vmem:[%s2456_s1 + $0x498] sm:$0xff]  ;;  %1130 = vmatpush1.bf16.msra.mxu1 %v1129_v34  ;;  %v1135_v52 = vpack.c.bf16 %v308_v47, %v306_v46  ;;  %v307_v54 = vld [vmem:[%s2456_s1 + $0x90] sm:$0xff]  ;;  %v433_v55 = vld [vmem:[%s2456_s1 + $0x480] sm:$0xff] }
  0x13   : > { %1258 = vmatpush1.bf16.msra.mxu0 %v1257_v38  ;;  %1132 = vmatprep.subr.bf16.mxu1 %v1131_v39  ;;  %v1263_v56 = vpack.c.bf16 %v436_v49, %v434_v48  ;;  %v435_v57 = vld [vmem:[%s2456_s1 + $0x490] sm:$0xff]  ;;  %v310_v58 = vld [vmem:[%s2456_s1 + $0xa8] sm:$0xff]  ;;  %v312_v59 = vld [vmem:[%s2456_s1 + $0xb8] sm:$0xff]  ;;  %v1137_v62 = vpack.c.bf16 %v307_v54, %v305_v53 }
  0x14   : > { %1260 = vmatprep.subr.bf16.mxu0 %v1259_v43  ;;  %v438_v60 = vld [vmem:[%s2456_s1 + $0x4a8] sm:$0xff]  ;;  %v440_v61 = vld [vmem:[%s2456_s1 + $0x4b8] sm:$0xff]  ;;  %v1265_v63 = vpack.c.bf16 %v435_v57, %v433_v55  ;;  %v1139_v0 = vpack.c.bf16 %v312_v59, %v310_v58  ;;  %v309_v1 = vld [vmem:[%s2456_s1 + $0xa0] sm:$0xff] }
  0x15   : > { %v311_v2 = vld [vmem:[%s2456_s1 + $0xb0] sm:$0xff]  ;;  %v437_v3 = vld [vmem:[%s2456_s1 + $0x4a0] sm:$0xff]  ;;  %v1267_v4 = vpack.c.bf16 %v440_v61, %v438_v60  ;;  %v314_v6 = vld [vmem:[%s2456_s1 + $0xc8] sm:$0xff] }
  0x16   : > { %1134 = vmatpush1.bf16.msra.mxu1 %v1133_v50  ;;  %v439_v5 = vld [vmem:[%s2456_s1 + $0x4b0] sm:$0xff]  ;;  %v316_v7 = vld [vmem:[%s2456_s1 + $0xd8] sm:$0xff]  ;;  %v442_v8 = vld [vmem:[%s2456_s1 + $0x4c8] sm:$0xff]  ;;  %v1141_v10 = vpack.c.bf16 %v311_v2, %v309_v1 }
  0x17   : > { %1262 = vmatpush1.bf16.msra.mxu0 %v1261_v51  ;;  %1136 = vmatprep.subr.bf16.mxu1 %v1135_v52  ;;  %v444_v9 = vld [vmem:[%s2456_s1 + $0x4d8] sm:$0xff]  ;;  %v1269_v11 = vpack.c.bf16 %v439_v5, %v437_v3  ;;  %v1143_v12 = vpack.c.bf16 %v316_v7, %v314_v6  ;;  %v313_v13 = vld [vmem:[%s2456_s1 + $0xc0] sm:$0xff]  ;;  %v315_v14 = vld [vmem:[%s2456_s1 + $0xd0] sm:$0xff] }
  0x18   : > { %1264 = vmatprep.subr.bf16.mxu0 %v1263_v56  ;;  %v441_v15 = vld [vmem:[%s2456_s1 + $0x4c0] sm:$0xff]  ;;  %v1271_v16 = vpack.c.bf16 %v444_v9, %v442_v8  ;;  %v443_v17 = vld [vmem:[%s2456_s1 + $0x4d0] sm:$0xff]  ;;  %v318_v18 = vld [vmem:[%s2456_s1 + $0xe8] sm:$0xff]  ;;  %v1145_v22 = vpack.c.bf16 %v315_v14, %v313_v13 }
  0x19   : > { %v320_v19 = vld [vmem:[%s2456_s1 + $0xf8] sm:$0xff]  ;;  %v446_v20 = vld [vmem:[%s2456_s1 + $0x4e8] sm:$0xff]  ;;  %v1273_v23 = vpack.c.bf16 %v443_v17, %v441_v15  ;;  %v317_v25 = vld [vmem:[%s2456_s1 + $0xe0] sm:$0xff] }
  0x1a   : > { %1138 = vmatpush1.bf16.msra.mxu1 %v1137_v62  ;;  %v448_v21 = vld [vmem:[%s2456_s1 + $0x4f8] sm:$0xff]  ;;  %v1147_v24 = vpack.c.bf16 %v320_v19, %v318_v18  ;;  %v319_v26 = vld [vmem:[%s2456_s1 + $0xf0] sm:$0xff]  ;;  %v445_v27 = vld [vmem:[%s2456_s1 + $0x4e0] sm:$0xff] }
  0x1b   : > { %1266 = vmatpush1.bf16.msra.mxu0 %v1265_v63  ;;  %1140 = vmatprep.subr.bf16.mxu1 %v1139_v0  ;;  %v1275_v28 = vpack.c.bf16 %v448_v21, %v446_v20  ;;  %v447_v29 = vld [vmem:[%s2456_s1 + $0x4f0] sm:$0xff]  ;;  %v322_v30 = vld [vmem:[%s2456_s1 + $0x108] sm:$0xff]  ;;  %v324_v31 = vld [vmem:[%s2456_s1 + $0x118] sm:$0xff]  ;;  %v1149_v34 = vpack.c.bf16 %v319_v26, %v317_v25 }
  0x1c   : > { %1268 = vmatprep.subr.bf16.mxu0 %v1267_v4  ;;  %v450_v32 = vld [vmem:[%s2456_s1 + $0x508] sm:$0xff]  ;;  %v452_v33 = vld [vmem:[%s2456_s1 + $0x518] sm:$0xff]  ;;  %v1277_v35 = vpack.c.bf16 %v447_v29, %v445_v27  ;;  %v1151_v36 = vpack.c.bf16 %v324_v31, %v322_v30  ;;  %v321_v37 = vld [vmem:[%s2456_s1 + $0x100] sm:$0xff] }
  0x1d   : > { %v323_v38 = vld [vmem:[%s2456_s1 + $0x110] sm:$0xff]  ;;  %v449_v39 = vld [vmem:[%s2456_s1 + $0x500] sm:$0xff]  ;;  %v1279_v40 = vpack.c.bf16 %v452_v33, %v450_v32  ;;  %v326_v42 = vld [vmem:[%s2456_s1 + $0x128] sm:$0xff] }
  0x1e   : > { %1142 = vmatpush1.bf16.msra.mxu1 %v1141_v10  ;;  %v451_v41 = vld [vmem:[%s2456_s1 + $0x510] sm:$0xff]  ;;  %v328_v43 = vld [vmem:[%s2456_s1 + $0x138] sm:$0xff]  ;;  %v454_v44 = vld [vmem:[%s2456_s1 + $0x528] sm:$0xff]  ;;  %v1153_v46 = vpack.c.bf16 %v323_v38, %v321_v37 }
  0x1f   : > { %1270 = vmatpush1.bf16.msra.mxu0 %v1269_v11  ;;  %1144 = vmatprep.subr.bf16.mxu1 %v1143_v12  ;;  %v456_v45 = vld [vmem:[%s2456_s1 + $0x538] sm:$0xff]  ;;  %v1281_v47 = vpack.c.bf16 %v451_v41, %v449_v39  ;;  %v1155_v48 = vpack.c.bf16 %v328_v43, %v326_v42  ;;  %v325_v49 = vld [vmem:[%s2456_s1 + $0x120] sm:$0xff]  ;;  %v327_v50 = vld [vmem:[%s2456_s1 + $0x130] sm:$0xff] }
  0x20   : > { %1272 = vmatprep.subr.bf16.mxu0 %v1271_v16  ;;  %v453_v51 = vld [vmem:[%s2456_s1 + $0x520] sm:$0xff]  ;;  %v1283_v52 = vpack.c.bf16 %v456_v45, %v454_v44  ;;  %v455_v53 = vld [vmem:[%s2456_s1 + $0x530] sm:$0xff]  ;;  %v330_v54 = vld [vmem:[%s2456_s1 + $0x148] sm:$0xff]  ;;  %v1157_v58 = vpack.c.bf16 %v327_v50, %v325_v49 }
  0x21   : > { %v332_v55 = vld [vmem:[%s2456_s1 + $0x158] sm:$0xff]  ;;  %v458_v56 = vld [vmem:[%s2456_s1 + $0x548] sm:$0xff]  ;;  %v1285_v59 = vpack.c.bf16 %v455_v53, %v453_v51  ;;  %v329_v61 = vld [vmem:[%s2456_s1 + $0x140] sm:$0xff] }
  0x22   : > { %1146 = vmatpush1.bf16.msra.mxu1 %v1145_v22  ;;  %v460_v57 = vld [vmem:[%s2456_s1 + $0x558] sm:$0xff]  ;;  %v1159_v60 = vpack.c.bf16 %v332_v55, %v330_v54  ;;  %v331_v62 = vld [vmem:[%s2456_s1 + $0x150] sm:$0xff]  ;;  %v457_v63 = vld [vmem:[%s2456_s1 + $0x540] sm:$0xff] }
  0x23   : > { %1274 = vmatpush1.bf16.msra.mxu0 %v1273_v23  ;;  %1148 = vmatprep.subr.bf16.mxu1 %v1147_v24  ;;  %v1287_v0 = vpack.c.bf16 %v460_v57, %v458_v56  ;;  %v459_v1 = vld [vmem:[%s2456_s1 + $0x550] sm:$0xff]  ;;  %v334_v2 = vld [vmem:[%s2456_s1 + $0x168] sm:$0xff]  ;;  %v336_v3 = vld [vmem:[%s2456_s1 + $0x178] sm:$0xff]  ;;  %v1161_v6 = vpack.c.bf16 %v331_v62, %v329_v61 }
  0x24   : > { %1276 = vmatprep.subr.bf16.mxu0 %v1275_v28  ;;  %v462_v4 = vld [vmem:[%s2456_s1 + $0x568] sm:$0xff]  ;;  %v464_v5 = vld [vmem:[%s2456_s1 + $0x578] sm:$0xff]  ;;  %v333_v7 = vld [vmem:[%s2456_s1 + $0x160] sm:$0xff]  ;;  %v1289_v8 = vpack.c.bf16 %v459_v1, %v457_v63  ;;  %v1163_v9 = vpack.c.bf16 %v336_v3, %v334_v2 }
  0x25   : > { %v335_v10 = vld [vmem:[%s2456_s1 + $0x170] sm:$0xff]  ;;  %v461_v11 = vld [vmem:[%s2456_s1 + $0x560] sm:$0xff]  ;;  %v1291_v13 = vpack.c.bf16 %v464_v5, %v462_v4  ;;  %v338_v14 = vld [vmem:[%s2456_s1 + $0x188] sm:$0xff] }
  0x26   : > { %1150 = vmatpush1.bf16.msra.mxu1 %v1149_v34  ;;  %v463_v12 = vld [vmem:[%s2456_s1 + $0x570] sm:$0xff]  ;;  %v340_v15 = vld [vmem:[%s2456_s1 + $0x198] sm:$0xff]  ;;  %v272_v16 = vld [vmem:[%s1828_s7 + $0x8] sm:$0xff]  ;;  %v1165_v20 = vpack.c.bf16 %v335_v10, %v333_v7 }
  0x27   : > { %1278 = vmatpush1.bf16.msra.mxu0 %v1277_v35  ;;  %1152 = vmatprep.subr.bf16.mxu1 %v1151_v36  ;;  %v466_v17 = vld [vmem:[%s2456_s1 + $0x588] sm:$0xff]  ;;  %v468_v18 = vld [vmem:[%s2456_s1 + $0x598] sm:$0xff]  ;;  %v1293_v21 = vpack.c.bf16 %v463_v12, %v461_v11  ;;  %v1167_v22 = vpack.c.bf16 %v340_v15, %v338_v14  ;;  %v337_v23 = vld [vmem:[%s2456_s1 + $0x180] sm:$0xff] }
  0x28   : > { %1280 = vmatprep.subr.bf16.mxu0 %v1279_v40  ;;  %641 = vmatprep.mubr.f32.mxu1 %v272_v16  ;;  %v276_v19 = vld [vmem:[%s1828_s7 + $0x28] sm:$0xff]  ;;  %v339_v24 = vld [vmem:[%s2456_s1 + $0x190] sm:$0xff]  ;;  %v465_v25 = vld [vmem:[%s2456_s1 + $0x580] sm:$0xff]  ;;  %v1295_v26 = vpack.c.bf16 %v468_v18, %v466_v17 }
  0x29   : > { %795 = vmatprep.mubr.f32.mxu0 %v276_v19  ;;  %v467_v27 = vld [vmem:[%s2456_s1 + $0x590] sm:$0xff]  ;;  %v342_v28 = vld [vmem:[%s2456_s1 + $0x1a8] sm:$0xff]  ;;  %v344_v29 = vld [vmem:[%s2456_s1 + $0x1b8] sm:$0xff]  ;;  %v1169_v32 = vpack.c.bf16 %v339_v24, %v337_v23 }
  0x2a   : > { %1154 = vmatpush1.bf16.msra.mxu1 %v1153_v46  ;;  %v470_v30 = vld [vmem:[%s2456_s1 + $0x5a8] sm:$0xff]  ;;  %v472_v31 = vld [vmem:[%s2456_s1 + $0x5b8] sm:$0xff]  ;;  %v1297_v33 = vpack.c.bf16 %v467_v27, %v465_v25  ;;  %v1171_v34 = vpack.c.bf16 %v344_v29, %v342_v28  ;;  %v341_v35 = vld [vmem:[%s2456_s1 + $0x1a0] sm:$0xff] }
  0x2b   : > { %1282 = vmatpush1.bf16.msra.mxu0 %v1281_v47  ;;  %1156 = vmatprep.subr.bf16.mxu1 %v1155_v48  ;;  %v343_v36 = vld [vmem:[%s2456_s1 + $0x1b0] sm:$0xff]  ;;  %v469_v37 = vld [vmem:[%s2456_s1 + $0x5a0] sm:$0xff]  ;;  %v1299_v38 = vpack.c.bf16 %v472_v31, %v470_v30  ;;  %v346_v40 = vld [vmem:[%s2456_s1 + $0x1c8] sm:$0xff] }
  0x2c   : > { %1284 = vmatprep.subr.bf16.mxu0 %v1283_v52  ;;  %v471_v39 = vld [vmem:[%s2456_s1 + $0x5b0] sm:$0xff]  ;;  %v348_v41 = vld [vmem:[%s2456_s1 + $0x1d8] sm:$0xff]  ;;  %v474_v42 = vld [vmem:[%s2456_s1 + $0x5c8] sm:$0xff]  ;;  %v1173_v44 = vpack.c.bf16 %v343_v36, %v341_v35 }
  0x2d   : > { %v476_v43 = vld [vmem:[%s2456_s1 + $0x5d8] sm:$0xff]  ;;  %v1301_v45 = vpack.c.bf16 %v471_v39, %v469_v37  ;;  %v1175_v46 = vpack.c.bf16 %v348_v41, %v346_v40  ;;  %v345_v47 = vld [vmem:[%s2456_s1 + $0x1c0] sm:$0xff]  ;;  %v347_v48 = vld [vmem:[%s2456_s1 + $0x1d0] sm:$0xff] }
  0x2e   : > { %1158 = vmatpush1.bf16.msra.mxu1 %v1157_v58  ;;  %v473_v49 = vld [vmem:[%s2456_s1 + $0x5c0] sm:$0xff]  ;;  %v1303_v50 = vpack.c.bf16 %v476_v43, %v474_v42  ;;  %v475_v51 = vld [vmem:[%s2456_s1 + $0x5d0] sm:$0xff]  ;;  %v350_v52 = vld [vmem:[%s2456_s1 + $0x1e8] sm:$0xff]  ;;  %v1177_v56 = vpack.c.bf16 %v347_v48, %v345_v47 }
  0x2f   : > { %1286 = vmatpush1.bf16.msra.mxu0 %v1285_v59  ;;  %1160 = vmatprep.subr.bf16.mxu1 %v1159_v60  ;;  %v352_v53 = vld [vmem:[%s2456_s1 + $0x1f8] sm:$0xff]  ;;  %v478_v54 = vld [vmem:[%s2456_s1 + $0x5e8] sm:$0xff]  ;;  %v1305_v57 = vpack.c.bf16 %v475_v51, %v473_v49  ;;  %v349_v59 = vld [vmem:[%s2456_s1 + $0x1e0] sm:$0xff] }
  0x30   : > { %1288 = vmatprep.subr.bf16.mxu0 %v1287_v0  ;;  %v480_v55 = vld [vmem:[%s2456_s1 + $0x5f8] sm:$0xff]  ;;  %v1179_v58 = vpack.c.bf16 %v352_v53, %v350_v52  ;;  %v351_v60 = vld [vmem:[%s2456_s1 + $0x1f0] sm:$0xff]  ;;  %v477_v61 = vld [vmem:[%s2456_s1 + $0x5e0] sm:$0xff] }
  0x31   : > { %v1307_v62 = vpack.c.bf16 %v480_v55, %v478_v54  ;;  %v479_v63 = vld [vmem:[%s2456_s1 + $0x5f0] sm:$0xff]  ;;  %v354_v0 = vld [vmem:[%s2456_s1 + $0x208] sm:$0xff]  ;;  %v356_v1 = vld [vmem:[%s2456_s1 + $0x218] sm:$0xff]  ;;  %v1181_v4 = vpack.c.bf16 %v351_v60, %v349_v59 }
  0x32   : > { %1162 = vmatpush1.bf16.msra.mxu1 %v1161_v6  ;;  %v482_v2 = vld [vmem:[%s2456_s1 + $0x608] sm:$0xff]  ;;  %v484_v3 = vld [vmem:[%s2456_s1 + $0x618] sm:$0xff]  ;;  %v1309_v5 = vpack.c.bf16 %v479_v63, %v477_v61  ;;  %v1183_v6 = vpack.c.bf16 %v356_v1, %v354_v0  ;;  %v353_v7 = vld [vmem:[%s2456_s1 + $0x200] sm:$0xff] }
  0x33   : > { %1290 = vmatpush1.bf16.msra.mxu0 %v1289_v8  ;;  %1164 = vmatprep.subr.bf16.mxu1 %v1163_v9  ;;  %v355_v8 = vld [vmem:[%s2456_s1 + $0x210] sm:$0xff]  ;;  %v481_v9 = vld [vmem:[%s2456_s1 + $0x600] sm:$0xff]  ;;  %v1311_v10 = vpack.c.bf16 %v484_v3, %v482_v2  ;;  %v358_v12 = vld [vmem:[%s2456_s1 + $0x228] sm:$0xff] }
  0x34   : > { %1292 = vmatprep.subr.bf16.mxu0 %v1291_v13  ;;  %v483_v11 = vld [vmem:[%s2456_s1 + $0x610] sm:$0xff]  ;;  %v360_v13 = vld [vmem:[%s2456_s1 + $0x238] sm:$0xff]  ;;  %v486_v14 = vld [vmem:[%s2456_s1 + $0x628] sm:$0xff]  ;;  %v1185_v17 = vpack.c.bf16 %v355_v8, %v353_v7 }
  0x35   : > { %v488_v15 = vld [vmem:[%s2456_s1 + $0x638] sm:$0xff]  ;;  %v271_v16 = vld [vmem:[%s1828_s7] sm:$0xff]  ;;  %v1313_v19 = vpack.c.bf16 %v483_v11, %v481_v9  ;;  %v487_v25 = vld [vmem:[%s2456_s1 + $0x630] sm:$0xff] }
  0x36   : > { %1166 = vmatpush1.bf16.msra.mxu1 %v1165_v20  ;;  %v275_v18 = vld [vmem:[%s1828_s7 + $0x20] sm:$0xff]  ;;  %v1187_v20 = vpack.c.bf16 %v360_v13, %v358_v12  ;;  %v1315_v24 = vpack.c.bf16 %v488_v15, %v486_v14  ;;  %v364_v27 = vld [vmem:[%s2456_s1 + $0x258] sm:$0xff]  ;;  %v490_v28 = vld [vmem:[%s2456_s1 + $0x648] sm:$0xff] }
  0x37   : > { %1294 = vmatpush1.bf16.msra.mxu0 %v1293_v21  ;;  %1168 = vmatprep.subr.bf16.mxu1 %v1167_v22  ;;  %v357_v21 = vld [vmem:[%s2456_s1 + $0x220] sm:$0xff]  ;;  %v359_v22 = vld [vmem:[%s2456_s1 + $0x230] sm:$0xff]  ;;  %v492_v29 = vld [vmem:[%s2456_s1 + $0x658] sm:$0xff] }
  0x38   : > { %1296 = vmatprep.subr.bf16.mxu0 %v1295_v26  ;;  %v485_v23 = vld [vmem:[%s2456_s1 + $0x620] sm:$0xff]  ;;  %v362_v26 = vld [vmem:[%s2456_s1 + $0x248] sm:$0xff]  ;;  %v1189_v30 = vpack.c.bf16 %v359_v22, %v357_v21  ;;  %v1319_v36 = vpack.c.bf16 %v492_v29, %v490_v28  ;;  %v491_v37 = vld [vmem:[%s2456_s1 + $0x650] sm:$0xff] }
  0x39   : > { %v1317_v31 = vpack.c.bf16 %v487_v25, %v485_v23  ;;  %v489_v35 = vld [vmem:[%s2456_s1 + $0x640] sm:$0xff]  ;;  %v368_v39 = vld [vmem:[%s2456_s1 + $0x278] sm:$0xff]  ;;  %v494_v40 = vld [vmem:[%s2456_s1 + $0x668] sm:$0xff] }
  0x3a   : > { %1170 = vmatpush1.bf16.msra.mxu1 %v1169_v32  ;;  %v1191_v32 = vpack.c.bf16 %v364_v27, %v362_v26  ;;  %v496_v41 = vld [vmem:[%s2456_s1 + $0x678] sm:$0xff]  ;;  %v1321_v43 = vpack.c.bf16 %v491_v37, %v489_v35  ;;  %v493_v47 = vld [vmem:[%s2456_s1 + $0x660] sm:$0xff]  ;;  %v495_v49 = vld [vmem:[%s2456_s1 + $0x670] sm:$0xff] }
  0x3b   : > { %1298 = vmatpush1.bf16.msra.mxu0 %v1297_v33  ;;  %1172 = vmatprep.subr.bf16.mxu1 %v1171_v34  ;;  %v361_v33 = vld [vmem:[%s2456_s1 + $0x240] sm:$0xff]  ;;  %v363_v34 = vld [vmem:[%s2456_s1 + $0x250] sm:$0xff]  ;;  %v1323_v48 = vpack.c.bf16 %v496_v41, %v494_v40  ;;  %v372_v51 = vld [vmem:[%s2456_s1 + $0x298] sm:$0xff]  ;;  %v1325_v55 = vpack.c.bf16 %v495_v49, %v493_v47 }
  0x3c   : > { %1300 = vmatprep.subr.bf16.mxu0 %v1299_v38  ;;  %v366_v38 = vld [vmem:[%s2456_s1 + $0x268] sm:$0xff]  ;;  %v1193_v42 = vpack.c.bf16 %v363_v34, %v361_v33  ;;  %v500_v53 = vld [vmem:[%s2456_s1 + $0x698] sm:$0xff]  ;;  %v497_v59 = vld [vmem:[%s2456_s1 + $0x680] sm:$0xff] }
  0x3d   : > { %v498_v52 = vld [vmem:[%s2456_s1 + $0x688] sm:$0xff]  ;;  %v499_v61 = vld [vmem:[%s2456_s1 + $0x690] sm:$0xff]  ;;  %v376_v63 = vld [vmem:[%s2456_s1 + $0x2b8] sm:$0xff] }
  0x3e   : > { %1174 = vmatpush1.bf16.msra.mxu1 %v1173_v44  ;;  %v1195_v44 = vpack.c.bf16 %v368_v39, %v366_v38  ;;  %v1327_v60 = vpack.c.bf16 %v500_v53, %v498_v52  ;;  %v502_v0 = vld [vmem:[%s2456_s1 + $0x6a8] sm:$0xff]  ;;  %v504_v1 = vld [vmem:[%s2456_s1 + $0x6b8] sm:$0xff]  ;;  %v1329_v3 = vpack.c.bf16 %v499_v61, %v497_v59  ;;  %v501_v7 = vld [vmem:[%s2456_s1 + $0x6a0] sm:$0xff] }
  0x3f   : > { %1302 = vmatpush1.bf16.msra.mxu0 %v1301_v45  ;;  %1176 = vmatprep.subr.bf16.mxu1 %v1175_v46  ;;  %v365_v45 = vld [vmem:[%s2456_s1 + $0x260] sm:$0xff]  ;;  %v367_v46 = vld [vmem:[%s2456_s1 + $0x270] sm:$0xff]  ;;  %v1331_v8 = vpack.c.bf16 %v504_v1, %v502_v0  ;;  %v380_v11 = vld [vmem:[%s2456_s1 + $0x2d8] sm:$0xff] }
  0x40   : > { %1304 = vmatprep.subr.bf16.mxu0 %v1303_v50  ;;  %v370_v50 = vld [vmem:[%s2456_s1 + $0x288] sm:$0xff]  ;;  %v1197_v54 = vpack.c.bf16 %v367_v46, %v365_v45  ;;  %v503_v9 = vld [vmem:[%s2456_s1 + $0x6b0] sm:$0xff]  ;;  %v508_v13 = vld [vmem:[%s2456_s1 + $0x6d8] sm:$0xff] }
  0x41   : > { %v506_v12 = vld [vmem:[%s2456_s1 + $0x6c8] sm:$0xff]  ;;  %v377_v14 = vld [vmem:[%s2456_s1 + $0x2c0] sm:$0xff]  ;;  %v379_v21 = vld [vmem:[%s2456_s1 + $0x2d0] sm:$0xff] }
  0x42   : > { %1178 = vmatpush1.bf16.msra.mxu1 %v1177_v56  ;;  %v1199_v56 = vpack.c.bf16 %v372_v51, %v370_v50  ;;  %v505_v22 = vld [vmem:[%s2456_s1 + $0x6c0] sm:$0xff]  ;;  %v284_v23 = vld [vmem:[%s1828_s7 + $0x68] sm:$0xff]  ;;  %v507_v25 = vld [vmem:[%s2456_s1 + $0x6d0] sm:$0xff] }
  0x43   : > { %1306 = vmatpush1.bf16.msra.mxu0 %v1305_v57  ;;  %1180 = vmatprep.subr.bf16.mxu1 %v1179_v58  ;;  %v369_v57 = vld [vmem:[%s2456_s1 + $0x280] sm:$0xff]  ;;  %v371_v58 = vld [vmem:[%s2456_s1 + $0x290] sm:$0xff]  ;;  %v382_v26 = vld [vmem:[%s2456_s1 + $0x2e8] sm:$0xff]  ;;  %v1337_v33 = vpack.c.bf16 %v507_v25, %v505_v22 }
  0x44   : > { %1308 = vmatprep.subr.bf16.mxu0 %v1307_v62  ;;  %v374_v62 = vld [vmem:[%s2456_s1 + $0x2a8] sm:$0xff]  ;;  %v1201_v2 = vpack.c.bf16 %v371_v58, %v369_v57  ;;  %v384_v27 = vld [vmem:[%s2456_s1 + $0x2f8] sm:$0xff]  ;;  %v381_v35 = vld [vmem:[%s2456_s1 + $0x2e0] sm:$0xff] }
  0x45   : > { %v510_v28 = vld [vmem:[%s2456_s1 + $0x6e8] sm:$0xff]  ;;  %v512_v29 = vld [vmem:[%s2456_s1 + $0x6f8] sm:$0xff]  ;;  %v1211_v34 = vpack.c.bf16 %v384_v27, %v382_v26  ;;  %v509_v37 = vld [vmem:[%s2456_s1 + $0x6e0] sm:$0xff] }
  0x46   : > { %1182 = vmatpush1.bf16.msra.mxu1 %v1181_v4  ;;  %v1203_v4 = vpack.c.bf16 %v376_v63, %v374_v62  ;;  %v1339_v38 = vpack.c.bf16 %v512_v29, %v510_v28  ;;  %v511_v39 = vld [vmem:[%s2456_s1 + $0x6f0] sm:$0xff]  ;;  %v386_v40 = vld [vmem:[%s2456_s1 + $0x308] sm:$0xff]  ;;  %v388_v41 = vld [vmem:[%s2456_s1 + $0x318] sm:$0xff] }
  0x47   : > { %1310 = vmatpush1.bf16.msra.mxu0 %v1309_v5  ;;  %1184 = vmatprep.subr.bf16.mxu1 %v1183_v6  ;;  %v373_v5 = vld [vmem:[%s2456_s1 + $0x2a0] sm:$0xff]  ;;  %v375_v6 = vld [vmem:[%s2456_s1 + $0x2b0] sm:$0xff]  ;;  %v1341_v45 = vpack.c.bf16 %v511_v39, %v509_v37  ;;  %v1215_v46 = vpack.c.bf16 %v388_v41, %v386_v40  ;;  %v390_v52 = vld [vmem:[%s2456_s1 + $0x328] sm:$0xff] }
  0x48   : > { %1312 = vmatprep.subr.bf16.mxu0 %v1311_v10  ;;  %v378_v10 = vld [vmem:[%s2456_s1 + $0x2c8] sm:$0xff]  ;;  %v1205_v15 = vpack.c.bf16 %v375_v6, %v373_v5  ;;  %v385_v47 = vld [vmem:[%s2456_s1 + $0x300] sm:$0xff]  ;;  %v515_v51 = vld [vmem:[%s2456_s1 + $0x710] sm:$0xff] }
  0x49   : > { %642 = vmatmul.mubr.f32.vlgmr.msra.gmra.mrb[0].mxu1 %v271_v16  ;;  %v281_v16 = vld [vmem:[%s1828_s7 + $0x50] sm:$0xff]  ;;  %v513_v49 = vld [vmem:[%s2456_s1 + $0x700] sm:$0xff]  ;;  %v392_v53 = vld [vmem:[%s2456_s1 + $0x338] sm:$0xff] }
  0x4a   : > { %1186 = vmatpush1.bf16.msra.mxu1 %v1185_v17  ;;  %796 = vmatmul.mubr.f32.vlgmr.msra.gmra.mrb[0].mxu0 %v275_v18  ;;  %v285_v17 = vld [vmem:[%s1828_s7 + $0x70] sm:$0xff]  ;;  %v280_v18 = vld [vmem:[%s1828_s7 + $0x48] sm:$0xff]  ;;  %v1345_v57 = vpack.c.bf16 %v515_v51, %v513_v49  ;;  %v1219_v58 = vpack.c.bf16 %v392_v53, %v390_v52  ;;  %v389_v59 = vld [vmem:[%s2456_s1 + $0x320] sm:$0xff] }
  0x4b   : > { %1314 = vmatpush1.bf16.msra.mxu0 %v1313_v19  ;;  %1188 = vmatprep.subr.bf16.mxu1 %v1187_v20  ;;  %v1333_v19 = vpack.c.bf16 %v503_v9, %v501_v7  ;;  %v1207_v20 = vpack.c.bf16 %v380_v11, %v378_v10  ;;  %v517_v61 = vld [vmem:[%s2456_s1 + $0x720] sm:$0xff]  ;;  %v519_v63 = vld [vmem:[%s2456_s1 + $0x730] sm:$0xff]  ;;  %v394_v0 = vld [vmem:[%s2456_s1 + $0x348] sm:$0xff] }
  0x4c   : > { %1316 = vmatprep.subr.bf16.mxu0 %v1315_v24  ;;  %v1335_v24 = vpack.c.bf16 %v508_v13, %v506_v12  ;;  %647 = vmatprep.mubr.f32.mxu1 %v281_v16  ;;  %v396_v1 = vld [vmem:[%s2456_s1 + $0x358] sm:$0xff]  ;;  %v1349_v5 = vpack.c.bf16 %v519_v63, %v517_v61  ;;  %v393_v7 = vld [vmem:[%s2456_s1 + $0x340] sm:$0xff]  ;;  %v523_v11 = vld [vmem:[%s2456_s1 + $0x750] sm:$0xff] }
  0x4d   : > { %801 = vmatprep.mubr.f32.mxu0 %v285_v17  ;;  %648 = vmatmul.mubr.f32.gmra.mrb[2].mxu1 %v280_v18  ;;  %v1223_v6 = vpack.c.bf16 %v396_v1, %v394_v0  ;;  %v521_v9 = vld [vmem:[%s2456_s1 + $0x740] sm:$0xff]  ;;  %v398_v12 = vld [vmem:[%s2456_s1 + $0x368] sm:$0xff]  ;;  %v400_v13 = vld [vmem:[%s2456_s1 + $0x378] sm:$0xff] }
  0x4e   : > { %1190 = vmatpush1.bf16.msra.mxu1 %v1189_v30  ;;  %v1209_v30 = vpack.c.bf16 %v379_v21, %v377_v14  ;;  %802 = vmatmul.mubr.f32.gmra.mrb[2].mxu0 %v284_v23  ;;  %v526_v14 = vld [vmem:[%s2456_s1 + $0x768] sm:$0xff]  ;;  %v1353_v17 = vpack.c.bf16 %v523_v11, %v521_v9  ;;  %v1227_v18 = vpack.c.bf16 %v400_v13, %v398_v12  ;;  %v525_v21 = vld [vmem:[%s2456_s1 + $0x760] sm:$0xff]  ;;  %v527_v23 = vld [vmem:[%s2456_s1 + $0x770] sm:$0xff] }
  0x4f   : > { %1318 = vmatpush1.bf16.msra.mxu0 %v1317_v31  ;;  %1192 = vmatprep.subr.bf16.mxu1 %v1191_v32  ;;  %v274_v31 = vld [vmem:[%s1828_s7 + $0x18] sm:$0xff]  ;;  %v530_v26 = vld [vmem:[%s2456_s1 + $0x788] sm:$0xff]  ;;  %v1357_v29 = vpack.c.bf16 %v527_v23, %v525_v21  ;;  %v545_v13 = vld [vmem:[%s2456_s1 + $0x800] sm:$0xff] }
  0x50   : > { %1320 = vmatprep.subr.bf16.mxu0 %v1319_v36  ;;  %v278_v32 = vld [vmem:[%s1828_s7 + $0x38] sm:$0xff]  ;;  %v383_v36 = vld [vmem:[%s2456_s1 + $0x2f0] sm:$0xff]  ;;  %718 = vmatprep.mubr.f32.mxu1 %v274_v31  ;;  %v401_v31 = vld [vmem:[%s2456_s1 + $0x380] sm:$0xff] }
  0x51   : > { %872 = vmatprep.mubr.f32.mxu0 %v278_v32  ;;  %v404_v25 = vld [vmem:[%s2456_s1 + $0x398] sm:$0xff]  ;;  %v403_v32 = vld [vmem:[%s2456_s1 + $0x390] sm:$0xff] }
  0x52   : > { %1194 = vmatpush1.bf16.msra.mxu1 %v1193_v42  ;;  %v514_v42 = vld [vmem:[%s2456_s1 + $0x708] sm:$0xff]  ;;  %v532_v27 = vld [vmem:[%s2456_s1 + $0x798] sm:$0xff]  ;;  %v1233_v40 = vpack.c.bf16 %v403_v32, %v401_v31  ;;  %v551_v21 = vld [vmem:[%s2456_s1 + $0x830] sm:$0xff] }
  0x53   : > { %1322 = vmatpush1.bf16.msra.mxu0 %v1321_v43  ;;  %1196 = vmatprep.subr.bf16.mxu1 %v1195_v44  ;;  %v516_v43 = vld [vmem:[%s2456_s1 + $0x718] sm:$0xff]  ;;  %v1213_v44 = vpack.c.bf16 %v383_v36, %v381_v35  ;;  %v531_v35 = vld [vmem:[%s2456_s1 + $0x790] sm:$0xff]  ;;  %v406_v36 = vld [vmem:[%s2456_s1 + $0x3a8] sm:$0xff] }
  0x54   : > { %1324 = vmatprep.subr.bf16.mxu0 %v1323_v48  ;;  %v387_v48 = vld [vmem:[%s2456_s1 + $0x310] sm:$0xff]  ;;  %v1343_v50 = vpack.c.bf16 %v516_v43, %v514_v42  ;;  %v408_v37 = vld [vmem:[%s2456_s1 + $0x3b8] sm:$0xff]  ;;  %v405_v43 = vld [vmem:[%s2456_s1 + $0x3a0] sm:$0xff] }
  0x55   : > { %v536_v39 = vld [vmem:[%s2456_s1 + $0x7b8] sm:$0xff]  ;;  %v1235_v42 = vpack.c.bf16 %v408_v37, %v406_v36  ;;  %v553_v31 = vld [vmem:[%s2456_s1 + $0x840] sm:$0xff]  ;;  %v555_v32 = vld [vmem:[%s2456_s1 + $0x850] sm:$0xff] }
  0x56   : > { %1198 = vmatpush1.bf16.msra.mxu1 %v1197_v54  ;;  %v518_v54 = vld [vmem:[%s2456_s1 + $0x728] sm:$0xff]  ;;  %v412_v49 = vld [vmem:[%s2456_s1 + $0x3d8] sm:$0xff]  ;;  %v557_v37 = vld [vmem:[%s2456_s1 + $0x860] sm:$0xff] }
  0x57   : > { %1326 = vmatpush1.bf16.msra.mxu0 %v1325_v55  ;;  %1200 = vmatprep.subr.bf16.mxu1 %v1199_v56  ;;  %v520_v55 = vld [vmem:[%s2456_s1 + $0x738] sm:$0xff]  ;;  %v1217_v56 = vpack.c.bf16 %v387_v48, %v385_v47  ;;  %v535_v47 = vld [vmem:[%s2456_s1 + $0x7b0] sm:$0xff]  ;;  %v410_v48 = vld [vmem:[%s2456_s1 + $0x3c8] sm:$0xff] }
  0x58   : > { %1328 = vmatprep.subr.bf16.mxu0 %v1327_v60  ;;  %v391_v60 = vld [vmem:[%s2456_s1 + $0x330] sm:$0xff]  ;;  %v1347_v62 = vpack.c.bf16 %v520_v55, %v518_v54  ;;  %v540_v51 = vld [vmem:[%s2456_s1 + $0x7d8] sm:$0xff]  ;;  %v1239_v54 = vpack.c.bf16 %v412_v49, %v410_v48  ;;  %v409_v55 = vld [vmem:[%s2456_s1 + $0x3c0] sm:$0xff] }
  0x59   : > { %v416_v61 = vld [vmem:[%s2456_s1 + $0x3f8] sm:$0xff] }
  0x5a   : > { %1202 = vmatpush1.bf16.msra.mxu1 %v1201_v2  ;;  %v522_v2 = vld [vmem:[%s2456_s1 + $0x748] sm:$0xff]  ;;  %v544_v63 = vld [vmem:[%s2456_s1 + $0x7f8] sm:$0xff] }
  0x5b   : > { %1330 = vmatpush1.bf16.msra.mxu0 %v1329_v3  ;;  %1204 = vmatprep.subr.bf16.mxu1 %v1203_v4  ;;  %v524_v3 = vld [vmem:[%s2456_s1 + $0x758] sm:$0xff]  ;;  %v1221_v4 = vpack.c.bf16 %v391_v60, %v389_v59  ;;  %v539_v59 = vld [vmem:[%s2456_s1 + $0x7d0] sm:$0xff]  ;;  %v414_v60 = vld [vmem:[%s2456_s1 + $0x3e8] sm:$0xff] }
  0x5c   : > { %1332 = vmatprep.subr.bf16.mxu0 %v1331_v8  ;;  %v395_v8 = vld [vmem:[%s2456_s1 + $0x350] sm:$0xff]  ;;  %v1351_v10 = vpack.c.bf16 %v524_v3, %v522_v2  ;;  %v1243_v2 = vpack.c.bf16 %v416_v61, %v414_v60  ;;  %v413_v3 = vld [vmem:[%s2456_s1 + $0x3e0] sm:$0xff]  ;;  %v548_v9 = vld [vmem:[%s2456_s1 + $0x818] sm:$0xff] }
  0x5d   : > { %v1225_v16 = vpack.c.bf16 %v395_v8, %v393_v7  ;;  %v543_v7 = vld [vmem:[%s2456_s1 + $0x7f0] sm:$0xff]  ;;  %v546_v8 = vld [vmem:[%s2456_s1 + $0x808] sm:$0xff] }
  0x5e   : > { %1206 = vmatpush1.bf16.msra.mxu1 %v1205_v15  ;;  %v528_v15 = vld [vmem:[%s2456_s1 + $0x778] sm:$0xff]  ;;  %v1375_v12 = vpack.c.bf16 %v548_v9, %v546_v8 }
  0x5f   : > { %1334 = vmatpush1.bf16.msra.mxu0 %v1333_v19  ;;  %1208 = vmatprep.subr.bf16.mxu1 %v1207_v20  ;;  %v397_v19 = vld [vmem:[%s2456_s1 + $0x360] sm:$0xff]  ;;  %v399_v20 = vld [vmem:[%s2456_s1 + $0x370] sm:$0xff]  ;;  %v1355_v22 = vpack.c.bf16 %v528_v15, %v526_v14  ;;  %v550_v15 = vld [vmem:[%s2456_s1 + $0x828] sm:$0xff] }
  0x60   : > { %1336 = vmatprep.subr.bf16.mxu0 %v1335_v24  ;;  %v402_v24 = vld [vmem:[%s2456_s1 + $0x388] sm:$0xff]  ;;  %v1229_v28 = vpack.c.bf16 %v399_v20, %v397_v19  ;;  %v547_v14 = vld [vmem:[%s2456_s1 + $0x810] sm:$0xff]  ;;  %v549_v20 = vld [vmem:[%s2456_s1 + $0x820] sm:$0xff] }
  0x61   : > { %v277_v19 = vld [vmem:[%s1828_s7 + $0x30] sm:$0xff] }
  0x62   : > { %1210 = vmatpush1.bf16.msra.mxu1 %v1209_v30  ;;  %v1231_v30 = vpack.c.bf16 %v404_v25, %v402_v24  ;;  %v554_v24 = vld [vmem:[%s2456_s1 + $0x848] sm:$0xff]  ;;  %v556_v25 = vld [vmem:[%s2456_s1 + $0x858] sm:$0xff] }
  0x63   : > { %1338 = vmatpush1.bf16.msra.mxu0 %v1337_v33  ;;  %1212 = vmatprep.subr.bf16.mxu1 %v1211_v34  ;;  %v529_v33 = vld [vmem:[%s2456_s1 + $0x780] sm:$0xff]  ;;  %v1359_v34 = vpack.c.bf16 %v532_v27, %v530_v26  ;;  %v282_v27 = vld [vmem:[%s1828_s7 + $0x58] sm:$0xff] }
  0x64   : > { %1340 = vmatprep.subr.bf16.mxu0 %v1339_v38  ;;  %v534_v38 = vld [vmem:[%s2456_s1 + $0x7a8] sm:$0xff]  ;;  %v1361_v41 = vpack.c.bf16 %v531_v35, %v529_v33  ;;  %v287_v26 = vld [vmem:[%s1828_s7 + $0x80] sm:$0xff]  ;;  %v1385_v35 = vpack.c.bf16 %v555_v32, %v553_v31 }
  0x65   : > { %v558_v33 = vld [vmem:[%s2456_s1 + $0x868] sm:$0xff] }
  0x66   : > { %1214 = vmatpush1.bf16.msra.mxu1 %v1213_v44  ;;  %v407_v44 = vld [vmem:[%s2456_s1 + $0x3b0] sm:$0xff] }
  0x67   : > { %1342 = vmatpush1.bf16.msra.mxu0 %v1341_v45  ;;  %1216 = vmatprep.subr.bf16.mxu1 %v1215_v46  ;;  %v533_v45 = vld [vmem:[%s2456_s1 + $0x7a0] sm:$0xff]  ;;  %v1363_v46 = vpack.c.bf16 %v536_v39, %v534_v38  ;;  %v1237_v52 = vpack.c.bf16 %v407_v44, %v405_v43  ;;  %v559_v38 = vld [vmem:[%s2456_s1 + $0x870] sm:$0xff]  ;;  %v562_v39 = vld [vmem:[%s2456_s1 + $0x888] sm:$0xff] }
  0x68   : > { %1344 = vmatprep.subr.bf16.mxu0 %v1343_v50  ;;  %v538_v50 = vld [vmem:[%s2456_s1 + $0x7c8] sm:$0xff]  ;;  %v1365_v53 = vpack.c.bf16 %v535_v47, %v533_v45  ;;  %v561_v44 = vld [vmem:[%s2456_s1 + $0x880] sm:$0xff]  ;;  %v563_v45 = vld [vmem:[%s2456_s1 + $0x890] sm:$0xff] }
  0x69   : > { %v568_v47 = vld [vmem:[%s2456_s1 + $0x8b8] sm:$0xff]  ;;  %v1393_v48 = vpack.c.bf16 %v563_v45, %v561_v44 }
  0x6a   : > { %1218 = vmatpush1.bf16.msra.mxu1 %v1217_v56  ;;  %v411_v56 = vld [vmem:[%s2456_s1 + $0x3d0] sm:$0xff] }
  0x6b   : > { %1346 = vmatpush1.bf16.msra.mxu0 %v1345_v57  ;;  %1220 = vmatprep.subr.bf16.mxu1 %v1219_v58  ;;  %v537_v57 = vld [vmem:[%s2456_s1 + $0x7c0] sm:$0xff]  ;;  %v1367_v58 = vpack.c.bf16 %v540_v51, %v538_v50  ;;  %v1241_v0 = vpack.c.bf16 %v411_v56, %v409_v55  ;;  %v567_v51 = vld [vmem:[%s2456_s1 + $0x8b0] sm:$0xff] }
  0x6c   : > { %1348 = vmatprep.subr.bf16.mxu0 %v1347_v62  ;;  %v542_v62 = vld [vmem:[%s2456_s1 + $0x7e8] sm:$0xff]  ;;  %v1369_v1 = vpack.c.bf16 %v539_v59, %v537_v57  ;;  %v565_v50 = vld [vmem:[%s2456_s1 + $0x8a0] sm:$0xff]  ;;  %v571_v57 = vld [vmem:[%s2456_s1 + $0x8d0] sm:$0xff] }
  0x6d   : > { %v569_v56 = vld [vmem:[%s2456_s1 + $0x8c0] sm:$0xff]  ;;  %v576_v59 = vld [vmem:[%s2456_s1 + $0x8f8] sm:$0xff] }
  0x6e   : > { %1222 = vmatpush1.bf16.msra.mxu1 %v1221_v4  ;;  %v415_v4 = vld [vmem:[%s2456_s1 + $0x3f0] sm:$0xff]  ;;  %v1401_v60 = vpack.c.bf16 %v571_v57, %v569_v56 }
  0x6f   : > { %1350 = vmatpush1.bf16.msra.mxu0 %v1349_v5  ;;  %1224 = vmatprep.subr.bf16.mxu1 %v1223_v6  ;;  %v541_v5 = vld [vmem:[%s2456_s1 + $0x7e0] sm:$0xff]  ;;  %v1371_v6 = vpack.c.bf16 %v544_v63, %v542_v62  ;;  %v575_v63 = vld [vmem:[%s2456_s1 + $0x8f0] sm:$0xff] }
  0x70   : > { %1352 = vmatprep.subr.bf16.mxu0 %v1351_v10  ;;  %v1245_v10 = vpack.c.bf16 %v415_v4, %v413_v3  ;;  %v1373_v11 = vpack.c.bf16 %v543_v7, %v541_v5  ;;  %v573_v62 = vld [vmem:[%s2456_s1 + $0x8e0] sm:$0xff] }
  0x72   : > { %1226 = vmatpush1.bf16.msra.mxu1 %v1225_v16  ;;  %v552_v16 = vld [vmem:[%s2456_s1 + $0x838] sm:$0xff] }
  0x73   : > { %1354 = vmatpush1.bf16.msra.mxu0 %v1353_v17  ;;  %1228 = vmatprep.subr.bf16.mxu1 %v1227_v18  ;;  %v273_v17 = vld [vmem:[%s1828_s7 + $0x10] sm:$0xff]  ;;  %v1377_v18 = vpack.c.bf16 %v547_v14, %v545_v13  ;;  %v1379_v23 = vpack.c.bf16 %v552_v16, %v550_v15  ;;  %v977_v14 = vld [vmem:[%s2457_s2] sm:$0x3] }
  0x74   : > { %1356 = vmatprep.subr.bf16.mxu0 %v1355_v22  ;;  %v283_v22 = vld [vmem:[%s1828_s7 + $0x60] sm:$0xff] }
  0x75   : > { %v993_v16 = vld [vmem:[%s2458_s3] sm:$0x3] }
  0x76   : > { %1230 = vmatpush1.bf16.msra.mxu1 %v1229_v28  ;;  %v1381_v28 = vpack.c.bf16 %v551_v21, %v549_v20 }
  0x77   : > { %1358 = vmatpush1.bf16.msra.mxu0 %v1357_v29  ;;  %1232 = vmatprep.subr.bf16.mxu1 %v1231_v30  ;;  %v286_v29 = vld [vmem:[%s1828_s7 + $0x78] sm:$0xff]  ;;  %v1383_v30 = vpack.c.bf16 %v556_v25, %v554_v24 }
  0x78   : > { %1360 = vmatprep.subr.bf16.mxu0 %v1359_v34  ;;  %v560_v34 = vld [vmem:[%s2456_s1 + $0x878] sm:$0xff] }
  0x79   : > { %v1387_v36 = vpack.c.bf16 %v560_v34, %v558_v33 }
  0x7a   : > { %1234 = vmatpush1.bf16.msra.mxu1 %v1233_v40  ;;  %v564_v40 = vld [vmem:[%s2456_s1 + $0x898] sm:$0xff] }
  0x7b   : > { %1362 = vmatpush1.bf16.msra.mxu0 %v1361_v41  ;;  %1236 = vmatprep.subr.bf16.mxu1 %v1235_v42  ;;  %v1489_v41 = vmov 0.0   ;;  %v1389_v42 = vpack.c.bf16 %v559_v38, %v557_v37  ;;  %v1391_v43 = vpack.c.bf16 %v564_v40, %v562_v39 }
  0x7c   : > { %1364 = vmatprep.subr.bf16.mxu0 %v1363_v46  ;;  %v566_v46 = vld [vmem:[%s2456_s1 + $0x8a8] sm:$0xff] }
  0x7d   : > { %v1395_v49 = vpack.c.bf16 %v568_v47, %v566_v46 }
  0x7e   : > { %1238 = vmatpush1.bf16.msra.mxu1 %v1237_v52  ;;  %v570_v52 = vld [vmem:[%s2456_s1 + $0x8c8] sm:$0xff] }
  0x7f   : > { %1366 = vmatpush1.bf16.msra.mxu0 %v1365_v53  ;;  %1240 = vmatprep.subr.bf16.mxu1 %v1239_v54  ;;  %v572_v53 = vld [vmem:[%s2456_s1 + $0x8d8] sm:$0xff]  ;;  %v1397_v54 = vpack.c.bf16 %v567_v51, %v565_v50 }
  0x80   : > { %1368 = vmatprep.subr.bf16.mxu0 %v1367_v58  ;;  %v1399_v55 = vpack.c.bf16 %v572_v53, %v570_v52  ;;  %v574_v58 = vld [vmem:[%s2456_s1 + $0x8e8] sm:$0xff] }
  0x81   : > { %v1403_v61 = vpack.c.bf16 %v576_v59, %v574_v58 }
  0x82   : > { %1242 = vmatpush1.bf16.msra.mxu1 %v1241_v0  ;;  %v1405_v0 = vpack.c.bf16 %v575_v63, %v573_v62 }
  0x83   : > { %1370 = vmatpush1.bf16.msra.mxu0 %v1369_v1  ;;  %1244 = vmatprep.subr.bf16.mxu1 %v1243_v2  ;;  %v288_v1 = vld [vmem:[%s1828_s7 + $0x88] sm:$0xff]  ;;  %v279_v2 = vld [vmem:[%s1828_s7 + $0x40] sm:$0xff] }
  0x84   : > { %1372 = vmatprep.subr.bf16.mxu0 %v1371_v6 }
  0x86   : > { %1246 = vmatpush1.bf16.msra.mxu1 %v1245_v10 }
  0x87   : > { %1374 = vmatpush1.bf16.msra.mxu0 %v1373_v11  ;;  %1407 = vmatprep.subr.bf16.mxu1 %v1375_v12  ;;  %v979_v11 = vlaneseq }
  0x88   : > { %1376 = vmatprep.subr.bf16.mxu0 %v1375_v12 }
  0x89   : > { %719 = vmatmul.mubr.f32.vlgmr.msra.gmra.mrb[0].mxu1 %v273_v17  ;;  %v980_v12 = vshrl.u32 %v979_v11, 7 }
  0x8a   : > { %873 = vmatmul.mubr.f32.vlgmr.msra.gmra.mrb[0].mxu0 %v277_v19  ;;  %1415 = vmatpush1.bf16.msra.mxu1 %v1377_v18 }
  0x8b   : > { %1378 = vmatpush1.bf16.msra.mxu0 %v1377_v18  ;;  %724 = vmatprep.mubr.f32.mxu1 %v283_v22  ;;  %v981_v13 = vsub.s32 0, %v980_v12  ;;  %v985_v15 = vsub.s32 1, %v980_v12 }
  0x8c   : > { %878 = vmatprep.mubr.f32.mxu0 %v287_v26  ;;  %1380 = vmatprep.subr.bf16.mxu0 %v1379_v23 }
  0x8d   : > { %725 = vmatmul.mubr.f32.gmra.mrb[2].mxu1 %v282_v27  ;;  %1408 = vmatprep.subr.bf16.mxu1 %v1379_v23  ;;  %v982_v17 = vrot.slane %v977_v14, %v981_v13  ;;  %v986_v19 = vrot.slane %v977_v14, %v985_v15  ;;  %v998_v21 = vrot.slane %v993_v16, %v981_v13 }
  0x8e   : > { %879 = vmatmul.mubr.f32.gmra.mrb[2].mxu0 %v286_v29  ;;  %1416 = vmatpush1.bf16.msra.mxu1 %v1381_v28  ;;  %v1002_v26 = vrot.slane %v993_v16, %v985_v15 }
  0x8f   : > { %1382 = vmatpush1.bf16.msra.mxu0 %v1381_v28  ;;  %1409 = vmatprep.subr.bf16.mxu1 %v1383_v30 }
  0x90   : > { %1384 = vmatprep.subr.bf16.mxu0 %v1383_v30  ;;  %949 = vmatprep.mubr.f32.mxu0 %v1489_v41 }
  0x91   : > { %955 = vmatprep.mubr.f32.mxu1 %v1489_v41 }
  0x92   : > { %1417 = vmatpush1.bf16.msra.mxu1 %v1385_v35 }
  0x93   : > { %1386 = vmatpush1.bf16.msra.mxu0 %v1385_v35  ;;  %1410 = vmatprep.subr.bf16.mxu1 %v1387_v36 }
  0x94   : > { %1388 = vmatprep.subr.bf16.mxu0 %v1387_v36 }
  0x96   : > { %1418 = vmatpush1.bf16.msra.mxu1 %v1389_v42 }
  0x97   : > { %1390 = vmatpush1.bf16.msra.mxu0 %v1389_v42  ;;  %1411 = vmatprep.subr.bf16.mxu1 %v1391_v43 }
  0x98   : > { %1392 = vmatprep.subr.bf16.mxu0 %v1391_v43 }
  0x9a   : > { %1419 = vmatpush1.bf16.msra.mxu1 %v1393_v48 }
  0x9b   : > { %1394 = vmatpush1.bf16.msra.mxu0 %v1393_v48  ;;  %1412 = vmatprep.subr.bf16.mxu1 %v1395_v49 }
  0x9c   : > { %1396 = vmatprep.subr.bf16.mxu0 %v1395_v49 }
  0x9e   : > { %1420 = vmatpush1.bf16.msra.mxu1 %v1397_v54 }
  0x9f   : > { %1398 = vmatpush1.bf16.msra.mxu0 %v1397_v54  ;;  %1413 = vmatprep.subr.bf16.mxu1 %v1399_v55 }
  0xa0   : > { %1400 = vmatprep.subr.bf16.mxu0 %v1399_v55 }
  0xa2   : > { %1421 = vmatpush1.bf16.msra.mxu1 %v1401_v60 }
  0xa3   : > { %1402 = vmatpush1.bf16.msra.mxu0 %v1401_v60  ;;  %1414 = vmatprep.subr.bf16.mxu1 %v1403_v61 }
  0xa4   : > { %1404 = vmatprep.subr.bf16.mxu0 %v1403_v61 }
  0xa6   : > { %1422 = vmatpush1.bf16.msra.mxu1 %v1405_v0 }
  0xa7   : > { %1406 = vmatpush1.bf16.msra.mxu0 %v1405_v0 }
  0xa9   : > { %956 = vmatmul.mubr.f32.vlgmr.msra.gmra.mrb[4].mxu1 %v288_v1 }
  0xaa   : > { %950 = vmatmul.mubr.f32.vlgmr.msra.gmra.mrb[0].mxu0 %v279_v2 }
 0x15c   : > { %v720_v3 = vpop.f32.mrb[0].mxu1 }
 0x15d   : > { %v722_v4 = vpop.f32.mrb[1].mxu1 }
 0x160   : > { %v726_v5 = vpop.f32.mrb[2].mxu1 }
 0x161   : > { %v880_v6 = vpop.f32.mrb[2].mxu0  ;;  %v728_v7 = vpop.f32.mrb[3].mxu1 }
 0x162   : > { %v1425_v8 = vadd.f32 %v880_v6, %v726_v5  ;;  %v882_v9 = vpop.f32.mrb[3].mxu0 }
 0x163   : > { %v1427_v10 = vadd.f32 %v882_v9, %v728_v7 }
 0x17c   : > { %v957_v18 = vpop.f32.mrb[4].mxu1 }
 0x17d   : > { %v951_v20 = vpop.f32.mrb[0].mxu0  ;;  %v1426_v22 = vadd.f32 %v1425_v8, %v957_v18  ;;  %v959_v23 = vpop.f32.mrb[5].mxu1 }
 0x17e   : > { %v1423_v24 = vadd.f32 %v951_v20, %v720_v3  ;;  %v953_v25 = vpop.f32.mrb[1].mxu0  ;;  %v1428_v27 = vadd.f32 %v1427_v10, %v959_v23 }
 0x17f   : > { %v991_v28 = vmul.f32 %v1426_v22, %v982_v17  ;;  %v1424_v29 = vadd.f32 %v953_v25, %v722_v4 }
 0x180   : > { %v989_v30 = vmul.f32 %v1423_v24, %v982_v17  ;;  %v992_v31 = vmul.f32 %v1428_v27, %v986_v19 }
 0x181   : > { %v1007_v32 = vadd.f32 %v998_v21, %v991_v28  ;;  %v990_v33 = vmul.f32 %v1424_v29, %v986_v19 }
 0x182   : > { %v1005_v34 = vadd.f32 %v998_v21, %v989_v30  ;;  %v1008_v35 = vadd.f32 %v1002_v26, %v992_v31 }
 0x183   : > { %v1011_v36 = vmax.f32 %v1007_v32, 0.0  ;;  %v1006_v37 = vadd.f32 %v1002_v26, %v990_v33 }
 0x184   : > { %v1009_v38 = vmax.f32 %v1005_v34, 0.0  ;;  %v1012_v39 = vmax.f32 %v1008_v35, 0.0 }
 0x185   : > { %v1010_v40 = vmax.f32 %v1006_v37, 0.0  ;;  %1015 = vst [vmem:[%s257_s6 + $0x10] sm:$0xff] %v1011_v36 }
 0x186   : > { %1013 = vst [vmem:[%s257_s6] sm:$0xff] %v1009_v38  ;;  %1016 = vst [vmem:[%s257_s6 + $0x18] sm:$0xff] %v1012_v39 }
 0x187   : > { %1014 = vst [vmem:[%s257_s6 + $0x8] sm:$0xff] %v1010_v40 }
 0x188 PF: > { %s14_s17 = sadd.s32 1, %s1487_s17   ;;  %s2461_s15 = smov %s1483_s16 }
 0x189   : > { %p11_p5 = scmp.ge.s32.totalorder %s14_s17, 4   ;;  %s2462_s16 = smov %s2464_s18 }
 0x18b   :  { %13 = sbr.rel (!%p11_p5) target bundleno = 2 (0x2), region = 77 }

// kernel: custom_resnet_forward.17
= control target key start
LH: loop header
LB: loop body
LE: loop exit
PB: predicated region body
PF: predicated region fallthrough
CT: control target
= control target key end

     0   :  { %s2017_s15 = smov 0   ;;  %s2019_s16 = smov 0   ;;  %s2456_s0 = inlined_call_operand.vmem [shape: f32[16,4096], index: 0, kind: input, shape index: {}]   ;;  %s2457_s1 = inlined_call_operand.vmem [shape: f32[4096,128], index: 1, kind: input, shape index: {}]   ;;  %s2458_s2 = inlined_call_operand.vmem [shape: f32[1,128], index: 2, kind: input, shape index: {}]   ;;  %s2459_s3 = inlined_call_operand.vmem [shape: f32[1,128], index: 3, kind: input, shape index: {}]   ;;  %s2460_s4 = inlined_call_operand.vmem [shape: f32[16,128], index: 4, kind: output, shape index: {}]  }
   0x1   :  { %s2021_s17 = smov 0   ;;  %s2023_s18 = smov 0  }
   0x2   :  { %s2025_s19 = smov 0  }
   0x3 LB: > { %s23_s20 = sadd.s32 1, %s1985_s18  ;;  %p42_p1 = scmp.ne.s32.totalorder %s1977_s16, %s1973_s15  ;;  %s1989_s19 = sphi %s2025_s19, %s14_s19   ;;  %s1985_s18 = sphi %s2023_s18, %s2464_s18   ;;  %s1981_s17 = sphi %s2021_s17, %s2463_s17   ;;  %s1977_s16 = sphi %s2019_s16, %s2462_s16   ;;  %s1973_s15 = sphi %s2017_s15, %s2461_s15  }
   0x4   : > { %p24_p0 = scmp.ge.s32.totalorder %s23_s20, 2  ;;  %p43_p2 = scmp.eq.s32.totalorder %s1989_s19, 0 }
   0x5   : > { %s35_s22 = sadd.s32 1, %s1977_s16  ;;  %p1333_p5 = scmp.ge.s32.totalorder %s1989_s19, 2 }
   0x6   : > { %s2466_s20 = smov (%p24_p0, %s23_s20), 0  ;;  %p44_p3 = por %p43_p2, %p42_p1 }
   0x7   : > { %s31_s21 = ssub.s32 %s1985_s18, %s2466_s20  ;;  %168 = sbr.rel (%p1333_p5) target bundleno = 34 (0x22), region = 24 }
   0x8   : > { %p33_p4 = scmp.eq.s32.totalorder %s31_s21, 0 }
   0xa   : > { %s2052_s23 = scalar_select %p33_p4, %s1977_s16, %s35_s22  }
   0xe   : > { %171 = sbr.rel (!%p44_p3) target bundleno = 34 (0x22), region = 28  ;;  %s173_s24 = sand.u32 (%p44_p3), 1, %s1977_s16  }
   0xf   : > { %s1349_s25 = sshll.u32 (%p44_p3), %s1985_s18, 7  ;;  %s1334_s26 = sshll.u32 (%p44_p3), %s173_s24, 8 }
  0x10   : > { %s2060_s29 = scalar_lea.vmem (%p44_p3), %s2456_s0, %s1349_s25  ;;  %s2065_s30 = scalar_lea.vmem (%p44_p3), [#allocation3], %s1334_s26 }
  0x11   : > { %v194_v0 = vld [vmem:[%s2060_s29] sm:$0xff] (%p44_p3)  ;;  %v196_v1 = vld [vmem:[%s2060_s29 + $0x8] sm:$0xff] (%p44_p3)  ;;  %v198_v2 = vld [vmem:[%s2060_s29 + $0x10] sm:$0xff] (%p44_p3) }
  0x12   : > { %195 = vst [vmem:[%s2065_s30] sm:$0xff] (%p44_p3), %v194_v0  ;;  %197 = vst [vmem:[%s2065_s30 + $0x8] sm:$0xff] (%p44_p3), %v196_v1  ;;  %v200_v3 = vld [vmem:[%s2060_s29 + $0x18] sm:$0xff] (%p44_p3)  ;;  %v202_v4 = vld [vmem:[%s2060_s29 + $0x20] sm:$0xff] (%p44_p3) }
  0x13   : > { %199 = vst [vmem:[%s2065_s30 + $0x10] sm:$0xff] (%p44_p3), %v198_v2  ;;  %v204_v5 = vld [vmem:[%s2060_s29 + $0x28] sm:$0xff] (%p44_p3)  ;;  %201 = vst [vmem:[%s2065_s30 + $0x18] sm:$0xff] (%p44_p3), %v200_v3  ;;  %v206_v6 = vld [vmem:[%s2060_s29 + $0x30] sm:$0xff] (%p44_p3) }
  0x14   : > { %203 = vst [vmem:[%s2065_s30 + $0x20] sm:$0xff] (%p44_p3), %v202_v4  ;;  %205 = vst [vmem:[%s2065_s30 + $0x28] sm:$0xff] (%p44_p3), %v204_v5  ;;  %v208_v7 = vld [vmem:[%s2060_s29 + $0x38] sm:$0xff] (%p44_p3)  ;;  %v210_v8 = vld [vmem:[%s2060_s29 + $0x40] sm:$0xff] (%p44_p3) }
  0x15   : > { %207 = vst [vmem:[%s2065_s30 + $0x30] sm:$0xff] %v206_v6  ;;  %209 = vst [vmem:[%s2065_s30 + $0x38] sm:$0xff] %v208_v7  ;;  %v212_v9 = vld [vmem:[%s2060_s29 + $0x48] sm:$0xff]  ;;  %v214_v10 = vld [vmem:[%s2060_s29 + $0x50] sm:$0xff] }
  0x16   : > { %211 = vst [vmem:[%s2065_s30 + $0x40] sm:$0xff] %v210_v8  ;;  %v216_v11 = vld [vmem:[%s2060_s29 + $0x58] sm:$0xff]  ;;  %213 = vst [vmem:[%s2065_s30 + $0x48] sm:$0xff] %v212_v9  ;;  %v218_v12 = vld [vmem:[%s2060_s29 + $0x60] sm:$0xff] }
  0x17   : > { %215 = vst [vmem:[%s2065_s30 + $0x50] sm:$0xff] %v214_v10  ;;  %217 = vst [vmem:[%s2065_s30 + $0x58] sm:$0xff] %v216_v11  ;;  %v220_v13 = vld [vmem:[%s2060_s29 + $0x68] sm:$0xff]  ;;  %v222_v14 = vld [vmem:[%s2060_s29 + $0x70] sm:$0xff] }
  0x18   : > { %219 = vst [vmem:[%s2065_s30 + $0x60] sm:$0xff] %v218_v12  ;;  %221 = vst [vmem:[%s2065_s30 + $0x68] sm:$0xff] %v220_v13  ;;  %v224_v15 = vld [vmem:[%s2060_s29 + $0x78] sm:$0xff]  ;;  %v226_v16 = vld [vmem:[%s2060_s29 + $0x100] sm:$0xff] }
  0x19   : > { %223 = vst [vmem:[%s2065_s30 + $0x70] sm:$0xff] %v222_v14  ;;  %v228_v17 = vld [vmem:[%s2060_s29 + $0x108] sm:$0xff]  ;;  %225 = vst [vmem:[%s2065_s30 + $0x78] sm:$0xff] %v224_v15  ;;  %v230_v18 = vld [vmem:[%s2060_s29 + $0x110] sm:$0xff] }
  0x1a   : > { %227 = vst [vmem:[%s2065_s30 + $0x80] sm:$0xff] %v226_v16  ;;  %229 = vst [vmem:[%s2065_s30 + $0x88] sm:$0xff] %v228_v17  ;;  %v232_v19 = vld [vmem:[%s2060_s29 + $0x118] sm:$0xff]  ;;  %v234_v20 = vld [vmem:[%s2060_s29 + $0x120] sm:$0xff] }
  0x1b   : > { %231 = vst [vmem:[%s2065_s30 + $0x90] sm:$0xff] %v230_v18  ;;  %233 = vst [vmem:[%s2065_s30 + $0x98] sm:$0xff] %v232_v19  ;;  %v236_v21 = vld [vmem:[%s2060_s29 + $0x128] sm:$0xff]  ;;  %v238_v22 = vld [vmem:[%s2060_s29 + $0x130] sm:$0xff] }
  0x1c   : > { %235 = vst [vmem:[%s2065_s30 + $0xa0] sm:$0xff] %v234_v20  ;;  %v240_v23 = vld [vmem:[%s2060_s29 + $0x138] sm:$0xff]  ;;  %237 = vst [vmem:[%s2065_s30 + $0xa8] sm:$0xff] %v236_v21  ;;  %v242_v24 = vld [vmem:[%s2060_s29 + $0x140] sm:$0xff] }
  0x1d   : > { %239 = vst [vmem:[%s2065_s30 + $0xb0] sm:$0xff] %v238_v22  ;;  %241 = vst [vmem:[%s2065_s30 + $0xb8] sm:$0xff] %v240_v23  ;;  %v244_v25 = vld [vmem:[%s2060_s29 + $0x148] sm:$0xff]  ;;  %v246_v26 = vld [vmem:[%s2060_s29 + $0x150] sm:$0xff] }
  0x1e   : > { %243 = vst [vmem:[%s2065_s30 + $0xc0] sm:$0xff] %v242_v24  ;;  %245 = vst [vmem:[%s2065_s30 + $0xc8] sm:$0xff] %v244_v25  ;;  %v248_v27 = vld [vmem:[%s2060_s29 + $0x158] sm:$0xff]  ;;  %v250_v28 = vld [vmem:[%s2060_s29 + $0x160] sm:$0xff] }
  0x1f   : > { %247 = vst [vmem:[%s2065_s30 + $0xd0] sm:$0xff] %v246_v26  ;;  %v252_v29 = vld [vmem:[%s2060_s29 + $0x168] sm:$0xff]  ;;  %249 = vst [vmem:[%s2065_s30 + $0xd8] sm:$0xff] %v248_v27  ;;  %v254_v30 = vld [vmem:[%s2060_s29 + $0x170] sm:$0xff] }
  0x20   : > { %251 = vst [vmem:[%s2065_s30 + $0xe0] sm:$0xff] %v250_v28  ;;  %253 = vst [vmem:[%s2065_s30 + $0xe8] sm:$0xff] %v252_v29  ;;  %v256_v31 = vld [vmem:[%s2060_s29 + $0x178] sm:$0xff] }
  0x21   : > { %255 = vst [vmem:[%s2065_s30 + $0xf0] sm:$0xff] %v254_v30  ;;  %257 = vst [vmem:[%s2065_s30 + $0xf8] sm:$0xff] %v256_v31 }
  0x22 PF: > { %p1337_p6 = scmp.ge.s32.totalorder %s1989_s19, 1  ;;  %p271_p7 = scmp.lt.s32.totalorder %s1989_s19, 3 }
  0x24   : > { %p272_p8 = pnand %p1337_p6, %p271_p7 }
  0x25   : > { %s278_s5 = sand.u32 (!%p272_p8), 1, %s1973_s15   ;;  %s1339_s6 = sshll.u32 (!%p272_p8), %s1981_s17, 8 }
  0x26   : > { %275 = sbr.rel (%p272_p8) target bundleno = 422 (0x1a6), region = 55  ;;  %s1338_s7 = sshll.u32 (!%p272_p8), %s278_s5, 8 }
  0x27   : > { %p311_p9 = scmp.lt.s32.totalorder (!%p272_p8), %s1339_s6, 511  ;;  %s2137_s12 = scalar_lea.vmem (!%p272_p8), [#allocation3], %s1338_s7 }
  0x28   : > { %p1341_p10 = scmp.ne.s32.totalorder (!%p272_p8), %s1981_s17, 0 }
  0x2d   : > { %s2468_s6 = smov (!%p311_p9, %s1339_s6), 511  ;;  %325 = sbr.rel (%p1341_p10) target bundleno = 52 (0x34), region = 63 }
  0x2e   : > { %s1340_s8 = sshll.u32 %s2468_s6, 3  ;;  %v1991_v32 = vmov (!%p1341_p10), 0.0  }
  0x2f   : > { %s2135_s11 = scalar_lea.vmem %s2457_s1, %s1340_s8  ;;  %326 = vst [vmem:[#allocation2] sm:$0xff] (!%p1341_p10), %v1991_v32  ;;  %327 = vst [vmem:[#allocation2 + $0x8] sm:$0xff] (!%p1341_p10), %v1991_v32 }
  0x34 PF: > { %v378_v33 = vld [vmem:[%s2135_s11 + $0x80] sm:$0xff]  ;;  %v379_v34 = vld [vmem:[%s2135_s11 + $0x88] sm:$0xff]  ;;  %v380_v44 = vld [vmem:[%s2135_s11 + $0x90] sm:$0xff]  ;;  %p1342_p11 = scmp.ne.s32.totalorder %s1981_s17, 1 }
  0x35   : > { %v410_v35 = vld [vmem:[%s2135_s11 + $0x180] sm:$0xff]  ;;  %v1654_v36 = vpack.c.bf16 %v379_v34, %v378_v33  ;;  %v411_v37 = vld [vmem:[%s2135_s11 + $0x188] sm:$0xff]  ;;  %v381_v46 = vld [vmem:[%s2135_s11 + $0x98] sm:$0xff] }
  0x36   : > { %v362_v38 = vld [vmem:[%s2135_s11] sm:$0xff]  ;;  %v363_v39 = vld [vmem:[%s2135_s11 + $0x8] sm:$0xff]  ;;  %v1686_v40 = vpack.c.bf16 %v411_v37, %v410_v35  ;;  %v412_v47 = vld [vmem:[%s2135_s11 + $0x190] sm:$0xff]  ;;  %v1658_v49 = vpack.c.bf16 %v381_v46, %v380_v44 }
  0x37   : > { %v1656_v41 = vpack.c.bf16 %v363_v39, %v362_v38  ;;  %v394_v42 = vld [vmem:[%s2135_s11 + $0x100] sm:$0xff]  ;;  %v395_v43 = vld [vmem:[%s2135_s11 + $0x108] sm:$0xff]  ;;  %1655 = vmatprep.subr.bf16.mxu0 %v1654_v36  ;;  %v413_v48 = vld [vmem:[%s2135_s11 + $0x198] sm:$0xff] }
  0x38   : > { %v1688_v45 = vpack.c.bf16 %v395_v43, %v394_v42  ;;  %1687 = vmatprep.subr.bf16.mxu1 %v1686_v40  ;;  %v1690_v50 = vpack.c.bf16 %v413_v48, %v412_v47  ;;  %v364_v51 = vld [vmem:[%s2135_s11 + $0x10] sm:$0xff]  ;;  %v365_v52 = vld [vmem:[%s2135_s11 + $0x18] sm:$0xff]  ;;  %v382_v56 = vld [vmem:[%s2135_s11 + $0xa0] sm:$0xff] }
  0x39   : > { %1657 = vmatpush3.bf16.msra.mxu0 %v1656_v41  ;;  %v396_v53 = vld [vmem:[%s2135_s11 + $0x110] sm:$0xff]  ;;  %v1660_v54 = vpack.c.bf16 %v365_v52, %v364_v51  ;;  %v397_v55 = vld [vmem:[%s2135_s11 + $0x118] sm:$0xff]  ;;  %v383_v57 = vld [vmem:[%s2135_s11 + $0xa8] sm:$0xff] }
  0x3a   : > { %1689 = vmatpush3.bf16.msra.mxu1 %v1688_v45  ;;  %1659 = vmatprep.subr.bf16.mxu0 %v1658_v49  ;;  %v1692_v58 = vpack.c.bf16 %v397_v55, %v396_v53  ;;  %v1662_v59 = vpack.c.bf16 %v383_v57, %v382_v56  ;;  %v414_v60 = vld [vmem:[%s2135_s11 + $0x1a0] sm:$0xff]  ;;  %v415_v61 = vld [vmem:[%s2135_s11 + $0x1a8] sm:$0xff]  ;;  %v384_v4 = vld [vmem:[%s2135_s11 + $0xb0] sm:$0xff] }
  0x3b   : > { %1691 = vmatprep.subr.bf16.mxu1 %v1690_v50  ;;  %v366_v62 = vld [vmem:[%s2135_s11 + $0x20] sm:$0xff]  ;;  %v1694_v63 = vpack.c.bf16 %v415_v61, %v414_v60  ;;  %v367_v0 = vld [vmem:[%s2135_s11 + $0x28] sm:$0xff]  ;;  %v385_v5 = vld [vmem:[%s2135_s11 + $0xb8] sm:$0xff] }
  0x3c   : > { %v398_v1 = vld [vmem:[%s2135_s11 + $0x120] sm:$0xff]  ;;  %v399_v2 = vld [vmem:[%s2135_s11 + $0x128] sm:$0xff]  ;;  %v1664_v3 = vpack.c.bf16 %v367_v0, %v366_v62  ;;  %v416_v6 = vld [vmem:[%s2135_s11 + $0x1b0] sm:$0xff]  ;;  %v1666_v8 = vpack.c.bf16 %v385_v5, %v384_v4 }
  0x3d   : > { %1661 = vmatpush3.bf16.msra.mxu0 %v1660_v54  ;;  %v1696_v7 = vpack.c.bf16 %v399_v2, %v398_v1  ;;  %v417_v9 = vld [vmem:[%s2135_s11 + $0x1b8] sm:$0xff]  ;;  %v368_v10 = vld [vmem:[%s2135_s11 + $0x30] sm:$0xff]  ;;  %v386_v15 = vld [vmem:[%s2135_s11 + $0xc0] sm:$0xff] }
  0x3e   : > { %1693 = vmatpush3.bf16.msra.mxu1 %v1692_v58  ;;  %1663 = vmatprep.subr.bf16.mxu0 %v1662_v59  ;;  %v369_v11 = vld [vmem:[%s2135_s11 + $0x38] sm:$0xff]  ;;  %v1698_v12 = vpack.c.bf16 %v417_v9, %v416_v6  ;;  %v400_v13 = vld [vmem:[%s2135_s11 + $0x130] sm:$0xff]  ;;  %v387_v16 = vld [vmem:[%s2135_s11 + $0xc8] sm:$0xff] }
  0x3f   : > { %1695 = vmatprep.subr.bf16.mxu1 %v1694_v63  ;;  %v401_v14 = vld [vmem:[%s2135_s11 + $0x138] sm:$0xff]  ;;  %v418_v17 = vld [vmem:[%s2135_s11 + $0x1c0] sm:$0xff]  ;;  %v419_v18 = vld [vmem:[%s2135_s11 + $0x1c8] sm:$0xff]  ;;  %v1668_v19 = vpack.c.bf16 %v369_v11, %v368_v10  ;;  %v1670_v21 = vpack.c.bf16 %v387_v16, %v386_v15 }
  0x40   : > { %v1700_v20 = vpack.c.bf16 %v401_v14, %v400_v13  ;;  %v370_v22 = vld [vmem:[%s2135_s11 + $0x40] sm:$0xff]  ;;  %v371_v23 = vld [vmem:[%s2135_s11 + $0x48] sm:$0xff]  ;;  %v1702_v25 = vpack.c.bf16 %v419_v18, %v418_v17  ;;  %v388_v27 = vld [vmem:[%s2135_s11 + $0xd0] sm:$0xff] }
  0x41   : > { %1665 = vmatpush3.bf16.msra.mxu0 %v1664_v3  ;;  %v402_v24 = vld [vmem:[%s2135_s11 + $0x140] sm:$0xff]  ;;  %v403_v26 = vld [vmem:[%s2135_s11 + $0x148] sm:$0xff]  ;;  %v389_v28 = vld [vmem:[%s2135_s11 + $0xd8] sm:$0xff]  ;;  %v1672_v31 = vpack.c.bf16 %v371_v23, %v370_v22 }
  0x42   : > { %1697 = vmatpush3.bf16.msra.mxu1 %v1696_v7  ;;  %1667 = vmatprep.subr.bf16.mxu0 %v1666_v8  ;;  %v420_v29 = vld [vmem:[%s2135_s11 + $0x1d0] sm:$0xff]  ;;  %v421_v30 = vld [vmem:[%s2135_s11 + $0x1d8] sm:$0xff]  ;;  %v1704_v32 = vpack.c.bf16 %v403_v26, %v402_v24  ;;  %v1674_v33 = vpack.c.bf16 %v389_v28, %v388_v27  ;;  %v390_v39 = vld [vmem:[%s2135_s11 + $0xe0] sm:$0xff] }
  0x43   : > { %1699 = vmatprep.subr.bf16.mxu1 %v1698_v12  ;;  %v372_v34 = vld [vmem:[%s2135_s11 + $0x50] sm:$0xff]  ;;  %v373_v35 = vld [vmem:[%s2135_s11 + $0x58] sm:$0xff]  ;;  %v1706_v37 = vpack.c.bf16 %v421_v30, %v420_v29  ;;  %v391_v40 = vld [vmem:[%s2135_s11 + $0xe8] sm:$0xff] }
  0x44   : > { %v404_v36 = vld [vmem:[%s2135_s11 + $0x150] sm:$0xff]  ;;  %v405_v38 = vld [vmem:[%s2135_s11 + $0x158] sm:$0xff]  ;;  %v422_v41 = vld [vmem:[%s2135_s11 + $0x1e0] sm:$0xff]  ;;  %v1676_v43 = vpack.c.bf16 %v373_v35, %v372_v34  ;;  %v1678_v47 = vpack.c.bf16 %v391_v40, %v390_v39 }
  0x45   : > { %1669 = vmatpush3.bf16.msra.mxu0 %v1668_v19  ;;  %v423_v42 = vld [vmem:[%s2135_s11 + $0x1e8] sm:$0xff]  ;;  %v374_v44 = vld [vmem:[%s2135_s11 + $0x60] sm:$0xff]  ;;  %v1708_v46 = vpack.c.bf16 %v405_v38, %v404_v36  ;;  %v331_v49 = vld [vmem:[%s2137_s12 + $0x8] sm:$0xff] }
  0x46   : > { %1701 = vmatpush3.bf16.msra.mxu1 %v1700_v20  ;;  %1671 = vmatprep.subr.bf16.mxu0 %v1670_v21  ;;  %v375_v45 = vld [vmem:[%s2135_s11 + $0x68] sm:$0xff]  ;;  %v406_v48 = vld [vmem:[%s2135_s11 + $0x160] sm:$0xff]  ;;  %v1710_v51 = vpack.c.bf16 %v423_v42, %v422_v41  ;;  %v392_v53 = vld [vmem:[%s2135_s11 + $0xf0] sm:$0xff] }
  0x47   : > { %1703 = vmatprep.subr.bf16.mxu1 %v1702_v25  ;;  %v333_v50 = vld [vmem:[%s2137_s12 + $0x18] sm:$0xff]  ;;  %v393_v54 = vld [vmem:[%s2135_s11 + $0xf8] sm:$0xff]  ;;  %682 = vmatprep.mubr.f32.mxu0 %v331_v49  ;;  %v424_v55 = vld [vmem:[%s2135_s11 + $0x1f0] sm:$0xff]  ;;  %v1680_v57 = vpack.c.bf16 %v375_v45, %v374_v44 }
  0x48   : > { %v407_v52 = vld [vmem:[%s2135_s11 + $0x168] sm:$0xff]  ;;  %v425_v56 = vld [vmem:[%s2135_s11 + $0x1f8] sm:$0xff]  ;;  %757 = vmatprep.mubr.f32.mxu1 %v333_v50  ;;  %v1682_v59 = vpack.c.bf16 %v393_v54, %v392_v53  ;;  %v376_v60 = vld [vmem:[%s2135_s11 + $0x70] sm:$0xff] }
  0x49   : > { %1673 = vmatpush3.bf16.msra.mxu0 %v1672_v31  ;;  %v1712_v58 = vpack.c.bf16 %v407_v52, %v406_v48  ;;  %v377_v61 = vld [vmem:[%s2135_s11 + $0x78] sm:$0xff]  ;;  %v408_v62 = vld [vmem:[%s2135_s11 + $0x170] sm:$0xff]  ;;  %v1714_v63 = vpack.c.bf16 %v425_v56, %v424_v55  ;;  %v442_v1 = vld [vmem:[%s2135_s11 + $0x280] sm:$0xff] }
  0x4a   : > { %1705 = vmatpush3.bf16.msra.mxu1 %v1704_v32  ;;  %1675 = vmatprep.subr.bf16.mxu0 %v1674_v33  ;;  %v409_v0 = vld [vmem:[%s2135_s11 + $0x178] sm:$0xff]  ;;  %v443_v2 = vld [vmem:[%s2135_s11 + $0x288] sm:$0xff]  ;;  %v474_v3 = vld [vmem:[%s2135_s11 + $0x380] sm:$0xff]  ;;  %v1684_v5 = vpack.c.bf16 %v377_v61, %v376_v60 }
  0x4b   : > { %1707 = vmatprep.subr.bf16.mxu1 %v1706_v37  ;;  %v475_v4 = vld [vmem:[%s2135_s11 + $0x388] sm:$0xff]  ;;  %v1716_v6 = vpack.c.bf16 %v409_v0, %v408_v62  ;;  %v1718_v7 = vpack.c.bf16 %v443_v2, %v442_v1  ;;  %v426_v8 = vld [vmem:[%s2135_s11 + $0x200] sm:$0xff]  ;;  %v444_v13 = vld [vmem:[%s2135_s11 + $0x290] sm:$0xff] }
  0x4c   : > { %v427_v9 = vld [vmem:[%s2135_s11 + $0x208] sm:$0xff]  ;;  %v458_v10 = vld [vmem:[%s2135_s11 + $0x300] sm:$0xff]  ;;  %v1750_v11 = vpack.c.bf16 %v475_v4, %v474_v3  ;;  %v445_v14 = vld [vmem:[%s2135_s11 + $0x298] sm:$0xff] }
  0x4d   : > { %1677 = vmatpush3.bf16.msra.mxu0 %v1676_v43  ;;  %v459_v12 = vld [vmem:[%s2135_s11 + $0x308] sm:$0xff]  ;;  %v476_v15 = vld [vmem:[%s2135_s11 + $0x390] sm:$0xff]  ;;  %v477_v16 = vld [vmem:[%s2135_s11 + $0x398] sm:$0xff]  ;;  %v1720_v19 = vpack.c.bf16 %v427_v9, %v426_v8  ;;  %v1722_v21 = vpack.c.bf16 %v445_v14, %v444_v13 }
  0x4e   : > { %1709 = vmatpush3.bf16.msra.mxu1 %v1708_v46  ;;  %1679 = vmatprep.subr.bf16.mxu0 %v1678_v47  ;;  %v330_v17 = vld [vmem:[%s2137_s12] sm:$0xff]  ;;  %v332_v18 = vld [vmem:[%s2137_s12 + $0x10] sm:$0xff]  ;;  %v1752_v20 = vpack.c.bf16 %v459_v12, %v458_v10  ;;  %v429_v23 = vld [vmem:[%s2135_s11 + $0x218] sm:$0xff]  ;;  %v1754_v25 = vpack.c.bf16 %v477_v16, %v476_v15 }
  0x4f   : > { %1711 = vmatprep.subr.bf16.mxu1 %v1710_v51  ;;  %v428_v22 = vld [vmem:[%s2135_s11 + $0x210] sm:$0xff]  ;;  %v461_v26 = vld [vmem:[%s2135_s11 + $0x318] sm:$0xff]  ;;  %v446_v27 = vld [vmem:[%s2135_s11 + $0x2a0] sm:$0xff] }
  0x50   : > { %v460_v24 = vld [vmem:[%s2135_s11 + $0x310] sm:$0xff]  ;;  %v447_v28 = vld [vmem:[%s2135_s11 + $0x2a8] sm:$0xff]  ;;  %v478_v29 = vld [vmem:[%s2135_s11 + $0x3a0] sm:$0xff]  ;;  %v1724_v31 = vpack.c.bf16 %v429_v23, %v428_v22 }
  0x51   : > { %1681 = vmatpush3.bf16.msra.mxu0 %v1680_v57  ;;  %v479_v30 = vld [vmem:[%s2135_s11 + $0x3a8] sm:$0xff]  ;;  %v1756_v32 = vpack.c.bf16 %v461_v26, %v460_v24  ;;  %v1726_v33 = vpack.c.bf16 %v447_v28, %v446_v27  ;;  %v430_v34 = vld [vmem:[%s2135_s11 + $0x220] sm:$0xff]  ;;  %v448_v39 = vld [vmem:[%s2135_s11 + $0x2b0] sm:$0xff] }
  0x52   : > { %1713 = vmatpush3.bf16.msra.mxu1 %v1712_v58  ;;  %1683 = vmatprep.subr.bf16.mxu0 %v1682_v59  ;;  %v431_v35 = vld [vmem:[%s2135_s11 + $0x228] sm:$0xff]  ;;  %v462_v36 = vld [vmem:[%s2135_s11 + $0x320] sm:$0xff]  ;;  %v1758_v37 = vpack.c.bf16 %v479_v30, %v478_v29  ;;  %v449_v40 = vld [vmem:[%s2135_s11 + $0x2b8] sm:$0xff] }
  0x53   : > { %1715 = vmatprep.subr.bf16.mxu1 %v1714_v63  ;;  %v463_v38 = vld [vmem:[%s2135_s11 + $0x328] sm:$0xff]  ;;  %v432_v41 = vld [vmem:[%s2135_s11 + $0x230] sm:$0xff]  ;;  %v481_v43 = vld [vmem:[%s2135_s11 + $0x3b8] sm:$0xff]  ;;  %v1728_v44 = vpack.c.bf16 %v431_v35, %v430_v34  ;;  %v1730_v49 = vpack.c.bf16 %v449_v40, %v448_v39 }
  0x54   : > { %v480_v42 = vld [vmem:[%s2135_s11 + $0x3b0] sm:$0xff]  ;;  %v433_v45 = vld [vmem:[%s2135_s11 + $0x238] sm:$0xff]  ;;  %v1760_v48 = vpack.c.bf16 %v463_v38, %v462_v36  ;;  %v450_v50 = vld [vmem:[%s2135_s11 + $0x2c0] sm:$0xff] }
  0x55   : > { %1685 = vmatpush3.bf16.msra.mxu0 %v1684_v5  ;;  %v464_v46 = vld [vmem:[%s2135_s11 + $0x330] sm:$0xff]  ;;  %v465_v47 = vld [vmem:[%s2135_s11 + $0x338] sm:$0xff]  ;;  %v349_v52 = vld [vmem:[%s2137_s12 + $0x98] sm:$0xff]  ;;  %v1762_v53 = vpack.c.bf16 %v481_v43, %v480_v42  ;;  %v1732_v59 = vpack.c.bf16 %v433_v45, %v432_v41 }
  0x56   : > { %1717 = vmatpush3.bf16.msra.mxu1 %v1716_v6  ;;  %1719 = vmatprep.subr.bf16.mxu0 %v1718_v7  ;;  %v347_v51 = vld [vmem:[%s2137_s12 + $0x88] sm:$0xff]  ;;  %v451_v54 = vld [vmem:[%s2135_s11 + $0x2c8] sm:$0xff]  ;;  %v346_v55 = vld [vmem:[%s2137_s12 + $0x80] sm:$0xff]  ;;  %v1764_v62 = vpack.c.bf16 %v465_v47, %v464_v46 }
  0x57   : > { %1751 = vmatprep.subr.bf16.mxu1 %v1750_v11  ;;  %v348_v56 = vld [vmem:[%s2137_s12 + $0x90] sm:$0xff]  ;;  %v483_v58 = vld [vmem:[%s2135_s11 + $0x3c8] sm:$0xff]  ;;  %v1734_v63 = vpack.c.bf16 %v451_v54, %v450_v50  ;;  %v335_v2 = vld [vmem:[%s2137_s12 + $0x28] sm:$0xff] }
  0x58   : > { %683 = vmatmul.mubr.f32.vlgmr.msra.gmra.mrb[0].mxu0 %v330_v17  ;;  %v482_v57 = vld [vmem:[%s2135_s11 + $0x3c0] sm:$0xff]  ;;  %v435_v61 = vld [vmem:[%s2135_s11 + $0x248] sm:$0xff]  ;;  %v452_v4 = vld [vmem:[%s2135_s11 + $0x2d0] sm:$0xff] }
  0x59   : > { %758 = vmatmul.mubr.f32.vlgmr.msra.gmra.mrb[0].mxu1 %v332_v18  ;;  %1721 = vmatpush3.bf16.msra.mxu0 %v1720_v19  ;;  %v434_v60 = vld [vmem:[%s2135_s11 + $0x240] sm:$0xff]  ;;  %v467_v1 = vld [vmem:[%s2135_s11 + $0x348] sm:$0xff]  ;;  %v1766_v3 = vpack.c.bf16 %v483_v58, %v482_v57  ;;  %v453_v5 = vld [vmem:[%s2135_s11 + $0x2d8] sm:$0xff] }
  0x5a   : > { %1753 = vmatpush3.bf16.msra.mxu1 %v1752_v20  ;;  %1723 = vmatprep.subr.bf16.mxu0 %v1722_v21  ;;  %v466_v0 = vld [vmem:[%s2135_s11 + $0x340] sm:$0xff]  ;;  %v337_v6 = vld [vmem:[%s2137_s12 + $0x38] sm:$0xff]  ;;  %v484_v7 = vld [vmem:[%s2135_s11 + $0x3d0] sm:$0xff]  ;;  %v1736_v9 = vpack.c.bf16 %v435_v61, %v434_v60  ;;  %v1738_v11 = vpack.c.bf16 %v453_v5, %v452_v4 }
  0x5b   : > { %1755 = vmatprep.subr.bf16.mxu1 %v1754_v25  ;;  %687 = vmatprep.mubr.f32.mxu0 %v347_v51  ;;  %v485_v8 = vld [vmem:[%s2135_s11 + $0x3d8] sm:$0xff]  ;;  %v1768_v10 = vpack.c.bf16 %v467_v1, %v466_v0  ;;  %v436_v12 = vld [vmem:[%s2135_s11 + $0x250] sm:$0xff]  ;;  %v454_v17 = vld [vmem:[%s2135_s11 + $0x2e0] sm:$0xff] }
  0x5c   : > { %762 = vmatprep.mubr.f32.mxu1 %v349_v52  ;;  %688 = vmatmul.mubr.f32.gmra.mrb[2].mxu0 %v346_v55  ;;  %v437_v13 = vld [vmem:[%s2135_s11 + $0x258] sm:$0xff]  ;;  %v468_v14 = vld [vmem:[%s2135_s11 + $0x350] sm:$0xff]  ;;  %v1770_v15 = vpack.c.bf16 %v485_v8, %v484_v7  ;;  %v455_v18 = vld [vmem:[%s2135_s11 + $0x2e8] sm:$0xff] }
  0x5d   : > { %1725 = vmatpush3.bf16.msra.mxu0 %v1724_v31  ;;  %763 = vmatmul.mubr.f32.gmra.mrb[2].mxu1 %v348_v56  ;;  %v469_v16 = vld [vmem:[%s2135_s11 + $0x358] sm:$0xff]  ;;  %v486_v19 = vld [vmem:[%s2135_s11 + $0x3e0] sm:$0xff]  ;;  %v487_v20 = vld [vmem:[%s2135_s11 + $0x3e8] sm:$0xff]  ;;  %v1740_v21 = vpack.c.bf16 %v437_v13, %v436_v12  ;;  %v1742_v23 = vpack.c.bf16 %v455_v18, %v454_v17 }
  0x5e   : > { %1757 = vmatpush3.bf16.msra.mxu1 %v1756_v32  ;;  %1727 = vmatprep.subr.bf16.mxu0 %v1726_v33  ;;  %v1772_v22 = vpack.c.bf16 %v469_v16, %v468_v14  ;;  %v438_v24 = vld [vmem:[%s2135_s11 + $0x260] sm:$0xff]  ;;  %v439_v25 = vld [vmem:[%s2135_s11 + $0x268] sm:$0xff]  ;;  %v1774_v27 = vpack.c.bf16 %v487_v20, %v486_v19  ;;  %v456_v29 = vld [vmem:[%s2135_s11 + $0x2f0] sm:$0xff] }
  0x5f   : > { %1759 = vmatprep.subr.bf16.mxu1 %v1758_v37  ;;  %832 = vmatprep.mubr.f32.mxu0 %v335_v2  ;;  %v470_v26 = vld [vmem:[%s2135_s11 + $0x360] sm:$0xff]  ;;  %v471_v28 = vld [vmem:[%s2135_s11 + $0x368] sm:$0xff]  ;;  %v457_v30 = vld [vmem:[%s2135_s11 + $0x2f8] sm:$0xff]  ;;  %v1744_v33 = vpack.c.bf16 %v439_v25, %v438_v24 }
  0x60   : > { %907 = vmatprep.mubr.f32.mxu1 %v337_v6  ;;  %v488_v31 = vld [vmem:[%s2135_s11 + $0x3f0] sm:$0xff]  ;;  %v489_v32 = vld [vmem:[%s2135_s11 + $0x3f8] sm:$0xff]  ;;  %v1776_v34 = vpack.c.bf16 %v471_v28, %v470_v26  ;;  %v1746_v35 = vpack.c.bf16 %v457_v30, %v456_v29  ;;  %v506_v41 = vld [vmem:[%s2135_s11 + $0x480] sm:$0xff] }
  0x61   : > { %1729 = vmatpush3.bf16.msra.mxu0 %v1728_v44  ;;  %v440_v36 = vld [vmem:[%s2135_s11 + $0x270] sm:$0xff]  ;;  %v441_v37 = vld [vmem:[%s2135_s11 + $0x278] sm:$0xff]  ;;  %v1778_v39 = vpack.c.bf16 %v489_v32, %v488_v31  ;;  %v507_v42 = vld [vmem:[%s2135_s11 + $0x488] sm:$0xff] }
  0x62   : > { %1761 = vmatpush3.bf16.msra.mxu1 %v1760_v48  ;;  %1731 = vmatprep.subr.bf16.mxu0 %v1730_v49  ;;  %v472_v38 = vld [vmem:[%s2135_s11 + $0x370] sm:$0xff]  ;;  %v473_v40 = vld [vmem:[%s2135_s11 + $0x378] sm:$0xff]  ;;  %v538_v43 = vld [vmem:[%s2135_s11 + $0x580] sm:$0xff]  ;;  %v1748_v45 = vpack.c.bf16 %v441_v37, %v440_v36  ;;  %v1782_v47 = vpack.c.bf16 %v507_v42, %v506_v41 }
  0x63   : > { %1763 = vmatprep.subr.bf16.mxu1 %v1762_v53  ;;  %v539_v44 = vld [vmem:[%s2135_s11 + $0x588] sm:$0xff]  ;;  %v1780_v46 = vpack.c.bf16 %v473_v40, %v472_v38  ;;  %v490_v48 = vld [vmem:[%s2135_s11 + $0x400] sm:$0xff]  ;;  %v334_v50 = vld [vmem:[%s2137_s12 + $0x20] sm:$0xff] }
  0x64   : > { %v491_v49 = vld [vmem:[%s2135_s11 + $0x408] sm:$0xff]  ;;  %v1814_v51 = vpack.c.bf16 %v539_v44, %v538_v43  ;;  %v522_v52 = vld [vmem:[%s2135_s11 + $0x500] sm:$0xff]  ;;  %v508_v55 = vld [vmem:[%s2135_s11 + $0x490] sm:$0xff] }
  0x65   : > { %1733 = vmatpush3.bf16.msra.mxu0 %v1732_v59  ;;  %v523_v53 = vld [vmem:[%s2135_s11 + $0x508] sm:$0xff]  ;;  %v336_v54 = vld [vmem:[%s2137_s12 + $0x30] sm:$0xff]  ;;  %v509_v56 = vld [vmem:[%s2135_s11 + $0x498] sm:$0xff]  ;;  %v1784_v57 = vpack.c.bf16 %v491_v49, %v490_v48 }
  0x66   : > { %1765 = vmatpush3.bf16.msra.mxu1 %v1764_v62  ;;  %1735 = vmatprep.subr.bf16.mxu0 %v1734_v63  ;;  %v351_v58 = vld [vmem:[%s2137_s12 + $0xa8] sm:$0xff]  ;;  %v540_v59 = vld [vmem:[%s2135_s11 + $0x590] sm:$0xff]  ;;  %v1816_v61 = vpack.c.bf16 %v523_v53, %v522_v52  ;;  %v1786_v1 = vpack.c.bf16 %v509_v56, %v508_v55  ;;  %v511_v4 = vld [vmem:[%s2135_s11 + $0x4a8] sm:$0xff] }
  0x67   : > { %1767 = vmatprep.subr.bf16.mxu1 %v1766_v3  ;;  %v541_v60 = vld [vmem:[%s2135_s11 + $0x598] sm:$0xff]  ;;  %v492_v62 = vld [vmem:[%s2135_s11 + $0x410] sm:$0xff]  ;;  %v510_v3 = vld [vmem:[%s2135_s11 + $0x4a0] sm:$0xff] }
  0x68   : > { %v493_v63 = vld [vmem:[%s2135_s11 + $0x418] sm:$0xff]  ;;  %v524_v0 = vld [vmem:[%s2135_s11 + $0x510] sm:$0xff]  ;;  %v353_v5 = vld [vmem:[%s2137_s12 + $0xb8] sm:$0xff]  ;;  %v1818_v6 = vpack.c.bf16 %v541_v60, %v540_v59  ;;  %v1790_v13 = vpack.c.bf16 %v511_v4, %v510_v3 }
  0x69   : > { %1737 = vmatpush3.bf16.msra.mxu0 %v1736_v9  ;;  %v525_v2 = vld [vmem:[%s2135_s11 + $0x518] sm:$0xff]  ;;  %v542_v7 = vld [vmem:[%s2135_s11 + $0x5a0] sm:$0xff]  ;;  %v543_v8 = vld [vmem:[%s2135_s11 + $0x5a8] sm:$0xff] }
  0x6a   : > { %1769 = vmatpush3.bf16.msra.mxu1 %v1768_v10  ;;  %1739 = vmatprep.subr.bf16.mxu0 %v1738_v11  ;;  %v350_v9 = vld [vmem:[%s2137_s12 + $0xa0] sm:$0xff]  ;;  %v1788_v10 = vpack.c.bf16 %v493_v63, %v492_v62  ;;  %v352_v11 = vld [vmem:[%s2137_s12 + $0xb0] sm:$0xff]  ;;  %v1820_v12 = vpack.c.bf16 %v525_v2, %v524_v0  ;;  %v1822_v17 = vpack.c.bf16 %v543_v8, %v542_v7  ;;  %v527_v18 = vld [vmem:[%s2135_s11 + $0x528] sm:$0xff] }
  0x6b   : > { %1771 = vmatprep.subr.bf16.mxu1 %v1770_v15  ;;  %v494_v14 = vld [vmem:[%s2135_s11 + $0x420] sm:$0xff]  ;;  %v495_v15 = vld [vmem:[%s2135_s11 + $0x428] sm:$0xff]  ;;  %v512_v19 = vld [vmem:[%s2135_s11 + $0x4b0] sm:$0xff] }
  0x6c   : > { %v526_v16 = vld [vmem:[%s2135_s11 + $0x520] sm:$0xff]  ;;  %v513_v20 = vld [vmem:[%s2135_s11 + $0x4b8] sm:$0xff]  ;;  %v1792_v24 = vpack.c.bf16 %v495_v15, %v494_v14  ;;  %v341_v25 = vld [vmem:[%s2137_s12 + $0x58] sm:$0xff] }
  0x6d   : > { %1741 = vmatpush3.bf16.msra.mxu0 %v1740_v21  ;;  %v544_v21 = vld [vmem:[%s2135_s11 + $0x5b0] sm:$0xff]  ;;  %v1824_v26 = vpack.c.bf16 %v527_v18, %v526_v16  ;;  %v497_v29 = vld [vmem:[%s2135_s11 + $0x438] sm:$0xff]  ;;  %v547_v36 = vld [vmem:[%s2135_s11 + $0x5c8] sm:$0xff] }
  0x6e   : > { %1773 = vmatpush3.bf16.msra.mxu1 %v1772_v22  ;;  %1743 = vmatprep.subr.bf16.mxu0 %v1742_v23  ;;  %v545_v22 = vld [vmem:[%s2135_s11 + $0x5b8] sm:$0xff]  ;;  %v496_v28 = vld [vmem:[%s2135_s11 + $0x430] sm:$0xff]  ;;  %v498_v40 = vld [vmem:[%s2135_s11 + $0x440] sm:$0xff] }
  0x6f   : > { %1775 = vmatprep.subr.bf16.mxu1 %v1774_v27  ;;  %v339_v23 = vld [vmem:[%s2137_s12 + $0x48] sm:$0xff]  ;;  %v1794_v27 = vpack.c.bf16 %v513_v20, %v512_v19  ;;  %v528_v30 = vld [vmem:[%s2135_s11 + $0x530] sm:$0xff]  ;;  %v1826_v31 = vpack.c.bf16 %v545_v22, %v544_v21  ;;  %v1796_v37 = vpack.c.bf16 %v497_v29, %v496_v28  ;;  %v499_v41 = vld [vmem:[%s2135_s11 + $0x448] sm:$0xff] }
  0x70   : > { %v529_v32 = vld [vmem:[%s2135_s11 + $0x538] sm:$0xff]  ;;  %v530_v42 = vld [vmem:[%s2135_s11 + $0x540] sm:$0xff]  ;;  %v531_v44 = vld [vmem:[%s2135_s11 + $0x548] sm:$0xff]  ;;  %v1800_v49 = vpack.c.bf16 %v499_v41, %v498_v40 }
  0x71   : > { %1745 = vmatpush3.bf16.msra.mxu0 %v1744_v33  ;;  %v514_v33 = vld [vmem:[%s2135_s11 + $0x4c0] sm:$0xff]  ;;  %v1828_v38 = vpack.c.bf16 %v529_v32, %v528_v30  ;;  %v549_v48 = vld [vmem:[%s2135_s11 + $0x5d8] sm:$0xff]  ;;  %v500_v52 = vld [vmem:[%s2135_s11 + $0x450] sm:$0xff] }
  0x72   : > { %1777 = vmatpush3.bf16.msra.mxu1 %v1776_v34  ;;  %1747 = vmatprep.subr.bf16.mxu0 %v1746_v35  ;;  %v515_v34 = vld [vmem:[%s2135_s11 + $0x4c8] sm:$0xff]  ;;  %v546_v35 = vld [vmem:[%s2135_s11 + $0x5c0] sm:$0xff]  ;;  %v501_v53 = vld [vmem:[%s2135_s11 + $0x458] sm:$0xff] }
  0x73   : > { %1779 = vmatprep.subr.bf16.mxu1 %v1778_v39  ;;  %v1798_v39 = vpack.c.bf16 %v515_v34, %v514_v33  ;;  %v1830_v43 = vpack.c.bf16 %v547_v36, %v546_v35  ;;  %v533_v56 = vld [vmem:[%s2135_s11 + $0x558] sm:$0xff]  ;;  %v550_v59 = vld [vmem:[%s2135_s11 + $0x5e0] sm:$0xff]  ;;  %v551_v60 = vld [vmem:[%s2135_s11 + $0x5e8] sm:$0xff] }
  0x74   : > { %v502_v0 = vld [vmem:[%s2135_s11 + $0x460] sm:$0xff]  ;;  %v1838_v3 = vpack.c.bf16 %v551_v60, %v550_v59  ;;  %v535_v4 = vld [vmem:[%s2135_s11 + $0x568] sm:$0xff]  ;;  %v552_v7 = vld [vmem:[%s2135_s11 + $0x5f0] sm:$0xff] }
  0x75   : > { %1749 = vmatpush3.bf16.msra.mxu0 %v1748_v45  ;;  %v516_v45 = vld [vmem:[%s2135_s11 + $0x4d0] sm:$0xff]  ;;  %v534_v2 = vld [vmem:[%s2135_s11 + $0x560] sm:$0xff]  ;;  %v553_v8 = vld [vmem:[%s2135_s11 + $0x5f8] sm:$0xff] }
  0x76   : > { %1781 = vmatpush3.bf16.msra.mxu1 %v1780_v46  ;;  %1783 = vmatprep.subr.bf16.mxu0 %v1782_v47  ;;  %v517_v46 = vld [vmem:[%s2135_s11 + $0x4d8] sm:$0xff]  ;;  %v548_v47 = vld [vmem:[%s2135_s11 + $0x5d0] sm:$0xff]  ;;  %v1842_v15 = vpack.c.bf16 %v553_v8, %v552_v7  ;;  %v571_v18 = vld [vmem:[%s2135_s11 + $0x688] sm:$0xff] }
  0x77   : > { %1815 = vmatprep.subr.bf16.mxu1 %v1814_v51  ;;  %v1802_v51 = vpack.c.bf16 %v517_v46, %v516_v45  ;;  %v1834_v55 = vpack.c.bf16 %v549_v48, %v548_v47  ;;  %v536_v14 = vld [vmem:[%s2135_s11 + $0x570] sm:$0xff]  ;;  %v537_v16 = vld [vmem:[%s2135_s11 + $0x578] sm:$0xff]  ;;  %v602_v19 = vld [vmem:[%s2135_s11 + $0x780] sm:$0xff] }
  0x78   : > { %833 = vmatmul.mubr.f32.vlgmr.msra.gmra.mrb[4].mxu0 %v334_v50  ;;  %v1832_v50 = vpack.c.bf16 %v531_v44, %v530_v42  ;;  %v603_v20 = vld [vmem:[%s2135_s11 + $0x788] sm:$0xff]  ;;  %v1844_v22 = vpack.c.bf16 %v537_v16, %v536_v14  ;;  %v586_v28 = vld [vmem:[%s2135_s11 + $0x700] sm:$0xff]  ;;  %v573_v32 = vld [vmem:[%s2135_s11 + $0x698] sm:$0xff] }
  0x79   : > { %1785 = vmatpush3.bf16.msra.mxu0 %v1784_v57  ;;  %908 = vmatmul.mubr.f32.vlgmr.msra.gmra.mrb[4].mxu1 %v336_v54  ;;  %v532_v54 = vld [vmem:[%s2135_s11 + $0x550] sm:$0xff]  ;;  %v518_v57 = vld [vmem:[%s2135_s11 + $0x4e0] sm:$0xff]  ;;  %v587_v29 = vld [vmem:[%s2135_s11 + $0x708] sm:$0xff] }
  0x7a   : > { %1817 = vmatpush3.bf16.msra.mxu1 %v1816_v61  ;;  %837 = vmatprep.mubr.f32.mxu0 %v351_v58  ;;  %v519_v58 = vld [vmem:[%s2135_s11 + $0x4e8] sm:$0xff]  ;;  %v1804_v61 = vpack.c.bf16 %v501_v53, %v500_v52  ;;  %v1836_v62 = vpack.c.bf16 %v533_v56, %v532_v54  ;;  %v340_v30 = vld [vmem:[%s2137_s12 + $0x50] sm:$0xff]  ;;  %v355_v34 = vld [vmem:[%s2137_s12 + $0xc8] sm:$0xff] }
  0x7b   : > { %1787 = vmatprep.subr.bf16.mxu0 %v1786_v1  ;;  %912 = vmatprep.mubr.f32.mxu1 %v353_v5  ;;  %v1806_v63 = vpack.c.bf16 %v519_v58, %v518_v57  ;;  %v503_v1 = vld [vmem:[%s2135_s11 + $0x468] sm:$0xff]  ;;  %v520_v5 = vld [vmem:[%s2135_s11 + $0x4f0] sm:$0xff]  ;;  %v605_v36 = vld [vmem:[%s2135_s11 + $0x798] sm:$0xff] }
  0x7c   : > { %838 = vmatmul.mubr.f32.gmra.mrb[6].mxu0 %v350_v9  ;;  %1819 = vmatprep.subr.bf16.mxu1 %v1818_v6  ;;  %v521_v6 = vld [vmem:[%s2135_s11 + $0x4f8] sm:$0xff]  ;;  %v1808_v9 = vpack.c.bf16 %v503_v1, %v502_v0  ;;  %v604_v35 = vld [vmem:[%s2135_s11 + $0x790] sm:$0xff]  ;;  %v575_v44 = vld [vmem:[%s2135_s11 + $0x6a8] sm:$0xff] }
  0x7d   : > { %1789 = vmatpush3.bf16.msra.mxu0 %v1788_v10  ;;  %913 = vmatmul.mubr.f32.gmra.mrb[6].mxu1 %v352_v11  ;;  %v1840_v10 = vpack.c.bf16 %v535_v4, %v534_v2  ;;  %v1810_v11 = vpack.c.bf16 %v521_v6, %v520_v5  ;;  %v588_v40 = vld [vmem:[%s2135_s11 + $0x710] sm:$0xff]  ;;  %v589_v42 = vld [vmem:[%s2135_s11 + $0x718] sm:$0xff]  ;;  %v357_v45 = vld [vmem:[%s2137_s12 + $0xd8] sm:$0xff]  ;;  %v1882_v46 = vpack.c.bf16 %v605_v36, %v604_v35 }
  0x7e   : > { %1821 = vmatpush3.bf16.msra.mxu1 %v1820_v12  ;;  %1791 = vmatprep.subr.bf16.mxu0 %v1790_v13  ;;  %v504_v12 = vld [vmem:[%s2135_s11 + $0x470] sm:$0xff]  ;;  %v505_v13 = vld [vmem:[%s2135_s11 + $0x478] sm:$0xff]  ;;  %v606_v47 = vld [vmem:[%s2135_s11 + $0x7a0] sm:$0xff]  ;;  %v1884_v52 = vpack.c.bf16 %v589_v42, %v588_v40 }
  0x7f   : > { %1823 = vmatprep.subr.bf16.mxu1 %v1822_v17  ;;  %982 = vmatprep.mubr.f32.mxu0 %v339_v23  ;;  %v570_v17 = vld [vmem:[%s2135_s11 + $0x680] sm:$0xff]  ;;  %v1812_v21 = vpack.c.bf16 %v505_v13, %v504_v12  ;;  %v607_v48 = vld [vmem:[%s2135_s11 + $0x7a8] sm:$0xff]  ;;  %v576_v59 = vld [vmem:[%s2135_s11 + $0x6b0] sm:$0xff] }
  0x80   : > { %1057 = vmatprep.mubr.f32.mxu1 %v341_v25  ;;  %v1846_v23 = vpack.c.bf16 %v571_v18, %v570_v17  ;;  %v555_v25 = vld [vmem:[%s2135_s11 + $0x608] sm:$0xff]  ;;  %v558_v54 = vld [vmem:[%s2135_s11 + $0x620] sm:$0xff]  ;;  %v1886_v57 = vpack.c.bf16 %v607_v48, %v606_v47  ;;  %v577_v60 = vld [vmem:[%s2135_s11 + $0x6b8] sm:$0xff] }
  0x81   : > { %1793 = vmatpush3.bf16.msra.mxu0 %v1792_v24  ;;  %v554_v24 = vld [vmem:[%s2135_s11 + $0x600] sm:$0xff]  ;;  %v591_v58 = vld [vmem:[%s2135_s11 + $0x728] sm:$0xff]  ;;  %v560_v4 = vld [vmem:[%s2135_s11 + $0x630] sm:$0xff] }
  0x82   : > { %1825 = vmatpush3.bf16.msra.mxu1 %v1824_v26  ;;  %1795 = vmatprep.subr.bf16.mxu0 %v1794_v27  ;;  %v338_v26 = vld [vmem:[%s2137_s12 + $0x40] sm:$0xff]  ;;  %v1878_v27 = vpack.c.bf16 %v603_v20, %v602_v19  ;;  %v1848_v33 = vpack.c.bf16 %v555_v25, %v554_v24  ;;  %v590_v56 = vld [vmem:[%s2135_s11 + $0x720] sm:$0xff]  ;;  %v345_v1 = vld [vmem:[%s2137_s12 + $0x78] sm:$0xff] }
  0x83   : > { %1827 = vmatprep.subr.bf16.mxu1 %v1826_v31  ;;  %v572_v31 = vld [vmem:[%s2135_s11 + $0x690] sm:$0xff]  ;;  %v1888_v2 = vpack.c.bf16 %v591_v58, %v590_v56  ;;  %v561_v5 = vld [vmem:[%s2135_s11 + $0x638] sm:$0xff]  ;;  %v611_v12 = vld [vmem:[%s2135_s11 + $0x7c8] sm:$0xff] }
  0x84   : > { %v1850_v41 = vpack.c.bf16 %v573_v32, %v572_v31  ;;  %v592_v6 = vld [vmem:[%s2135_s11 + $0x730] sm:$0xff]  ;;  %v593_v8 = vld [vmem:[%s2135_s11 + $0x738] sm:$0xff]  ;;  %v1860_v13 = vpack.c.bf16 %v561_v5, %v560_v4  ;;  %v562_v16 = vld [vmem:[%s2135_s11 + $0x640] sm:$0xff] }
  0x85   : > { %1797 = vmatpush3.bf16.msra.mxu0 %v1796_v37  ;;  %v1880_v37 = vpack.c.bf16 %v587_v29, %v586_v28  ;;  %v1892_v14 = vpack.c.bf16 %v593_v8, %v592_v6  ;;  %v563_v17 = vld [vmem:[%s2135_s11 + $0x648] sm:$0xff]  ;;  %v594_v18 = vld [vmem:[%s2135_s11 + $0x740] sm:$0xff]  ;;  %v613_v24 = vld [vmem:[%s2135_s11 + $0x7d8] sm:$0xff] }
  0x86   : > { %1829 = vmatpush3.bf16.msra.mxu1 %v1828_v38  ;;  %1799 = vmatprep.subr.bf16.mxu0 %v1798_v39  ;;  %v556_v38 = vld [vmem:[%s2135_s11 + $0x610] sm:$0xff]  ;;  %v557_v39 = vld [vmem:[%s2135_s11 + $0x618] sm:$0xff]  ;;  %v595_v20 = vld [vmem:[%s2135_s11 + $0x748] sm:$0xff]  ;;  %v1864_v25 = vpack.c.bf16 %v563_v17, %v562_v16 }
  0x87   : > { %1831 = vmatprep.subr.bf16.mxu1 %v1830_v43  ;;  %v574_v43 = vld [vmem:[%s2135_s11 + $0x6a0] sm:$0xff]  ;;  %v564_v28 = vld [vmem:[%s2135_s11 + $0x650] sm:$0xff]  ;;  %v565_v29 = vld [vmem:[%s2135_s11 + $0x658] sm:$0xff] }
  0x88   : > { %v1854_v53 = vpack.c.bf16 %v575_v44, %v574_v43  ;;  %v597_v32 = vld [vmem:[%s2135_s11 + $0x758] sm:$0xff]  ;;  %v614_v35 = vld [vmem:[%s2135_s11 + $0x7e0] sm:$0xff]  ;;  %v615_v36 = vld [vmem:[%s2135_s11 + $0x7e8] sm:$0xff] }
  0x89   : > { %1801 = vmatpush3.bf16.msra.mxu0 %v1800_v49  ;;  %v354_v49 = vld [vmem:[%s2137_s12 + $0xc0] sm:$0xff]  ;;  %v566_v40 = vld [vmem:[%s2135_s11 + $0x660] sm:$0xff]  ;;  %v1902_v43 = vpack.c.bf16 %v615_v36, %v614_v35  ;;  %v599_v44 = vld [vmem:[%s2135_s11 + $0x768] sm:$0xff] }
  0x8a   : > { %1833 = vmatpush3.bf16.msra.mxu1 %v1832_v50  ;;  %1803 = vmatprep.subr.bf16.mxu0 %v1802_v51  ;;  %v1852_v50 = vpack.c.bf16 %v557_v39, %v556_v38  ;;  %v356_v51 = vld [vmem:[%s2137_s12 + $0xd0] sm:$0xff]  ;;  %v616_v47 = vld [vmem:[%s2135_s11 + $0x7f0] sm:$0xff]  ;;  %v617_v48 = vld [vmem:[%s2135_s11 + $0x7f8] sm:$0xff] }
  0x8b   : > { %1835 = vmatprep.subr.bf16.mxu1 %v1834_v55  ;;  %v559_v55 = vld [vmem:[%s2135_s11 + $0x628] sm:$0xff]  ;;  %v598_v42 = vld [vmem:[%s2135_s11 + $0x760] sm:$0xff]  ;;  %v601_v56 = vld [vmem:[%s2135_s11 + $0x778] sm:$0xff] }
  0x8c   : > { %v1856_v0 = vpack.c.bf16 %v559_v55, %v558_v54  ;;  %v1906_v54 = vpack.c.bf16 %v617_v48, %v616_v47  ;;  %v600_v55 = vld [vmem:[%s2135_s11 + $0x770] sm:$0xff] }
  0x8d   : > { %1805 = vmatpush3.bf16.msra.mxu0 %v1804_v61  ;;  %v608_v61 = vld [vmem:[%s2135_s11 + $0x7b0] sm:$0xff]  ;;  %v1908_v58 = vpack.c.bf16 %v601_v56, %v600_v55  ;;  %v328_v55 = vld [vmem:[#allocation2] sm:$0xff] }
  0x8e   : > { %1837 = vmatpush3.bf16.msra.mxu1 %v1836_v62  ;;  %1807 = vmatprep.subr.bf16.mxu0 %v1806_v63  ;;  %v609_v62 = vld [vmem:[%s2135_s11 + $0x7b8] sm:$0xff] }
  0x8f   : > { %1839 = vmatprep.subr.bf16.mxu1 %v1838_v3  ;;  %v343_v63 = vld [vmem:[%s2137_s12 + $0x68] sm:$0xff]  ;;  %v1858_v3 = vpack.c.bf16 %v577_v60, %v576_v59  ;;  %v1890_v7 = vpack.c.bf16 %v609_v62, %v608_v61  ;;  %v342_v59 = vld [vmem:[%s2137_s12 + $0x60] sm:$0xff]  ;;  %v344_v60 = vld [vmem:[%s2137_s12 + $0x70] sm:$0xff] }
  0x90   : > { %v359_v61 = vld [vmem:[%s2137_s12 + $0xe8] sm:$0xff]  ;;  %v361_v62 = vld [vmem:[%s2137_s12 + $0xf8] sm:$0xff] }
  0x91   : > { %1809 = vmatpush3.bf16.msra.mxu0 %v1808_v9  ;;  %v578_v9 = vld [vmem:[%s2135_s11 + $0x6c0] sm:$0xff] }
  0x92   : > { %1841 = vmatpush3.bf16.msra.mxu1 %v1840_v10  ;;  %1811 = vmatprep.subr.bf16.mxu0 %v1810_v11  ;;  %v579_v10 = vld [vmem:[%s2135_s11 + $0x6c8] sm:$0xff]  ;;  %v610_v11 = vld [vmem:[%s2135_s11 + $0x7c0] sm:$0xff] }
  0x93   : > { %1843 = vmatprep.subr.bf16.mxu1 %v1842_v15  ;;  %v1862_v15 = vpack.c.bf16 %v579_v10, %v578_v9  ;;  %v1894_v19 = vpack.c.bf16 %v611_v12, %v610_v11 }
  0x95   : > { %1813 = vmatpush3.bf16.msra.mxu0 %v1812_v21  ;;  %v580_v21 = vld [vmem:[%s2135_s11 + $0x6d0] sm:$0xff] }
  0x96   : > { %1845 = vmatpush3.bf16.msra.mxu1 %v1844_v22  ;;  %1847 = vmatprep.subr.bf16.mxu0 %v1846_v23  ;;  %v581_v22 = vld [vmem:[%s2135_s11 + $0x6d8] sm:$0xff]  ;;  %v612_v23 = vld [vmem:[%s2135_s11 + $0x7d0] sm:$0xff] }
  0x97   : > { %1879 = vmatprep.subr.bf16.mxu1 %v1878_v27  ;;  %v1866_v27 = vpack.c.bf16 %v581_v22, %v580_v21  ;;  %v1898_v31 = vpack.c.bf16 %v613_v24, %v612_v23 }
  0x98   : > { %983 = vmatmul.mubr.f32.vlgmr.msra.gmra.mrb[8].mxu0 %v338_v26  ;;  %v1896_v26 = vpack.c.bf16 %v595_v20, %v594_v18 }
  0x99   : > { %1849 = vmatpush3.bf16.msra.mxu0 %v1848_v33  ;;  %1058 = vmatmul.mubr.f32.vlgmr.msra.gmra.mrb[8].mxu1 %v340_v30  ;;  %v596_v30 = vld [vmem:[%s2135_s11 + $0x750] sm:$0xff]  ;;  %v582_v33 = vld [vmem:[%s2135_s11 + $0x6e0] sm:$0xff] }
  0x9a   : > { %1881 = vmatpush3.bf16.msra.mxu1 %v1880_v37  ;;  %987 = vmatprep.mubr.f32.mxu0 %v355_v34  ;;  %v583_v34 = vld [vmem:[%s2135_s11 + $0x6e8] sm:$0xff]  ;;  %v1868_v37 = vpack.c.bf16 %v565_v29, %v564_v28  ;;  %v1900_v38 = vpack.c.bf16 %v597_v32, %v596_v30 }
  0x9b   : > { %1851 = vmatprep.subr.bf16.mxu0 %v1850_v41  ;;  %1062 = vmatprep.mubr.f32.mxu1 %v357_v45  ;;  %v1870_v39 = vpack.c.bf16 %v583_v34, %v582_v33  ;;  %v567_v41 = vld [vmem:[%s2135_s11 + $0x668] sm:$0xff]  ;;  %v584_v45 = vld [vmem:[%s2135_s11 + $0x6f0] sm:$0xff] }
  0x9c   : > { %988 = vmatmul.mubr.f32.gmra.mrb[10].mxu0 %v354_v49  ;;  %1883 = vmatprep.subr.bf16.mxu1 %v1882_v46  ;;  %v585_v46 = vld [vmem:[%s2135_s11 + $0x6f8] sm:$0xff]  ;;  %v1872_v49 = vpack.c.bf16 %v567_v41, %v566_v40 }
  0x9d   : > { %1853 = vmatpush3.bf16.msra.mxu0 %v1852_v50  ;;  %1063 = vmatmul.mubr.f32.gmra.mrb[10].mxu1 %v356_v51  ;;  %v1904_v50 = vpack.c.bf16 %v599_v44, %v598_v42  ;;  %v1874_v51 = vpack.c.bf16 %v585_v46, %v584_v45 }
  0x9e   : > { %1885 = vmatpush3.bf16.msra.mxu1 %v1884_v52  ;;  %1855 = vmatprep.subr.bf16.mxu0 %v1854_v53  ;;  %v568_v52 = vld [vmem:[%s2135_s11 + $0x670] sm:$0xff]  ;;  %v569_v53 = vld [vmem:[%s2135_s11 + $0x678] sm:$0xff] }
  0x9f   : > { %1887 = vmatprep.subr.bf16.mxu1 %v1886_v57  ;;  %1132 = vmatprep.mubr.f32.mxu0 %v343_v63  ;;  %v1876_v57 = vpack.c.bf16 %v569_v53, %v568_v52  ;;  %v358_v63 = vld [vmem:[%s2137_s12 + $0xe0] sm:$0xff] }
  0xa0   : > { %1207 = vmatprep.mubr.f32.mxu1 %v345_v1 }
  0xa1   : > { %1857 = vmatpush3.bf16.msra.mxu0 %v1856_v0  ;;  %v360_v0 = vld [vmem:[%s2137_s12 + $0xf0] sm:$0xff] }
  0xa2   : > { %1889 = vmatpush3.bf16.msra.mxu1 %v1888_v2  ;;  %1859 = vmatprep.subr.bf16.mxu0 %v1858_v3 }
  0xa3   : > { %1891 = vmatprep.subr.bf16.mxu1 %v1890_v7 }
  0xa5   : > { %1861 = vmatpush3.bf16.msra.mxu0 %v1860_v13 }
  0xa6   : > { %1893 = vmatpush3.bf16.msra.mxu1 %v1892_v14  ;;  %1863 = vmatprep.subr.bf16.mxu0 %v1862_v15 }
  0xa7   : > { %1895 = vmatprep.subr.bf16.mxu1 %v1894_v19 }
  0xa9   : > { %1865 = vmatpush3.bf16.msra.mxu0 %v1864_v25 }
  0xaa   : > { %1897 = vmatpush3.bf16.msra.mxu1 %v1896_v26  ;;  %1867 = vmatprep.subr.bf16.mxu0 %v1866_v27 }
  0xab   : > { %1899 = vmatprep.subr.bf16.mxu1 %v1898_v31 }
  0xad   : > { %1869 = vmatpush3.bf16.msra.mxu0 %v1868_v37 }
  0xae   : > { %1901 = vmatpush3.bf16.msra.mxu1 %v1900_v38  ;;  %1871 = vmatprep.subr.bf16.mxu0 %v1870_v39 }
  0xaf   : > { %1903 = vmatprep.subr.bf16.mxu1 %v1902_v43 }
  0xb1   : > { %1873 = vmatpush3.bf16.msra.mxu0 %v1872_v49 }
  0xb2   : > { %1905 = vmatpush3.bf16.msra.mxu1 %v1904_v50  ;;  %1875 = vmatprep.subr.bf16.mxu0 %v1874_v51 }
  0xb3   : > { %1907 = vmatprep.subr.bf16.mxu1 %v1906_v54 }
  0xb5   : > { %1877 = vmatpush3.bf16.msra.mxu0 %v1876_v57 }
  0xb6   : > { %1909 = vmatpush3.bf16.msra.mxu1 %v1908_v58 }
  0xb8   : > { %1133 = vmatmul.mubr.f32.vlgmr.msra.gmra.mrb[12].mxu0 %v342_v59 }
  0xb9   : > { %1208 = vmatmul.mubr.f32.vlgmr.msra.gmra.mrb[12].mxu1 %v344_v60  ;;  %1137 = vmatprep.mubr.f32.mxu0 %v359_v61 }
  0xba   : > { %1212 = vmatprep.mubr.f32.mxu1 %v361_v62 }
  0xbc   : > { %1138 = vmatmul.mubr.f32.gmra.mrb[14].mxu0 %v358_v63 }
  0xbd   : > { %1213 = vmatmul.mubr.f32.gmra.mrb[14].mxu1 %v360_v0  ;;  %v329_v0 = vld [vmem:[#allocation2 + $0x8] sm:$0xff] }
 0x12b   : > { %v1382_v1 = vpop.f32.mrb[0].mxu0 }
 0x12c   : > { %v1420_v2 = vpop.f32.mrb[0].mxu1  ;;  %v1383_v3 = vpop.f32.mrb[1].mxu0 }
 0x12d   : > { %v1384_v4 = vadd.f32 %v1383_v3, %v1382_v1  ;;  %v1421_v5 = vpop.f32.mrb[1].mxu1 }
 0x12e   : > { %v1422_v6 = vadd.f32 %v1421_v5, %v1420_v2  ;;  %v1344_v5 = vld [vmem:[%s2459_s3] ss:$0 sm:$0xff] (!%p1342_p11) }
 0x12f   : > { %v1385_v8 = vpop.f32.mrb[2].mxu0 }
 0x130   : > { %v760_v7 = vadd.f32 %v1422_v6, %v1384_v4  ;;  %v1423_v9 = vpop.f32.mrb[2].mxu1  ;;  %v1386_v10 = vpop.f32.mrb[3].mxu0  ;;  %v1343_v4 = vld [vmem:[%s2458_s2] ss:$0 sm:$0xff] (!%p1342_p11) }
 0x131   : > { %v1387_v11 = vadd.f32 %v1386_v10, %v1385_v8  ;;  %v1424_v12 = vpop.f32.mrb[3].mxu1 }
 0x132   : > { %v1425_v13 = vadd.f32 %v1424_v12, %v1423_v9 }
 0x134   : > { %v765_v14 = vadd.f32 %v1425_v13, %v1387_v11 }
 0x14b   : > { %v1458_v15 = vpop.f32.mrb[4].mxu0 }
 0x14c   : > { %v1459_v16 = vpop.f32.mrb[5].mxu0  ;;  %v1496_v17 = vpop.f32.mrb[4].mxu1 }
 0x14d   : > { %v1460_v18 = vadd.f32 %v1459_v16, %v1458_v15  ;;  %v1497_v19 = vpop.f32.mrb[5].mxu1 }
 0x14e   : > { %v1498_v20 = vadd.f32 %v1497_v19, %v1496_v17 }
 0x14f   : > { %v835_v21 = vadd.f32 %v1460_v18, %v760_v7  ;;  %v1461_v22 = vpop.f32.mrb[6].mxu0 }
 0x150   : > { %v1462_v23 = vpop.f32.mrb[7].mxu0  ;;  %v1499_v24 = vpop.f32.mrb[6].mxu1 }
 0x151   : > { %v910_v25 = vadd.f32 %v1498_v20, %v835_v21  ;;  %v1463_v26 = vadd.f32 %v1462_v23, %v1461_v22  ;;  %v1500_v27 = vpop.f32.mrb[7].mxu1 }
 0x152   : > { %v1501_v28 = vadd.f32 %v1500_v27, %v1499_v24 }
 0x153   : > { %v840_v29 = vadd.f32 %v1463_v26, %v765_v14 }
 0x155   : > { %v915_v30 = vadd.f32 %v1501_v28, %v840_v29 }
 0x16b   : > { %v1534_v31 = vpop.f32.mrb[8].mxu0 }
 0x16c   : > { %v1535_v32 = vpop.f32.mrb[9].mxu0  ;;  %v1572_v33 = vpop.f32.mrb[8].mxu1 }
 0x16d   : > { %v1536_v34 = vadd.f32 %v1535_v32, %v1534_v31  ;;  %v1573_v35 = vpop.f32.mrb[9].mxu1 }
 0x16e   : > { %v1574_v36 = vadd.f32 %v1573_v35, %v1572_v33 }
 0x16f   : > { %v985_v37 = vadd.f32 %v1536_v34, %v910_v25  ;;  %v1537_v38 = vpop.f32.mrb[10].mxu0 }
 0x170   : > { %v1538_v39 = vpop.f32.mrb[11].mxu0  ;;  %v1575_v40 = vpop.f32.mrb[10].mxu1 }
 0x171   : > { %v1060_v41 = vadd.f32 %v1574_v36, %v985_v37  ;;  %v1539_v42 = vadd.f32 %v1538_v39, %v1537_v38  ;;  %v1576_v43 = vpop.f32.mrb[11].mxu1 }
 0x172   : > { %v1577_v44 = vadd.f32 %v1576_v43, %v1575_v40 }
 0x173   : > { %v990_v45 = vadd.f32 %v1539_v42, %v915_v30 }
 0x175   : > { %v1065_v46 = vadd.f32 %v1577_v44, %v990_v45 }
 0x18b   : > { %v1610_v47 = vpop.f32.mrb[12].mxu0 }
 0x18c   : > { %v1611_v48 = vpop.f32.mrb[13].mxu0  ;;  %v1648_v49 = vpop.f32.mrb[12].mxu1 }
 0x18d   : > { %v1612_v50 = vadd.f32 %v1611_v48, %v1610_v47  ;;  %v1649_v51 = vpop.f32.mrb[13].mxu1 }
 0x18e   : > { %v1650_v52 = vadd.f32 %v1649_v51, %v1648_v49 }
 0x18f   : > { %v1135_v53 = vadd.f32 %v1612_v50, %v1060_v41  ;;  %v1613_v54 = vpop.f32.mrb[14].mxu0 }
 0x190   : > { %v1614_v56 = vpop.f32.mrb[15].mxu0  ;;  %v1651_v57 = vpop.f32.mrb[14].mxu1 }
 0x191   : > { %v1210_v58 = vadd.f32 %v1650_v52, %v1135_v53  ;;  %v1615_v59 = vadd.f32 %v1614_v56, %v1613_v54  ;;  %v1652_v60 = vpop.f32.mrb[15].mxu1 }
 0x192   : > { %v1653_v61 = vadd.f32 %v1652_v60, %v1651_v57 }
 0x193   : > { %v1218_v62 = vadd.f32 %v1210_v58, %v328_v55  ;;  %v1140_v63 = vadd.f32 %v1615_v59, %v1065_v46  ;;  %1225 = sbr.rel (%p1342_p11) target bundleno = 422 (0x1a6), region = 67 }
 0x195   : > { %1220 = vst [vmem:[#allocation2] sm:$0xff] %v1218_v62  ;;  %v1215_v1 = vadd.f32 %v1653_v61, %v1140_v63 }
 0x197   : > { %v1219_v2 = vadd.f32 %v1215_v1, %v329_v0 }
 0x199   : > { %1221 = vst [vmem:[#allocation2 + $0x8] sm:$0xff] %v1219_v2 }
 0x19c   : > { %v1226_v3 = vld [vmem:[#allocation2] sm:$0xff] }
 0x19d   : > { %v1235_v6 = vmul.f32 %v1343_v4, %v1226_v3 }
 0x19f   : > { %v1244_v9 = vadd.f32 %v1344_v5, %v1235_v6 }
 0x1a0   : > { %v1227_v7 = vld [vmem:[#allocation2 + $0x8] sm:$0xff] }
 0x1a1   : > { %v1236_v8 = vmul.f32 %v1343_v4, %v1227_v7  ;;  %1246 = vst [vmem:[%s2460_s4] sm:$0xff] %v1244_v9 }
 0x1a3   : > { %v1245_v10 = vadd.f32 %v1344_v5, %v1236_v8 }
 0x1a5   : > { %1247 = vst [vmem:[%s2460_s4 + $0x8] sm:$0xff] %v1245_v10 }
 0x1a6 PF: > { %s14_s19 = sadd.s32 1, %s1989_s19   ;;  %s2461_s15 = smov %s1977_s16 }
 0x1a7   : > { %p11_p12 = scmp.ge.s32.totalorder %s14_s19, 4   ;;  %s2462_s16 = smov %s2052_s23 }
 0x1a8   : > { %s2463_s17 = smov %s1985_s18  ;;  %s2464_s18 = smov %s2466_s20 }
 0x1a9   :  { %13 = sbr.rel (!%p11_p12) target bundleno = 3 (0x3), region = 105 }

// kernel: custom_resnet_forward.16
= control target key start
LH: loop header
LB: loop body
LE: loop exit
PB: predicated region body
PF: predicated region fallthrough
CT: control target
= control target key end

     0   :  { %s1713_s18 = smov 0   ;;  %s1715_s19 = smov 0   ;;  %s2178_s0 = inlined_call_operand.vmem [shape: f32[32,2304], index: 0, kind: input, shape index: {}]   ;;  %s2179_s1 = inlined_call_operand.vmem [shape: f32[2304,256], index: 1, kind: input, shape index: {}]   ;;  %s2180_s2 = inlined_call_operand.vmem [shape: f32[1,256], index: 2, kind: input, shape index: {}]   ;;  %s2181_s3 = inlined_call_operand.vmem [shape: f32[1,256], index: 3, kind: input, shape index: {}]   ;;  %s2182_s4 = inlined_call_operand.vmem [shape: f32[32,256], index: 4, kind: input, shape index: {}]   ;;  %s2183_s5 = inlined_call_operand.vmem [shape: f32[32,256], index: 5, kind: output, shape index: {}]  }
   0x1   :  { %s1717_s20 = smov 0   ;;  %s1719_s21 = smov 0  }
   0x2   :  { %s1721_s22 = smov 0   ;;  %s1723_s23 = smov 0  }
   0x3   :  { %s1725_s24 = smov 0  }
   0x4 LB: > { %s24_s25 = sadd.s32 1, %s1671_s22  ;;  %s27_s26 = sadd.s32 1, %s1675_s23  ;;  %s1679_s24 = sphi %s1725_s24, %s15_s24   ;;  %s1675_s23 = sphi %s1723_s23, %s2189_s23   ;;  %s1671_s22 = sphi %s1721_s22, %s2188_s22   ;;  %s1667_s21 = sphi %s1719_s21, %s2187_s21   ;;  %s1663_s20 = sphi %s1717_s20, %s2186_s20   ;;  %s1659_s19 = sphi %s1715_s19, %s2185_s19   ;;  %s1655_s18 = sphi %s1713_s18, %s2184_s18  }
   0x5   : > { %p25_p0 = scmp.ge.s32.totalorder %s24_s25, 2  ;;  %p43_p1 = scmp.ne.s32.totalorder %s1659_s19, %s1655_s18 }
   0x6   : > { %p44_p2 = scmp.eq.s32.totalorder %s1679_s24, 0  ;;  %s36_s30 = sadd.s32 1, %s1659_s19 }
   0x7   : > { %s2191_s25 = smov (%p25_p0, %s24_s25), 0  ;;  %s2193_s26 = smov (!%p25_p0, %s27_s26), %s1675_s23 }
   0x8   : > { %p45_p3 = por %p44_p2, %p43_p1  ;;  %p29_p4 = scmp.ge.s32.totalorder %s2193_s26, 2 }
   0x9   : > { %s32_s27 = ssub.s32 %s1671_s22, %s2191_s25  ;;  %p1224_p6 = scmp.ge.s32.totalorder %s1679_s24, 4 }
   0xa   : > { %s2195_s26 = smov (%p29_p4, %s2193_s26), 0 }
   0xb   : > { %s31_s28 = ssub.s32 %s1675_s23, %s2195_s26  ;;  %195 = sbr.rel (%p1224_p6) target bundleno = 36 (0x24), region = 24 }
   0xc   : > { %s33_s29 = sor.u32 %s32_s27, %s31_s28 }
   0xd   : > { %p34_p5 = scmp.eq.s32.totalorder %s33_s29, 0 }
   0xf   : > { %s1764_s6 = scalar_select %p34_p5, %s1659_s19, %s36_s30  }
  0x12   : > { %198 = sbr.rel (!%p45_p3) target bundleno = 36 (0x24), region = 28  ;;  %s200_s7 = sand.u32 (%p45_p3), 1, %s1659_s19  }
  0x13   : > { %s204_s8 = smul.u32 (%p45_p3), 9, %s1671_s22 }
  0x14   : > { %s1564_s9 = smul.u32 (%p45_p3), 144, %s200_s7 }
  0x15   : > { %s1565_s10 = smul.u32 (%p45_p3), 36, %s1675_s23 }
  0x16   : > { %s1778_s16 = scalar_lea.vmem (%p45_p3), [#allocation3], %s1564_s9 }
  0x17   : > { %s206_s11 = sadd.s32 (%p45_p3), %s1565_s10, %s204_s8 }
  0x18   : > { %s1227_s12 = sshll.u32 (%p45_p3), %s206_s11, 3 }
  0x19   : > { %s1773_s15 = scalar_lea.vmem %s2178_s0, %s1227_s12 }
  0x1a   : > { %v221_v0 = vld [vmem:[%s1773_s15] sm:$0xff]  ;;  %v223_v1 = vld [vmem:[%s1773_s15 + $0x8] sm:$0xff]  ;;  %v225_v2 = vld [vmem:[%s1773_s15 + $0x10] sm:$0xff] }
  0x1b   : > { %222 = vst [vmem:[%s1778_s16] sm:$0xff] %v221_v0  ;;  %224 = vst [vmem:[%s1778_s16 + $0x8] sm:$0xff] %v223_v1  ;;  %v227_v3 = vld [vmem:[%s1773_s15 + $0x18] sm:$0xff]  ;;  %v229_v4 = vld [vmem:[%s1773_s15 + $0x20] sm:$0xff] }
  0x1c   : > { %226 = vst [vmem:[%s1778_s16 + $0x10] sm:$0xff] %v225_v2  ;;  %v231_v5 = vld [vmem:[%s1773_s15 + $0x28] sm:$0xff]  ;;  %228 = vst [vmem:[%s1778_s16 + $0x18] sm:$0xff] %v227_v3  ;;  %v233_v6 = vld [vmem:[%s1773_s15 + $0x30] sm:$0xff] }
  0x1d   : > { %230 = vst [vmem:[%s1778_s16 + $0x20] sm:$0xff] %v229_v4  ;;  %232 = vst [vmem:[%s1778_s16 + $0x28] sm:$0xff] %v231_v5  ;;  %v235_v7 = vld [vmem:[%s1773_s15 + $0x38] sm:$0xff]  ;;  %v237_v8 = vld [vmem:[%s1773_s15 + $0x40] sm:$0xff] }
  0x1e   : > { %234 = vst [vmem:[%s1778_s16 + $0x30] sm:$0xff] %v233_v6  ;;  %236 = vst [vmem:[%s1778_s16 + $0x38] sm:$0xff] %v235_v7  ;;  %v239_v9 = vld [vmem:[%s1773_s15 + $0x90] sm:$0xff]  ;;  %v241_v10 = vld [vmem:[%s1773_s15 + $0x98] sm:$0xff] }
  0x1f   : > { %238 = vst [vmem:[%s1778_s16 + $0x40] sm:$0xff] %v237_v8  ;;  %v243_v11 = vld [vmem:[%s1773_s15 + $0xa0] sm:$0xff]  ;;  %240 = vst [vmem:[%s1778_s16 + $0x48] sm:$0xff] %v239_v9  ;;  %v245_v12 = vld [vmem:[%s1773_s15 + $0xa8] sm:$0xff] }
  0x20   : > { %242 = vst [vmem:[%s1778_s16 + $0x50] sm:$0xff] %v241_v10  ;;  %244 = vst [vmem:[%s1778_s16 + $0x58] sm:$0xff] %v243_v11  ;;  %v247_v13 = vld [vmem:[%s1773_s15 + $0xb0] sm:$0xff]  ;;  %v249_v14 = vld [vmem:[%s1773_s15 + $0xb8] sm:$0xff] }
  0x21   : > { %246 = vst [vmem:[%s1778_s16 + $0x60] sm:$0xff] %v245_v12  ;;  %248 = vst [vmem:[%s1778_s16 + $0x68] sm:$0xff] %v247_v13  ;;  %v251_v15 = vld [vmem:[%s1773_s15 + $0xc0] sm:$0xff]  ;;  %v253_v16 = vld [vmem:[%s1773_s15 + $0xc8] sm:$0xff] }
  0x22   : > { %250 = vst [vmem:[%s1778_s16 + $0x70] sm:$0xff] %v249_v14  ;;  %v255_v17 = vld [vmem:[%s1773_s15 + $0xd0] sm:$0xff]  ;;  %252 = vst [vmem:[%s1778_s16 + $0x78] sm:$0xff] %v251_v15 }
  0x23   : > { %254 = vst [vmem:[%s1778_s16 + $0x80] sm:$0xff] %v253_v16  ;;  %256 = vst [vmem:[%s1778_s16 + $0x88] sm:$0xff] %v255_v17 }
  0x24 PF: > { %p1228_p7 = scmp.ge.s32.totalorder %s1679_s24, 1  ;;  %p281_p8 = scmp.lt.s32.totalorder %s1679_s24, 5 }
  0x26   : > { %p282_p9 = pnand %p1228_p7, %p281_p8 }
  0x27   : > { %s288_s17 = sand.u32 (!%p282_p9), 1, %s1655_s18   ;;  %s330_s27 = smul.u32 (!%p282_p9), 144, %s1663_s20 }
  0x28   : > { %285 = sbr.rel (%p282_p9) target bundleno = 455 (0x1c7), region = 59  ;;  %s1231_s29 = sshll.u32 (!%p282_p9), %s1667_s21, 1 }
  0x29   : > { %s1566_s28 = smul.u32 (!%p282_p9), 144, %s288_s17  ;;  %p331_p10 = scmp.lt.s32.totalorder (!%p282_p9), %s330_s27, 287 }
  0x2a   : > { %p338_p11 = scmp.lt.s32.totalorder (!%p282_p9), %s1231_s29, 3  ;;  %p1237_p12 = scmp.ne.s32.totalorder (!%p282_p9), %s1663_s20, 0 }
  0x2b   : > { %s1833_s15 = scalar_lea.vmem (!%p282_p9), [#allocation3], %s1566_s28 }
  0x2f   : > { %s2197_s27 = smov (!%p331_p10, %s330_s27), 287  ;;  %s2199_s29 = smov (!%p338_p11, %s1231_s29), 3 }
  0x30   : > { %s1241_s30 = sshll.u32 %s2197_s27, 4  ;;  %s1242_s10 = sshll.u32 %s2199_s29, 4  ;;  %v1681_v18 = vmov (!%p1237_p12), 0.0  }
  0x31   : > { %s1821_s9 = scalar_lea.vmem %s2179_s1, %s1241_s30  ;;  %s1826_s13 = scalar_lea.vmem %s2182_s4, %s1242_s10  ;;  %355 = vst [vmem:[#allocation2] sm:$0xff] (!%p1237_p12), %v1681_v18  ;;  %356 = vst [vmem:[#allocation2 + $0x8] sm:$0xff] (!%p1237_p12), %v1681_v18 }
  0x32   : > { %s1831_s21 = scalar_lea.vmem %s2183_s5, %s1242_s10  ;;  %354 = sbr.rel (%p1237_p12) target bundleno = 57 (0x39), region = 67  ;;  %357 = vst [vmem:[#allocation2 + $0x10] sm:$0xff] (!%p1237_p12), %v1681_v18  ;;  %358 = vst [vmem:[#allocation2 + $0x18] sm:$0xff] (!%p1237_p12), %v1681_v18 }
  0x39 PF: > { %v382_v19 = vld [vmem:[%s1821_s9 + $0x8] sm:$0xff]  ;;  %v384_v20 = vld [vmem:[%s1821_s9 + $0x18] sm:$0xff]  ;;  %v381_v24 = vld [vmem:[%s1821_s9] sm:$0xff]  ;;  %p1238_p13 = scmp.ne.s32.totalorder %s1663_s20, 1 }
  0x3a   : > { %v510_v21 = vld [vmem:[%s1821_s9 + $0x408] sm:$0xff]  ;;  %v1244_v22 = vpack.c.bf16 %v384_v20, %v382_v19  ;;  %v512_v23 = vld [vmem:[%s1821_s9 + $0x418] sm:$0xff]  ;;  %v383_v25 = vld [vmem:[%s1821_s9 + $0x10] sm:$0xff] }
  0x3b   : > { %v1372_v26 = vpack.c.bf16 %v512_v23, %v510_v21  ;;  %v1246_v27 = vpack.c.bf16 %v383_v25, %v381_v24  ;;  %v509_v28 = vld [vmem:[%s1821_s9 + $0x400] sm:$0xff]  ;;  %v511_v29 = vld [vmem:[%s1821_s9 + $0x410] sm:$0xff]  ;;  %v386_v30 = vld [vmem:[%s1821_s9 + $0x28] sm:$0xff] }
  0x3c   : > { %1245 = vmatprep.subr.bf16.mxu1 %v1244_v22  ;;  %v1374_v31 = vpack.c.bf16 %v511_v29, %v509_v28  ;;  %v388_v32 = vld [vmem:[%s1821_s9 + $0x38] sm:$0xff]  ;;  %v514_v33 = vld [vmem:[%s1821_s9 + $0x428] sm:$0xff]  ;;  %v385_v37 = vld [vmem:[%s1821_s9 + $0x20] sm:$0xff] }
  0x3d   : > { %v516_v34 = vld [vmem:[%s1821_s9 + $0x438] sm:$0xff]  ;;  %1373 = vmatprep.subr.bf16.mxu0 %v1372_v26  ;;  %1247 = vmatpush1.bf16.msra.mxu1 %v1246_v27  ;;  %v1248_v35 = vpack.c.bf16 %v388_v32, %v386_v30  ;;  %v387_v38 = vld [vmem:[%s1821_s9 + $0x30] sm:$0xff]  ;;  %v513_v39 = vld [vmem:[%s1821_s9 + $0x420] sm:$0xff] }
  0x3e   : > { %v1376_v36 = vpack.c.bf16 %v516_v34, %v514_v33  ;;  %1375 = vmatpush1.bf16.msra.mxu0 %v1374_v31  ;;  %v1250_v40 = vpack.c.bf16 %v387_v38, %v385_v37  ;;  %v515_v41 = vld [vmem:[%s1821_s9 + $0x430] sm:$0xff]  ;;  %v390_v42 = vld [vmem:[%s1821_s9 + $0x48] sm:$0xff]  ;;  %v392_v43 = vld [vmem:[%s1821_s9 + $0x58] sm:$0xff] }
  0x3f   : > { %1249 = vmatprep.subr.bf16.mxu1 %v1248_v35  ;;  %v1378_v44 = vpack.c.bf16 %v515_v41, %v513_v39  ;;  %v1252_v45 = vpack.c.bf16 %v392_v43, %v390_v42  ;;  %v518_v46 = vld [vmem:[%s1821_s9 + $0x448] sm:$0xff]  ;;  %v520_v47 = vld [vmem:[%s1821_s9 + $0x458] sm:$0xff]  ;;  %v389_v48 = vld [vmem:[%s1821_s9 + $0x40] sm:$0xff] }
  0x40   : > { %1377 = vmatprep.subr.bf16.mxu0 %v1376_v36  ;;  %v1380_v49 = vpack.c.bf16 %v520_v47, %v518_v46  ;;  %v391_v50 = vld [vmem:[%s1821_s9 + $0x50] sm:$0xff]  ;;  %v517_v51 = vld [vmem:[%s1821_s9 + $0x440] sm:$0xff]  ;;  %v394_v54 = vld [vmem:[%s1821_s9 + $0x68] sm:$0xff] }
  0x41   : > { %v519_v52 = vld [vmem:[%s1821_s9 + $0x450] sm:$0xff]  ;;  %1251 = vmatpush1.bf16.msra.mxu1 %v1250_v40  ;;  %v1254_v53 = vpack.c.bf16 %v391_v50, %v389_v48  ;;  %v396_v55 = vld [vmem:[%s1821_s9 + $0x78] sm:$0xff]  ;;  %v522_v56 = vld [vmem:[%s1821_s9 + $0x468] sm:$0xff] }
  0x42   : > { %1379 = vmatpush1.bf16.msra.mxu0 %v1378_v44  ;;  %1253 = vmatprep.subr.bf16.mxu1 %v1252_v45  ;;  %v1382_v57 = vpack.c.bf16 %v519_v52, %v517_v51  ;;  %v1256_v58 = vpack.c.bf16 %v396_v55, %v394_v54  ;;  %v524_v59 = vld [vmem:[%s1821_s9 + $0x478] sm:$0xff]  ;;  %v393_v60 = vld [vmem:[%s1821_s9 + $0x60] sm:$0xff]  ;;  %v395_v61 = vld [vmem:[%s1821_s9 + $0x70] sm:$0xff] }
  0x43   : > { %1381 = vmatprep.subr.bf16.mxu0 %v1380_v49  ;;  %v1384_v62 = vpack.c.bf16 %v524_v59, %v522_v56  ;;  %v521_v63 = vld [vmem:[%s1821_s9 + $0x460] sm:$0xff]  ;;  %v523_v0 = vld [vmem:[%s1821_s9 + $0x470] sm:$0xff]  ;;  %v398_v1 = vld [vmem:[%s1821_s9 + $0x88] sm:$0xff]  ;;  %v1258_v5 = vpack.c.bf16 %v395_v61, %v393_v60 }
  0x44   : > { %v400_v2 = vld [vmem:[%s1821_s9 + $0x98] sm:$0xff]  ;;  %v526_v3 = vld [vmem:[%s1821_s9 + $0x488] sm:$0xff]  ;;  %v1386_v6 = vpack.c.bf16 %v523_v0, %v521_v63  ;;  %v397_v8 = vld [vmem:[%s1821_s9 + $0x80] sm:$0xff] }
  0x45   : > { %v528_v4 = vld [vmem:[%s1821_s9 + $0x498] sm:$0xff]  ;;  %1255 = vmatpush1.bf16.msra.mxu1 %v1254_v53  ;;  %v1260_v7 = vpack.c.bf16 %v400_v2, %v398_v1  ;;  %v399_v9 = vld [vmem:[%s1821_s9 + $0x90] sm:$0xff]  ;;  %v525_v10 = vld [vmem:[%s1821_s9 + $0x480] sm:$0xff] }
  0x46   : > { %1383 = vmatpush1.bf16.msra.mxu0 %v1382_v57  ;;  %1257 = vmatprep.subr.bf16.mxu1 %v1256_v58  ;;  %v1388_v11 = vpack.c.bf16 %v528_v4, %v526_v3  ;;  %v527_v12 = vld [vmem:[%s1821_s9 + $0x490] sm:$0xff]  ;;  %v402_v13 = vld [vmem:[%s1821_s9 + $0xa8] sm:$0xff]  ;;  %v404_v14 = vld [vmem:[%s1821_s9 + $0xb8] sm:$0xff]  ;;  %v1262_v17 = vpack.c.bf16 %v399_v9, %v397_v8 }
  0x47   : > { %1385 = vmatprep.subr.bf16.mxu0 %v1384_v62  ;;  %v530_v15 = vld [vmem:[%s1821_s9 + $0x4a8] sm:$0xff]  ;;  %v532_v16 = vld [vmem:[%s1821_s9 + $0x4b8] sm:$0xff]  ;;  %v1390_v18 = vpack.c.bf16 %v527_v12, %v525_v10  ;;  %v1264_v19 = vpack.c.bf16 %v404_v14, %v402_v13  ;;  %v401_v20 = vld [vmem:[%s1821_s9 + $0xa0] sm:$0xff] }
  0x48   : > { %v403_v21 = vld [vmem:[%s1821_s9 + $0xb0] sm:$0xff]  ;;  %v529_v22 = vld [vmem:[%s1821_s9 + $0x4a0] sm:$0xff]  ;;  %v1392_v23 = vpack.c.bf16 %v532_v16, %v530_v15  ;;  %v406_v25 = vld [vmem:[%s1821_s9 + $0xc8] sm:$0xff] }
  0x49   : > { %1259 = vmatpush1.bf16.msra.mxu1 %v1258_v5  ;;  %v531_v24 = vld [vmem:[%s1821_s9 + $0x4b0] sm:$0xff]  ;;  %v408_v26 = vld [vmem:[%s1821_s9 + $0xd8] sm:$0xff]  ;;  %v534_v27 = vld [vmem:[%s1821_s9 + $0x4c8] sm:$0xff]  ;;  %v1266_v29 = vpack.c.bf16 %v403_v21, %v401_v20 }
  0x4a   : > { %1387 = vmatpush1.bf16.msra.mxu0 %v1386_v6  ;;  %1261 = vmatprep.subr.bf16.mxu1 %v1260_v7  ;;  %v536_v28 = vld [vmem:[%s1821_s9 + $0x4d8] sm:$0xff]  ;;  %v1394_v30 = vpack.c.bf16 %v531_v24, %v529_v22  ;;  %v1268_v31 = vpack.c.bf16 %v408_v26, %v406_v25  ;;  %v405_v32 = vld [vmem:[%s1821_s9 + $0xc0] sm:$0xff]  ;;  %v407_v33 = vld [vmem:[%s1821_s9 + $0xd0] sm:$0xff] }
  0x4b   : > { %1389 = vmatprep.subr.bf16.mxu0 %v1388_v11  ;;  %v533_v34 = vld [vmem:[%s1821_s9 + $0x4c0] sm:$0xff]  ;;  %v1396_v35 = vpack.c.bf16 %v536_v28, %v534_v27  ;;  %v535_v36 = vld [vmem:[%s1821_s9 + $0x4d0] sm:$0xff]  ;;  %v410_v37 = vld [vmem:[%s1821_s9 + $0xe8] sm:$0xff]  ;;  %v1270_v41 = vpack.c.bf16 %v407_v33, %v405_v32 }
  0x4c   : > { %v412_v38 = vld [vmem:[%s1821_s9 + $0xf8] sm:$0xff]  ;;  %v538_v39 = vld [vmem:[%s1821_s9 + $0x4e8] sm:$0xff]  ;;  %v1398_v42 = vpack.c.bf16 %v535_v36, %v533_v34  ;;  %v409_v44 = vld [vmem:[%s1821_s9 + $0xe0] sm:$0xff] }
  0x4d   : > { %1263 = vmatpush1.bf16.msra.mxu1 %v1262_v17  ;;  %v540_v40 = vld [vmem:[%s1821_s9 + $0x4f8] sm:$0xff]  ;;  %v1272_v43 = vpack.c.bf16 %v412_v38, %v410_v37  ;;  %v411_v45 = vld [vmem:[%s1821_s9 + $0xf0] sm:$0xff]  ;;  %v537_v46 = vld [vmem:[%s1821_s9 + $0x4e0] sm:$0xff] }
  0x4e   : > { %1391 = vmatpush1.bf16.msra.mxu0 %v1390_v18  ;;  %1265 = vmatprep.subr.bf16.mxu1 %v1264_v19  ;;  %v1400_v47 = vpack.c.bf16 %v540_v40, %v538_v39  ;;  %v539_v48 = vld [vmem:[%s1821_s9 + $0x4f0] sm:$0xff]  ;;  %v414_v49 = vld [vmem:[%s1821_s9 + $0x108] sm:$0xff]  ;;  %v416_v50 = vld [vmem:[%s1821_s9 + $0x118] sm:$0xff]  ;;  %v1274_v53 = vpack.c.bf16 %v411_v45, %v409_v44 }
  0x4f   : > { %1393 = vmatprep.subr.bf16.mxu0 %v1392_v23  ;;  %v542_v51 = vld [vmem:[%s1821_s9 + $0x508] sm:$0xff]  ;;  %v544_v52 = vld [vmem:[%s1821_s9 + $0x518] sm:$0xff]  ;;  %v1402_v54 = vpack.c.bf16 %v539_v48, %v537_v46  ;;  %v1276_v55 = vpack.c.bf16 %v416_v50, %v414_v49  ;;  %v413_v56 = vld [vmem:[%s1821_s9 + $0x100] sm:$0xff] }
  0x50   : > { %v415_v57 = vld [vmem:[%s1821_s9 + $0x110] sm:$0xff]  ;;  %v541_v58 = vld [vmem:[%s1821_s9 + $0x500] sm:$0xff]  ;;  %v1404_v59 = vpack.c.bf16 %v544_v52, %v542_v51  ;;  %v418_v61 = vld [vmem:[%s1821_s9 + $0x128] sm:$0xff] }
  0x51   : > { %1267 = vmatpush1.bf16.msra.mxu1 %v1266_v29  ;;  %v543_v60 = vld [vmem:[%s1821_s9 + $0x510] sm:$0xff]  ;;  %v420_v62 = vld [vmem:[%s1821_s9 + $0x138] sm:$0xff]  ;;  %v546_v63 = vld [vmem:[%s1821_s9 + $0x528] sm:$0xff]  ;;  %v1278_v1 = vpack.c.bf16 %v415_v57, %v413_v56 }
  0x52   : > { %1395 = vmatpush1.bf16.msra.mxu0 %v1394_v30  ;;  %1269 = vmatprep.subr.bf16.mxu1 %v1268_v31  ;;  %v548_v0 = vld [vmem:[%s1821_s9 + $0x538] sm:$0xff]  ;;  %v1406_v2 = vpack.c.bf16 %v543_v60, %v541_v58  ;;  %v1280_v3 = vpack.c.bf16 %v420_v62, %v418_v61  ;;  %v417_v4 = vld [vmem:[%s1821_s9 + $0x120] sm:$0xff]  ;;  %v419_v5 = vld [vmem:[%s1821_s9 + $0x130] sm:$0xff] }
  0x53   : > { %1397 = vmatprep.subr.bf16.mxu0 %v1396_v35  ;;  %v545_v6 = vld [vmem:[%s1821_s9 + $0x520] sm:$0xff]  ;;  %v1408_v7 = vpack.c.bf16 %v548_v0, %v546_v63  ;;  %v547_v8 = vld [vmem:[%s1821_s9 + $0x530] sm:$0xff]  ;;  %v422_v9 = vld [vmem:[%s1821_s9 + $0x148] sm:$0xff]  ;;  %v1282_v13 = vpack.c.bf16 %v419_v5, %v417_v4 }
  0x54   : > { %v424_v10 = vld [vmem:[%s1821_s9 + $0x158] sm:$0xff]  ;;  %v550_v11 = vld [vmem:[%s1821_s9 + $0x548] sm:$0xff]  ;;  %v1410_v14 = vpack.c.bf16 %v547_v8, %v545_v6  ;;  %v421_v16 = vld [vmem:[%s1821_s9 + $0x140] sm:$0xff] }
  0x55   : > { %1271 = vmatpush1.bf16.msra.mxu1 %v1270_v41  ;;  %v552_v12 = vld [vmem:[%s1821_s9 + $0x558] sm:$0xff]  ;;  %v1284_v15 = vpack.c.bf16 %v424_v10, %v422_v9  ;;  %v423_v17 = vld [vmem:[%s1821_s9 + $0x150] sm:$0xff]  ;;  %v549_v18 = vld [vmem:[%s1821_s9 + $0x540] sm:$0xff] }
  0x56   : > { %1399 = vmatpush1.bf16.msra.mxu0 %v1398_v42  ;;  %1273 = vmatprep.subr.bf16.mxu1 %v1272_v43  ;;  %v1412_v19 = vpack.c.bf16 %v552_v12, %v550_v11  ;;  %v551_v20 = vld [vmem:[%s1821_s9 + $0x550] sm:$0xff]  ;;  %v426_v21 = vld [vmem:[%s1821_s9 + $0x168] sm:$0xff]  ;;  %v428_v22 = vld [vmem:[%s1821_s9 + $0x178] sm:$0xff]  ;;  %v1286_v25 = vpack.c.bf16 %v423_v17, %v421_v16 }
  0x57   : > { %1401 = vmatprep.subr.bf16.mxu0 %v1400_v47  ;;  %v554_v23 = vld [vmem:[%s1821_s9 + $0x568] sm:$0xff]  ;;  %v556_v24 = vld [vmem:[%s1821_s9 + $0x578] sm:$0xff]  ;;  %v425_v26 = vld [vmem:[%s1821_s9 + $0x160] sm:$0xff]  ;;  %v1414_v27 = vpack.c.bf16 %v551_v20, %v549_v18  ;;  %v1288_v28 = vpack.c.bf16 %v428_v22, %v426_v21 }
  0x58   : > { %v427_v29 = vld [vmem:[%s1821_s9 + $0x170] sm:$0xff]  ;;  %v553_v30 = vld [vmem:[%s1821_s9 + $0x560] sm:$0xff]  ;;  %v1416_v32 = vpack.c.bf16 %v556_v24, %v554_v23  ;;  %v430_v33 = vld [vmem:[%s1821_s9 + $0x188] sm:$0xff] }
  0x59   : > { %1275 = vmatpush1.bf16.msra.mxu1 %v1274_v53  ;;  %v555_v31 = vld [vmem:[%s1821_s9 + $0x570] sm:$0xff]  ;;  %v432_v34 = vld [vmem:[%s1821_s9 + $0x198] sm:$0xff]  ;;  %v558_v36 = vld [vmem:[%s1821_s9 + $0x588] sm:$0xff]  ;;  %v1290_v39 = vpack.c.bf16 %v427_v29, %v425_v26 }
  0x5a   : > { %1403 = vmatpush1.bf16.msra.mxu0 %v1402_v54  ;;  %1277 = vmatprep.subr.bf16.mxu1 %v1276_v55  ;;  %v364_v35 = vld [vmem:[%s1833_s15 + $0x8] sm:$0xff]  ;;  %v1418_v40 = vpack.c.bf16 %v555_v31, %v553_v30  ;;  %v1292_v41 = vpack.c.bf16 %v432_v34, %v430_v33  ;;  %v429_v42 = vld [vmem:[%s1821_s9 + $0x180] sm:$0xff]  ;;  %v431_v43 = vld [vmem:[%s1821_s9 + $0x190] sm:$0xff] }
  0x5b   : > { %1405 = vmatprep.subr.bf16.mxu0 %v1404_v59  ;;  %v560_v37 = vld [vmem:[%s1821_s9 + $0x598] sm:$0xff]  ;;  %733 = vmatprep.mubr.f32.mxu1 %v364_v35  ;;  %v557_v44 = vld [vmem:[%s1821_s9 + $0x580] sm:$0xff]  ;;  %v559_v46 = vld [vmem:[%s1821_s9 + $0x590] sm:$0xff]  ;;  %v1294_v51 = vpack.c.bf16 %v431_v43, %v429_v42 }
  0x5c   : > { %v368_v38 = vld [vmem:[%s1833_s15 + $0x28] sm:$0xff]  ;;  %v1420_v45 = vpack.c.bf16 %v560_v37, %v558_v36  ;;  %v1422_v52 = vpack.c.bf16 %v559_v46, %v557_v44  ;;  %v433_v54 = vld [vmem:[%s1821_s9 + $0x1a0] sm:$0xff]  ;;  %v435_v55 = vld [vmem:[%s1821_s9 + $0x1b0] sm:$0xff] }
  0x5d   : > { %1279 = vmatpush1.bf16.msra.mxu1 %v1278_v1  ;;  %887 = vmatprep.mubr.f32.mxu0 %v368_v38  ;;  %v434_v47 = vld [vmem:[%s1821_s9 + $0x1a8] sm:$0xff]  ;;  %v436_v48 = vld [vmem:[%s1821_s9 + $0x1b8] sm:$0xff]  ;;  %v561_v56 = vld [vmem:[%s1821_s9 + $0x5a0] sm:$0xff]  ;;  %v1298_v63 = vpack.c.bf16 %v435_v55, %v433_v54 }
  0x5e   : > { %1407 = vmatpush1.bf16.msra.mxu0 %v1406_v2  ;;  %1281 = vmatprep.subr.bf16.mxu1 %v1280_v3  ;;  %v562_v49 = vld [vmem:[%s1821_s9 + $0x5a8] sm:$0xff]  ;;  %v564_v50 = vld [vmem:[%s1821_s9 + $0x5b8] sm:$0xff]  ;;  %v1296_v53 = vpack.c.bf16 %v436_v48, %v434_v47  ;;  %v563_v58 = vld [vmem:[%s1821_s9 + $0x5b0] sm:$0xff] }
  0x5f   : > { %1409 = vmatprep.subr.bf16.mxu0 %v1408_v7  ;;  %v1424_v57 = vpack.c.bf16 %v564_v50, %v562_v49  ;;  %v438_v59 = vld [vmem:[%s1821_s9 + $0x1c8] sm:$0xff]  ;;  %v440_v60 = vld [vmem:[%s1821_s9 + $0x1d8] sm:$0xff]  ;;  %v1426_v0 = vpack.c.bf16 %v563_v58, %v561_v56  ;;  %v437_v2 = vld [vmem:[%s1821_s9 + $0x1c0] sm:$0xff] }
  0x60   : > { %v566_v61 = vld [vmem:[%s1821_s9 + $0x5c8] sm:$0xff]  ;;  %v568_v62 = vld [vmem:[%s1821_s9 + $0x5d8] sm:$0xff]  ;;  %v1300_v1 = vpack.c.bf16 %v440_v60, %v438_v59  ;;  %v439_v3 = vld [vmem:[%s1821_s9 + $0x1d0] sm:$0xff] }
  0x61   : > { %1283 = vmatpush1.bf16.msra.mxu1 %v1282_v13  ;;  %v565_v4 = vld [vmem:[%s1821_s9 + $0x5c0] sm:$0xff]  ;;  %v1428_v5 = vpack.c.bf16 %v568_v62, %v566_v61  ;;  %v567_v6 = vld [vmem:[%s1821_s9 + $0x5d0] sm:$0xff]  ;;  %v442_v7 = vld [vmem:[%s1821_s9 + $0x1e8] sm:$0xff]  ;;  %v1302_v11 = vpack.c.bf16 %v439_v3, %v437_v2 }
  0x62   : > { %1411 = vmatpush1.bf16.msra.mxu0 %v1410_v14  ;;  %1285 = vmatprep.subr.bf16.mxu1 %v1284_v15  ;;  %v444_v8 = vld [vmem:[%s1821_s9 + $0x1f8] sm:$0xff]  ;;  %v570_v9 = vld [vmem:[%s1821_s9 + $0x5e8] sm:$0xff]  ;;  %v1430_v12 = vpack.c.bf16 %v567_v6, %v565_v4  ;;  %v441_v14 = vld [vmem:[%s1821_s9 + $0x1e0] sm:$0xff] }
  0x63   : > { %1413 = vmatprep.subr.bf16.mxu0 %v1412_v19  ;;  %v572_v10 = vld [vmem:[%s1821_s9 + $0x5f8] sm:$0xff]  ;;  %v1304_v13 = vpack.c.bf16 %v444_v8, %v442_v7  ;;  %v443_v15 = vld [vmem:[%s1821_s9 + $0x1f0] sm:$0xff]  ;;  %v569_v16 = vld [vmem:[%s1821_s9 + $0x5e0] sm:$0xff] }
  0x64   : > { %v1432_v17 = vpack.c.bf16 %v572_v10, %v570_v9  ;;  %v571_v18 = vld [vmem:[%s1821_s9 + $0x5f0] sm:$0xff]  ;;  %v446_v19 = vld [vmem:[%s1821_s9 + $0x208] sm:$0xff]  ;;  %v448_v20 = vld [vmem:[%s1821_s9 + $0x218] sm:$0xff]  ;;  %v1306_v23 = vpack.c.bf16 %v443_v15, %v441_v14 }
  0x65   : > { %1287 = vmatpush1.bf16.msra.mxu1 %v1286_v25  ;;  %v574_v21 = vld [vmem:[%s1821_s9 + $0x608] sm:$0xff]  ;;  %v576_v22 = vld [vmem:[%s1821_s9 + $0x618] sm:$0xff]  ;;  %v1434_v24 = vpack.c.bf16 %v571_v18, %v569_v16  ;;  %v1308_v25 = vpack.c.bf16 %v448_v20, %v446_v19  ;;  %v445_v26 = vld [vmem:[%s1821_s9 + $0x200] sm:$0xff] }
  0x66   : > { %1415 = vmatpush1.bf16.msra.mxu0 %v1414_v27  ;;  %1289 = vmatprep.subr.bf16.mxu1 %v1288_v28  ;;  %v447_v27 = vld [vmem:[%s1821_s9 + $0x210] sm:$0xff]  ;;  %v573_v28 = vld [vmem:[%s1821_s9 + $0x600] sm:$0xff]  ;;  %v1436_v29 = vpack.c.bf16 %v576_v22, %v574_v21  ;;  %v450_v31 = vld [vmem:[%s1821_s9 + $0x228] sm:$0xff] }
  0x67   : > { %1417 = vmatprep.subr.bf16.mxu0 %v1416_v32  ;;  %v575_v30 = vld [vmem:[%s1821_s9 + $0x610] sm:$0xff]  ;;  %v452_v32 = vld [vmem:[%s1821_s9 + $0x238] sm:$0xff]  ;;  %v578_v33 = vld [vmem:[%s1821_s9 + $0x628] sm:$0xff]  ;;  %v1310_v36 = vpack.c.bf16 %v447_v27, %v445_v26 }
  0x68   : > { %v580_v34 = vld [vmem:[%s1821_s9 + $0x638] sm:$0xff]  ;;  %v363_v35 = vld [vmem:[%s1833_s15] sm:$0xff]  ;;  %v1438_v38 = vpack.c.bf16 %v575_v30, %v573_v28  ;;  %v582_v47 = vld [vmem:[%s1821_s9 + $0x648] sm:$0xff] }
  0x69   : > { %1291 = vmatpush1.bf16.msra.mxu1 %v1290_v39  ;;  %v367_v37 = vld [vmem:[%s1833_s15 + $0x20] sm:$0xff]  ;;  %v1312_v39 = vpack.c.bf16 %v452_v32, %v450_v31  ;;  %v1440_v43 = vpack.c.bf16 %v580_v34, %v578_v33  ;;  %v456_v46 = vld [vmem:[%s1821_s9 + $0x258] sm:$0xff]  ;;  %v586_v59 = vld [vmem:[%s1821_s9 + $0x668] sm:$0xff] }
  0x6a   : > { %1419 = vmatpush1.bf16.msra.mxu0 %v1418_v40  ;;  %1293 = vmatprep.subr.bf16.mxu1 %v1292_v41  ;;  %v449_v40 = vld [vmem:[%s1821_s9 + $0x220] sm:$0xff]  ;;  %v451_v41 = vld [vmem:[%s1821_s9 + $0x230] sm:$0xff]  ;;  %v584_v48 = vld [vmem:[%s1821_s9 + $0x658] sm:$0xff] }
  0x6b   : > { %1421 = vmatprep.subr.bf16.mxu0 %v1420_v45  ;;  %v577_v42 = vld [vmem:[%s1821_s9 + $0x620] sm:$0xff]  ;;  %v579_v44 = vld [vmem:[%s1821_s9 + $0x630] sm:$0xff]  ;;  %v454_v45 = vld [vmem:[%s1821_s9 + $0x248] sm:$0xff]  ;;  %v1314_v49 = vpack.c.bf16 %v451_v41, %v449_v40  ;;  %v1444_v55 = vpack.c.bf16 %v584_v48, %v582_v47 }
  0x6c   : > { %v1442_v50 = vpack.c.bf16 %v579_v44, %v577_v42  ;;  %v581_v54 = vld [vmem:[%s1821_s9 + $0x640] sm:$0xff]  ;;  %v583_v56 = vld [vmem:[%s1821_s9 + $0x650] sm:$0xff]  ;;  %v460_v58 = vld [vmem:[%s1821_s9 + $0x278] sm:$0xff] }
  0x6d   : > { %1295 = vmatpush1.bf16.msra.mxu1 %v1294_v51  ;;  %v1316_v51 = vpack.c.bf16 %v456_v46, %v454_v45  ;;  %v588_v60 = vld [vmem:[%s1821_s9 + $0x678] sm:$0xff]  ;;  %v1446_v62 = vpack.c.bf16 %v583_v56, %v581_v54  ;;  %v585_v2 = vld [vmem:[%s1821_s9 + $0x660] sm:$0xff]  ;;  %v587_v4 = vld [vmem:[%s1821_s9 + $0x670] sm:$0xff] }
  0x6e   : > { %1423 = vmatpush1.bf16.msra.mxu0 %v1422_v52  ;;  %1297 = vmatprep.subr.bf16.mxu1 %v1296_v53  ;;  %v453_v52 = vld [vmem:[%s1821_s9 + $0x240] sm:$0xff]  ;;  %v455_v53 = vld [vmem:[%s1821_s9 + $0x250] sm:$0xff]  ;;  %v1448_v3 = vpack.c.bf16 %v588_v60, %v586_v59  ;;  %v464_v6 = vld [vmem:[%s1821_s9 + $0x298] sm:$0xff]  ;;  %v1450_v10 = vpack.c.bf16 %v587_v4, %v585_v2 }
  0x6f   : > { %1425 = vmatprep.subr.bf16.mxu0 %v1424_v57  ;;  %v458_v57 = vld [vmem:[%s1821_s9 + $0x268] sm:$0xff]  ;;  %v1318_v61 = vpack.c.bf16 %v455_v53, %v453_v52  ;;  %v592_v8 = vld [vmem:[%s1821_s9 + $0x698] sm:$0xff]  ;;  %v589_v14 = vld [vmem:[%s1821_s9 + $0x680] sm:$0xff] }
  0x70   : > { %v590_v7 = vld [vmem:[%s1821_s9 + $0x688] sm:$0xff]  ;;  %v591_v16 = vld [vmem:[%s1821_s9 + $0x690] sm:$0xff]  ;;  %v468_v18 = vld [vmem:[%s1821_s9 + $0x2b8] sm:$0xff] }
  0x71   : > { %1299 = vmatpush1.bf16.msra.mxu1 %v1298_v63  ;;  %v1320_v63 = vpack.c.bf16 %v460_v58, %v458_v57  ;;  %v1452_v15 = vpack.c.bf16 %v592_v8, %v590_v7  ;;  %v594_v19 = vld [vmem:[%s1821_s9 + $0x6a8] sm:$0xff]  ;;  %v596_v20 = vld [vmem:[%s1821_s9 + $0x6b8] sm:$0xff]  ;;  %v1454_v22 = vpack.c.bf16 %v591_v16, %v589_v14  ;;  %v593_v26 = vld [vmem:[%s1821_s9 + $0x6a0] sm:$0xff] }
  0x72   : > { %1427 = vmatpush1.bf16.msra.mxu0 %v1426_v0  ;;  %1301 = vmatprep.subr.bf16.mxu1 %v1300_v1  ;;  %v457_v0 = vld [vmem:[%s1821_s9 + $0x260] sm:$0xff]  ;;  %v459_v1 = vld [vmem:[%s1821_s9 + $0x270] sm:$0xff]  ;;  %v1456_v27 = vpack.c.bf16 %v596_v20, %v594_v19  ;;  %v472_v30 = vld [vmem:[%s1821_s9 + $0x2d8] sm:$0xff] }
  0x73   : > { %1429 = vmatprep.subr.bf16.mxu0 %v1428_v5  ;;  %v462_v5 = vld [vmem:[%s1821_s9 + $0x288] sm:$0xff]  ;;  %v1322_v9 = vpack.c.bf16 %v459_v1, %v457_v0  ;;  %v595_v28 = vld [vmem:[%s1821_s9 + $0x6b0] sm:$0xff]  ;;  %v600_v32 = vld [vmem:[%s1821_s9 + $0x6d8] sm:$0xff] }
  0x74   : > { %v598_v31 = vld [vmem:[%s1821_s9 + $0x6c8] sm:$0xff]  ;;  %v469_v33 = vld [vmem:[%s1821_s9 + $0x2c0] sm:$0xff]  ;;  %v471_v40 = vld [vmem:[%s1821_s9 + $0x2d0] sm:$0xff] }
  0x75   : > { %1303 = vmatpush1.bf16.msra.mxu1 %v1302_v11  ;;  %v1324_v11 = vpack.c.bf16 %v464_v6, %v462_v5  ;;  %v597_v41 = vld [vmem:[%s1821_s9 + $0x6c0] sm:$0xff]  ;;  %v376_v42 = vld [vmem:[%s1833_s15 + $0x68] sm:$0xff]  ;;  %v599_v44 = vld [vmem:[%s1821_s9 + $0x6d0] sm:$0xff] }
  0x76   : > { %1431 = vmatpush1.bf16.msra.mxu0 %v1430_v12  ;;  %1305 = vmatprep.subr.bf16.mxu1 %v1304_v13  ;;  %v461_v12 = vld [vmem:[%s1821_s9 + $0x280] sm:$0xff]  ;;  %v463_v13 = vld [vmem:[%s1821_s9 + $0x290] sm:$0xff]  ;;  %v474_v45 = vld [vmem:[%s1821_s9 + $0x2e8] sm:$0xff]  ;;  %v1462_v52 = vpack.c.bf16 %v599_v44, %v597_v41 }
  0x77   : > { %1433 = vmatprep.subr.bf16.mxu0 %v1432_v17  ;;  %v466_v17 = vld [vmem:[%s1821_s9 + $0x2a8] sm:$0xff]  ;;  %v1326_v21 = vpack.c.bf16 %v463_v13, %v461_v12  ;;  %v476_v46 = vld [vmem:[%s1821_s9 + $0x2f8] sm:$0xff]  ;;  %v473_v54 = vld [vmem:[%s1821_s9 + $0x2e0] sm:$0xff] }
  0x78   : > { %v602_v47 = vld [vmem:[%s1821_s9 + $0x6e8] sm:$0xff]  ;;  %v604_v48 = vld [vmem:[%s1821_s9 + $0x6f8] sm:$0xff]  ;;  %v1336_v53 = vpack.c.bf16 %v476_v46, %v474_v45  ;;  %v601_v56 = vld [vmem:[%s1821_s9 + $0x6e0] sm:$0xff] }
  0x79   : > { %1307 = vmatpush1.bf16.msra.mxu1 %v1306_v23  ;;  %v1328_v23 = vpack.c.bf16 %v468_v18, %v466_v17  ;;  %v1464_v57 = vpack.c.bf16 %v604_v48, %v602_v47  ;;  %v603_v58 = vld [vmem:[%s1821_s9 + $0x6f0] sm:$0xff]  ;;  %v478_v59 = vld [vmem:[%s1821_s9 + $0x308] sm:$0xff]  ;;  %v480_v60 = vld [vmem:[%s1821_s9 + $0x318] sm:$0xff] }
  0x7a   : > { %1435 = vmatpush1.bf16.msra.mxu0 %v1434_v24  ;;  %1309 = vmatprep.subr.bf16.mxu1 %v1308_v25  ;;  %v465_v24 = vld [vmem:[%s1821_s9 + $0x2a0] sm:$0xff]  ;;  %v467_v25 = vld [vmem:[%s1821_s9 + $0x2b0] sm:$0xff]  ;;  %v1466_v0 = vpack.c.bf16 %v603_v58, %v601_v56  ;;  %v1340_v1 = vpack.c.bf16 %v480_v60, %v478_v59  ;;  %v482_v7 = vld [vmem:[%s1821_s9 + $0x328] sm:$0xff] }
  0x7b   : > { %1437 = vmatprep.subr.bf16.mxu0 %v1436_v29  ;;  %v470_v29 = vld [vmem:[%s1821_s9 + $0x2c8] sm:$0xff]  ;;  %v1330_v34 = vpack.c.bf16 %v467_v25, %v465_v24  ;;  %v477_v2 = vld [vmem:[%s1821_s9 + $0x300] sm:$0xff]  ;;  %v607_v6 = vld [vmem:[%s1821_s9 + $0x710] sm:$0xff] }
  0x7c   : > { %734 = vmatmul.mubr.f32.vlgmr.msra.gmra.mrb[0].mxu1 %v363_v35  ;;  %v373_v35 = vld [vmem:[%s1833_s15 + $0x50] sm:$0xff]  ;;  %v484_v8 = vld [vmem:[%s1821_s9 + $0x338] sm:$0xff]  ;;  %v486_v19 = vld [vmem:[%s1821_s9 + $0x348] sm:$0xff] }
  0x7d   : > { %1311 = vmatpush1.bf16.msra.mxu1 %v1310_v36  ;;  %888 = vmatmul.mubr.f32.vlgmr.msra.gmra.mrb[0].mxu0 %v367_v37  ;;  %v377_v36 = vld [vmem:[%s1833_s15 + $0x70] sm:$0xff]  ;;  %v372_v37 = vld [vmem:[%s1833_s15 + $0x48] sm:$0xff]  ;;  %v1344_v13 = vpack.c.bf16 %v484_v8, %v482_v7 }
  0x7e   : > { %1439 = vmatpush1.bf16.msra.mxu0 %v1438_v38  ;;  %1313 = vmatprep.subr.bf16.mxu1 %v1312_v39  ;;  %v1458_v38 = vpack.c.bf16 %v595_v28, %v593_v26  ;;  %v1332_v39 = vpack.c.bf16 %v472_v30, %v470_v29  ;;  %v605_v4 = vld [vmem:[%s1821_s9 + $0x700] sm:$0xff]  ;;  %v611_v18 = vld [vmem:[%s1821_s9 + $0x730] sm:$0xff]  ;;  %v488_v20 = vld [vmem:[%s1821_s9 + $0x358] sm:$0xff] }
  0x7f   : > { %1441 = vmatprep.subr.bf16.mxu0 %v1440_v43  ;;  %v1460_v43 = vpack.c.bf16 %v600_v32, %v598_v31  ;;  %739 = vmatprep.mubr.f32.mxu1 %v373_v35  ;;  %v1470_v12 = vpack.c.bf16 %v607_v6, %v605_v4  ;;  %v481_v14 = vld [vmem:[%s1821_s9 + $0x320] sm:$0xff]  ;;  %v1348_v25 = vpack.c.bf16 %v488_v20, %v486_v19  ;;  %v615_v30 = vld [vmem:[%s1821_s9 + $0x750] sm:$0xff]  ;;  %v490_v31 = vld [vmem:[%s1821_s9 + $0x368] sm:$0xff] }
  0x80   : > { %893 = vmatprep.mubr.f32.mxu0 %v377_v36  ;;  %740 = vmatmul.mubr.f32.gmra.mrb[2].mxu1 %v372_v37  ;;  %v609_v16 = vld [vmem:[%s1821_s9 + $0x720] sm:$0xff]  ;;  %v492_v32 = vld [vmem:[%s1821_s9 + $0x378] sm:$0xff]  ;;  %v622_v45 = vld [vmem:[%s1821_s9 + $0x788] sm:$0xff] }
  0x81   : > { %1315 = vmatpush1.bf16.msra.mxu1 %v1314_v49  ;;  %v1334_v49 = vpack.c.bf16 %v471_v40, %v469_v33  ;;  %894 = vmatmul.mubr.f32.gmra.mrb[2].mxu0 %v376_v42  ;;  %v1474_v24 = vpack.c.bf16 %v611_v18, %v609_v16  ;;  %v485_v26 = vld [vmem:[%s1821_s9 + $0x340] sm:$0xff]  ;;  %v618_v33 = vld [vmem:[%s1821_s9 + $0x768] sm:$0xff]  ;;  %v1352_v37 = vpack.c.bf16 %v492_v32, %v490_v31  ;;  %v619_v42 = vld [vmem:[%s1821_s9 + $0x770] sm:$0xff] }
  0x82   : > { %1443 = vmatpush1.bf16.msra.mxu0 %v1442_v50  ;;  %1317 = vmatprep.subr.bf16.mxu1 %v1316_v51  ;;  %v366_v50 = vld [vmem:[%s1833_s15 + $0x18] sm:$0xff]  ;;  %v613_v28 = vld [vmem:[%s1821_s9 + $0x740] sm:$0xff] }
  0x83   : > { %1445 = vmatprep.subr.bf16.mxu0 %v1444_v55  ;;  %v370_v51 = vld [vmem:[%s1833_s15 + $0x38] sm:$0xff]  ;;  %v475_v55 = vld [vmem:[%s1821_s9 + $0x2f0] sm:$0xff]  ;;  %810 = vmatprep.mubr.f32.mxu1 %v366_v50  ;;  %v1478_v36 = vpack.c.bf16 %v615_v30, %v613_v28  ;;  %v617_v40 = vld [vmem:[%s1821_s9 + $0x760] sm:$0xff] }
  0x84   : > { %964 = vmatprep.mubr.f32.mxu0 %v370_v51  ;;  %v496_v44 = vld [vmem:[%s1821_s9 + $0x398] sm:$0xff]  ;;  %v1482_v48 = vpack.c.bf16 %v619_v42, %v617_v40  ;;  %v493_v50 = vld [vmem:[%s1821_s9 + $0x380] sm:$0xff]  ;;  %v495_v51 = vld [vmem:[%s1821_s9 + $0x390] sm:$0xff] }
  0x85   : > { %1319 = vmatpush1.bf16.msra.mxu1 %v1318_v61  ;;  %v606_v61 = vld [vmem:[%s1821_s9 + $0x708] sm:$0xff]  ;;  %v624_v46 = vld [vmem:[%s1821_s9 + $0x798] sm:$0xff]  ;;  %v1358_v59 = vpack.c.bf16 %v495_v51, %v493_v50  ;;  %v637_v32 = vld [vmem:[%s1821_s9 + $0x800] sm:$0xff] }
  0x86   : > { %1447 = vmatpush1.bf16.msra.mxu0 %v1446_v62  ;;  %1321 = vmatprep.subr.bf16.mxu1 %v1320_v63  ;;  %v608_v62 = vld [vmem:[%s1821_s9 + $0x718] sm:$0xff]  ;;  %v1338_v63 = vpack.c.bf16 %v475_v55, %v473_v54  ;;  %v623_v54 = vld [vmem:[%s1821_s9 + $0x790] sm:$0xff]  ;;  %v498_v55 = vld [vmem:[%s1821_s9 + $0x3a8] sm:$0xff] }
  0x87   : > { %1449 = vmatprep.subr.bf16.mxu0 %v1448_v3  ;;  %v479_v3 = vld [vmem:[%s1821_s9 + $0x310] sm:$0xff]  ;;  %v1468_v5 = vpack.c.bf16 %v608_v62, %v606_v61  ;;  %v500_v56 = vld [vmem:[%s1821_s9 + $0x3b8] sm:$0xff]  ;;  %v497_v62 = vld [vmem:[%s1821_s9 + $0x3a0] sm:$0xff] }
  0x88   : > { %v628_v58 = vld [vmem:[%s1821_s9 + $0x7b8] sm:$0xff]  ;;  %v1360_v61 = vpack.c.bf16 %v500_v56, %v498_v55  ;;  %v643_v40 = vld [vmem:[%s1821_s9 + $0x830] sm:$0xff]  ;;  %v645_v50 = vld [vmem:[%s1821_s9 + $0x840] sm:$0xff] }
  0x89   : > { %1323 = vmatpush1.bf16.msra.mxu1 %v1322_v9  ;;  %v610_v9 = vld [vmem:[%s1821_s9 + $0x728] sm:$0xff]  ;;  %v504_v4 = vld [vmem:[%s1821_s9 + $0x3d8] sm:$0xff]  ;;  %v647_v51 = vld [vmem:[%s1821_s9 + $0x850] sm:$0xff] }
  0x8a   : > { %1451 = vmatpush1.bf16.msra.mxu0 %v1450_v10  ;;  %1325 = vmatprep.subr.bf16.mxu1 %v1324_v11  ;;  %v612_v10 = vld [vmem:[%s1821_s9 + $0x738] sm:$0xff]  ;;  %v1342_v11 = vpack.c.bf16 %v479_v3, %v477_v2  ;;  %v627_v2 = vld [vmem:[%s1821_s9 + $0x7b0] sm:$0xff]  ;;  %v502_v3 = vld [vmem:[%s1821_s9 + $0x3c8] sm:$0xff] }
  0x8b   : > { %1453 = vmatprep.subr.bf16.mxu0 %v1452_v15  ;;  %v483_v15 = vld [vmem:[%s1821_s9 + $0x330] sm:$0xff]  ;;  %v1472_v17 = vpack.c.bf16 %v612_v10, %v610_v9  ;;  %v632_v6 = vld [vmem:[%s1821_s9 + $0x7d8] sm:$0xff]  ;;  %v1364_v9 = vpack.c.bf16 %v504_v4, %v502_v3  ;;  %v501_v10 = vld [vmem:[%s1821_s9 + $0x3c0] sm:$0xff] }
  0x8c   : > { %v508_v16 = vld [vmem:[%s1821_s9 + $0x3f8] sm:$0xff]  ;;  %v649_v56 = vld [vmem:[%s1821_s9 + $0x860] sm:$0xff] }
  0x8d   : > { %1327 = vmatpush1.bf16.msra.mxu1 %v1326_v21  ;;  %v614_v21 = vld [vmem:[%s1821_s9 + $0x748] sm:$0xff]  ;;  %v636_v18 = vld [vmem:[%s1821_s9 + $0x7f8] sm:$0xff] }
  0x8e   : > { %1455 = vmatpush1.bf16.msra.mxu0 %v1454_v22  ;;  %1329 = vmatprep.subr.bf16.mxu1 %v1328_v23  ;;  %v616_v22 = vld [vmem:[%s1821_s9 + $0x758] sm:$0xff]  ;;  %v1346_v23 = vpack.c.bf16 %v483_v15, %v481_v14  ;;  %v631_v14 = vld [vmem:[%s1821_s9 + $0x7d0] sm:$0xff]  ;;  %v506_v15 = vld [vmem:[%s1821_s9 + $0x3e8] sm:$0xff] }
  0x8f   : > { %1457 = vmatprep.subr.bf16.mxu0 %v1456_v27  ;;  %v487_v27 = vld [vmem:[%s1821_s9 + $0x350] sm:$0xff]  ;;  %v1476_v29 = vpack.c.bf16 %v616_v22, %v614_v21  ;;  %v1368_v21 = vpack.c.bf16 %v508_v16, %v506_v15  ;;  %v505_v22 = vld [vmem:[%s1821_s9 + $0x3e0] sm:$0xff]  ;;  %v640_v28 = vld [vmem:[%s1821_s9 + $0x818] sm:$0xff] }
  0x90   : > { %v1350_v35 = vpack.c.bf16 %v487_v27, %v485_v26  ;;  %v635_v26 = vld [vmem:[%s1821_s9 + $0x7f0] sm:$0xff]  ;;  %v638_v27 = vld [vmem:[%s1821_s9 + $0x808] sm:$0xff] }
  0x91   : > { %1331 = vmatpush1.bf16.msra.mxu1 %v1330_v34  ;;  %v620_v34 = vld [vmem:[%s1821_s9 + $0x778] sm:$0xff]  ;;  %v1500_v31 = vpack.c.bf16 %v640_v28, %v638_v27 }
  0x92   : > { %1459 = vmatpush1.bf16.msra.mxu0 %v1458_v38  ;;  %1333 = vmatprep.subr.bf16.mxu1 %v1332_v39  ;;  %v489_v38 = vld [vmem:[%s1821_s9 + $0x360] sm:$0xff]  ;;  %v491_v39 = vld [vmem:[%s1821_s9 + $0x370] sm:$0xff]  ;;  %v1480_v41 = vpack.c.bf16 %v620_v34, %v618_v33  ;;  %v642_v34 = vld [vmem:[%s1821_s9 + $0x828] sm:$0xff] }
  0x93   : > { %1461 = vmatprep.subr.bf16.mxu0 %v1460_v43  ;;  %v494_v43 = vld [vmem:[%s1821_s9 + $0x388] sm:$0xff]  ;;  %v1354_v47 = vpack.c.bf16 %v491_v39, %v489_v38  ;;  %v639_v33 = vld [vmem:[%s1821_s9 + $0x810] sm:$0xff]  ;;  %v641_v39 = vld [vmem:[%s1821_s9 + $0x820] sm:$0xff] }
  0x94   : > { %v369_v38 = vld [vmem:[%s1833_s15 + $0x30] sm:$0xff] }
  0x95   : > { %1335 = vmatpush1.bf16.msra.mxu1 %v1334_v49  ;;  %v1356_v49 = vpack.c.bf16 %v496_v44, %v494_v43  ;;  %v646_v43 = vld [vmem:[%s1821_s9 + $0x848] sm:$0xff]  ;;  %v648_v44 = vld [vmem:[%s1821_s9 + $0x858] sm:$0xff] }
  0x96   : > { %1463 = vmatpush1.bf16.msra.mxu0 %v1462_v52  ;;  %1337 = vmatprep.subr.bf16.mxu1 %v1336_v53  ;;  %v621_v52 = vld [vmem:[%s1821_s9 + $0x780] sm:$0xff]  ;;  %v1484_v53 = vpack.c.bf16 %v624_v46, %v622_v45  ;;  %v374_v46 = vld [vmem:[%s1833_s15 + $0x58] sm:$0xff] }
  0x97   : > { %1465 = vmatprep.subr.bf16.mxu0 %v1464_v57  ;;  %v626_v57 = vld [vmem:[%s1821_s9 + $0x7a8] sm:$0xff]  ;;  %v1486_v60 = vpack.c.bf16 %v623_v54, %v621_v52  ;;  %v379_v45 = vld [vmem:[%s1833_s15 + $0x80] sm:$0xff]  ;;  %v1510_v54 = vpack.c.bf16 %v647_v51, %v645_v50 }
  0x98   : > { %v650_v52 = vld [vmem:[%s1821_s9 + $0x868] sm:$0xff] }
  0x99   : > { %1339 = vmatpush1.bf16.msra.mxu1 %v1338_v63  ;;  %v499_v63 = vld [vmem:[%s1821_s9 + $0x3b0] sm:$0xff] }
  0x9a   : > { %1467 = vmatpush1.bf16.msra.mxu0 %v1466_v0  ;;  %1341 = vmatprep.subr.bf16.mxu1 %v1340_v1  ;;  %v625_v0 = vld [vmem:[%s1821_s9 + $0x7a0] sm:$0xff]  ;;  %v1488_v1 = vpack.c.bf16 %v628_v58, %v626_v57  ;;  %v1362_v7 = vpack.c.bf16 %v499_v63, %v497_v62  ;;  %v651_v57 = vld [vmem:[%s1821_s9 + $0x870] sm:$0xff]  ;;  %v654_v58 = vld [vmem:[%s1821_s9 + $0x888] sm:$0xff] }
  0x9b   : > { %1469 = vmatprep.subr.bf16.mxu0 %v1468_v5  ;;  %v630_v5 = vld [vmem:[%s1821_s9 + $0x7c8] sm:$0xff]  ;;  %v1490_v8 = vpack.c.bf16 %v627_v2, %v625_v0  ;;  %v653_v63 = vld [vmem:[%s1821_s9 + $0x880] sm:$0xff]  ;;  %v655_v0 = vld [vmem:[%s1821_s9 + $0x890] sm:$0xff] }
  0x9c   : > { %v660_v2 = vld [vmem:[%s1821_s9 + $0x8b8] sm:$0xff]  ;;  %v1518_v3 = vpack.c.bf16 %v655_v0, %v653_v63 }
  0x9d   : > { %1343 = vmatpush1.bf16.msra.mxu1 %v1342_v11  ;;  %v503_v11 = vld [vmem:[%s1821_s9 + $0x3d0] sm:$0xff] }
  0x9e   : > { %1471 = vmatpush1.bf16.msra.mxu0 %v1470_v12  ;;  %1345 = vmatprep.subr.bf16.mxu1 %v1344_v13  ;;  %v629_v12 = vld [vmem:[%s1821_s9 + $0x7c0] sm:$0xff]  ;;  %v1492_v13 = vpack.c.bf16 %v632_v6, %v630_v5  ;;  %v1366_v19 = vpack.c.bf16 %v503_v11, %v501_v10  ;;  %v659_v6 = vld [vmem:[%s1821_s9 + $0x8b0] sm:$0xff] }
  0x9f   : > { %1473 = vmatprep.subr.bf16.mxu0 %v1472_v17  ;;  %v634_v17 = vld [vmem:[%s1821_s9 + $0x7e8] sm:$0xff]  ;;  %v1494_v20 = vpack.c.bf16 %v631_v14, %v629_v12  ;;  %v657_v5 = vld [vmem:[%s1821_s9 + $0x8a0] sm:$0xff]  ;;  %v663_v12 = vld [vmem:[%s1821_s9 + $0x8d0] sm:$0xff] }
  0xa0   : > { %v661_v11 = vld [vmem:[%s1821_s9 + $0x8c0] sm:$0xff]  ;;  %v668_v14 = vld [vmem:[%s1821_s9 + $0x8f8] sm:$0xff] }
  0xa1   : > { %1347 = vmatpush1.bf16.msra.mxu1 %v1346_v23  ;;  %v507_v23 = vld [vmem:[%s1821_s9 + $0x3f0] sm:$0xff]  ;;  %v1526_v15 = vpack.c.bf16 %v663_v12, %v661_v11 }
  0xa2   : > { %1475 = vmatpush1.bf16.msra.mxu0 %v1474_v24  ;;  %1349 = vmatprep.subr.bf16.mxu1 %v1348_v25  ;;  %v633_v24 = vld [vmem:[%s1821_s9 + $0x7e0] sm:$0xff]  ;;  %v1496_v25 = vpack.c.bf16 %v636_v18, %v634_v17  ;;  %v667_v18 = vld [vmem:[%s1821_s9 + $0x8f0] sm:$0xff] }
  0xa3   : > { %1477 = vmatprep.subr.bf16.mxu0 %v1476_v29  ;;  %v1370_v29 = vpack.c.bf16 %v507_v23, %v505_v22  ;;  %v1498_v30 = vpack.c.bf16 %v635_v26, %v633_v24  ;;  %v665_v17 = vld [vmem:[%s1821_s9 + $0x8e0] sm:$0xff] }
  0xa5   : > { %1351 = vmatpush1.bf16.msra.mxu1 %v1350_v35  ;;  %v644_v35 = vld [vmem:[%s1821_s9 + $0x838] sm:$0xff] }
  0xa6   : > { %1479 = vmatpush1.bf16.msra.mxu0 %v1478_v36  ;;  %1353 = vmatprep.subr.bf16.mxu1 %v1352_v37  ;;  %v365_v36 = vld [vmem:[%s1833_s15 + $0x10] sm:$0xff]  ;;  %v1502_v37 = vpack.c.bf16 %v639_v33, %v637_v32  ;;  %v1504_v42 = vpack.c.bf16 %v644_v35, %v642_v34  ;;  %v362_v35 = vld [vmem:[#allocation2 + $0x18] sm:$0xff] }
  0xa7   : > { %1481 = vmatprep.subr.bf16.mxu0 %v1480_v41  ;;  %v375_v41 = vld [vmem:[%s1833_s15 + $0x60] sm:$0xff] }
  0xa8   : > { %v359_v32 = vld [vmem:[#allocation2] sm:$0xff] }
  0xa9   : > { %1355 = vmatpush1.bf16.msra.mxu1 %v1354_v47  ;;  %v1506_v47 = vpack.c.bf16 %v643_v40, %v641_v39 }
  0xaa   : > { %1483 = vmatpush1.bf16.msra.mxu0 %v1482_v48  ;;  %1357 = vmatprep.subr.bf16.mxu1 %v1356_v49  ;;  %v378_v48 = vld [vmem:[%s1833_s15 + $0x78] sm:$0xff]  ;;  %v1508_v49 = vpack.c.bf16 %v648_v44, %v646_v43 }
  0xab   : > { %1485 = vmatprep.subr.bf16.mxu0 %v1484_v53  ;;  %v652_v53 = vld [vmem:[%s1821_s9 + $0x878] sm:$0xff] }
  0xac   : > { %v1512_v55 = vpack.c.bf16 %v652_v53, %v650_v52 }
  0xad   : > { %1359 = vmatpush1.bf16.msra.mxu1 %v1358_v59  ;;  %v656_v59 = vld [vmem:[%s1821_s9 + $0x898] sm:$0xff] }
  0xae   : > { %1487 = vmatpush1.bf16.msra.mxu0 %v1486_v60  ;;  %1361 = vmatprep.subr.bf16.mxu1 %v1360_v61  ;;  %v1682_v60 = vmov 0.0   ;;  %v1514_v61 = vpack.c.bf16 %v651_v57, %v649_v56  ;;  %v1516_v62 = vpack.c.bf16 %v656_v59, %v654_v58 }
  0xaf   : > { %1489 = vmatprep.subr.bf16.mxu0 %v1488_v1  ;;  %v658_v1 = vld [vmem:[%s1821_s9 + $0x8a8] sm:$0xff] }
  0xb0   : > { %v1520_v4 = vpack.c.bf16 %v660_v2, %v658_v1  ;;  %v1103_v1 = vld [vmem:[%s1826_s13 + $0x8] sm:$0xff] (!%p1238_p13)  ;;  %v1104_v2 = vld [vmem:[%s1826_s13 + $0x10] sm:$0xff] (!%p1238_p13) }
  0xb1   : > { %1363 = vmatpush1.bf16.msra.mxu1 %v1362_v7  ;;  %v662_v7 = vld [vmem:[%s1821_s9 + $0x8c8] sm:$0xff] }
  0xb2   : > { %1491 = vmatpush1.bf16.msra.mxu0 %v1490_v8  ;;  %1365 = vmatprep.subr.bf16.mxu1 %v1364_v9  ;;  %v664_v8 = vld [vmem:[%s1821_s9 + $0x8d8] sm:$0xff]  ;;  %v1522_v9 = vpack.c.bf16 %v659_v6, %v657_v5 }
  0xb3   : > { %1493 = vmatprep.subr.bf16.mxu0 %v1492_v13  ;;  %v1524_v10 = vpack.c.bf16 %v664_v8, %v662_v7  ;;  %v666_v13 = vld [vmem:[%s1821_s9 + $0x8e8] sm:$0xff] }
  0xb4   : > { %v1528_v16 = vpack.c.bf16 %v668_v14, %v666_v13 }
  0xb5   : > { %1367 = vmatpush1.bf16.msra.mxu1 %v1366_v19  ;;  %v1530_v19 = vpack.c.bf16 %v667_v18, %v665_v17 }
  0xb6   : > { %1495 = vmatpush1.bf16.msra.mxu0 %v1494_v20  ;;  %1369 = vmatprep.subr.bf16.mxu1 %v1368_v21  ;;  %v380_v20 = vld [vmem:[%s1833_s15 + $0x88] sm:$0xff]  ;;  %v371_v21 = vld [vmem:[%s1833_s15 + $0x40] sm:$0xff] }
  0xb7   : > { %1497 = vmatprep.subr.bf16.mxu0 %v1496_v25 }
  0xb9   : > { %1371 = vmatpush1.bf16.msra.mxu1 %v1370_v29 }
  0xba   : > { %1499 = vmatpush1.bf16.msra.mxu0 %v1498_v30  ;;  %1532 = vmatprep.subr.bf16.mxu1 %v1500_v31  ;;  %v361_v30 = vld [vmem:[#allocation2 + $0x10] sm:$0xff] }
  0xbb   : > { %1501 = vmatprep.subr.bf16.mxu0 %v1500_v31 }
  0xbc   : > { %811 = vmatmul.mubr.f32.vlgmr.msra.gmra.mrb[0].mxu1 %v365_v36 }
  0xbd   : > { %965 = vmatmul.mubr.f32.vlgmr.msra.gmra.mrb[0].mxu0 %v369_v38  ;;  %1540 = vmatpush1.bf16.msra.mxu1 %v1502_v37  ;;  %v360_v38 = vld [vmem:[#allocation2 + $0x8] sm:$0xff] }
  0xbe   : > { %1503 = vmatpush1.bf16.msra.mxu0 %v1502_v37  ;;  %816 = vmatprep.mubr.f32.mxu1 %v375_v41 }
  0xbf   : > { %970 = vmatprep.mubr.f32.mxu0 %v379_v45  ;;  %1505 = vmatprep.subr.bf16.mxu0 %v1504_v42 }
  0xc0   : > { %817 = vmatmul.mubr.f32.gmra.mrb[2].mxu1 %v374_v46  ;;  %1533 = vmatprep.subr.bf16.mxu1 %v1504_v42  ;;  %v1072_v46 = vlaneseq (!%p1238_p13) }
  0xc1   : > { %971 = vmatmul.mubr.f32.gmra.mrb[2].mxu0 %v378_v48  ;;  %1541 = vmatpush1.bf16.msra.mxu1 %v1506_v47  ;;  %v1070_v48 = vld [vmem:[%s2180_s2] sm:$0x3] (!%p1238_p13) }
  0xc2   : > { %1507 = vmatpush1.bf16.msra.mxu0 %v1506_v47  ;;  %1534 = vmatprep.subr.bf16.mxu1 %v1508_v49  ;;  %v1073_v47 = vshrl.u32 (!%p1238_p13), %v1072_v46, 7 }
  0xc3   : > { %1509 = vmatprep.subr.bf16.mxu0 %v1508_v49  ;;  %1041 = vmatprep.mubr.f32.mxu0 %v1682_v60  ;;  %v1086_v49 = vld [vmem:[%s2181_s3] sm:$0x3] (!%p1238_p13) }
  0xc4   : > { %1047 = vmatprep.mubr.f32.mxu1 %v1682_v60  ;;  %v1074_v51 = vsub.s32 (!%p1238_p13), 0, %v1073_v47  ;;  %v1078_v52 = vsub.s32 (!%p1238_p13), 1, %v1073_v47 }
  0xc5   : > { %1542 = vmatpush1.bf16.msra.mxu1 %v1510_v54 }
  0xc6   : > { %1511 = vmatpush1.bf16.msra.mxu0 %v1510_v54  ;;  %1535 = vmatprep.subr.bf16.mxu1 %v1512_v55  ;;  %v1075_v56 = vrot.slane (!%p1238_p13), %v1070_v48, %v1074_v51  ;;  %v1091_v57 = vrot.slane (!%p1238_p13), %v1086_v49, %v1074_v51  ;;  %v1079_v58 = vrot.slane (!%p1238_p13), %v1070_v48, %v1078_v52 }
  0xc7   : > { %1513 = vmatprep.subr.bf16.mxu0 %v1512_v55  ;;  %v1095_v59 = vrot.slane (!%p1238_p13), %v1086_v49, %v1078_v52 }
  0xc9   : > { %1543 = vmatpush1.bf16.msra.mxu1 %v1514_v61 }
  0xca   : > { %1515 = vmatpush1.bf16.msra.mxu0 %v1514_v61  ;;  %1536 = vmatprep.subr.bf16.mxu1 %v1516_v62  ;;  %v1102_v61 = vld [vmem:[%s1826_s13] sm:$0xff] (!%p1238_p13) }
  0xcb   : > { %1517 = vmatprep.subr.bf16.mxu0 %v1516_v62 }
  0xcd   : > { %1544 = vmatpush1.bf16.msra.mxu1 %v1518_v3 }
  0xce   : > { %1519 = vmatpush1.bf16.msra.mxu0 %v1518_v3  ;;  %1537 = vmatprep.subr.bf16.mxu1 %v1520_v4  ;;  %v1105_v3 = vld [vmem:[%s1826_s13 + $0x18] sm:$0xff] (!%p1238_p13) }
  0xcf   : > { %1521 = vmatprep.subr.bf16.mxu0 %v1520_v4 }
  0xd1   : > { %1545 = vmatpush1.bf16.msra.mxu1 %v1522_v9 }
  0xd2   : > { %1523 = vmatpush1.bf16.msra.mxu0 %v1522_v9  ;;  %1538 = vmatprep.subr.bf16.mxu1 %v1524_v10 }
  0xd3   : > { %1525 = vmatprep.subr.bf16.mxu0 %v1524_v10 }
  0xd5   : > { %1546 = vmatpush1.bf16.msra.mxu1 %v1526_v15 }
  0xd6   : > { %1527 = vmatpush1.bf16.msra.mxu0 %v1526_v15  ;;  %1539 = vmatprep.subr.bf16.mxu1 %v1528_v16 }
  0xd7   : > { %1529 = vmatprep.subr.bf16.mxu0 %v1528_v16 }
  0xd9   : > { %1547 = vmatpush1.bf16.msra.mxu1 %v1530_v19 }
  0xda   : > { %1531 = vmatpush1.bf16.msra.mxu0 %v1530_v19 }
  0xdc   : > { %1048 = vmatmul.mubr.f32.vlgmr.msra.gmra.mrb[4].mxu1 %v380_v20 }
  0xdd   : > { %1042 = vmatmul.mubr.f32.vlgmr.msra.gmra.mrb[0].mxu0 %v371_v21 }
 0x18f   : > { %v812_v22 = vpop.f32.mrb[0].mxu1 }
 0x190   : > { %v814_v23 = vpop.f32.mrb[1].mxu1 }
 0x193   : > { %v818_v24 = vpop.f32.mrb[2].mxu1 }
 0x194   : > { %v972_v25 = vpop.f32.mrb[2].mxu0  ;;  %v820_v26 = vpop.f32.mrb[3].mxu1 }
 0x195   : > { %v1550_v27 = vadd.f32 %v972_v25, %v818_v24  ;;  %v974_v28 = vpop.f32.mrb[3].mxu0 }
 0x196   : > { %v1552_v29 = vadd.f32 %v974_v28, %v820_v26 }
 0x1af   : > { %v1049_v31 = vpop.f32.mrb[4].mxu1 }
 0x1b0   : > { %v1043_v33 = vpop.f32.mrb[0].mxu0  ;;  %v1551_v34 = vadd.f32 %v1550_v27, %v1049_v31  ;;  %v1051_v36 = vpop.f32.mrb[5].mxu1  ;;  %1065 = sbr.rel (%p1238_p13) target bundleno = 455 (0x1c7), region = 71 }
 0x1b1   : > { %v1548_v37 = vadd.f32 %v1043_v33, %v812_v22  ;;  %v1045_v39 = vpop.f32.mrb[1].mxu0  ;;  %v1553_v40 = vadd.f32 %v1552_v29, %v1051_v36 }
 0x1b2   : > { %v1056_v41 = vadd.f32 %v1551_v34, %v361_v30  ;;  %v1549_v42 = vadd.f32 %v1045_v39, %v814_v23 }
 0x1b3   : > { %v1054_v43 = vadd.f32 %v1548_v37, %v359_v32  ;;  %v1057_v44 = vadd.f32 %v1553_v40, %v362_v35 }
 0x1b4   : > { %1060 = vst [vmem:[#allocation2 + $0x10] sm:$0xff] %v1056_v41  ;;  %v1055_v45 = vadd.f32 %v1549_v42, %v360_v38 }
 0x1b5   : > { %1058 = vst [vmem:[#allocation2] sm:$0xff] %v1054_v43  ;;  %1061 = vst [vmem:[#allocation2 + $0x18] sm:$0xff] %v1057_v44 }
 0x1b6   : > { %1059 = vst [vmem:[#allocation2 + $0x8] sm:$0xff] %v1055_v45 }
 0x1bb   : > { %v1068_v54 = vld [vmem:[#allocation2 + $0x10] sm:$0xff] }
 0x1bc   : > { %v1066_v50 = vld [vmem:[#allocation2] sm:$0xff]  ;;  %v1069_v55 = vld [vmem:[#allocation2 + $0x18] sm:$0xff]  ;;  %v1084_v63 = vmul.f32 %v1075_v56, %v1068_v54 }
 0x1bd   : > { %v1067_v53 = vld [vmem:[#allocation2 + $0x8] sm:$0xff]  ;;  %v1082_v60 = vmul.f32 %v1075_v56, %v1066_v50  ;;  %v1085_v0 = vmul.f32 %v1079_v58, %v1069_v55 }
 0x1be   : > { %v1083_v62 = vmul.f32 %v1079_v58, %v1067_v53  ;;  %v1100_v6 = vadd.f32 %v1091_v57, %v1084_v63 }
 0x1bf   : > { %v1098_v4 = vadd.f32 %v1091_v57, %v1082_v60  ;;  %v1101_v7 = vadd.f32 %v1095_v59, %v1085_v0 }
 0x1c0   : > { %v1099_v5 = vadd.f32 %v1095_v59, %v1083_v62  ;;  %v1108_v10 = vadd.f32 %v1104_v2, %v1100_v6 }
 0x1c1   : > { %v1106_v8 = vadd.f32 %v1102_v61, %v1098_v4  ;;  %v1109_v11 = vadd.f32 %v1105_v3, %v1101_v7 }
 0x1c2   : > { %v1107_v9 = vadd.f32 %v1103_v1, %v1099_v5  ;;  %v1112_v14 = vmax.f32 %v1108_v10, 0.0 }
 0x1c3   : > { %v1110_v12 = vmax.f32 %v1106_v8, 0.0  ;;  %v1113_v15 = vmax.f32 %v1109_v11, 0.0 }
 0x1c4   : > { %v1111_v13 = vmax.f32 %v1107_v9, 0.0  ;;  %1116 = vst [vmem:[%s1831_s21 + $0x10] sm:$0xff] %v1112_v14 }
 0x1c5   : > { %1114 = vst [vmem:[%s1831_s21] sm:$0xff] %v1110_v12  ;;  %1117 = vst [vmem:[%s1831_s21 + $0x18] sm:$0xff] %v1113_v15 }
 0x1c6   : > { %1115 = vst [vmem:[%s1831_s21 + $0x8] sm:$0xff] %v1111_v13 }
 0x1c7 PF: > { %s15_s24 = sadd.s32 1, %s1679_s24   ;;  %s2184_s18 = smov %s1659_s19 }
 0x1c8   : > { %p12_p0 = scmp.ge.s32.totalorder %s15_s24, 6   ;;  %s2185_s19 = smov %s1764_s6 }
 0x1c9   : > { %s2186_s20 = smov %s1671_s22  ;;  %s2187_s21 = smov %s1675_s23 }
 0x1ca   : > { %s2188_s22 = smov %s2191_s25  ;;  %s2189_s23 = smov %s2195_s26 }
 0x1cb   :  { %14 = sbr.rel (!%p12_p0) target bundleno = 4 (0x4), region = 112 }

</bundles_post_ra>
